<compile_context>
chip_gen: v6e
topology: v6e:2x2x1
jax: 0.10.0
libtpu: 0.0.40
codegen_flags: <defaults>
</compile_context>

<pallas_src>
import jax
import jax.numpy as jnp
from jax.experimental import pallas as pl
from jax.experimental.pallas import tpu as pltpu


# Tap offsets (dh, dw), shared by the kernel (window reads) and the wrapper
# (per-tap weight packing).  Tap 0 is the merged centre tap (conv1 1x1 + conv2
# centre + conv3 centre); taps 1..8 are conv2's off-centre 3x3 taps; taps 9..16
# are conv3's off-centre dilated (dilation=2) taps.
_TAPS = (
    ((0, 0),)
    + tuple((dh, dw) for dh in (-1, 0, 1) for dw in (-1, 0, 1) if (dh, dw) != (0, 0))
    + tuple((dh, dw) for dh in (-2, 0, 2) for dw in (-2, 0, 2) if (dh, dw) != (0, 0))
)
_QUADS = ((0, 0), (0, 1), (1, 0), (1, 1))   # 2x2 max-pool quadrants (a, b)

_NEG_SLOPE = 0.01  # nn.LeakyReLU default negative_slope


# --------------------------------------------------------------------------- #
# Kernel
# --------------------------------------------------------------------------- #
def _make_atp_kernel(Sh, Wo, Cin, Cout):
    """Sh = pooled output rows per strip, Wo = pooled output cols."""
    M = Sh * Wo

    def kernel(xs_ref, w_ref, b_ref, o_ref):
        # xs_ref: (2, 2, Sh+2, Wo+2, Cin)  halo'd quadrant-plane strip (bf16)
        # w_ref : (17, Cin, Cout)          softmax-mixed per-tap weights (bf16)
        # b_ref : (1, Cout)                softmax-mixed bias (f32)
        # o_ref : (Sh, Wo, Cout)           pooled output strip
        #
        # For pooling quadrant (a, b), tap (dh, dw) and output pixel (i, j):
        #   value = xpad[2 + 2i + a + dh, 2 + 2j + b + dw]
        #         = xq[(a+dh) % 2, (b+dw) % 2, i + (2+a+dh)//2, j + (2+b+dw)//2]
        # i.e. a dense stride-1 slice of one quadrant plane.
        acc = [None, None, None, None]            # per-quadrant f32 accumulators
        for t, (dh, dw) in enumerate(_TAPS):
            w_t = w_ref[t]                        # (Cin, Cout), reused by 4 quadrants
            for qi, (pa, pb) in enumerate(_QUADS):
                c = (pa + dh) % 2
                d = (pb + dw) % 2
                u0 = (2 + pa + dh) // 2           # in {0, 1, 2}
                v0 = (2 + pb + dw) // 2           # in {0, 1, 2}
                win = xs_ref[c, d, u0:u0 + Sh, v0:v0 + Wo, :].reshape(M, Cin)
                p = jnp.dot(win, w_t, preferred_element_type=jnp.float32)
                acc[qi] = p if acc[qi] is None else acc[qi] + p

        # MaxPool2d(2, 2) first (commutes with bias add; LeakyReLU is monotone),
        # so the epilogue touches (M, Cout) instead of (4*M, Cout).
        pooled = jnp.maximum(jnp.maximum(acc[0], acc[1]),
                             jnp.maximum(acc[2], acc[3]))
        y = pooled + b_ref[...]
        # self.dropout(x) discards its result in the reference forward -> no-op.
        y = jnp.where(y > 0, y, _NEG_SLOPE * y)   # LeakyReLU
        o_ref[...] = y.reshape(Sh, Wo, Cout).astype(o_ref.dtype)

    return kernel


# --------------------------------------------------------------------------- #
# Parameter packing (softmax mixing folded into the conv weights — linear)
# --------------------------------------------------------------------------- #
def _grouped_to_dense(w_oihw, groups):
    """PyTorch OIHW (grouped) conv weight -> dense (kH*kW, Cin, Cout) block-diag weight."""
    Cout, Cin_g, kH, kW = w_oihw.shape
    Cin = Cin_g * groups
    out_per = Cout // groups
    dense = jnp.zeros((kH, kW, Cin, Cout), jnp.float32)
    for g in range(groups):
        blk = jnp.transpose(w_oihw[g * out_per:(g + 1) * out_per], (2, 3, 1, 0))
        dense = dense.at[:, :, g * Cin_g:(g + 1) * Cin_g,
                         g * out_per:(g + 1) * out_per].set(blk)
    return dense.reshape(kH * kW, Cin, Cout)


def _pack_params(params, group_size):
    """Fold softmax mixing + centre-tap merge into per-tap weights and one bias."""
    w1, b1 = params["w1"], params["b1"]
    w2, b2 = params["w2"], params["b2"]
    w3, b3 = params["w3"], params["b3"]
    Cout = w1.shape[0]

    sm = jax.nn.softmax(params["mix"].astype(jnp.float32))          # (3,)

    w1d = _grouped_to_dense(w1, group_size)                         # (1, Cin, Cout)
    w2d = _grouped_to_dense(w2, group_size)                         # (9, Cin, Cout)
    w3d = _grouped_to_dense(w3, 1)                                  # (9, Cin, Cout)

    off = (0, 1, 2, 3, 5, 6, 7, 8)                                  # 3x3 taps excl. centre
    center = sm[0] * w1d[0] + sm[1] * w2d[4] + sm[2] * w3d[4]
    blocks = [center] + [sm[1] * w2d[k] for k in off] + [sm[2] * w3d[k] for k in off]
    w_taps = jnp.stack(blocks, axis=0)                               # (17, Cin, Cout)
    b_mix = (sm[0] * b1 + sm[1] * b2 + sm[2] * b3).reshape(1, Cout)
    return w_taps, b_mix


# --------------------------------------------------------------------------- #
# VMEM accounting / strip sizing
# --------------------------------------------------------------------------- #
def _phys_vmem_bytes():
    # v5e / v6e: 128 MiB VMEM per core; v7x: 64 MiB.  Query when available and
    # fall back to the conservative v7x figure.
    try:
        info = pltpu.get_tpu_info()
        cap = int(getattr(info, "vmem_capacity_bytes", 0))
        if cap > 0:
            return cap
    except Exception:
        pass
    return 64 << 20


def _per_step_vmem_bytes(Sh, Wo, Cin, Cout, act_isz, out_isz):
    Wop = Wo + 2
    n_taps = len(_TAPS)
    b_in = 2 * 2 * (Sh + 2) * Wop * Cin * act_isz        # halo'd quadrant-plane strip
    b_w = n_taps * Cin * Cout * act_isz                  # per-tap weights
    b_b = Cout * 4                                       # bias
    b_out = Sh * Wo * Cout * out_isz                     # output strip
    b_acc = 4 * Sh * Wo * Cout * 4                       # 4 f32 quadrant accumulators
    b_tmp = 4 * Sh * Wo * max(Cin, Cout) * 4             # window / relayout temporaries
    # inputs & outputs double-buffered by the pipeline; weights counted x2 too
    # until they are single-buffered (see TODO(synk) above).
    return 2 * (b_in + b_w + b_b + b_out) + b_acc + b_tmp


def _pick_strip_ho(Ho, Wo, Cin, Cout, act_isz, out_isz, budget):
    divisors = [d for d in range(1, Ho + 1) if Ho % d == 0]
    best = divisors[0]
    for d in divisors:                                   # ascending -> keep largest that fits
        if _per_step_vmem_bytes(d, Wo, Cin, Cout, act_isz, out_isz) <= budget:
            best = d
    return best


# --------------------------------------------------------------------------- #
# Wrapper
# --------------------------------------------------------------------------- #
def atp_block_forward(x_nchw, params, group_size, *, strip_ho=None,
                      compute_dtype=jnp.bfloat16, out_dtype=jnp.float32):
    B, Cin, H, W = x_nchw.shape
    assert H % 2 == 0 and W % 2 == 0, "MaxPool2d(2,2) needs even H, W"
    Cout = params["w1"].shape[0]
    assert Cin % group_size == 0 and Cout % group_size == 0
    Ho, Wo = H // 2, W // 2
    Wop = Wo + 2
    act_isz = jnp.dtype(compute_dtype).itemsize
    out_isz = jnp.dtype(out_dtype).itemsize

    # glue: fold softmax mixing into per-tap weights / one bias (mixing is linear)
    w_taps, b_mix = _pack_params(params, group_size)

    # glue: NCHW -> NHWC (channels -> lanes), pad 2 (covers conv2 pad=1 and the
    # dilated conv3 pad=2), space-to-depth into 2x2 quadrant planes so every
    # tap/quadrant read in the kernel is a dense stride-1 slice.
    x_nhwc = jnp.transpose(x_nchw, (0, 2, 3, 1)).astype(compute_dtype)
    xpad = jnp.pad(x_nhwc, ((0, 0), (2, 2), (2, 2), (0, 0)))           # (B, H+4, W+4, Cin)
    xq = xpad.reshape(B, Ho + 2, 2, Wop, 2, Cin).transpose(0, 2, 4, 1, 3, 5)
    # xq[b, c, d, u, v, :] == xpad[b, 2u+c, 2v+d, :]   shape (B, 2, 2, Ho+2, Wop, Cin)

    # strip sizing per TPU generation
    phys = _phys_vmem_bytes()
    budget = max(phys - (8 << 20), 16 << 20)
    if strip_ho is None:
        strip_ho = _pick_strip_ho(Ho, Wo, Cin, Cout, act_isz, out_isz, budget)
    assert Ho % strip_ho == 0, "strip_ho must divide H//2"
    S = Ho // strip_ho

    # halo'd strips (each strip carries its own 2 extra plane rows so plain
    # Blocked BlockSpecs work; duplicated halo rows are 2/strip_ho of the input)
    strips = jnp.stack(
        [xq[:, :, :, s * strip_ho: s * strip_ho + strip_ho + 2] for s in range(S)],
        axis=1)                                   # (B, S, 2, 2, strip_ho+2, Wop, Cin)

    need = _per_step_vmem_bytes(strip_ho, Wo, Cin, Cout, act_isz, out_isz)
    vmem_limit = int(max(min(need + (8 << 20), phys - (4 << 20)), 16 << 20))

    kernel = _make_atp_kernel(strip_ho, Wo, Cin, Cout)

    out_nhwc = pl.pallas_call(
        kernel,
        out_shape=jax.ShapeDtypeStruct((B, Ho, Wo, Cout), out_dtype),
        grid_spec=pltpu.PrefetchScalarGridSpec(
            num_scalar_prefetch=0,
            grid=(B, S),
            in_specs=[
                pl.BlockSpec((None, None, 2, 2, strip_ho + 2, Wop, Cin),
                             lambda b, s: (b, s, 0, 0, 0, 0, 0)),
                pl.BlockSpec((len(_TAPS), Cin, Cout), lambda b, s: (0, 0, 0)),
                pl.BlockSpec((1, Cout), lambda b, s: (0, 0)),
            ],
            out_specs=pl.BlockSpec((None, strip_ho, Wo, Cout),
                                   lambda b, s: (b, s, 0, 0)),
        ),
        compiler_params=pltpu.CompilerParams(
            dimension_semantics=("parallel", "parallel"),   # batch x strips across cores
            vmem_limit_bytes=vmem_limit,
        ),
    )(strips, w_taps.astype(compute_dtype), b_mix.astype(jnp.float32))

    # NHWC -> NCHW to match the PyTorch module's output convention
    return jnp.transpose(out_nhwc, (0, 3, 1, 2))


# --------------------------------------------------------------------------- #
# Pure-JAX reference (f32, NCHW, eval mode)
# --------------------------------------------------------------------------- #
def _ref_forward(x, params, group_size):
    def conv(x, w, b, pad, dil, groups):
        y = jax.lax.conv_general_dilated(
            x, w, window_strides=(1, 1),
            padding=((pad, pad), (pad, pad)),
            rhs_dilation=(dil, dil),
            feature_group_count=groups,
            dimension_numbers=("NCHW", "OIHW", "NCHW"))
        return y + b[None, :, None, None]

    x1 = conv(x, params["w1"], params["b1"], 0, 1, group_size)
    x2 = conv(x, params["w2"], params["b2"], 1, 1, group_size)
    x3 = conv(x, params["w3"], params["b3"], 2, 2, 1)
    sm = jax.nn.softmax(params["mix"])
    y = x1 * sm[0] + x2 * sm[1] + x3 * sm[2]
    y = jnp.where(y > 0, y, _NEG_SLOPE * y)
    B, C, H, W = y.shape
    return y.reshape(B, C, H // 2, 2, W // 2, 2).max(axis=(3, 5))


if __name__ == "__main__":
    B, G, Cin, Cout, H, W = 2, 2, 4, 4, 16, 16
    key = jax.random.PRNGKey(0)
    ks = jax.random.split(key, 8)
    params = {
        "w1": 0.2 * jax.random.normal(ks[0], (Cout, Cin // G, 1, 1), jnp.float32),
        "b1": 0.1 * jax.random.normal(ks[1], (Cout,), jnp.float32),
        "w2": 0.2 * jax.random.normal(ks[2], (Cout, Cin // G, 3, 3), jnp.float32),
        "b2": 0.1 * jax.random.normal(ks[3], (Cout,), jnp.float32),
        "w3": 0.2 * jax.random.normal(ks[4], (Cout, Cin, 3, 3), jnp.float32),
        "b3": 0.1 * jax.random.normal(ks[5], (Cout,), jnp.float32),
        "mix": jax.random.normal(ks[6], (3,), jnp.float32),
    }
    x = jax.random.normal(ks[7], (B, Cin, H, W), jnp.float32)

    ref = _ref_forward(x, params, G)

    # auto strip size (whole image per strip at this toy size) ...
    out_auto = jax.block_until_ready(atp_block_forward(x, params, G))
    # ... and an explicitly tiled run (2 halo'd strips) to exercise the strip path
    out_tiled = jax.block_until_ready(atp_block_forward(x, params, G, strip_ho=4))

    # Tolerance reflects bf16 MXU operands (activations + weights) vs. the f32
    # reference; accumulation is f32, so errors stay at the bf16-rounding level.
    for name, out in (("auto", out_auto), ("tiled", out_tiled)):
        assert out.shape == (B, Cout, H // 2, W // 2), (name, out.shape)
        if not jnp.allclose(out, ref, atol=5e-2, rtol=5e-2):
            max_err = float(jnp.max(jnp.abs(out - ref)))
            raise AssertionError(
                f"Pallas kernel ({name}) mismatch vs JAX reference, max_err={max_err}")
    print("KERNEL_OK")
</pallas_src>

<mosaic_0001>
module attributes {stable_mosaic.version = 11 : i64} {
  func.func @kernel(%arg0: i32, %arg1: i32, %arg2: memref<1x1x2x2x10x10x4xbf16, #tpu.memory_space<vmem>>, %arg3: memref<17x4x4xbf16, #tpu.memory_space<vmem>>, %arg4: memref<1x4xf32, #tpu.memory_space<vmem>>, %arg5: memref<1x8x8x4xf32, #tpu.memory_space<vmem>>) attributes {dimension_semantics = [#tpu.dimension_semantics<parallel>, #tpu.dimension_semantics<parallel>], iteration_bounds = array<i64: 2, 1>, scalar_prefetch = 0 : i64, scratch_operands = 0 : i64, tpu.core_type = #tpu.core_type<tc>, window_params = [{transform_indices = @transform_0, window_bounds = array<i64: 1, 1, 2, 2, 10, 10, 4>}, {pipeline_mode = #tpu.pipeline_mode<synchronous>, transform_indices = @transform_1, window_bounds = array<i64: 17, 4, 4>}, {pipeline_mode = #tpu.pipeline_mode<synchronous>, transform_indices = @transform_2, window_bounds = array<i64: 1, 4>}, {transform_indices = @transform_3, window_bounds = array<i64: 1, 8, 8, 4>}]} {
    %c0 = arith.constant 0 : index
    %c0_0 = arith.constant 0 : index
    %c0_1 = arith.constant 0 : index
    %0 = vector.load %arg3[%c0, %c0_0, %c0_1] : memref<17x4x4xbf16, #tpu.memory_space<vmem>>, vector<1x4x4xbf16>
    %1 = vector.shape_cast %0 : vector<1x4x4xbf16> to vector<4x4xbf16>
    %c0_2 = arith.constant 0 : index
    %c0_3 = arith.constant 0 : index
    %c0_4 = arith.constant 0 : index
    %c0_5 = arith.constant 0 : index
    %c1 = arith.constant 1 : index
    %c1_6 = arith.constant 1 : index
    %c0_7 = arith.constant 0 : index
    %2 = vector.load %arg2[%c0_2, %c0_3, %c0_4, %c0_5, %c1, %c1_6, %c0_7] : memref<1x1x2x2x10x10x4xbf16, #tpu.memory_space<vmem>>, vector<1x1x1x1x8x8x4xbf16>
    %3 = vector.shape_cast %2 : vector<1x1x1x1x8x8x4xbf16> to vector<8x8x4xbf16>
    %4 = vector.shape_cast %3 : vector<8x8x4xbf16> to vector<64x4xbf16>
    %cst = arith.constant dense<0.000000e+00> : vector<64x4xf32>
    %5 = tpu.matmul %4, %1, %cst {dimension_numbers = #tpu.dot_dimension_numbers<[1], [0], [0], [1], [0, 0, 1, 1], [], []>} : vector<64x4xbf16>, vector<4x4xbf16>, vector<64x4xf32> -> vector<64x4xf32>
    %c0_8 = arith.constant 0 : index
    %c0_9 = arith.constant 0 : index
    %c0_10 = arith.constant 0 : index
    %c1_11 = arith.constant 1 : index
    %c1_12 = arith.constant 1 : index
    %c1_13 = arith.constant 1 : index
    %c0_14 = arith.constant 0 : index
    %6 = vector.load %arg2[%c0_8, %c0_9, %c0_10, %c1_11, %c1_12, %c1_13, %c0_14] : memref<1x1x2x2x10x10x4xbf16, #tpu.memory_space<vmem>>, vector<1x1x1x1x8x8x4xbf16>
    %7 = vector.shape_cast %6 : vector<1x1x1x1x8x8x4xbf16> to vector<8x8x4xbf16>
    %8 = vector.shape_cast %7 : vector<8x8x4xbf16> to vector<64x4xbf16>
    %cst_15 = arith.constant dense<0.000000e+00> : vector<64x4xf32>
    %9 = tpu.matmul %8, %1, %cst_15 {dimension_numbers = #tpu.dot_dimension_numbers<[1], [0], [0], [1], [0, 0, 1, 1], [], []>} : vector<64x4xbf16>, vector<4x4xbf16>, vector<64x4xf32> -> vector<64x4xf32>
    %c0_16 = arith.constant 0 : index
    %c0_17 = arith.constant 0 : index
    %c1_18 = arith.constant 1 : index
    %c0_19 = arith.constant 0 : index
    %c1_20 = arith.constant 1 : index
    %c1_21 = arith.constant 1 : index
    %c0_22 = arith.constant 0 : index
    %10 = vector.load %arg2[%c0_16, %c0_17, %c1_18, %c0_19, %c1_20, %c1_21, %c0_22] : memref<1x1x2x2x10x10x4xbf16, #tpu.memory_space<vmem>>, vector<1x1x1x1x8x8x4xbf16>
    %11 = vector.shape_cast %10 : vector<1x1x1x1x8x8x4xbf16> to vector<8x8x4xbf16>
    %12 = vector.shape_cast %11 : vector<8x8x4xbf16> to vector<64x4xbf16>
    %cst_23 = arith.constant dense<0.000000e+00> : vector<64x4xf32>
    %13 = tpu.matmul %12, %1, %cst_23 {dimension_numbers = #tpu.dot_dimension_numbers<[1], [0], [0], [1], [0, 0, 1, 1], [], []>} : vector<64x4xbf16>, vector<4x4xbf16>, vector<64x4xf32> -> vector<64x4xf32>
    %c0_24 = arith.constant 0 : index
    %c0_25 = arith.constant 0 : index
    %c1_26 = arith.constant 1 : index
    %c1_27 = arith.constant 1 : index
    %c1_28 = arith.constant 1 : index
    %c1_29 = arith.constant 1 : index
    %c0_30 = arith.constant 0 : index
    %14 = vector.load %arg2[%c0_24, %c0_25, %c1_26, %c1_27, %c1_28, %c1_29, %c0_30] : memref<1x1x2x2x10x10x4xbf16, #tpu.memory_space<vmem>>, vector<1x1x1x1x8x8x4xbf16>
    %15 = vector.shape_cast %14 : vector<1x1x1x1x8x8x4xbf16> to vector<8x8x4xbf16>
    %16 = vector.shape_cast %15 : vector<8x8x4xbf16> to vector<64x4xbf16>
    %cst_31 = arith.constant dense<0.000000e+00> : vector<64x4xf32>
    %17 = tpu.matmul %16, %1, %cst_31 {dimension_numbers = #tpu.dot_dimension_numbers<[1], [0], [0], [1], [0, 0, 1, 1], [], []>} : vector<64x4xbf16>, vector<4x4xbf16>, vector<64x4xf32> -> vector<64x4xf32>
    %c1_32 = arith.constant 1 : index
    %c0_33 = arith.constant 0 : index
    %c0_34 = arith.constant 0 : index
    %18 = vector.load %arg3[%c1_32, %c0_33, %c0_34] : memref<17x4x4xbf16, #tpu.memory_space<vmem>>, vector<1x4x4xbf16>
    %19 = vector.shape_cast %18 : vector<1x4x4xbf16> to vector<4x4xbf16>
    %c0_35 = arith.constant 0 : index
    %c0_36 = arith.constant 0 : index
    %c1_37 = arith.constant 1 : index
    %c1_38 = arith.constant 1 : index
    %c0_39 = arith.constant 0 : index
    %c0_40 = arith.constant 0 : index
    %c0_41 = arith.constant 0 : index
    %20 = vector.load %arg2[%c0_35, %c0_36, %c1_37, %c1_38, %c0_39, %c0_40, %c0_41] : memref<1x1x2x2x10x10x4xbf16, #tpu.memory_space<vmem>>, vector<1x1x1x1x8x8x4xbf16>
    %21 = vector.shape_cast %20 : vector<1x1x1x1x8x8x4xbf16> to vector<8x8x4xbf16>
    %22 = vector.shape_cast %21 : vector<8x8x4xbf16> to vector<64x4xbf16>
    %cst_42 = arith.constant dense<0.000000e+00> : vector<64x4xf32>
    %23 = tpu.matmul %22, %19, %cst_42 {dimension_numbers = #tpu.dot_dimension_numbers<[1], [0], [0], [1], [0, 0, 1, 1], [], []>} : vector<64x4xbf16>, vector<4x4xbf16>, vector<64x4xf32> -> vector<64x4xf32>
    %24 = arith.addf %5, %23 : vector<64x4xf32>
    %c0_43 = arith.constant 0 : index
    %c0_44 = arith.constant 0 : index
    %c1_45 = arith.constant 1 : index
    %c0_46 = arith.constant 0 : index
    %c0_47 = arith.constant 0 : index
    %c1_48 = arith.constant 1 : index
    %c0_49 = arith.constant 0 : index
    %25 = vector.load %arg2[%c0_43, %c0_44, %c1_45, %c0_46, %c0_47, %c1_48, %c0_49] : memref<1x1x2x2x10x10x4xbf16, #tpu.memory_space<vmem>>, vector<1x1x1x1x8x8x4xbf16>
    %26 = vector.shape_cast %25 : vector<1x1x1x1x8x8x4xbf16> to vector<8x8x4xbf16>
    %27 = vector.shape_cast %26 : vector<8x8x4xbf16> to vector<64x4xbf16>
    %cst_50 = arith.constant dense<0.000000e+00> : vector<64x4xf32>
    %28 = tpu.matmul %27, %19, %cst_50 {dimension_numbers = #tpu.dot_dimension_numbers<[1], [0], [0], [1], [0, 0, 1, 1], [], []>} : vector<64x4xbf16>, vector<4x4xbf16>, vector<64x4xf32> -> vector<64x4xf32>
    %29 = arith.addf %9, %28 : vector<64x4xf32>
    %c0_51 = arith.constant 0 : index
    %c0_52 = arith.constant 0 : index
    %c0_53 = arith.constant 0 : index
    %c1_54 = arith.constant 1 : index
    %c1_55 = arith.constant 1 : index
    %c0_56 = arith.constant 0 : index
    %c0_57 = arith.constant 0 : index
    %30 = vector.load %arg2[%c0_51, %c0_52, %c0_53, %c1_54, %c1_55, %c0_56, %c0_57] : memref<1x1x2x2x10x10x4xbf16, #tpu.memory_space<vmem>>, vector<1x1x1x1x8x8x4xbf16>
    %31 = vector.shape_cast %30 : vector<1x1x1x1x8x8x4xbf16> to vector<8x8x4xbf16>
    %32 = vector.shape_cast %31 : vector<8x8x4xbf16> to vector<64x4xbf16>
    %cst_58 = arith.constant dense<0.000000e+00> : vector<64x4xf32>
    %33 = tpu.matmul %32, %19, %cst_58 {dimension_numbers = #tpu.dot_dimension_numbers<[1], [0], [0], [1], [0, 0, 1, 1], [], []>} : vector<64x4xbf16>, vector<4x4xbf16>, vector<64x4xf32> -> vector<64x4xf32>
    %34 = arith.addf %13, %33 : vector<64x4xf32>
    %c0_59 = arith.constant 0 : index
    %c0_60 = arith.constant 0 : index
    %c0_61 = arith.constant 0 : index
    %c0_62 = arith.constant 0 : index
    %c1_63 = arith.constant 1 : index
    %c1_64 = arith.constant 1 : index
    %c0_65 = arith.constant 0 : index
    %35 = vector.load %arg2[%c0_59, %c0_60, %c0_61, %c0_62, %c1_63, %c1_64, %c0_65] : memref<1x1x2x2x10x10x4xbf16, #tpu.memory_space<vmem>>, vector<1x1x1x1x8x8x4xbf16>
    %36 = vector.shape_cast %35 : vector<1x1x1x1x8x8x4xbf16> to vector<8x8x4xbf16>
    %37 = vector.shape_cast %36 : vector<8x8x4xbf16> to vector<64x4xbf16>
    %cst_66 = arith.constant dense<0.000000e+00> : vector<64x4xf32>
    %38 = tpu.matmul %37, %19, %cst_66 {dimension_numbers = #tpu.dot_dimension_numbers<[1], [0], [0], [1], [0, 0, 1, 1], [], []>} : vector<64x4xbf16>, vector<4x4xbf16>, vector<64x4xf32> -> vector<64x4xf32>
    %39 = arith.addf %17, %38 : vector<64x4xf32>
    %c2 = arith.constant 2 : index
    %c0_67 = arith.constant 0 : index
    %c0_68 = arith.constant 0 : index
    %40 = vector.load %arg3[%c2, %c0_67, %c0_68] : memref<17x4x4xbf16, #tpu.memory_space<vmem>>, vector<1x4x4xbf16>
    %41 = vector.shape_cast %40 : vector<1x4x4xbf16> to vector<4x4xbf16>
    %c0_69 = arith.constant 0 : index
    %c0_70 = arith.constant 0 : index
    %c1_71 = arith.constant 1 : index
    %c0_72 = arith.constant 0 : index
    %c0_73 = arith.constant 0 : index
    %c1_74 = arith.constant 1 : index
    %c0_75 = arith.constant 0 : index
    %42 = vector.load %arg2[%c0_69, %c0_70, %c1_71, %c0_72, %c0_73, %c1_74, %c0_75] : memref<1x1x2x2x10x10x4xbf16, #tpu.memory_space<vmem>>, vector<1x1x1x1x8x8x4xbf16>
    %43 = vector.shape_cast %42 : vector<1x1x1x1x8x8x4xbf16> to vector<8x8x4xbf16>
    %44 = vector.shape_cast %43 : vector<8x8x4xbf16> to vector<64x4xbf16>
    %cst_76 = arith.constant dense<0.000000e+00> : vector<64x4xf32>
    %45 = tpu.matmul %44, %41, %cst_76 {dimension_numbers = #tpu.dot_dimension_numbers<[1], [0], [0], [1], [0, 0, 1, 1], [], []>} : vector<64x4xbf16>, vector<4x4xbf16>, vector<64x4xf32> -> vector<64x4xf32>
    %46 = arith.addf %24, %45 : vector<64x4xf32>
    %c0_77 = arith.constant 0 : index
    %c0_78 = arith.constant 0 : index
    %c1_79 = arith.constant 1 : index
    %c1_80 = arith.constant 1 : index
    %c0_81 = arith.constant 0 : index
    %c1_82 = arith.constant 1 : index
    %c0_83 = arith.constant 0 : index
    %47 = vector.load %arg2[%c0_77, %c0_78, %c1_79, %c1_80, %c0_81, %c1_82, %c0_83] : memref<1x1x2x2x10x10x4xbf16, #tpu.memory_space<vmem>>, vector<1x1x1x1x8x8x4xbf16>
    %48 = vector.shape_cast %47 : vector<1x1x1x1x8x8x4xbf16> to vector<8x8x4xbf16>
    %49 = vector.shape_cast %48 : vector<8x8x4xbf16> to vector<64x4xbf16>
    %cst_84 = arith.constant dense<0.000000e+00> : vector<64x4xf32>
    %50 = tpu.matmul %49, %41, %cst_84 {dimension_numbers = #tpu.dot_dimension_numbers<[1], [0], [0], [1], [0, 0, 1, 1], [], []>} : vector<64x4xbf16>, vector<4x4xbf16>, vector<64x4xf32> -> vector<64x4xf32>
    %51 = arith.addf %29, %50 : vector<64x4xf32>
    %c0_85 = arith.constant 0 : index
    %c0_86 = arith.constant 0 : index
    %c0_87 = arith.constant 0 : index
    %c0_88 = arith.constant 0 : index
    %c1_89 = arith.constant 1 : index
    %c1_90 = arith.constant 1 : index
    %c0_91 = arith.constant 0 : index
    %52 = vector.load %arg2[%c0_85, %c0_86, %c0_87, %c0_88, %c1_89, %c1_90, %c0_91] : memref<1x1x2x2x10x10x4xbf16, #tpu.memory_space<vmem>>, vector<1x1x1x1x8x8x4xbf16>
    %53 = vector.shape_cast %52 : vector<1x1x1x1x8x8x4xbf16> to vector<8x8x4xbf16>
    %54 = vector.shape_cast %53 : vector<8x8x4xbf16> to vector<64x4xbf16>
    %cst_92 = arith.constant dense<0.000000e+00> : vector<64x4xf32>
    %55 = tpu.matmul %54, %41, %cst_92 {dimension_numbers = #tpu.dot_dimension_numbers<[1], [0], [0], [1], [0, 0, 1, 1], [], []>} : vector<64x4xbf16>, vector<4x4xbf16>, vector<64x4xf32> -> vector<64x4xf32>
    %56 = arith.addf %34, %55 : vector<64x4xf32>
    %c0_93 = arith.constant 0 : index
    %c0_94 = arith.constant 0 : index
    %c0_95 = arith.constant 0 : index
    %c1_96 = arith.constant 1 : index
    %c1_97 = arith.constant 1 : index
    %c1_98 = arith.constant 1 : index
    %c0_99 = arith.constant 0 : index
    %57 = vector.load %arg2[%c0_93, %c0_94, %c0_95, %c1_96, %c1_97, %c1_98, %c0_99] : memref<1x1x2x2x10x10x4xbf16, #tpu.memory_space<vmem>>, vector<1x1x1x1x8x8x4xbf16>
    %58 = vector.shape_cast %57 : vector<1x1x1x1x8x8x4xbf16> to vector<8x8x4xbf16>
    %59 = vector.shape_cast %58 : vector<8x8x4xbf16> to vector<64x4xbf16>
    %cst_100 = arith.constant dense<0.000000e+00> : vector<64x4xf32>
    %60 = tpu.matmul %59, %41, %cst_100 {dimension_numbers = #tpu.dot_dimension_numbers<[1], [0], [0], [1], [0, 0, 1, 1], [], []>} : vector<64x4xbf16>, vector<4x4xbf16>, vector<64x4xf32> -> vector<64x4xf32>
    %61 = arith.addf %39, %60 : vector<64x4xf32>
    %c3 = arith.constant 3 : index
    %c0_101 = arith.constant 0 : index
    %c0_102 = arith.constant 0 : index
    %62 = vector.load %arg3[%c3, %c0_101, %c0_102] : memref<17x4x4xbf16, #tpu.memory_space<vmem>>, vector<1x4x4xbf16>
    %63 = vector.shape_cast %62 : vector<1x4x4xbf16> to vector<4x4xbf16>
    %c0_103 = arith.constant 0 : index
    %c0_104 = arith.constant 0 : index
    %c1_105 = arith.constant 1 : index
    %c1_106 = arith.constant 1 : index
    %c0_107 = arith.constant 0 : index
    %c1_108 = arith.constant 1 : index
    %c0_109 = arith.constant 0 : index
    %64 = vector.load %arg2[%c0_103, %c0_104, %c1_105, %c1_106, %c0_107, %c1_108, %c0_109] : memref<1x1x2x2x10x10x4xbf16, #tpu.memory_space<vmem>>, vector<1x1x1x1x8x8x4xbf16>
    %65 = vector.shape_cast %64 : vector<1x1x1x1x8x8x4xbf16> to vector<8x8x4xbf16>
    %66 = vector.shape_cast %65 : vector<8x8x4xbf16> to vector<64x4xbf16>
    %cst_110 = arith.constant dense<0.000000e+00> : vector<64x4xf32>
    %67 = tpu.matmul %66, %63, %cst_110 {dimension_numbers = #tpu.dot_dimension_numbers<[1], [0], [0], [1], [0, 0, 1, 1], [], []>} : vector<64x4xbf16>, vector<4x4xbf16>, vector<64x4xf32> -> vector<64x4xf32>
    %68 = arith.addf %46, %67 : vector<64x4xf32>
    %c0_111 = arith.constant 0 : index
    %c0_112 = arith.constant 0 : index
    %c1_113 = arith.constant 1 : index
    %c0_114 = arith.constant 0 : index
    %c0_115 = arith.constant 0 : index
    %c2_116 = arith.constant 2 : index
    %c0_117 = arith.constant 0 : index
    %69 = vector.load %arg2[%c0_111, %c0_112, %c1_113, %c0_114, %c0_115, %c2_116, %c0_117] : memref<1x1x2x2x10x10x4xbf16, #tpu.memory_space<vmem>>, vector<1x1x1x1x8x8x4xbf16>
    %70 = vector.shape_cast %69 : vector<1x1x1x1x8x8x4xbf16> to vector<8x8x4xbf16>
    %71 = vector.shape_cast %70 : vector<8x8x4xbf16> to vector<64x4xbf16>
    %cst_118 = arith.constant dense<0.000000e+00> : vector<64x4xf32>
    %72 = tpu.matmul %71, %63, %cst_118 {dimension_numbers = #tpu.dot_dimension_numbers<[1], [0], [0], [1], [0, 0, 1, 1], [], []>} : vector<64x4xbf16>, vector<4x4xbf16>, vector<64x4xf32> -> vector<64x4xf32>
    %73 = arith.addf %51, %72 : vector<64x4xf32>
    %c0_119 = arith.constant 0 : index
    %c0_120 = arith.constant 0 : index
    %c0_121 = arith.constant 0 : index
    %c1_122 = arith.constant 1 : index
    %c1_123 = arith.constant 1 : index
    %c1_124 = arith.constant 1 : index
    %c0_125 = arith.constant 0 : index
    %74 = vector.load %arg2[%c0_119, %c0_120, %c0_121, %c1_122, %c1_123, %c1_124, %c0_125] : memref<1x1x2x2x10x10x4xbf16, #tpu.memory_space<vmem>>, vector<1x1x1x1x8x8x4xbf16>
    %75 = vector.shape_cast %74 : vector<1x1x1x1x8x8x4xbf16> to vector<8x8x4xbf16>
    %76 = vector.shape_cast %75 : vector<8x8x4xbf16> to vector<64x4xbf16>
    %cst_126 = arith.constant dense<0.000000e+00> : vector<64x4xf32>
    %77 = tpu.matmul %76, %63, %cst_126 {dimension_numbers = #tpu.dot_dimension_numbers<[1], [0], [0], [1], [0, 0, 1, 1], [], []>} : vector<64x4xbf16>, vector<4x4xbf16>, vector<64x4xf32> -> vector<64x4xf32>
    %78 = arith.addf %56, %77 : vector<64x4xf32>
    %c0_127 = arith.constant 0 : index
    %c0_128 = arith.constant 0 : index
    %c0_129 = arith.constant 0 : index
    %c0_130 = arith.constant 0 : index
    %c1_131 = arith.constant 1 : index
    %c2_132 = arith.constant 2 : index
    %c0_133 = arith.constant 0 : index
    %79 = vector.load %arg2[%c0_127, %c0_128, %c0_129, %c0_130, %c1_131, %c2_132, %c0_133] : memref<1x1x2x2x10x10x4xbf16, #tpu.memory_space<vmem>>, vector<1x1x1x1x8x8x4xbf16>
    %80 = vector.shape_cast %79 : vector<1x1x1x1x8x8x4xbf16> to vector<8x8x4xbf16>
    %81 = vector.shape_cast %80 : vector<8x8x4xbf16> to vector<64x4xbf16>
    %cst_134 = arith.constant dense<0.000000e+00> : vector<64x4xf32>
    %82 = tpu.matmul %81, %63, %cst_134 {dimension_numbers = #tpu.dot_dimension_numbers<[1], [0], [0], [1], [0, 0, 1, 1], [], []>} : vector<64x4xbf16>, vector<4x4xbf16>, vector<64x4xf32> -> vector<64x4xf32>
    %83 = arith.addf %61, %82 : vector<64x4xf32>
    %c4 = arith.constant 4 : index
    %c0_135 = arith.constant 0 : index
    %c0_136 = arith.constant 0 : index
    %84 = vector.load %arg3[%c4, %c0_135, %c0_136] : memref<17x4x4xbf16, #tpu.memory_space<vmem>>, vector<1x4x4xbf16>
    %85 = vector.shape_cast %84 : vector<1x4x4xbf16> to vector<4x4xbf16>
    %c0_137 = arith.constant 0 : index
    %c0_138 = arith.constant 0 : index
    %c0_139 = arith.constant 0 : index
    %c1_140 = arith.constant 1 : index
    %c1_141 = arith.constant 1 : index
    %c0_142 = arith.constant 0 : index
    %c0_143 = arith.constant 0 : index
    %86 = vector.load %arg2[%c0_137, %c0_138, %c0_139, %c1_140, %c1_141, %c0_142, %c0_143] : memref<1x1x2x2x10x10x4xbf16, #tpu.memory_space<vmem>>, vector<1x1x1x1x8x8x4xbf16>
    %87 = vector.shape_cast %86 : vector<1x1x1x1x8x8x4xbf16> to vector<8x8x4xbf16>
    %88 = vector.shape_cast %87 : vector<8x8x4xbf16> to vector<64x4xbf16>
    %cst_144 = arith.constant dense<0.000000e+00> : vector<64x4xf32>
    %89 = tpu.matmul %88, %85, %cst_144 {dimension_numbers = #tpu.dot_dimension_numbers<[1], [0], [0], [1], [0, 0, 1, 1], [], []>} : vector<64x4xbf16>, vector<4x4xbf16>, vector<64x4xf32> -> vector<64x4xf32>
    %90 = arith.addf %68, %89 : vector<64x4xf32>
    %c0_145 = arith.constant 0 : index
    %c0_146 = arith.constant 0 : index
    %c0_147 = arith.constant 0 : index
    %c0_148 = arith.constant 0 : index
    %c1_149 = arith.constant 1 : index
    %c1_150 = arith.constant 1 : index
    %c0_151 = arith.constant 0 : index
    %91 = vector.load %arg2[%c0_145, %c0_146, %c0_147, %c0_148, %c1_149, %c1_150, %c0_151] : memref<1x1x2x2x10x10x4xbf16, #tpu.memory_space<vmem>>, vector<1x1x1x1x8x8x4xbf16>
    %92 = vector.shape_cast %91 : vector<1x1x1x1x8x8x4xbf16> to vector<8x8x4xbf16>
    %93 = vector.shape_cast %92 : vector<8x8x4xbf16> to vector<64x4xbf16>
    %cst_152 = arith.constant dense<0.000000e+00> : vector<64x4xf32>
    %94 = tpu.matmul %93, %85, %cst_152 {dimension_numbers = #tpu.dot_dimension_numbers<[1], [0], [0], [1], [0, 0, 1, 1], [], []>} : vector<64x4xbf16>, vector<4x4xbf16>, vector<64x4xf32> -> vector<64x4xf32>
    %95 = arith.addf %73, %94 : vector<64x4xf32>
    %c0_153 = arith.constant 0 : index
    %c0_154 = arith.constant 0 : index
    %c1_155 = arith.constant 1 : index
    %c1_156 = arith.constant 1 : index
    %c1_157 = arith.constant 1 : index
    %c0_158 = arith.constant 0 : index
    %c0_159 = arith.constant 0 : index
    %96 = vector.load %arg2[%c0_153, %c0_154, %c1_155, %c1_156, %c1_157, %c0_158, %c0_159] : memref<1x1x2x2x10x10x4xbf16, #tpu.memory_space<vmem>>, vector<1x1x1x1x8x8x4xbf16>
    %97 = vector.shape_cast %96 : vector<1x1x1x1x8x8x4xbf16> to vector<8x8x4xbf16>
    %98 = vector.shape_cast %97 : vector<8x8x4xbf16> to vector<64x4xbf16>
    %cst_160 = arith.constant dense<0.000000e+00> : vector<64x4xf32>
    %99 = tpu.matmul %98, %85, %cst_160 {dimension_numbers = #tpu.dot_dimension_numbers<[1], [0], [0], [1], [0, 0, 1, 1], [], []>} : vector<64x4xbf16>, vector<4x4xbf16>, vector<64x4xf32> -> vector<64x4xf32>
    %100 = arith.addf %78, %99 : vector<64x4xf32>
    %c0_161 = arith.constant 0 : index
    %c0_162 = arith.constant 0 : index
    %c1_163 = arith.constant 1 : index
    %c0_164 = arith.constant 0 : index
    %c1_165 = arith.constant 1 : index
    %c1_166 = arith.constant 1 : index
    %c0_167 = arith.constant 0 : index
    %101 = vector.load %arg2[%c0_161, %c0_162, %c1_163, %c0_164, %c1_165, %c1_166, %c0_167] : memref<1x1x2x2x10x10x4xbf16, #tpu.memory_space<vmem>>, vector<1x1x1x1x8x8x4xbf16>
    %102 = vector.shape_cast %101 : vector<1x1x1x1x8x8x4xbf16> to vector<8x8x4xbf16>
    %103 = vector.shape_cast %102 : vector<8x8x4xbf16> to vector<64x4xbf16>
    %cst_168 = arith.constant dense<0.000000e+00> : vector<64x4xf32>
    %104 = tpu.matmul %103, %85, %cst_168 {dimension_numbers = #tpu.dot_dimension_numbers<[1], [0], [0], [1], [0, 0, 1, 1], [], []>} : vector<64x4xbf16>, vector<4x4xbf16>, vector<64x4xf32> -> vector<64x4xf32>
    %105 = arith.addf %83, %104 : vector<64x4xf32>
    %c5 = arith.constant 5 : index
    %c0_169 = arith.constant 0 : index
    %c0_170 = arith.constant 0 : index
    %106 = vector.load %arg3[%c5, %c0_169, %c0_170] : memref<17x4x4xbf16, #tpu.memory_space<vmem>>, vector<1x4x4xbf16>
    %107 = vector.shape_cast %106 : vector<1x4x4xbf16> to vector<4x4xbf16>
    %c0_171 = arith.constant 0 : index
    %c0_172 = arith.constant 0 : index
    %c0_173 = arith.constant 0 : index
    %c1_174 = arith.constant 1 : index
    %c1_175 = arith.constant 1 : index
    %c1_176 = arith.constant 1 : index
    %c0_177 = arith.constant 0 : index
    %108 = vector.load %arg2[%c0_171, %c0_172, %c0_173, %c1_174, %c1_175, %c1_176, %c0_177] : memref<1x1x2x2x10x10x4xbf16, #tpu.memory_space<vmem>>, vector<1x1x1x1x8x8x4xbf16>
    %109 = vector.shape_cast %108 : vector<1x1x1x1x8x8x4xbf16> to vector<8x8x4xbf16>
    %110 = vector.shape_cast %109 : vector<8x8x4xbf16> to vector<64x4xbf16>
    %cst_178 = arith.constant dense<0.000000e+00> : vector<64x4xf32>
    %111 = tpu.matmul %110, %107, %cst_178 {dimension_numbers = #tpu.dot_dimension_numbers<[1], [0], [0], [1], [0, 0, 1, 1], [], []>} : vector<64x4xbf16>, vector<4x4xbf16>, vector<64x4xf32> -> vector<64x4xf32>
    %112 = arith.addf %90, %111 : vector<64x4xf32>
    %c0_179 = arith.constant 0 : index
    %c0_180 = arith.constant 0 : index
    %c0_181 = arith.constant 0 : index
    %c0_182 = arith.constant 0 : index
    %c1_183 = arith.constant 1 : index
    %c2_184 = arith.constant 2 : index
    %c0_185 = arith.constant 0 : index
    %113 = vector.load %arg2[%c0_179, %c0_180, %c0_181, %c0_182, %c1_183, %c2_184, %c0_185] : memref<1x1x2x2x10x10x4xbf16, #tpu.memory_space<vmem>>, vector<1x1x1x1x8x8x4xbf16>
    %114 = vector.shape_cast %113 : vector<1x1x1x1x8x8x4xbf16> to vector<8x8x4xbf16>
    %115 = vector.shape_cast %114 : vector<8x8x4xbf16> to vector<64x4xbf16>
    %cst_186 = arith.constant dense<0.000000e+00> : vector<64x4xf32>
    %116 = tpu.matmul %115, %107, %cst_186 {dimension_numbers = #tpu.dot_dimension_numbers<[1], [0], [0], [1], [0, 0, 1, 1], [], []>} : vector<64x4xbf16>, vector<4x4xbf16>, vector<64x4xf32> -> vector<64x4xf32>
    %117 = arith.addf %95, %116 : vector<64x4xf32>
    %c0_187 = arith.constant 0 : index
    %c0_188 = arith.constant 0 : index
    %c1_189 = arith.constant 1 : index
    %c1_190 = arith.constant 1 : index
    %c1_191 = arith.constant 1 : index
    %c1_192 = arith.constant 1 : index
    %c0_193 = arith.constant 0 : index
    %118 = vector.load %arg2[%c0_187, %c0_188, %c1_189, %c1_190, %c1_191, %c1_192, %c0_193] : memref<1x1x2x2x10x10x4xbf16, #tpu.memory_space<vmem>>, vector<1x1x1x1x8x8x4xbf16>
    %119 = vector.shape_cast %118 : vector<1x1x1x1x8x8x4xbf16> to vector<8x8x4xbf16>
    %120 = vector.shape_cast %119 : vector<8x8x4xbf16> to vector<64x4xbf16>
    %cst_194 = arith.constant dense<0.000000e+00> : vector<64x4xf32>
    %121 = tpu.matmul %120, %107, %cst_194 {dimension_numbers = #tpu.dot_dimension_numbers<[1], [0], [0], [1], [0, 0, 1, 1], [], []>} : vector<64x4xbf16>, vector<4x4xbf16>, vector<64x4xf32> -> vector<64x4xf32>
    %122 = arith.addf %100, %121 : vector<64x4xf32>
    %c0_195 = arith.constant 0 : index
    %c0_196 = arith.constant 0 : index
    %c1_197 = arith.constant 1 : index
    %c0_198 = arith.constant 0 : index
    %c1_199 = arith.constant 1 : index
    %c2_200 = arith.constant 2 : index
    %c0_201 = arith.constant 0 : index
    %123 = vector.load %arg2[%c0_195, %c0_196, %c1_197, %c0_198, %c1_199, %c2_200, %c0_201] : memref<1x1x2x2x10x10x4xbf16, #tpu.memory_space<vmem>>, vector<1x1x1x1x8x8x4xbf16>
    %124 = vector.shape_cast %123 : vector<1x1x1x1x8x8x4xbf16> to vector<8x8x4xbf16>
    %125 = vector.shape_cast %124 : vector<8x8x4xbf16> to vector<64x4xbf16>
    %cst_202 = arith.constant dense<0.000000e+00> : vector<64x4xf32>
    %126 = tpu.matmul %125, %107, %cst_202 {dimension_numbers = #tpu.dot_dimension_numbers<[1], [0], [0], [1], [0, 0, 1, 1], [], []>} : vector<64x4xbf16>, vector<4x4xbf16>, vector<64x4xf32> -> vector<64x4xf32>
    %127 = arith.addf %105, %126 : vector<64x4xf32>
    %c6 = arith.constant 6 : index
    %c0_203 = arith.constant 0 : index
    %c0_204 = arith.constant 0 : index
    %128 = vector.load %arg3[%c6, %c0_203, %c0_204] : memref<17x4x4xbf16, #tpu.memory_space<vmem>>, vector<1x4x4xbf16>
    %129 = vector.shape_cast %128 : vector<1x4x4xbf16> to vector<4x4xbf16>
    %c0_205 = arith.constant 0 : index
    %c0_206 = arith.constant 0 : index
    %c1_207 = arith.constant 1 : index
    %c1_208 = arith.constant 1 : index
    %c1_209 = arith.constant 1 : index
    %c0_210 = arith.constant 0 : index
    %c0_211 = arith.constant 0 : index
    %130 = vector.load %arg2[%c0_205, %c0_206, %c1_207, %c1_208, %c1_209, %c0_210, %c0_211] : memref<1x1x2x2x10x10x4xbf16, #tpu.memory_space<vmem>>, vector<1x1x1x1x8x8x4xbf16>
    %131 = vector.shape_cast %130 : vector<1x1x1x1x8x8x4xbf16> to vector<8x8x4xbf16>
    %132 = vector.shape_cast %131 : vector<8x8x4xbf16> to vector<64x4xbf16>
    %cst_212 = arith.constant dense<0.000000e+00> : vector<64x4xf32>
    %133 = tpu.matmul %132, %129, %cst_212 {dimension_numbers = #tpu.dot_dimension_numbers<[1], [0], [0], [1], [0, 0, 1, 1], [], []>} : vector<64x4xbf16>, vector<4x4xbf16>, vector<64x4xf32> -> vector<64x4xf32>
    %134 = arith.addf %112, %133 : vector<64x4xf32>
    %c0_213 = arith.constant 0 : index
    %c0_214 = arith.constant 0 : index
    %c1_215 = arith.constant 1 : index
    %c0_216 = arith.constant 0 : index
    %c1_217 = arith.constant 1 : index
    %c1_218 = arith.constant 1 : index
    %c0_219 = arith.constant 0 : index
    %135 = vector.load %arg2[%c0_213, %c0_214, %c1_215, %c0_216, %c1_217, %c1_218, %c0_219] : memref<1x1x2x2x10x10x4xbf16, #tpu.memory_space<vmem>>, vector<1x1x1x1x8x8x4xbf16>
    %136 = vector.shape_cast %135 : vector<1x1x1x1x8x8x4xbf16> to vector<8x8x4xbf16>
    %137 = vector.shape_cast %136 : vector<8x8x4xbf16> to vector<64x4xbf16>
    %cst_220 = arith.constant dense<0.000000e+00> : vector<64x4xf32>
    %138 = tpu.matmul %137, %129, %cst_220 {dimension_numbers = #tpu.dot_dimension_numbers<[1], [0], [0], [1], [0, 0, 1, 1], [], []>} : vector<64x4xbf16>, vector<4x4xbf16>, vector<64x4xf32> -> vector<64x4xf32>
    %139 = arith.addf %117, %138 : vector<64x4xf32>
    %c0_221 = arith.constant 0 : index
    %c0_222 = arith.constant 0 : index
    %c0_223 = arith.constant 0 : index
    %c1_224 = arith.constant 1 : index
    %c2_225 = arith.constant 2 : index
    %c0_226 = arith.constant 0 : index
    %c0_227 = arith.constant 0 : index
    %140 = vector.load %arg2[%c0_221, %c0_222, %c0_223, %c1_224, %c2_225, %c0_226, %c0_227] : memref<1x1x2x2x10x10x4xbf16, #tpu.memory_space<vmem>>, vector<1x1x1x1x8x8x4xbf16>
    %141 = vector.shape_cast %140 : vector<1x1x1x1x8x8x4xbf16> to vector<8x8x4xbf16>
    %142 = vector.shape_cast %141 : vector<8x8x4xbf16> to vector<64x4xbf16>
    %cst_228 = arith.constant dense<0.000000e+00> : vector<64x4xf32>
    %143 = tpu.matmul %142, %129, %cst_228 {dimension_numbers = #tpu.dot_dimension_numbers<[1], [0], [0], [1], [0, 0, 1, 1], [], []>} : vector<64x4xbf16>, vector<4x4xbf16>, vector<64x4xf32> -> vector<64x4xf32>
    %144 = arith.addf %122, %143 : vector<64x4xf32>
    %c0_229 = arith.constant 0 : index
    %c0_230 = arith.constant 0 : index
    %c0_231 = arith.constant 0 : index
    %c0_232 = arith.constant 0 : index
    %c2_233 = arith.constant 2 : index
    %c1_234 = arith.constant 1 : index
    %c0_235 = arith.constant 0 : index
    %145 = vector.load %arg2[%c0_229, %c0_230, %c0_231, %c0_232, %c2_233, %c1_234, %c0_235] : memref<1x1x2x2x10x10x4xbf16, #tpu.memory_space<vmem>>, vector<1x1x1x1x8x8x4xbf16>
    %146 = vector.shape_cast %145 : vector<1x1x1x1x8x8x4xbf16> to vector<8x8x4xbf16>
    %147 = vector.shape_cast %146 : vector<8x8x4xbf16> to vector<64x4xbf16>
    %cst_236 = arith.constant dense<0.000000e+00> : vector<64x4xf32>
    %148 = tpu.matmul %147, %129, %cst_236 {dimension_numbers = #tpu.dot_dimension_numbers<[1], [0], [0], [1], [0, 0, 1, 1], [], []>} : vector<64x4xbf16>, vector<4x4xbf16>, vector<64x4xf32> -> vector<64x4xf32>
    %149 = arith.addf %127, %148 : vector<64x4xf32>
    %c7 = arith.constant 7 : index
    %c0_237 = arith.constant 0 : index
    %c0_238 = arith.constant 0 : index
    %150 = vector.load %arg3[%c7, %c0_237, %c0_238] : memref<17x4x4xbf16, #tpu.memory_space<vmem>>, vector<1x4x4xbf16>
    %151 = vector.shape_cast %150 : vector<1x4x4xbf16> to vector<4x4xbf16>
    %c0_239 = arith.constant 0 : index
    %c0_240 = arith.constant 0 : index
    %c1_241 = arith.constant 1 : index
    %c0_242 = arith.constant 0 : index
    %c1_243 = arith.constant 1 : index
    %c1_244 = arith.constant 1 : index
    %c0_245 = arith.constant 0 : index
    %152 = vector.load %arg2[%c0_239, %c0_240, %c1_241, %c0_242, %c1_243, %c1_244, %c0_245] : memref<1x1x2x2x10x10x4xbf16, #tpu.memory_space<vmem>>, vector<1x1x1x1x8x8x4xbf16>
    %153 = vector.shape_cast %152 : vector<1x1x1x1x8x8x4xbf16> to vector<8x8x4xbf16>
    %154 = vector.shape_cast %153 : vector<8x8x4xbf16> to vector<64x4xbf16>
    %cst_246 = arith.constant dense<0.000000e+00> : vector<64x4xf32>
    %155 = tpu.matmul %154, %151, %cst_246 {dimension_numbers = #tpu.dot_dimension_numbers<[1], [0], [0], [1], [0, 0, 1, 1], [], []>} : vector<64x4xbf16>, vector<4x4xbf16>, vector<64x4xf32> -> vector<64x4xf32>
    %156 = arith.addf %134, %155 : vector<64x4xf32>
    %c0_247 = arith.constant 0 : index
    %c0_248 = arith.constant 0 : index
    %c1_249 = arith.constant 1 : index
    %c1_250 = arith.constant 1 : index
    %c1_251 = arith.constant 1 : index
    %c1_252 = arith.constant 1 : index
    %c0_253 = arith.constant 0 : index
    %157 = vector.load %arg2[%c0_247, %c0_248, %c1_249, %c1_250, %c1_251, %c1_252, %c0_253] : memref<1x1x2x2x10x10x4xbf16, #tpu.memory_space<vmem>>, vector<1x1x1x1x8x8x4xbf16>
    %158 = vector.shape_cast %157 : vector<1x1x1x1x8x8x4xbf16> to vector<8x8x4xbf16>
    %159 = vector.shape_cast %158 : vector<8x8x4xbf16> to vector<64x4xbf16>
    %cst_254 = arith.constant dense<0.000000e+00> : vector<64x4xf32>
    %160 = tpu.matmul %159, %151, %cst_254 {dimension_numbers = #tpu.dot_dimension_numbers<[1], [0], [0], [1], [0, 0, 1, 1], [], []>} : vector<64x4xbf16>, vector<4x4xbf16>, vector<64x4xf32> -> vector<64x4xf32>
    %161 = arith.addf %139, %160 : vector<64x4xf32>
    %c0_255 = arith.constant 0 : index
    %c0_256 = arith.constant 0 : index
    %c0_257 = arith.constant 0 : index
    %c0_258 = arith.constant 0 : index
    %c2_259 = arith.constant 2 : index
    %c1_260 = arith.constant 1 : index
    %c0_261 = arith.constant 0 : index
    %162 = vector.load %arg2[%c0_255, %c0_256, %c0_257, %c0_258, %c2_259, %c1_260, %c0_261] : memref<1x1x2x2x10x10x4xbf16, #tpu.memory_space<vmem>>, vector<1x1x1x1x8x8x4xbf16>
    %163 = vector.shape_cast %162 : vector<1x1x1x1x8x8x4xbf16> to vector<8x8x4xbf16>
    %164 = vector.shape_cast %163 : vector<8x8x4xbf16> to vector<64x4xbf16>
    %cst_262 = arith.constant dense<0.000000e+00> : vector<64x4xf32>
    %165 = tpu.matmul %164, %151, %cst_262 {dimension_numbers = #tpu.dot_dimension_numbers<[1], [0], [0], [1], [0, 0, 1, 1], [], []>} : vector<64x4xbf16>, vector<4x4xbf16>, vector<64x4xf32> -> vector<64x4xf32>
    %166 = arith.addf %144, %165 : vector<64x4xf32>
    %c0_263 = arith.constant 0 : index
    %c0_264 = arith.constant 0 : index
    %c0_265 = arith.constant 0 : index
    %c1_266 = arith.constant 1 : index
    %c2_267 = arith.constant 2 : index
    %c1_268 = arith.constant 1 : index
    %c0_269 = arith.constant 0 : index
    %167 = vector.load %arg2[%c0_263, %c0_264, %c0_265, %c1_266, %c2_267, %c1_268, %c0_269] : memref<1x1x2x2x10x10x4xbf16, #tpu.memory_space<vmem>>, vector<1x1x1x1x8x8x4xbf16>
    %168 = vector.shape_cast %167 : vector<1x1x1x1x8x8x4xbf16> to vector<8x8x4xbf16>
    %169 = vector.shape_cast %168 : vector<8x8x4xbf16> to vector<64x4xbf16>
    %cst_270 = arith.constant dense<0.000000e+00> : vector<64x4xf32>
    %170 = tpu.matmul %169, %151, %cst_270 {dimension_numbers = #tpu.dot_dimension_numbers<[1], [0], [0], [1], [0, 0, 1, 1], [], []>} : vector<64x4xbf16>, vector<4x4xbf16>, vector<64x4xf32> -> vector<64x4xf32>
    %171 = arith.addf %149, %170 : vector<64x4xf32>
    %c8 = arith.constant 8 : index
    %c0_271 = arith.constant 0 : index
    %c0_272 = arith.constant 0 : index
    %172 = vector.load %arg3[%c8, %c0_271, %c0_272] : memref<17x4x4xbf16, #tpu.memory_space<vmem>>, vector<1x4x4xbf16>
    %173 = vector.shape_cast %172 : vector<1x4x4xbf16> to vector<4x4xbf16>
    %c0_273 = arith.constant 0 : index
    %c0_274 = arith.constant 0 : index
    %c1_275 = arith.constant 1 : index
    %c1_276 = arith.constant 1 : index
    %c1_277 = arith.constant 1 : index
    %c1_278 = arith.constant 1 : index
    %c0_279 = arith.constant 0 : index
    %174 = vector.load %arg2[%c0_273, %c0_274, %c1_275, %c1_276, %c1_277, %c1_278, %c0_279] : memref<1x1x2x2x10x10x4xbf16, #tpu.memory_space<vmem>>, vector<1x1x1x1x8x8x4xbf16>
    %175 = vector.shape_cast %174 : vector<1x1x1x1x8x8x4xbf16> to vector<8x8x4xbf16>
    %176 = vector.shape_cast %175 : vector<8x8x4xbf16> to vector<64x4xbf16>
    %cst_280 = arith.constant dense<0.000000e+00> : vector<64x4xf32>
    %177 = tpu.matmul %176, %173, %cst_280 {dimension_numbers = #tpu.dot_dimension_numbers<[1], [0], [0], [1], [0, 0, 1, 1], [], []>} : vector<64x4xbf16>, vector<4x4xbf16>, vector<64x4xf32> -> vector<64x4xf32>
    %178 = arith.addf %156, %177 : vector<64x4xf32>
    %c0_281 = arith.constant 0 : index
    %c0_282 = arith.constant 0 : index
    %c1_283 = arith.constant 1 : index
    %c0_284 = arith.constant 0 : index
    %c1_285 = arith.constant 1 : index
    %c2_286 = arith.constant 2 : index
    %c0_287 = arith.constant 0 : index
    %179 = vector.load %arg2[%c0_281, %c0_282, %c1_283, %c0_284, %c1_285, %c2_286, %c0_287] : memref<1x1x2x2x10x10x4xbf16, #tpu.memory_space<vmem>>, vector<1x1x1x1x8x8x4xbf16>
    %180 = vector.shape_cast %179 : vector<1x1x1x1x8x8x4xbf16> to vector<8x8x4xbf16>
    %181 = vector.shape_cast %180 : vector<8x8x4xbf16> to vector<64x4xbf16>
    %cst_288 = arith.constant dense<0.000000e+00> : vector<64x4xf32>
    %182 = tpu.matmul %181, %173, %cst_288 {dimension_numbers = #tpu.dot_dimension_numbers<[1], [0], [0], [1], [0, 0, 1, 1], [], []>} : vector<64x4xbf16>, vector<4x4xbf16>, vector<64x4xf32> -> vector<64x4xf32>
    %183 = arith.addf %161, %182 : vector<64x4xf32>
    %c0_289 = arith.constant 0 : index
    %c0_290 = arith.constant 0 : index
    %c0_291 = arith.constant 0 : index
    %c1_292 = arith.constant 1 : index
    %c2_293 = arith.constant 2 : index
    %c1_294 = arith.constant 1 : index
    %c0_295 = arith.constant 0 : index
    %184 = vector.load %arg2[%c0_289, %c0_290, %c0_291, %c1_292, %c2_293, %c1_294, %c0_295] : memref<1x1x2x2x10x10x4xbf16, #tpu.memory_space<vmem>>, vector<1x1x1x1x8x8x4xbf16>
    %185 = vector.shape_cast %184 : vector<1x1x1x1x8x8x4xbf16> to vector<8x8x4xbf16>
    %186 = vector.shape_cast %185 : vector<8x8x4xbf16> to vector<64x4xbf16>
    %cst_296 = arith.constant dense<0.000000e+00> : vector<64x4xf32>
    %187 = tpu.matmul %186, %173, %cst_296 {dimension_numbers = #tpu.dot_dimension_numbers<[1], [0], [0], [1], [0, 0, 1, 1], [], []>} : vector<64x4xbf16>, vector<4x4xbf16>, vector<64x4xf32> -> vector<64x4xf32>
    %188 = arith.addf %166, %187 : vector<64x4xf32>
    %c0_297 = arith.constant 0 : index
    %c0_298 = arith.constant 0 : index
    %c0_299 = arith.constant 0 : index
    %c0_300 = arith.constant 0 : index
    %c2_301 = arith.constant 2 : index
    %c2_302 = arith.constant 2 : index
    %c0_303 = arith.constant 0 : index
    %189 = vector.load %arg2[%c0_297, %c0_298, %c0_299, %c0_300, %c2_301, %c2_302, %c0_303] : memref<1x1x2x2x10x10x4xbf16, #tpu.memory_space<vmem>>, vector<1x1x1x1x8x8x4xbf16>
    %190 = vector.shape_cast %189 : vector<1x1x1x1x8x8x4xbf16> to vector<8x8x4xbf16>
    %191 = vector.shape_cast %190 : vector<8x8x4xbf16> to vector<64x4xbf16>
    %cst_304 = arith.constant dense<0.000000e+00> : vector<64x4xf32>
    %192 = tpu.matmul %191, %173, %cst_304 {dimension_numbers = #tpu.dot_dimension_numbers<[1], [0], [0], [1], [0, 0, 1, 1], [], []>} : vector<64x4xbf16>, vector<4x4xbf16>, vector<64x4xf32> -> vector<64x4xf32>
    %193 = arith.addf %171, %192 : vector<64x4xf32>
    %c9 = arith.constant 9 : index
    %c0_305 = arith.constant 0 : index
    %c0_306 = arith.constant 0 : index
    %194 = vector.load %arg3[%c9, %c0_305, %c0_306] : memref<17x4x4xbf16, #tpu.memory_space<vmem>>, vector<1x4x4xbf16>
    %195 = vector.shape_cast %194 : vector<1x4x4xbf16> to vector<4x4xbf16>
    %c0_307 = arith.constant 0 : index
    %c0_308 = arith.constant 0 : index
    %c0_309 = arith.constant 0 : index
    %c0_310 = arith.constant 0 : index
    %c0_311 = arith.constant 0 : index
    %c0_312 = arith.constant 0 : index
    %c0_313 = arith.constant 0 : index
    %196 = vector.load %arg2[%c0_307, %c0_308, %c0_309, %c0_310, %c0_311, %c0_312, %c0_313] : memref<1x1x2x2x10x10x4xbf16, #tpu.memory_space<vmem>>, vector<1x1x1x1x8x8x4xbf16>
    %197 = vector.shape_cast %196 : vector<1x1x1x1x8x8x4xbf16> to vector<8x8x4xbf16>
    %198 = vector.shape_cast %197 : vector<8x8x4xbf16> to vector<64x4xbf16>
    %cst_314 = arith.constant dense<0.000000e+00> : vector<64x4xf32>
    %199 = tpu.matmul %198, %195, %cst_314 {dimension_numbers = #tpu.dot_dimension_numbers<[1], [0], [0], [1], [0, 0, 1, 1], [], []>} : vector<64x4xbf16>, vector<4x4xbf16>, vector<64x4xf32> -> vector<64x4xf32>
    %200 = arith.addf %178, %199 : vector<64x4xf32>
    %c0_315 = arith.constant 0 : index
    %c0_316 = arith.constant 0 : index
    %c0_317 = arith.constant 0 : index
    %c1_318 = arith.constant 1 : index
    %c0_319 = arith.constant 0 : index
    %c0_320 = arith.constant 0 : index
    %c0_321 = arith.constant 0 : index
    %201 = vector.load %arg2[%c0_315, %c0_316, %c0_317, %c1_318, %c0_319, %c0_320, %c0_321] : memref<1x1x2x2x10x10x4xbf16, #tpu.memory_space<vmem>>, vector<1x1x1x1x8x8x4xbf16>
    %202 = vector.shape_cast %201 : vector<1x1x1x1x8x8x4xbf16> to vector<8x8x4xbf16>
    %203 = vector.shape_cast %202 : vector<8x8x4xbf16> to vector<64x4xbf16>
    %cst_322 = arith.constant dense<0.000000e+00> : vector<64x4xf32>
    %204 = tpu.matmul %203, %195, %cst_322 {dimension_numbers = #tpu.dot_dimension_numbers<[1], [0], [0], [1], [0, 0, 1, 1], [], []>} : vector<64x4xbf16>, vector<4x4xbf16>, vector<64x4xf32> -> vector<64x4xf32>
    %205 = arith.addf %183, %204 : vector<64x4xf32>
    %c0_323 = arith.constant 0 : index
    %c0_324 = arith.constant 0 : index
    %c1_325 = arith.constant 1 : index
    %c0_326 = arith.constant 0 : index
    %c0_327 = arith.constant 0 : index
    %c0_328 = arith.constant 0 : index
    %c0_329 = arith.constant 0 : index
    %206 = vector.load %arg2[%c0_323, %c0_324, %c1_325, %c0_326, %c0_327, %c0_328, %c0_329] : memref<1x1x2x2x10x10x4xbf16, #tpu.memory_space<vmem>>, vector<1x1x1x1x8x8x4xbf16>
    %207 = vector.shape_cast %206 : vector<1x1x1x1x8x8x4xbf16> to vector<8x8x4xbf16>
    %208 = vector.shape_cast %207 : vector<8x8x4xbf16> to vector<64x4xbf16>
    %cst_330 = arith.constant dense<0.000000e+00> : vector<64x4xf32>
    %209 = tpu.matmul %208, %195, %cst_330 {dimension_numbers = #tpu.dot_dimension_numbers<[1], [0], [0], [1], [0, 0, 1, 1], [], []>} : vector<64x4xbf16>, vector<4x4xbf16>, vector<64x4xf32> -> vector<64x4xf32>
    %210 = arith.addf %188, %209 : vector<64x4xf32>
    %c0_331 = arith.constant 0 : index
    %c0_332 = arith.constant 0 : index
    %c1_333 = arith.constant 1 : index
    %c1_334 = arith.constant 1 : index
    %c0_335 = arith.constant 0 : index
    %c0_336 = arith.constant 0 : index
    %c0_337 = arith.constant 0 : index
    %211 = vector.load %arg2[%c0_331, %c0_332, %c1_333, %c1_334, %c0_335, %c0_336, %c0_337] : memref<1x1x2x2x10x10x4xbf16, #tpu.memory_space<vmem>>, vector<1x1x1x1x8x8x4xbf16>
    %212 = vector.shape_cast %211 : vector<1x1x1x1x8x8x4xbf16> to vector<8x8x4xbf16>
    %213 = vector.shape_cast %212 : vector<8x8x4xbf16> to vector<64x4xbf16>
    %cst_338 = arith.constant dense<0.000000e+00> : vector<64x4xf32>
    %214 = tpu.matmul %213, %195, %cst_338 {dimension_numbers = #tpu.dot_dimension_numbers<[1], [0], [0], [1], [0, 0, 1, 1], [], []>} : vector<64x4xbf16>, vector<4x4xbf16>, vector<64x4xf32> -> vector<64x4xf32>
    %215 = arith.addf %193, %214 : vector<64x4xf32>
    %c10 = arith.constant 10 : index
    %c0_339 = arith.constant 0 : index
    %c0_340 = arith.constant 0 : index
    %216 = vector.load %arg3[%c10, %c0_339, %c0_340] : memref<17x4x4xbf16, #tpu.memory_space<vmem>>, vector<1x4x4xbf16>
    %217 = vector.shape_cast %216 : vector<1x4x4xbf16> to vector<4x4xbf16>
    %c0_341 = arith.constant 0 : index
    %c0_342 = arith.constant 0 : index
    %c0_343 = arith.constant 0 : index
    %c0_344 = arith.constant 0 : index
    %c0_345 = arith.constant 0 : index
    %c1_346 = arith.constant 1 : index
    %c0_347 = arith.constant 0 : index
    %218 = vector.load %arg2[%c0_341, %c0_342, %c0_343, %c0_344, %c0_345, %c1_346, %c0_347] : memref<1x1x2x2x10x10x4xbf16, #tpu.memory_space<vmem>>, vector<1x1x1x1x8x8x4xbf16>
    %219 = vector.shape_cast %218 : vector<1x1x1x1x8x8x4xbf16> to vector<8x8x4xbf16>
    %220 = vector.shape_cast %219 : vector<8x8x4xbf16> to vector<64x4xbf16>
    %cst_348 = arith.constant dense<0.000000e+00> : vector<64x4xf32>
    %221 = tpu.matmul %220, %217, %cst_348 {dimension_numbers = #tpu.dot_dimension_numbers<[1], [0], [0], [1], [0, 0, 1, 1], [], []>} : vector<64x4xbf16>, vector<4x4xbf16>, vector<64x4xf32> -> vector<64x4xf32>
    %222 = arith.addf %200, %221 : vector<64x4xf32>
    %c0_349 = arith.constant 0 : index
    %c0_350 = arith.constant 0 : index
    %c0_351 = arith.constant 0 : index
    %c1_352 = arith.constant 1 : index
    %c0_353 = arith.constant 0 : index
    %c1_354 = arith.constant 1 : index
    %c0_355 = arith.constant 0 : index
    %223 = vector.load %arg2[%c0_349, %c0_350, %c0_351, %c1_352, %c0_353, %c1_354, %c0_355] : memref<1x1x2x2x10x10x4xbf16, #tpu.memory_space<vmem>>, vector<1x1x1x1x8x8x4xbf16>
    %224 = vector.shape_cast %223 : vector<1x1x1x1x8x8x4xbf16> to vector<8x8x4xbf16>
    %225 = vector.shape_cast %224 : vector<8x8x4xbf16> to vector<64x4xbf16>
    %cst_356 = arith.constant dense<0.000000e+00> : vector<64x4xf32>
    %226 = tpu.matmul %225, %217, %cst_356 {dimension_numbers = #tpu.dot_dimension_numbers<[1], [0], [0], [1], [0, 0, 1, 1], [], []>} : vector<64x4xbf16>, vector<4x4xbf16>, vector<64x4xf32> -> vector<64x4xf32>
    %227 = arith.addf %205, %226 : vector<64x4xf32>
    %c0_357 = arith.constant 0 : index
    %c0_358 = arith.constant 0 : index
    %c1_359 = arith.constant 1 : index
    %c0_360 = arith.constant 0 : index
    %c0_361 = arith.constant 0 : index
    %c1_362 = arith.constant 1 : index
    %c0_363 = arith.constant 0 : index
    %228 = vector.load %arg2[%c0_357, %c0_358, %c1_359, %c0_360, %c0_361, %c1_362, %c0_363] : memref<1x1x2x2x10x10x4xbf16, #tpu.memory_space<vmem>>, vector<1x1x1x1x8x8x4xbf16>
    %229 = vector.shape_cast %228 : vector<1x1x1x1x8x8x4xbf16> to vector<8x8x4xbf16>
    %230 = vector.shape_cast %229 : vector<8x8x4xbf16> to vector<64x4xbf16>
    %cst_364 = arith.constant dense<0.000000e+00> : vector<64x4xf32>
    %231 = tpu.matmul %230, %217, %cst_364 {dimension_numbers = #tpu.dot_dimension_numbers<[1], [0], [0], [1], [0, 0, 1, 1], [], []>} : vector<64x4xbf16>, vector<4x4xbf16>, vector<64x4xf32> -> vector<64x4xf32>
    %232 = arith.addf %210, %231 : vector<64x4xf32>
    %c0_365 = arith.constant 0 : index
    %c0_366 = arith.constant 0 : index
    %c1_367 = arith.constant 1 : index
    %c1_368 = arith.constant 1 : index
    %c0_369 = arith.constant 0 : index
    %c1_370 = arith.constant 1 : index
    %c0_371 = arith.constant 0 : index
    %233 = vector.load %arg2[%c0_365, %c0_366, %c1_367, %c1_368, %c0_369, %c1_370, %c0_371] : memref<1x1x2x2x10x10x4xbf16, #tpu.memory_space<vmem>>, vector<1x1x1x1x8x8x4xbf16>
    %234 = vector.shape_cast %233 : vector<1x1x1x1x8x8x4xbf16> to vector<8x8x4xbf16>
    %235 = vector.shape_cast %234 : vector<8x8x4xbf16> to vector<64x4xbf16>
    %cst_372 = arith.constant dense<0.000000e+00> : vector<64x4xf32>
    %236 = tpu.matmul %235, %217, %cst_372 {dimension_numbers = #tpu.dot_dimension_numbers<[1], [0], [0], [1], [0, 0, 1, 1], [], []>} : vector<64x4xbf16>, vector<4x4xbf16>, vector<64x4xf32> -> vector<64x4xf32>
    %237 = arith.addf %215, %236 : vector<64x4xf32>
    %c11 = arith.constant 11 : index
    %c0_373 = arith.constant 0 : index
    %c0_374 = arith.constant 0 : index
    %238 = vector.load %arg3[%c11, %c0_373, %c0_374] : memref<17x4x4xbf16, #tpu.memory_space<vmem>>, vector<1x4x4xbf16>
    %239 = vector.shape_cast %238 : vector<1x4x4xbf16> to vector<4x4xbf16>
    %c0_375 = arith.constant 0 : index
    %c0_376 = arith.constant 0 : index
    %c0_377 = arith.constant 0 : index
    %c0_378 = arith.constant 0 : index
    %c0_379 = arith.constant 0 : index
    %c2_380 = arith.constant 2 : index
    %c0_381 = arith.constant 0 : index
    %240 = vector.load %arg2[%c0_375, %c0_376, %c0_377, %c0_378, %c0_379, %c2_380, %c0_381] : memref<1x1x2x2x10x10x4xbf16, #tpu.memory_space<vmem>>, vector<1x1x1x1x8x8x4xbf16>
    %241 = vector.shape_cast %240 : vector<1x1x1x1x8x8x4xbf16> to vector<8x8x4xbf16>
    %242 = vector.shape_cast %241 : vector<8x8x4xbf16> to vector<64x4xbf16>
    %cst_382 = arith.constant dense<0.000000e+00> : vector<64x4xf32>
    %243 = tpu.matmul %242, %239, %cst_382 {dimension_numbers = #tpu.dot_dimension_numbers<[1], [0], [0], [1], [0, 0, 1, 1], [], []>} : vector<64x4xbf16>, vector<4x4xbf16>, vector<64x4xf32> -> vector<64x4xf32>
    %244 = arith.addf %222, %243 : vector<64x4xf32>
    %c0_383 = arith.constant 0 : index
    %c0_384 = arith.constant 0 : index
    %c0_385 = arith.constant 0 : index
    %c1_386 = arith.constant 1 : index
    %c0_387 = arith.constant 0 : index
    %c2_388 = arith.constant 2 : index
    %c0_389 = arith.constant 0 : index
    %245 = vector.load %arg2[%c0_383, %c0_384, %c0_385, %c1_386, %c0_387, %c2_388, %c0_389] : memref<1x1x2x2x10x10x4xbf16, #tpu.memory_space<vmem>>, vector<1x1x1x1x8x8x4xbf16>
    %246 = vector.shape_cast %245 : vector<1x1x1x1x8x8x4xbf16> to vector<8x8x4xbf16>
    %247 = vector.shape_cast %246 : vector<8x8x4xbf16> to vector<64x4xbf16>
    %cst_390 = arith.constant dense<0.000000e+00> : vector<64x4xf32>
    %248 = tpu.matmul %247, %239, %cst_390 {dimension_numbers = #tpu.dot_dimension_numbers<[1], [0], [0], [1], [0, 0, 1, 1], [], []>} : vector<64x4xbf16>, vector<4x4xbf16>, vector<64x4xf32> -> vector<64x4xf32>
    %249 = arith.addf %227, %248 : vector<64x4xf32>
    %c0_391 = arith.constant 0 : index
    %c0_392 = arith.constant 0 : index
    %c1_393 = arith.constant 1 : index
    %c0_394 = arith.constant 0 : index
    %c0_395 = arith.constant 0 : index
    %c2_396 = arith.constant 2 : index
    %c0_397 = arith.constant 0 : index
    %250 = vector.load %arg2[%c0_391, %c0_392, %c1_393, %c0_394, %c0_395, %c2_396, %c0_397] : memref<1x1x2x2x10x10x4xbf16, #tpu.memory_space<vmem>>, vector<1x1x1x1x8x8x4xbf16>
    %251 = vector.shape_cast %250 : vector<1x1x1x1x8x8x4xbf16> to vector<8x8x4xbf16>
    %252 = vector.shape_cast %251 : vector<8x8x4xbf16> to vector<64x4xbf16>
    %cst_398 = arith.constant dense<0.000000e+00> : vector<64x4xf32>
    %253 = tpu.matmul %252, %239, %cst_398 {dimension_numbers = #tpu.dot_dimension_numbers<[1], [0], [0], [1], [0, 0, 1, 1], [], []>} : vector<64x4xbf16>, vector<4x4xbf16>, vector<64x4xf32> -> vector<64x4xf32>
    %254 = arith.addf %232, %253 : vector<64x4xf32>
    %c0_399 = arith.constant 0 : index
    %c0_400 = arith.constant 0 : index
    %c1_401 = arith.constant 1 : index
    %c1_402 = arith.constant 1 : index
    %c0_403 = arith.constant 0 : index
    %c2_404 = arith.constant 2 : index
    %c0_405 = arith.constant 0 : index
    %255 = vector.load %arg2[%c0_399, %c0_400, %c1_401, %c1_402, %c0_403, %c2_404, %c0_405] : memref<1x1x2x2x10x10x4xbf16, #tpu.memory_space<vmem>>, vector<1x1x1x1x8x8x4xbf16>
    %256 = vector.shape_cast %255 : vector<1x1x1x1x8x8x4xbf16> to vector<8x8x4xbf16>
    %257 = vector.shape_cast %256 : vector<8x8x4xbf16> to vector<64x4xbf16>
    %cst_406 = arith.constant dense<0.000000e+00> : vector<64x4xf32>
    %258 = tpu.matmul %257, %239, %cst_406 {dimension_numbers = #tpu.dot_dimension_numbers<[1], [0], [0], [1], [0, 0, 1, 1], [], []>} : vector<64x4xbf16>, vector<4x4xbf16>, vector<64x4xf32> -> vector<64x4xf32>
    %259 = arith.addf %237, %258 : vector<64x4xf32>
    %c12 = arith.constant 12 : index
    %c0_407 = arith.constant 0 : index
    %c0_408 = arith.constant 0 : index
    %260 = vector.load %arg3[%c12, %c0_407, %c0_408] : memref<17x4x4xbf16, #tpu.memory_space<vmem>>, vector<1x4x4xbf16>
    %261 = vector.shape_cast %260 : vector<1x4x4xbf16> to vector<4x4xbf16>
    %c0_409 = arith.constant 0 : index
    %c0_410 = arith.constant 0 : index
    %c0_411 = arith.constant 0 : index
    %c0_412 = arith.constant 0 : index
    %c1_413 = arith.constant 1 : index
    %c0_414 = arith.constant 0 : index
    %c0_415 = arith.constant 0 : index
    %262 = vector.load %arg2[%c0_409, %c0_410, %c0_411, %c0_412, %c1_413, %c0_414, %c0_415] : memref<1x1x2x2x10x10x4xbf16, #tpu.memory_space<vmem>>, vector<1x1x1x1x8x8x4xbf16>
    %263 = vector.shape_cast %262 : vector<1x1x1x1x8x8x4xbf16> to vector<8x8x4xbf16>
    %264 = vector.shape_cast %263 : vector<8x8x4xbf16> to vector<64x4xbf16>
    %cst_416 = arith.constant dense<0.000000e+00> : vector<64x4xf32>
    %265 = tpu.matmul %264, %261, %cst_416 {dimension_numbers = #tpu.dot_dimension_numbers<[1], [0], [0], [1], [0, 0, 1, 1], [], []>} : vector<64x4xbf16>, vector<4x4xbf16>, vector<64x4xf32> -> vector<64x4xf32>
    %266 = arith.addf %244, %265 : vector<64x4xf32>
    %c0_417 = arith.constant 0 : index
    %c0_418 = arith.constant 0 : index
    %c0_419 = arith.constant 0 : index
    %c1_420 = arith.constant 1 : index
    %c1_421 = arith.constant 1 : index
    %c0_422 = arith.constant 0 : index
    %c0_423 = arith.constant 0 : index
    %267 = vector.load %arg2[%c0_417, %c0_418, %c0_419, %c1_420, %c1_421, %c0_422, %c0_423] : memref<1x1x2x2x10x10x4xbf16, #tpu.memory_space<vmem>>, vector<1x1x1x1x8x8x4xbf16>
    %268 = vector.shape_cast %267 : vector<1x1x1x1x8x8x4xbf16> to vector<8x8x4xbf16>
    %269 = vector.shape_cast %268 : vector<8x8x4xbf16> to vector<64x4xbf16>
    %cst_424 = arith.constant dense<0.000000e+00> : vector<64x4xf32>
    %270 = tpu.matmul %269, %261, %cst_424 {dimension_numbers = #tpu.dot_dimension_numbers<[1], [0], [0], [1], [0, 0, 1, 1], [], []>} : vector<64x4xbf16>, vector<4x4xbf16>, vector<64x4xf32> -> vector<64x4xf32>
    %271 = arith.addf %249, %270 : vector<64x4xf32>
    %c0_425 = arith.constant 0 : index
    %c0_426 = arith.constant 0 : index
    %c1_427 = arith.constant 1 : index
    %c0_428 = arith.constant 0 : index
    %c1_429 = arith.constant 1 : index
    %c0_430 = arith.constant 0 : index
    %c0_431 = arith.constant 0 : index
    %272 = vector.load %arg2[%c0_425, %c0_426, %c1_427, %c0_428, %c1_429, %c0_430, %c0_431] : memref<1x1x2x2x10x10x4xbf16, #tpu.memory_space<vmem>>, vector<1x1x1x1x8x8x4xbf16>
    %273 = vector.shape_cast %272 : vector<1x1x1x1x8x8x4xbf16> to vector<8x8x4xbf16>
    %274 = vector.shape_cast %273 : vector<8x8x4xbf16> to vector<64x4xbf16>
    %cst_432 = arith.constant dense<0.000000e+00> : vector<64x4xf32>
    %275 = tpu.matmul %274, %261, %cst_432 {dimension_numbers = #tpu.dot_dimension_numbers<[1], [0], [0], [1], [0, 0, 1, 1], [], []>} : vector<64x4xbf16>, vector<4x4xbf16>, vector<64x4xf32> -> vector<64x4xf32>
    %276 = arith.addf %254, %275 : vector<64x4xf32>
    %c0_433 = arith.constant 0 : index
    %c0_434 = arith.constant 0 : index
    %c1_435 = arith.constant 1 : index
    %c1_436 = arith.constant 1 : index
    %c1_437 = arith.constant 1 : index
    %c0_438 = arith.constant 0 : index
    %c0_439 = arith.constant 0 : index
    %277 = vector.load %arg2[%c0_433, %c0_434, %c1_435, %c1_436, %c1_437, %c0_438, %c0_439] : memref<1x1x2x2x10x10x4xbf16, #tpu.memory_space<vmem>>, vector<1x1x1x1x8x8x4xbf16>
    %278 = vector.shape_cast %277 : vector<1x1x1x1x8x8x4xbf16> to vector<8x8x4xbf16>
    %279 = vector.shape_cast %278 : vector<8x8x4xbf16> to vector<64x4xbf16>
    %cst_440 = arith.constant dense<0.000000e+00> : vector<64x4xf32>
    %280 = tpu.matmul %279, %261, %cst_440 {dimension_numbers = #tpu.dot_dimension_numbers<[1], [0], [0], [1], [0, 0, 1, 1], [], []>} : vector<64x4xbf16>, vector<4x4xbf16>, vector<64x4xf32> -> vector<64x4xf32>
    %281 = arith.addf %259, %280 : vector<64x4xf32>
    %c13 = arith.constant 13 : index
    %c0_441 = arith.constant 0 : index
    %c0_442 = arith.constant 0 : index
    %282 = vector.load %arg3[%c13, %c0_441, %c0_442] : memref<17x4x4xbf16, #tpu.memory_space<vmem>>, vector<1x4x4xbf16>
    %283 = vector.shape_cast %282 : vector<1x4x4xbf16> to vector<4x4xbf16>
    %c0_443 = arith.constant 0 : index
    %c0_444 = arith.constant 0 : index
    %c0_445 = arith.constant 0 : index
    %c0_446 = arith.constant 0 : index
    %c1_447 = arith.constant 1 : index
    %c2_448 = arith.constant 2 : index
    %c0_449 = arith.constant 0 : index
    %284 = vector.load %arg2[%c0_443, %c0_444, %c0_445, %c0_446, %c1_447, %c2_448, %c0_449] : memref<1x1x2x2x10x10x4xbf16, #tpu.memory_space<vmem>>, vector<1x1x1x1x8x8x4xbf16>
    %285 = vector.shape_cast %284 : vector<1x1x1x1x8x8x4xbf16> to vector<8x8x4xbf16>
    %286 = vector.shape_cast %285 : vector<8x8x4xbf16> to vector<64x4xbf16>
    %cst_450 = arith.constant dense<0.000000e+00> : vector<64x4xf32>
    %287 = tpu.matmul %286, %283, %cst_450 {dimension_numbers = #tpu.dot_dimension_numbers<[1], [0], [0], [1], [0, 0, 1, 1], [], []>} : vector<64x4xbf16>, vector<4x4xbf16>, vector<64x4xf32> -> vector<64x4xf32>
    %288 = arith.addf %266, %287 : vector<64x4xf32>
    %c0_451 = arith.constant 0 : index
    %c0_452 = arith.constant 0 : index
    %c0_453 = arith.constant 0 : index
    %c1_454 = arith.constant 1 : index
    %c1_455 = arith.constant 1 : index
    %c2_456 = arith.constant 2 : index
    %c0_457 = arith.constant 0 : index
    %289 = vector.load %arg2[%c0_451, %c0_452, %c0_453, %c1_454, %c1_455, %c2_456, %c0_457] : memref<1x1x2x2x10x10x4xbf16, #tpu.memory_space<vmem>>, vector<1x1x1x1x8x8x4xbf16>
    %290 = vector.shape_cast %289 : vector<1x1x1x1x8x8x4xbf16> to vector<8x8x4xbf16>
    %291 = vector.shape_cast %290 : vector<8x8x4xbf16> to vector<64x4xbf16>
    %cst_458 = arith.constant dense<0.000000e+00> : vector<64x4xf32>
    %292 = tpu.matmul %291, %283, %cst_458 {dimension_numbers = #tpu.dot_dimension_numbers<[1], [0], [0], [1], [0, 0, 1, 1], [], []>} : vector<64x4xbf16>, vector<4x4xbf16>, vector<64x4xf32> -> vector<64x4xf32>
    %293 = arith.addf %271, %292 : vector<64x4xf32>
    %c0_459 = arith.constant 0 : index
    %c0_460 = arith.constant 0 : index
    %c1_461 = arith.constant 1 : index
    %c0_462 = arith.constant 0 : index
    %c1_463 = arith.constant 1 : index
    %c2_464 = arith.constant 2 : index
    %c0_465 = arith.constant 0 : index
    %294 = vector.load %arg2[%c0_459, %c0_460, %c1_461, %c0_462, %c1_463, %c2_464, %c0_465] : memref<1x1x2x2x10x10x4xbf16, #tpu.memory_space<vmem>>, vector<1x1x1x1x8x8x4xbf16>
    %295 = vector.shape_cast %294 : vector<1x1x1x1x8x8x4xbf16> to vector<8x8x4xbf16>
    %296 = vector.shape_cast %295 : vector<8x8x4xbf16> to vector<64x4xbf16>
    %cst_466 = arith.constant dense<0.000000e+00> : vector<64x4xf32>
    %297 = tpu.matmul %296, %283, %cst_466 {dimension_numbers = #tpu.dot_dimension_numbers<[1], [0], [0], [1], [0, 0, 1, 1], [], []>} : vector<64x4xbf16>, vector<4x4xbf16>, vector<64x4xf32> -> vector<64x4xf32>
    %298 = arith.addf %276, %297 : vector<64x4xf32>
    %c0_467 = arith.constant 0 : index
    %c0_468 = arith.constant 0 : index
    %c1_469 = arith.constant 1 : index
    %c1_470 = arith.constant 1 : index
    %c1_471 = arith.constant 1 : index
    %c2_472 = arith.constant 2 : index
    %c0_473 = arith.constant 0 : index
    %299 = vector.load %arg2[%c0_467, %c0_468, %c1_469, %c1_470, %c1_471, %c2_472, %c0_473] : memref<1x1x2x2x10x10x4xbf16, #tpu.memory_space<vmem>>, vector<1x1x1x1x8x8x4xbf16>
    %300 = vector.shape_cast %299 : vector<1x1x1x1x8x8x4xbf16> to vector<8x8x4xbf16>
    %301 = vector.shape_cast %300 : vector<8x8x4xbf16> to vector<64x4xbf16>
    %cst_474 = arith.constant dense<0.000000e+00> : vector<64x4xf32>
    %302 = tpu.matmul %301, %283, %cst_474 {dimension_numbers = #tpu.dot_dimension_numbers<[1], [0], [0], [1], [0, 0, 1, 1], [], []>} : vector<64x4xbf16>, vector<4x4xbf16>, vector<64x4xf32> -> vector<64x4xf32>
    %303 = arith.addf %281, %302 : vector<64x4xf32>
    %c14 = arith.constant 14 : index
    %c0_475 = arith.constant 0 : index
    %c0_476 = arith.constant 0 : index
    %304 = vector.load %arg3[%c14, %c0_475, %c0_476] : memref<17x4x4xbf16, #tpu.memory_space<vmem>>, vector<1x4x4xbf16>
    %305 = vector.shape_cast %304 : vector<1x4x4xbf16> to vector<4x4xbf16>
    %c0_477 = arith.constant 0 : index
    %c0_478 = arith.constant 0 : index
    %c0_479 = arith.constant 0 : index
    %c0_480 = arith.constant 0 : index
    %c2_481 = arith.constant 2 : index
    %c0_482 = arith.constant 0 : index
    %c0_483 = arith.constant 0 : index
    %306 = vector.load %arg2[%c0_477, %c0_478, %c0_479, %c0_480, %c2_481, %c0_482, %c0_483] : memref<1x1x2x2x10x10x4xbf16, #tpu.memory_space<vmem>>, vector<1x1x1x1x8x8x4xbf16>
    %307 = vector.shape_cast %306 : vector<1x1x1x1x8x8x4xbf16> to vector<8x8x4xbf16>
    %308 = vector.shape_cast %307 : vector<8x8x4xbf16> to vector<64x4xbf16>
    %cst_484 = arith.constant dense<0.000000e+00> : vector<64x4xf32>
    %309 = tpu.matmul %308, %305, %cst_484 {dimension_numbers = #tpu.dot_dimension_numbers<[1], [0], [0], [1], [0, 0, 1, 1], [], []>} : vector<64x4xbf16>, vector<4x4xbf16>, vector<64x4xf32> -> vector<64x4xf32>
    %310 = arith.addf %288, %309 : vector<64x4xf32>
    %c0_485 = arith.constant 0 : index
    %c0_486 = arith.constant 0 : index
    %c0_487 = arith.constant 0 : index
    %c1_488 = arith.constant 1 : index
    %c2_489 = arith.constant 2 : index
    %c0_490 = arith.constant 0 : index
    %c0_491 = arith.constant 0 : index
    %311 = vector.load %arg2[%c0_485, %c0_486, %c0_487, %c1_488, %c2_489, %c0_490, %c0_491] : memref<1x1x2x2x10x10x4xbf16, #tpu.memory_space<vmem>>, vector<1x1x1x1x8x8x4xbf16>
    %312 = vector.shape_cast %311 : vector<1x1x1x1x8x8x4xbf16> to vector<8x8x4xbf16>
    %313 = vector.shape_cast %312 : vector<8x8x4xbf16> to vector<64x4xbf16>
    %cst_492 = arith.constant dense<0.000000e+00> : vector<64x4xf32>
    %314 = tpu.matmul %313, %305, %cst_492 {dimension_numbers = #tpu.dot_dimension_numbers<[1], [0], [0], [1], [0, 0, 1, 1], [], []>} : vector<64x4xbf16>, vector<4x4xbf16>, vector<64x4xf32> -> vector<64x4xf32>
    %315 = arith.addf %293, %314 : vector<64x4xf32>
    %c0_493 = arith.constant 0 : index
    %c0_494 = arith.constant 0 : index
    %c1_495 = arith.constant 1 : index
    %c0_496 = arith.constant 0 : index
    %c2_497 = arith.constant 2 : index
    %c0_498 = arith.constant 0 : index
    %c0_499 = arith.constant 0 : index
    %316 = vector.load %arg2[%c0_493, %c0_494, %c1_495, %c0_496, %c2_497, %c0_498, %c0_499] : memref<1x1x2x2x10x10x4xbf16, #tpu.memory_space<vmem>>, vector<1x1x1x1x8x8x4xbf16>
    %317 = vector.shape_cast %316 : vector<1x1x1x1x8x8x4xbf16> to vector<8x8x4xbf16>
    %318 = vector.shape_cast %317 : vector<8x8x4xbf16> to vector<64x4xbf16>
    %cst_500 = arith.constant dense<0.000000e+00> : vector<64x4xf32>
    %319 = tpu.matmul %318, %305, %cst_500 {dimension_numbers = #tpu.dot_dimension_numbers<[1], [0], [0], [1], [0, 0, 1, 1], [], []>} : vector<64x4xbf16>, vector<4x4xbf16>, vector<64x4xf32> -> vector<64x4xf32>
    %320 = arith.addf %298, %319 : vector<64x4xf32>
    %c0_501 = arith.constant 0 : index
    %c0_502 = arith.constant 0 : index
    %c1_503 = arith.constant 1 : index
    %c1_504 = arith.constant 1 : index
    %c2_505 = arith.constant 2 : index
    %c0_506 = arith.constant 0 : index
    %c0_507 = arith.constant 0 : index
    %321 = vector.load %arg2[%c0_501, %c0_502, %c1_503, %c1_504, %c2_505, %c0_506, %c0_507] : memref<1x1x2x2x10x10x4xbf16, #tpu.memory_space<vmem>>, vector<1x1x1x1x8x8x4xbf16>
    %322 = vector.shape_cast %321 : vector<1x1x1x1x8x8x4xbf16> to vector<8x8x4xbf16>
    %323 = vector.shape_cast %322 : vector<8x8x4xbf16> to vector<64x4xbf16>
    %cst_508 = arith.constant dense<0.000000e+00> : vector<64x4xf32>
    %324 = tpu.matmul %323, %305, %cst_508 {dimension_numbers = #tpu.dot_dimension_numbers<[1], [0], [0], [1], [0, 0, 1, 1], [], []>} : vector<64x4xbf16>, vector<4x4xbf16>, vector<64x4xf32> -> vector<64x4xf32>
    %325 = arith.addf %303, %324 : vector<64x4xf32>
    %c15 = arith.constant 15 : index
    %c0_509 = arith.constant 0 : index
    %c0_510 = arith.constant 0 : index
    %326 = vector.load %arg3[%c15, %c0_509, %c0_510] : memref<17x4x4xbf16, #tpu.memory_space<vmem>>, vector<1x4x4xbf16>
    %327 = vector.shape_cast %326 : vector<1x4x4xbf16> to vector<4x4xbf16>
    %c0_511 = arith.constant 0 : index
    %c0_512 = arith.constant 0 : index
    %c0_513 = arith.constant 0 : index
    %c0_514 = arith.constant 0 : index
    %c2_515 = arith.constant 2 : index
    %c1_516 = arith.constant 1 : index
    %c0_517 = arith.constant 0 : index
    %328 = vector.load %arg2[%c0_511, %c0_512, %c0_513, %c0_514, %c2_515, %c1_516, %c0_517] : memref<1x1x2x2x10x10x4xbf16, #tpu.memory_space<vmem>>, vector<1x1x1x1x8x8x4xbf16>
    %329 = vector.shape_cast %328 : vector<1x1x1x1x8x8x4xbf16> to vector<8x8x4xbf16>
    %330 = vector.shape_cast %329 : vector<8x8x4xbf16> to vector<64x4xbf16>
    %cst_518 = arith.constant dense<0.000000e+00> : vector<64x4xf32>
    %331 = tpu.matmul %330, %327, %cst_518 {dimension_numbers = #tpu.dot_dimension_numbers<[1], [0], [0], [1], [0, 0, 1, 1], [], []>} : vector<64x4xbf16>, vector<4x4xbf16>, vector<64x4xf32> -> vector<64x4xf32>
    %332 = arith.addf %310, %331 : vector<64x4xf32>
    %c0_519 = arith.constant 0 : index
    %c0_520 = arith.constant 0 : index
    %c0_521 = arith.constant 0 : index
    %c1_522 = arith.constant 1 : index
    %c2_523 = arith.constant 2 : index
    %c1_524 = arith.constant 1 : index
    %c0_525 = arith.constant 0 : index
    %333 = vector.load %arg2[%c0_519, %c0_520, %c0_521, %c1_522, %c2_523, %c1_524, %c0_525] : memref<1x1x2x2x10x10x4xbf16, #tpu.memory_space<vmem>>, vector<1x1x1x1x8x8x4xbf16>
    %334 = vector.shape_cast %333 : vector<1x1x1x1x8x8x4xbf16> to vector<8x8x4xbf16>
    %335 = vector.shape_cast %334 : vector<8x8x4xbf16> to vector<64x4xbf16>
    %cst_526 = arith.constant dense<0.000000e+00> : vector<64x4xf32>
    %336 = tpu.matmul %335, %327, %cst_526 {dimension_numbers = #tpu.dot_dimension_numbers<[1], [0], [0], [1], [0, 0, 1, 1], [], []>} : vector<64x4xbf16>, vector<4x4xbf16>, vector<64x4xf32> -> vector<64x4xf32>
    %337 = arith.addf %315, %336 : vector<64x4xf32>
    %c0_527 = arith.constant 0 : index
    %c0_528 = arith.constant 0 : index
    %c1_529 = arith.constant 1 : index
    %c0_530 = arith.constant 0 : index
    %c2_531 = arith.constant 2 : index
    %c1_532 = arith.constant 1 : index
    %c0_533 = arith.constant 0 : index
    %338 = vector.load %arg2[%c0_527, %c0_528, %c1_529, %c0_530, %c2_531, %c1_532, %c0_533] : memref<1x1x2x2x10x10x4xbf16, #tpu.memory_space<vmem>>, vector<1x1x1x1x8x8x4xbf16>
    %339 = vector.shape_cast %338 : vector<1x1x1x1x8x8x4xbf16> to vector<8x8x4xbf16>
    %340 = vector.shape_cast %339 : vector<8x8x4xbf16> to vector<64x4xbf16>
    %cst_534 = arith.constant dense<0.000000e+00> : vector<64x4xf32>
    %341 = tpu.matmul %340, %327, %cst_534 {dimension_numbers = #tpu.dot_dimension_numbers<[1], [0], [0], [1], [0, 0, 1, 1], [], []>} : vector<64x4xbf16>, vector<4x4xbf16>, vector<64x4xf32> -> vector<64x4xf32>
    %342 = arith.addf %320, %341 : vector<64x4xf32>
    %c0_535 = arith.constant 0 : index
    %c0_536 = arith.constant 0 : index
    %c1_537 = arith.constant 1 : index
    %c1_538 = arith.constant 1 : index
    %c2_539 = arith.constant 2 : index
    %c1_540 = arith.constant 1 : index
    %c0_541 = arith.constant 0 : index
    %343 = vector.load %arg2[%c0_535, %c0_536, %c1_537, %c1_538, %c2_539, %c1_540, %c0_541] : memref<1x1x2x2x10x10x4xbf16, #tpu.memory_space<vmem>>, vector<1x1x1x1x8x8x4xbf16>
    %344 = vector.shape_cast %343 : vector<1x1x1x1x8x8x4xbf16> to vector<8x8x4xbf16>
    %345 = vector.shape_cast %344 : vector<8x8x4xbf16> to vector<64x4xbf16>
    %cst_542 = arith.constant dense<0.000000e+00> : vector<64x4xf32>
    %346 = tpu.matmul %345, %327, %cst_542 {dimension_numbers = #tpu.dot_dimension_numbers<[1], [0], [0], [1], [0, 0, 1, 1], [], []>} : vector<64x4xbf16>, vector<4x4xbf16>, vector<64x4xf32> -> vector<64x4xf32>
    %347 = arith.addf %325, %346 : vector<64x4xf32>
    %c16 = arith.constant 16 : index
    %c0_543 = arith.constant 0 : index
    %c0_544 = arith.constant 0 : index
    %348 = vector.load %arg3[%c16, %c0_543, %c0_544] : memref<17x4x4xbf16, #tpu.memory_space<vmem>>, vector<1x4x4xbf16>
    %349 = vector.shape_cast %348 : vector<1x4x4xbf16> to vector<4x4xbf16>
    %c0_545 = arith.constant 0 : index
    %c0_546 = arith.constant 0 : index
    %c0_547 = arith.constant 0 : index
    %c0_548 = arith.constant 0 : index
    %c2_549 = arith.constant 2 : index
    %c2_550 = arith.constant 2 : index
    %c0_551 = arith.constant 0 : index
    %350 = vector.load %arg2[%c0_545, %c0_546, %c0_547, %c0_548, %c2_549, %c2_550, %c0_551] : memref<1x1x2x2x10x10x4xbf16, #tpu.memory_space<vmem>>, vector<1x1x1x1x8x8x4xbf16>
    %351 = vector.shape_cast %350 : vector<1x1x1x1x8x8x4xbf16> to vector<8x8x4xbf16>
    %352 = vector.shape_cast %351 : vector<8x8x4xbf16> to vector<64x4xbf16>
    %cst_552 = arith.constant dense<0.000000e+00> : vector<64x4xf32>
    %353 = tpu.matmul %352, %349, %cst_552 {dimension_numbers = #tpu.dot_dimension_numbers<[1], [0], [0], [1], [0, 0, 1, 1], [], []>} : vector<64x4xbf16>, vector<4x4xbf16>, vector<64x4xf32> -> vector<64x4xf32>
    %354 = arith.addf %332, %353 : vector<64x4xf32>
    %c0_553 = arith.constant 0 : index
    %c0_554 = arith.constant 0 : index
    %c0_555 = arith.constant 0 : index
    %c1_556 = arith.constant 1 : index
    %c2_557 = arith.constant 2 : index
    %c2_558 = arith.constant 2 : index
    %c0_559 = arith.constant 0 : index
    %355 = vector.load %arg2[%c0_553, %c0_554, %c0_555, %c1_556, %c2_557, %c2_558, %c0_559] : memref<1x1x2x2x10x10x4xbf16, #tpu.memory_space<vmem>>, vector<1x1x1x1x8x8x4xbf16>
    %356 = vector.shape_cast %355 : vector<1x1x1x1x8x8x4xbf16> to vector<8x8x4xbf16>
    %357 = vector.shape_cast %356 : vector<8x8x4xbf16> to vector<64x4xbf16>
    %cst_560 = arith.constant dense<0.000000e+00> : vector<64x4xf32>
    %358 = tpu.matmul %357, %349, %cst_560 {dimension_numbers = #tpu.dot_dimension_numbers<[1], [0], [0], [1], [0, 0, 1, 1], [], []>} : vector<64x4xbf16>, vector<4x4xbf16>, vector<64x4xf32> -> vector<64x4xf32>
    %359 = arith.addf %337, %358 : vector<64x4xf32>
    %c0_561 = arith.constant 0 : index
    %c0_562 = arith.constant 0 : index
    %c1_563 = arith.constant 1 : index
    %c0_564 = arith.constant 0 : index
    %c2_565 = arith.constant 2 : index
    %c2_566 = arith.constant 2 : index
    %c0_567 = arith.constant 0 : index
    %360 = vector.load %arg2[%c0_561, %c0_562, %c1_563, %c0_564, %c2_565, %c2_566, %c0_567] : memref<1x1x2x2x10x10x4xbf16, #tpu.memory_space<vmem>>, vector<1x1x1x1x8x8x4xbf16>
    %361 = vector.shape_cast %360 : vector<1x1x1x1x8x8x4xbf16> to vector<8x8x4xbf16>
    %362 = vector.shape_cast %361 : vector<8x8x4xbf16> to vector<64x4xbf16>
    %cst_568 = arith.constant dense<0.000000e+00> : vector<64x4xf32>
    %363 = tpu.matmul %362, %349, %cst_568 {dimension_numbers = #tpu.dot_dimension_numbers<[1], [0], [0], [1], [0, 0, 1, 1], [], []>} : vector<64x4xbf16>, vector<4x4xbf16>, vector<64x4xf32> -> vector<64x4xf32>
    %364 = arith.addf %342, %363 : vector<64x4xf32>
    %c0_569 = arith.constant 0 : index
    %c0_570 = arith.constant 0 : index
    %c1_571 = arith.constant 1 : index
    %c1_572 = arith.constant 1 : index
    %c2_573 = arith.constant 2 : index
    %c2_574 = arith.constant 2 : index
    %c0_575 = arith.constant 0 : index
    %365 = vector.load %arg2[%c0_569, %c0_570, %c1_571, %c1_572, %c2_573, %c2_574, %c0_575] : memref<1x1x2x2x10x10x4xbf16, #tpu.memory_space<vmem>>, vector<1x1x1x1x8x8x4xbf16>
    %366 = vector.shape_cast %365 : vector<1x1x1x1x8x8x4xbf16> to vector<8x8x4xbf16>
    %367 = vector.shape_cast %366 : vector<8x8x4xbf16> to vector<64x4xbf16>
    %cst_576 = arith.constant dense<0.000000e+00> : vector<64x4xf32>
    %368 = tpu.matmul %367, %349, %cst_576 {dimension_numbers = #tpu.dot_dimension_numbers<[1], [0], [0], [1], [0, 0, 1, 1], [], []>} : vector<64x4xbf16>, vector<4x4xbf16>, vector<64x4xf32> -> vector<64x4xf32>
    %369 = arith.addf %347, %368 : vector<64x4xf32>
    %370 = arith.maximumf %354, %359 : vector<64x4xf32>
    %371 = arith.maximumf %364, %369 : vector<64x4xf32>
    %372 = arith.maximumf %370, %371 : vector<64x4xf32>
    %c0_577 = arith.constant 0 : index
    %c0_578 = arith.constant 0 : index
    %373 = vector.load %arg4[%c0_577, %c0_578] : memref<1x4xf32, #tpu.memory_space<vmem>>, vector<1x4xf32>
    %374 = vector.broadcast %373 : vector<1x4xf32> to vector<64x4xf32>
    %375 = arith.addf %372, %374 : vector<64x4xf32>
    %cst_579 = arith.constant 0.000000e+00 : f32
    %376 = vector.broadcast %cst_579 : f32 to vector<64x4xf32>
    %377 = arith.cmpf ogt, %375, %376 : vector<64x4xf32>
    %cst_580 = arith.constant 0.00999999977 : f32
    %378 = vector.broadcast %cst_580 : f32 to vector<64x4xf32>
    %379 = arith.mulf %378, %375 : vector<64x4xf32>
    %380 = arith.select %377, %375, %379 : vector<64x4xi1>, vector<64x4xf32>
    %381 = vector.shape_cast %380 : vector<64x4xf32> to vector<8x8x4xf32>
    %c0_581 = arith.constant 0 : index
    %c0_582 = arith.constant 0 : index
    %c0_583 = arith.constant 0 : index
    %c0_584 = arith.constant 0 : index
    %382 = vector.load %arg5[%c0_581, %c0_582, %c0_583, %c0_584] : memref<1x8x8x4xf32, #tpu.memory_space<vmem>>, vector<1x8x8x4xf32>
    %383 = vector.shape_cast %382 : vector<1x8x8x4xf32> to vector<8x8x4xf32>
    %384 = vector.shape_cast %381 : vector<8x8x4xf32> to vector<1x8x8x4xf32>
    tpu.vector_store %arg5[%c0_581, %c0_582, %c0_583, %c0_584], %384 {strides = array<i32>} : memref<1x8x8x4xf32, #tpu.memory_space<vmem>>, vector<1x8x8x4xf32>,
    return
  }
  func.func @transform_0(%arg0: i32, %arg1: i32) -> (i32, i32, i32, i32, i32, i32, i32) {
    %c0_i32 = arith.constant 0 : i32
    %c0_i32_0 = arith.constant 0 : i32
    %c0_i32_1 = arith.constant 0 : i32
    %c0_i32_2 = arith.constant 0 : i32
    %c0_i32_3 = arith.constant 0 : i32
    %c0_i32_4 = arith.constant 0 : i32
    return %arg0, %arg1, %c0_i32, %c0_i32_0, %c0_i32_1, %c0_i32_2, %c0_i32_3 : i32, i32, i32, i32, i32, i32, i32
  }
  func.func @transform_1(%arg0: i32, %arg1: i32) -> (i32, i32, i32) {
    %c0_i32 = arith.constant 0 : i32
    %c0_i32_0 = arith.constant 0 : i32
    %c0_i32_1 = arith.constant 0 : i32
    %c0_i32_2 = arith.constant 0 : i32
    return %c0_i32, %c0_i32_0, %c0_i32_1 : i32, i32, i32
  }
  func.func @transform_2(%arg0: i32, %arg1: i32) -> (i32, i32) {
    %c0_i32 = arith.constant 0 : i32
    %c0_i32_0 = arith.constant 0 : i32
    %c0_i32_1 = arith.constant 0 : i32
    return %c0_i32, %c0_i32_0 : i32, i32
  }
  func.func @transform_3(%arg0: i32, %arg1: i32) -> (i32, i32, i32, i32) {
    %c0_i32 = arith.constant 0 : i32
    %c0_i32_0 = arith.constant 0 : i32
    %c0_i32_1 = arith.constant 0 : i32
    return %arg0, %arg1, %c0_i32, %c0_i32_0 : i32, i32, i32, i32
  }
}

</mosaic_0001>

<bundles_post_ra>
// kernel: tpu_custom_call.1
= control target key start
LH: loop header
LB: loop body
LE: loop exit
PB: predicated region body
PF: predicated region fallthrough
CT: control target
= control target key end

     0   :  { %s10806_s12 = smov 0   ;;  %s10808_s13 = smov 0   ;;  %s14572_s0 = inlined_call_operand.vmem [shape: bf16[2,1,2,2,10,10,4], index: 0, kind: input, shape index: {}]   ;;  %s14573_s1 = inlined_call_operand.vmem [shape: bf16[17,4,4], index: 1, kind: input, shape index: {}]   ;;  %s14574_s2 = inlined_call_operand.vmem [shape: f32[1,4], index: 2, kind: input, shape index: {}]   ;;  %s14575_s3 = inlined_call_operand.vmem [shape: f32[2,8,8,4], index: 3, kind: output, shape index: {}]  }
   0x1   :  { %s10810_s14 = smov 0  }
   0x2 LB: > { %s25_s15 = sadd.s32 1, %s10780_s13  ;;  %p8641_p0 = scmp.ge.s32.totalorder %s10784_s14, 1  ;;  %s10784_s14 = sphi %s10810_s14, %s13_s14   ;;  %s10780_s13 = sphi %s10808_s13, %s14980_s13   ;;  %s10776_s12 = sphi %s10806_s12, %s14979_s12  }
   0x3   : > { %p27_p1 = scmp.ge.s32.totalorder %s25_s15, 2  ;;  %p157_p2 = scmp.lt.s32.totalorder %s10784_s14, 3 }
   0x5   : > { %s14982_s15 = smov (%p27_p1, %s25_s15), 0  ;;  %p158_p3 = pnand %p8641_p0, %p157_p2 }
   0x7   : > { %161 = sbr.rel (%p158_p3) target bundleno = 819 (0x333), region = 32 }
   0xc   : > { %v10827_v0 = vld [vmem:[%s14573_s1 + $0x2] sm:$0x3]  ;;  %vm773_vm0 = vcmask 1041408   ;;  %p189_p4 = scmp.lt.s32.totalorder %s10776_s12, 1  ;;  %v10838_v2 = vld [vmem:[%s14573_s1] sm:$0x3] }
   0xd   : > { %10549 = vmatprep.subr.msk.bf16.mxu0 %vm773_vm0, %v10827_v0  ;;  %v10833_v1 = vsel %vm773_vm0, %v10827_v0, 0  ;;  %10550 = vmatprep.subr.msk.bf16.mxu1 %vm773_vm0, %v10838_v2  ;;  %v10847_v3 = vsel %vm773_vm0, %v10838_v2, 0  ;;  %vm760_vm1 = vcmask 31744   ;;  %vm227_vm2 = vsmask.f32 3328 }
   0xe   : > { %9870 = vmatpush3.bf16.msra.mxu0 %v10833_v1  ;;  %s14984_s12 = smov (!%p189_p4, %s10776_s12), 1  ;;  %9880 = vmatpush3.bf16.msra.mxu1 %v10847_v3  ;;  %vm228_vm3 = vsmask.f32 7440  ;;  %vm2140_vm5 = vcmask 1042432   ;;  %vm2141_vm6 = vcmask 1046532  }
   0xf   : > { %10551 = vmatprep.subr.msk.bf16.mxu0 %vm773_vm0, %v10827_v0  ;;  %s10617_s20 = smul.u32 320, %s14984_s12  ;;  %10552 = vmatprep.subr.msk.bf16.mxu1 %vm773_vm0, %v10838_v2  ;;  %vm10880_vm4 = vmor %vm227_vm2, %vm228_vm3  ;;  %s9528_s6 = sshll.u32 %s14984_s12, 6 }
  0x10   : > { %vm11279_vm7 = vmor %vm2140_vm5, %vm2141_vm6  ;;  %s14519_s12 = scalar_lea.vmem %s14575_s3, %s9528_s6 }
  0x11   : > { %s10858_s23 = scalar_lea.vmem %s14572_s0, %s10617_s20 }
  0x12   : > { %v10642_v4 = vld [vmem:[%s10858_s23 + $0xf0] ss:$8 sps:$4 sm:$0xff]   ;;  %v10643_v5 = vld [vmem:[%s10858_s23 + $0x100] ss:$8 sps:$4 sm:$0xff]   ;;  %v8646_v8 = vld [vmem:[%s10858_s23 + $0xc] sm:$0x1] }
  0x13   : > { %9871 = vmatprep.mubr.msk.bf16.mxu0 %vm760_vm1, %v10642_v4  ;;  %v10644_v6 = vld [vmem:[%s10858_s23 + $0x110] ss:$8 sps:$4 sm:$0xff]   ;;  %v8645_v7 = vld [vmem:[%s10858_s23 + $0x8] sm:$0xf]  ;;  %v8648_v11 = vld [vmem:[%s10858_s23 + $0x14] sm:$0x1] }
  0x14   : > { %9872 = vmatmul.mubr.msk.bf16.vlgmr.msra.gmra.mxu0 %vm760_vm1, %v10643_v5  ;;  %v8647_v9 = vld [vmem:[%s10858_s23 + $0x10] sm:$0xf]  ;;  %v10645_v10 = vld [vmem:[%s10858_s23 + $0x120] ss:$8 sps:$4 sm:$0xff]   ;;  %v231_v12 = vshrl.u32 %v8645_v7, 16  ;;  %v234_v13 = vshll.u32 %v8645_v7, 16 }
  0x15   : > { %9875 = vmatprep.mubr.msk.bf16.mxu0 %vm760_vm1, %v10644_v6  ;;  %9890 = vmatpush3.bf16.msra.mxu0 %v10833_v1  ;;  %v240_v14 = vshll.u32 %v8646_v8, 16  ;;  %v245_v15 = vshrl.u32 %v8647_v9, 16  ;;  %v248_v16 = vshll.u32 %v8647_v9, 16  ;;  %v254_v17 = vshll.u32 %v8648_v11, 16  ;;  %v8649_v18 = vld [vmem:[%s10858_s23 + $0x18] sm:$0xf] }
  0x16   : > { %10553 = vmatprep.subr.msk.bf16.mxu0 %vm773_vm0, %v10827_v0  ;;  %v8650_v19 = vld [vmem:[%s10858_s23 + $0x1c] sm:$0x1]  ;;  %v233_v20 = vrot.slane %v231_v12, 4  ;;  %v236_v21 = vrot.slane %v234_v13, 5  ;;  %v8651_v24 = vld [vmem:[%s10858_s23 + $0x20] sm:$0xf] }
  0x17   : > { %v242_v22 = vrot.slane %v240_v14, 5  ;;  %v247_v23 = vrot.slane %v245_v15, 4  ;;  %v250_v25 = vrot.slane %v248_v16, 5  ;;  %v256_v26 = vrot.slane %v254_v17, 5  ;;  %v8652_v27 = vld [vmem:[%s10858_s23 + $0x24] sm:$0x1] }
  0x18   : > { %v259_v28 = vshrl.u32 %v8649_v18, 16  ;;  %v262_v29 = vshll.u32 %v8649_v18, 16  ;;  %v237_v30 = vor.u32 %v236_v21, %v233_v20  ;;  %v268_v31 = vshll.u32 %v8650_v19, 16  ;;  %v8734_v39 = vld [vmem:[%s10858_s23 + $0xa0] sm:$0xf] }
  0x19   : > { %v273_v32 = vshrl.u32 %v8651_v24, 16  ;;  %v276_v33 = vshll.u32 %v8651_v24, 16  ;;  %v251_v35 = vor.u32 %v250_v25, %v247_v23  ;;  %v282_v38 = vshll.u32 %v8652_v27, 16  ;;  %v8735_v43 = vld [vmem:[%s10858_s23 + $0xa4] sm:$0x1] }
  0x1a   : > { %v261_v36 = vrot.slane %v259_v28, 4  ;;  %v264_v37 = vrot.slane %v262_v29, 5  ;;  %v238_v40 = vrot.slane %v237_v30, 4  ;;  %v270_v46 = vrot.slane %v268_v31, 5  ;;  %v8736_v47 = vld [vmem:[%s10858_s23 + $0xa8] sm:$0xf] }
  0x1b   : > { %v275_v41 = vrot.slane %v273_v32, 4  ;;  %v278_v42 = vrot.slane %v276_v33, 5  ;;  %v252_v44 = vrot.slane %v251_v35, 4  ;;  %v284_v50 = vrot.slane %v282_v38, 5  ;;  %v8737_v51 = vld [vmem:[%s10858_s23 + $0xac] sm:$0x1] }
  0x1c   : > { %9876 = vmatmul.mubr.msk.bf16.gmra.mxu0 %vm760_vm1, %v10645_v10  ;;  %v265_v45 = vor.u32 %v264_v37, %v261_v36  ;;  %v243_v48 = vsel %vm10880_vm4, %v238_v40, %v242_v22  ;;  %v952_v52 = vshrl.u32 %v8734_v39, 16  ;;  %v955_v55 = vshll.u32 %v8734_v39, 16  ;;  %v8653_v57 = vld [vmem:[%s10858_s23 + $0x28] sm:$0xf]  ;;  %v8654_v62 = vld [vmem:[%s10858_s23 + $0x2c] sm:$0x1] }
  0x1d   : > { %v279_v49 = vor.u32 %v278_v42, %v275_v41  ;;  %v257_v53 = vsel %vm10880_vm4, %v252_v44, %v256_v26  ;;  %v961_v56 = vshll.u32 %v8735_v43, 16  ;;  %v966_v61 = vshrl.u32 %v8736_v47, 16  ;;  %v8655_v7 = vld [vmem:[%s10858_s23 + $0x30] sm:$0xf]  ;;  %v8656_v15 = vld [vmem:[%s10858_s23 + $0x34] sm:$0x1] }
  0x1e   : > { %v266_v54 = vrot.slane %v265_v45, 4  ;;  %v10894_v58 = vcombine.low %v243_v48, %v257_v53  ;;  %v954_v60 = vrot.slane %v952_v52, 4  ;;  %v957_v4 = vrot.slane %v955_v55, 5  ;;  %v8738_v17 = vld [vmem:[%s10858_s23 + $0xb0] sm:$0xf] }
  0x1f   : > { %v280_v59 = vrot.slane %v279_v49, 4  ;;  %v963_v5 = vrot.slane %v961_v56, 5  ;;  %v969_v6 = vshll.u32 %v8736_v47, 16  ;;  %v968_v9 = vrot.slane %v966_v61, 4  ;;  %v8739_v26 = vld [vmem:[%s10858_s23 + $0xb4] sm:$0x1] }
  0x20   : > { %v271_v63 = vsel %vm10880_vm4, %v266_v54, %v270_v46  ;;  %9881 = vmatprep.mubr.msk.bf16.mxu1 %vm760_vm1, %v10894_v58  ;;  %v975_v10 = vshll.u32 %v8737_v51, 16  ;;  %v287_v11 = vshrl.u32 %v8653_v57, 16  ;;  %v958_v13 = vor.u32 %v957_v4, %v954_v60  ;;  %v8740_v30 = vld [vmem:[%s10858_s23 + $0xb8] sm:$0xf]  ;;  %v8741_v38 = vld [vmem:[%s10858_s23 + $0xbc] sm:$0x1] }
  0x21   : > { %v285_v8 = vsel %vm10880_vm4, %v280_v59, %v284_v50  ;;  %v971_v14 = vrot.slane %v969_v6, 5  ;;  %v290_v16 = vshll.u32 %v8653_v57, 16  ;;  %v296_v20 = vshll.u32 %v8654_v62, 16  ;;  %v8657_v46 = vld [vmem:[%s10858_s23 + $0x38] sm:$0xf] }
  0x22   : > { %v10904_v12 = vcombine.low %v271_v63, %v285_v8  ;;  %v977_v18 = vrot.slane %v975_v10, 5  ;;  %v289_v19 = vrot.slane %v287_v11, 4  ;;  %v301_v21 = vshrl.u32 %v8655_v7, 16  ;;  %v8658_v47 = vld [vmem:[%s10858_s23 + $0x3c] sm:$0x1] }
  0x23   : > { %v959_v22 = vrot.slane %v958_v13, 4  ;;  %v972_v23 = vor.u32 %v971_v14, %v968_v9  ;;  %v292_v24 = vrot.slane %v290_v16, 5  ;;  %v304_v25 = vshll.u32 %v8655_v7, 16  ;;  %v8659_v52 = vld [vmem:[%s10858_s23 + $0x40] sm:$0xf] }
  0x24   : > { %9882 = vmatmul.mubr.msk.bf16.vlgmr.msra.gmra.mxu1 %vm760_vm1, %v10904_v12  ;;  %v298_v27 = vrot.slane %v296_v20, 5  ;;  %v303_v28 = vrot.slane %v301_v21, 4  ;;  %v310_v29 = vshll.u32 %v8656_v15, 16  ;;  %v980_v31 = vshrl.u32 %v8738_v17, 16  ;;  %v8660_v60 = vld [vmem:[%s10858_s23 + $0x44] sm:$0x1] }
  0x25   : > { %9900 = vmatpush3.bf16.msra.mxu1 %v10847_v3  ;;  %v964_v32 = vsel %vm10880_vm4, %v959_v22, %v963_v5  ;;  %v973_v33 = vrot.slane %v972_v23, 4  ;;  %v293_v35 = vor.u32 %v292_v24, %v289_v19  ;;  %v306_v36 = vrot.slane %v304_v25, 5  ;;  %v8742_v7 = vld [vmem:[%s10858_s23 + $0xc0] sm:$0xf]  ;;  %v8743_v13 = vld [vmem:[%s10858_s23 + $0xc4] sm:$0x1] }
  0x26   : > { %10554 = vmatprep.subr.msk.bf16.mxu1 %vm773_vm0, %v10838_v2  ;;  %v312_v37 = vrot.slane %v310_v29, 5  ;;  %v982_v39 = vrot.slane %v980_v31, 4  ;;  %v983_v40 = vshll.u32 %v8738_v17, 16  ;;  %v989_v41 = vshll.u32 %v8739_v26, 16  ;;  %v8745_v25 = vld [vmem:[%s10858_s23 + $0xcc] sm:$0x1] }
  0x27   : > { %v978_v42 = vsel %vm10880_vm4, %v973_v33, %v977_v18  ;;  %v294_v43 = vrot.slane %v293_v35, 4  ;;  %v307_v44 = vor.u32 %v306_v36, %v303_v28  ;;  %v994_v45 = vshrl.u32 %v8740_v30, 16  ;;  %v8744_v18 = vld [vmem:[%s10858_s23 + $0xc8] sm:$0xf] }
  0x28   : > { %v10922_v48 = vcombine.low %v964_v32, %v978_v42  ;;  %v985_v49 = vrot.slane %v983_v40, 5  ;;  %v991_v50 = vrot.slane %v989_v41, 5  ;;  %v997_v51 = vshll.u32 %v8740_v30, 16  ;;  %v8746_v32 = vld [vmem:[%s10858_s23 + $0xd0] sm:$0xf] }
  0x29   : > { %v299_v53 = vsel %vm10880_vm4, %v294_v43, %v298_v27  ;;  %v308_v54 = vrot.slane %v307_v44, 4  ;;  %v996_v55 = vrot.slane %v994_v45, 4  ;;  %v1003_v56 = vshll.u32 %v8741_v38, 16  ;;  %v8747_v38 = vld [vmem:[%s10858_s23 + $0xd4] sm:$0x1] }
  0x2a   : > { %14657 = vst [vmem:[#allocation2_spill] sm:$0xff] %v10922_v48  ;;  %9891 = vmatprep.mubr.msk.bf16.mxu0 %vm760_vm1, %v10922_v48  ;;  %v986_v57 = vor.u32 %v985_v49, %v982_v39  ;;  %v999_v59 = vrot.slane %v997_v51, 5  ;;  %v315_v61 = vshrl.u32 %v8657_v46, 16  ;;  %v318_v62 = vshll.u32 %v8657_v46, 16  ;;  %v8748_v39 = vld [vmem:[%s10858_s23 + $0xd8] sm:$0xf] }
  0x2b   : > { %v313_v63 = vsel %vm10880_vm4, %v308_v54, %v312_v37  ;;  %v1005_v4 = vrot.slane %v1003_v56, 5  ;;  %v324_v5 = vshll.u32 %v8658_v47, 16  ;;  %v329_v6 = vshrl.u32 %v8659_v52, 16  ;;  %v9458_v34 = vld [vmem:[%s10858_s23 + $0x88] sm:$0xe] }
  0x2c   : > { %v10933_v8 = vcombine.low %v299_v53, %v313_v63  ;;  %v987_v9 = vrot.slane %v986_v57, 4  ;;  %v1000_v10 = vor.u32 %v999_v59, %v996_v55  ;;  %v317_v11 = vrot.slane %v315_v61, 4  ;;  %v8661_v57 = vld [vmem:[%s10858_s23 + $0x58] sm:$0xf]  ;;  %v8662_v63 = vld [vmem:[%s10858_s23 + $0x5c] sm:$0x1] }
  0x2d   : > { %v320_v14 = vrot.slane %v318_v62, 5  ;;  %v326_v15 = vrot.slane %v324_v5, 5  ;;  %v331_v16 = vrot.slane %v329_v6, 4  ;;  %v332_v17 = vshll.u32 %v8659_v52, 16 }
  0x2e   : > { %9885 = vmatprep.mubr.msk.bf16.mxu1 %vm760_vm1, %v10933_v8  ;;  %v992_v19 = vsel %vm10880_vm4, %v987_v9, %v991_v50  ;;  %v1001_v20 = vrot.slane %v1000_v10, 4  ;;  %v338_v21 = vshll.u32 %v8660_v60, 16  ;;  %v1008_v22 = vshrl.u32 %v8742_v7, 16  ;;  %v8749_v50 = vld [vmem:[%s10858_s23 + $0xdc] sm:$0x1] }
  0x2f   : > { %v321_v23 = vor.u32 %v320_v14, %v317_v11  ;;  %v334_v24 = vrot.slane %v332_v17, 5  ;;  %v1011_v26 = vshll.u32 %v8742_v7, 16  ;;  %v1017_v27 = vshll.u32 %v8743_v13, 16 }
  0x30   : > { %v1006_v28 = vsel %vm10880_vm4, %v1001_v20, %v1005_v4  ;;  %v340_v29 = vrot.slane %v338_v21, 5  ;;  %v1010_v30 = vrot.slane %v1008_v22, 4  ;;  %v1022_v31 = vshrl.u32 %v8744_v18, 16  ;;  %v8663_v4 = vld [vmem:[%s10858_s23 + $0x60] sm:$0xf] }
  0x31   : > { %v10945_v33 = vcombine.low %v992_v19, %v1006_v28  ;;  %v322_v35 = vrot.slane %v321_v23, 4  ;;  %v335_v36 = vor.u32 %v334_v24, %v331_v16  ;;  %v1013_v37 = vrot.slane %v1011_v26, 5  ;;  %v8664_v16 = vld [vmem:[%s10858_s23 + $0x64] sm:$0x1]  ;;  %v8665_v23 = vld [vmem:[%s10858_s23 + $0x68] sm:$0xf] }
  0x32   : > { %v1019_v40 = vrot.slane %v1017_v27, 5  ;;  %v1024_v41 = vrot.slane %v1022_v31, 4  ;;  %v1025_v42 = vshll.u32 %v8744_v18, 16  ;;  %v1031_v43 = vshll.u32 %v8745_v25, 16  ;;  %v8666_v27 = vld [vmem:[%s10858_s23 + $0x6c] sm:$0x1] }
  0x33   : > { %14658 = vst [vmem:[#allocation3_spill] sm:$0xff] %v10945_v33  ;;  %9892 = vmatmul.mubr.msk.bf16.vlgmr.msra.gmra.mxu0 %vm760_vm1, %v10945_v33  ;;  %v327_v44 = vsel %vm10880_vm4, %v322_v35, %v326_v15  ;;  %v336_v45 = vrot.slane %v335_v36, 4  ;;  %v1014_v46 = vor.u32 %v1013_v37, %v1010_v30  ;;  %v1036_v47 = vshrl.u32 %v8746_v32, 16  ;;  %v8667_v28 = vld [vmem:[%s10858_s23 + $0x70] sm:$0xf] }
  0x34   : > { %v1027_v49 = vrot.slane %v1025_v42, 5  ;;  %v1039_v51 = vshll.u32 %v8746_v32, 16  ;;  %v1045_v52 = vshll.u32 %v8747_v38, 16  ;;  %9910 = vmatpush3.bf16.msra.mxu0 %v10833_v1  ;;  %v1050_v56 = vshrl.u32 %v8748_v39, 16  ;;  %v8668_v35 = vld [vmem:[%s10858_s23 + $0x74] sm:$0x1] }
  0x35   : > { %v341_v53 = vsel %vm10880_vm4, %v336_v45, %v340_v29  ;;  %v1015_v54 = vrot.slane %v1014_v46, 4  ;;  %v1038_v55 = vrot.slane %v1036_v47, 4  ;;  %10555 = vmatprep.subr.msk.bf16.mxu0 %vm773_vm0, %v10827_v0  ;;  %v1033_v61 = vrot.slane %v1031_v43, 5  ;;  %v8669_v45 = vld [vmem:[%s10858_s23 + $0x78] sm:$0xf] }
  0x36   : > { %v10960_v59 = vcombine.low %v327_v44, %v341_v53  ;;  %v1028_v60 = vor.u32 %v1027_v49, %v1024_v41  ;;  %v1041_v62 = vrot.slane %v1039_v51, 5  ;;  %v1052_v6 = vrot.slane %v1050_v56, 4 }
  0x37   : > { %v1020_v5 = vsel %vm10880_vm4, %v1015_v54, %v1019_v40  ;;  %v1053_v7 = vshll.u32 %v8748_v39, 16  ;;  %v1059_v9 = vshll.u32 %v8749_v50, 16  ;;  %v360_v11 = vshrl.u32 %v8661_v57, 16  ;;  %v10982_v40 = vld [vmem:[%s10858_s23 + $0x58] ss:$8 sps:$4 sm:$0xff]  }
  0x38   : > { %9886 = vmatmul.mubr.msk.bf16.gmra.mxu1 %vm760_vm1, %v10960_v59  ;;  %v1029_v10 = vrot.slane %v1028_v60, 4  ;;  %v1042_v0 = vor.u32 %v1041_v62, %v1038_v55  ;;  %v363_v13 = vshll.u32 %v8661_v57, 16  ;;  %v1047_v14 = vrot.slane %v1045_v52, 5  ;;  %v8670_v54 = vld [vmem:[%s10858_s23 + $0x7c] sm:$0x1] }
  0x39   : > { %v1055_v15 = vrot.slane %v1053_v7, 5  ;;  %v369_v17 = vshll.u32 %v8662_v63, 16  ;;  %v374_v18 = vshrl.u32 %v8663_v4, 16  ;;  %v362_v21 = vrot.slane %v360_v11, 4 }
  0x3a   : > { %v1034_v19 = vsel %vm10880_vm4, %v1029_v10, %v1033_v61  ;;  %v1043_v20 = vrot.slane %v1042_v0, 4  ;;  %v365_v22 = vrot.slane %v363_v13, 5  ;;  %v1061_v26 = vrot.slane %v1059_v9, 5  ;;  %v8671_v61 = vld [vmem:[%s10858_s23 + $0x80] sm:$0xf] }
  0x3b   : > { %v10972_v24 = vcombine.low %v1020_v5, %v1034_v19  ;;  %v1056_v25 = vor.u32 %v1055_v15, %v1052_v6  ;;  %v376_v30 = vrot.slane %v374_v18, 4  ;;  %v377_v31 = vshll.u32 %v8663_v4, 16  ;;  %v8672_v10 = vld [vmem:[%s10858_s23 + $0x84] sm:$0x1] }
  0x3c   : > { %v366_v29 = vor.u32 %v365_v22, %v362_v21  ;;  %v383_v32 = vshll.u32 %v8664_v16, 16  ;;  %v1048_v36 = vsel %vm10880_vm4, %v1043_v20, %v1047_v14  ;;  %v388_v38 = vshrl.u32 %v8665_v23, 16  ;;  %v8673_v16 = vld [vmem:[%s10858_s23 + $0x88] sm:$0xf]  ;;  %v8675_v21 = vld [vmem:[%s10858_s23 + $0x90] sm:$0xf] }
  0x3d   : > { %14659 = vst [vmem:[#allocation4_spill] sm:$0xff] %v10972_v24  ;;  %9895 = vmatprep.mubr.msk.bf16.mxu0 %vm760_vm1, %v10972_v24  ;;  %v1057_v37 = vrot.slane %v1056_v25, 4  ;;  %v391_v39 = vshll.u32 %v8665_v23, 16  ;;  %v371_v42 = vrot.slane %v369_v17, 5  ;;  %v379_v43 = vrot.slane %v377_v31, 5 }
  0x3e   : > { %v367_v41 = vrot.slane %v366_v29, 4  ;;  %v402_v44 = vshrl.u32 %v8667_v28, 16  ;;  %v390_v47 = vrot.slane %v388_v38, 4  ;;  %v397_v50 = vshll.u32 %v8666_v27, 16  ;;  %v11004_v20 = vld [vmem:[%s10858_s23 + $0x68] ss:$8 sps:$4 sm:$0xff]  }
  0x3f   : > { %v1062_v46 = vsel %vm10880_vm4, %v1057_v37, %v1061_v26  ;;  %v393_v49 = vrot.slane %v391_v39, 5  ;;  %v380_v52 = vor.u32 %v379_v43, %v376_v30  ;;  %v385_v53 = vrot.slane %v383_v32, 5  ;;  %v11010_v22 = vld [vmem:[%s14573_s1 + $0x4] sm:$0x3]  ;;  %v8676_v39 = vld [vmem:[%s10858_s23 + $0x94] sm:$0x1] }
  0x40   : > { %v10987_v51 = vcombine.low %v1048_v36, %v1062_v46  ;;  %v404_v56 = vrot.slane %v402_v44, 4  ;;  %v405_v57 = vshll.u32 %v8667_v28, 16  ;;  %v411_v60 = vshll.u32 %v8668_v35, 16  ;;  %v8674_v28 = vld [vmem:[%s10858_s23 + $0x8c] sm:$0x1] }
  0x41   : > { %v394_v55 = vor.u32 %v393_v49, %v390_v47  ;;  %v372_v62 = vsel %vm10880_vm4, %v367_v41, %v371_v42  ;;  %v381_v63 = vrot.slane %v380_v52, 4  ;;  %v416_v4 = vshrl.u32 %v8669_v45, 16  ;;  %v11018_v35 = vld [vmem:[%s10858_s23 + $0x78] ss:$8 sps:$4 sm:$0xff]   ;;  %v8677_v46 = vld [vmem:[%s10858_s23 + $0xa8] sm:$0xf] }
  0x42   : > { %14660 = vst [vmem:[#allocation5_spill] sm:$0xff] %v10987_v51  ;;  %9896 = vmatmul.mubr.msk.bf16.gmra.mxu0 %vm760_vm1, %v10987_v51  ;;  %v419_v5 = vshll.u32 %v8669_v45, 16  ;;  %v399_v7 = vrot.slane %v397_v50, 5  ;;  %v407_v9 = vrot.slane %v405_v57, 5  ;;  %v425_v0 = vshll.u32 %v8670_v54, 16 }
  0x43   : > { %v395_v6 = vrot.slane %v394_v55, 4  ;;  %9911 = vmatprep.mubr.msk.bf16.mxu0 %vm760_vm1, %v10982_v40  ;;  %v386_v11 = vsel %vm10880_vm4, %v381_v63, %v385_v53  ;;  %v418_v13 = vrot.slane %v416_v4, 4  ;;  %v430_v15 = vshrl.u32 %v8671_v61, 16  ;;  %v8678_v52 = vld [vmem:[%s10858_s23 + $0xac] sm:$0x1] }
  0x44   : > { %v421_v14 = vrot.slane %v419_v5, 5  ;;  %v11001_v17 = vcombine.low %v372_v62, %v386_v11  ;;  %v408_v18 = vor.u32 %v407_v9, %v404_v56  ;;  %v413_v19 = vrot.slane %v411_v60, 5  ;;  %v8679_v60 = vld [vmem:[%s10858_s23 + $0xb0] sm:$0xf]  ;;  %v8680_v9 = vld [vmem:[%s10858_s23 + $0xb4] sm:$0x1] }
  0x45   : > { %v432_v25 = vrot.slane %v430_v15, 4  ;;  %v433_v26 = vshll.u32 %v8671_v61, 16  ;;  %v439_v27 = vshll.u32 %v8672_v10, 16  ;;  %v400_v29 = vsel %vm10880_vm4, %v395_v6, %v399_v7  ;;  %v11042_v63 = vld [vmem:[%s10858_s23 + $0x88] ss:$8 sps:$4 sm:$0xff]  }
  0x46   : > { %v422_v23 = vor.u32 %v421_v14, %v418_v13  ;;  %9901 = vmatprep.mubr.msk.bf16.mxu1 %vm760_vm1, %v11001_v17  ;;  %v409_v30 = vrot.slane %v408_v18, 4  ;;  %v444_v31 = vshrl.u32 %v8673_v16, 16  ;;  %v447_v32 = vshll.u32 %v8673_v16, 16  ;;  %v8681_v15 = vld [vmem:[%s10858_s23 + $0xb8] sm:$0xf] }
  0x47   : > { %v427_v37 = vrot.slane %v425_v0, 5  ;;  %v435_v38 = vrot.slane %v433_v26, 5  ;;  %v458_v41 = vshrl.u32 %v8675_v21, 16  ;;  %v453_v45 = vshll.u32 %v8674_v28, 16 }
  0x48   : > { %v423_v36 = vrot.slane %v422_v23, 4  ;;  %v414_v42 = vsel %vm10880_vm4, %v409_v30, %v413_v19  ;;  %v446_v43 = vrot.slane %v444_v31, 4  ;;  %v449_v44 = vrot.slane %v447_v32, 5  ;;  %v8682_v23 = vld [vmem:[%s10858_s23 + $0xbc] sm:$0x1] }
  0x49   : > { %v11024_v47 = vcombine.low %v400_v29, %v414_v42  ;;  %v436_v49 = vor.u32 %v435_v38, %v432_v25  ;;  %v441_v50 = vrot.slane %v439_v27, 5  ;;  %v11031_v53 = vsel %vm773_vm0, %v11010_v22, 0  ;;  %v8683_v25 = vld [vmem:[%s10858_s23 + $0xc0] sm:$0xf]  ;;  %v8684_v30 = vld [vmem:[%s10858_s23 + $0xc4] sm:$0x1] }
  0x4a   : > { %9912 = vmatmul.mubr.msk.bf16.vlgmr.msra.gmra.mxu0 %vm760_vm1, %v11004_v20  ;;  %v450_v54 = vor.u32 %v449_v44, %v446_v43  ;;  %v460_v55 = vrot.slane %v458_v41, 4  ;;  %v461_v56 = vshll.u32 %v8675_v21, 16  ;;  %v467_v57 = vshll.u32 %v8676_v39, 16  ;;  %v8686_v43 = vld [vmem:[%s10858_s23 + $0xcc] sm:$0x1] }
  0x4b   : > { %9915 = vmatprep.mubr.msk.bf16.mxu0 %vm760_vm1, %v11018_v35  ;;  %9930 = vmatpush3.bf16.msra.mxu0 %v10833_v1  ;;  %v428_v61 = vsel %vm10880_vm4, %v423_v36, %v427_v37  ;;  %v437_v62 = vrot.slane %v436_v49, 4  ;;  %v489_v4 = vshrl.u32 %v8677_v46, 16  ;;  %v492_v5 = vshll.u32 %v8677_v46, 16  ;;  %v8685_v37 = vld [vmem:[%s10858_s23 + $0xc8] sm:$0xf] }
  0x4c   : > { %9902 = vmatmul.mubr.msk.bf16.vlgmr.msra.gmra.mxu1 %vm760_vm1, %v11024_v47  ;;  %10557 = vmatprep.subr.msk.bf16.mxu0 %vm773_vm0, %v11010_v22  ;;  %v451_v6 = vrot.slane %v450_v54, 4  ;;  %v455_v1 = vrot.slane %v453_v45, 5  ;;  %v463_v7 = vrot.slane %v461_v56, 5  ;;  %v498_v10 = vshll.u32 %v8678_v52, 16 }
  0x4d   : > { %9920 = vmatpush3.bf16.msra.mxu1 %v10847_v3  ;;  %v442_v0 = vsel %vm10880_vm4, %v437_v62, %v441_v50  ;;  %v491_v11 = vrot.slane %v489_v4, 4  ;;  %v494_v13 = vrot.slane %v492_v5, 5  ;;  %v503_v14 = vshrl.u32 %v8679_v60, 16  ;;  %v8687_v50 = vld [vmem:[%s10858_s23 + $0xd0] sm:$0xf] }
  0x4e   : > { %10556 = vmatprep.subr.msk.bf16.mxu1 %vm773_vm0, %v10838_v2  ;;  %v11053_v16 = vcombine.low %v428_v61, %v442_v0  ;;  %v464_v18 = vor.u32 %v463_v7, %v460_v55  ;;  %v469_v19 = vrot.slane %v467_v57, 5  ;;  %v500_v21 = vrot.slane %v498_v10, 5  ;;  %v8688_v5 = vld [vmem:[%s10858_s23 + $0xd4] sm:$0x1] }
  0x4f   : > { %v495_v26 = vor.u32 %v494_v13, %v491_v11  ;;  %v505_v27 = vrot.slane %v503_v14, 4  ;;  %v506_v28 = vshll.u32 %v8679_v60, 16  ;;  %v512_v29 = vshll.u32 %v8680_v9, 16  ;;  %v8689_v13 = vld [vmem:[%s10858_s23 + $0xd8] sm:$0xf] }
  0x50   : > { %9905 = vmatprep.mubr.msk.bf16.mxu1 %vm760_vm1, %v11053_v16  ;;  %v456_v2 = vsel %vm10880_vm4, %v451_v6, %v455_v1  ;;  %v465_v31 = vrot.slane %v464_v18, 4  ;;  %v517_v32 = vshrl.u32 %v8681_v15, 16  ;;  %v520_v36 = vshll.u32 %v8681_v15, 16 }
  0x51   : > { %v496_v38 = vrot.slane %v495_v26, 4  ;;  %v508_v39 = vrot.slane %v506_v28, 5  ;;  %v526_v41 = vshll.u32 %v8682_v23, 16  ;;  %v531_v42 = vshrl.u32 %v8683_v25, 16  ;;  %v8690_v28 = vld [vmem:[%s10858_s23 + $0xdc] sm:$0x1] }
  0x52   : > { %9916 = vmatmul.mubr.msk.bf16.gmra.mxu0 %vm760_vm1, %v11042_v63  ;;  %v470_v44 = vsel %vm10880_vm4, %v465_v31, %v469_v19  ;;  %v514_v45 = vrot.slane %v512_v29, 5  ;;  %v519_v46 = vrot.slane %v517_v32, 4  ;;  %v522_v49 = vrot.slane %v520_v36, 5 }
  0x53   : > { %9931 = vmatprep.mubr.msk.bf16.mxu0 %vm760_vm1, %v10894_v58  ;;  %v11071_v52 = vcombine.low %v456_v2, %v470_v44  ;;  %v501_v54 = vsel %vm10880_vm4, %v496_v38, %v500_v21  ;;  %v509_v55 = vor.u32 %v508_v39, %v505_v27  ;;  %v533_v56 = vrot.slane %v531_v42, 4  ;;  %v8691_v21 = vld [vmem:[%s10858_s23 + $0xe0] sm:$0xf]  ;;  %v8692_v38 = vld [vmem:[%s10858_s23 + $0xe4] sm:$0x1] }
  0x54   : > { %v523_v57 = vor.u32 %v522_v49, %v519_v46  ;;  %v534_v60 = vshll.u32 %v8683_v25, 16  ;;  %v540_v61 = vshll.u32 %v8684_v30, 16  ;;  %v545_v62 = vshrl.u32 %v8685_v37, 16 }
  0x55   : > { %9906 = vmatmul.mubr.msk.bf16.gmra.mxu1 %vm760_vm1, %v11071_v52  ;;  %v510_v4 = vrot.slane %v509_v55, 4  ;;  %v548_v6 = vshll.u32 %v8685_v37, 16  ;;  %v554_v1 = vshll.u32 %v8686_v43, 16  ;;  %v559_v7 = vshrl.u32 %v8687_v50, 16  ;;  %v8695_v55 = vld [vmem:[%s10858_s23 + $0x100] sm:$0xf] }
  0x56   : > { %v524_v9 = vrot.slane %v523_v57, 4  ;;  %v528_v10 = vrot.slane %v526_v41, 5  ;;  %v536_v0 = vrot.slane %v534_v60, 5  ;;  %v547_v11 = vrot.slane %v545_v62, 4  ;;  %v8694_v62 = vld [vmem:[%s10858_s23 + $0xfc] sm:$0x1] }
  0x57   : > { %v515_v14 = vsel %vm10880_vm4, %v510_v4, %v514_v45  ;;  %v542_v15 = vrot.slane %v540_v61, 5  ;;  %v550_v18 = vrot.slane %v548_v6, 5  ;;  %v556_v19 = vrot.slane %v554_v1, 5  ;;  %v8693_v45 = vld [vmem:[%s10858_s23 + $0xf8] sm:$0xf] }
  0x58   : > { %v11082_v23 = vcombine.low %v501_v54, %v515_v14  ;;  %v537_v25 = vor.u32 %v536_v0, %v533_v56  ;;  %v561_v26 = vrot.slane %v559_v7, 4  ;;  %v562_v27 = vshll.u32 %v8687_v50, 16  ;;  %v8696_v0 = vld [vmem:[%s10858_s23 + $0x104] sm:$0x1] }
  0x59   : > { %v551_v29 = vor.u32 %v550_v18, %v547_v11  ;;  %v568_v30 = vshll.u32 %v8688_v5, 16  ;;  %v573_v2 = vshrl.u32 %v8689_v13, 16  ;;  %v576_v31 = vshll.u32 %v8689_v13, 16 }
  0x5a   : > { %9932 = vmatmul.mubr.msk.bf16.vlgmr.msra.gmra.mxu0 %vm760_vm1, %v10904_v12  ;;  %9921 = vmatprep.mubr.msk.bf16.mxu1 %vm760_vm1, %v11082_v23  ;;  %v529_v32 = vsel %vm10880_vm4, %v524_v9, %v528_v10  ;;  %v538_v36 = vrot.slane %v537_v25, 4  ;;  %v564_v37 = vrot.slane %v562_v27, 5  ;;  %v587_v39 = vshrl.u32 %v8691_v21, 16 }
  0x5b   : > { %9935 = vmatprep.mubr.msk.bf16.mxu0 %vm760_vm1, %v10933_v8  ;;  %v552_v41 = vrot.slane %v551_v29, 4  ;;  %v575_v42 = vrot.slane %v573_v2, 4  ;;  %v578_v43 = vrot.slane %v576_v31, 5  ;;  %v582_v44 = vshll.u32 %v8690_v28, 16  ;;  %9950 = vmatpush3.bf16.msra.mxu0 %v11031_v53  ;;  %v8698_v2 = vld [vmem:[%s10858_s23 + $0x10c] sm:$0x1] }
  0x5c   : > { %v543_v46 = vsel %vm10880_vm4, %v538_v36, %v542_v15  ;;  %v565_v49 = vor.u32 %v564_v37, %v561_v26  ;;  %v570_v50 = vrot.slane %v568_v30, 5  ;;  %v589_v54 = vrot.slane %v587_v39, 4  ;;  %10559 = vmatprep.subr.msk.bf16.mxu0 %vm773_vm0, %v11010_v22 }
  0x5d   : > { %v11101_v56 = vcombine.low %v529_v32, %v543_v46  ;;  %v557_v57 = vsel %vm10880_vm4, %v552_v41, %v556_v19  ;;  %v579_v60 = vor.u32 %v578_v43, %v575_v42  ;;  %v590_v61 = vshll.u32 %v8691_v21, 16  ;;  %v8697_v19 = vld [vmem:[%s10858_s23 + $0x108] sm:$0xf]  ;;  %v8700_v42 = vld [vmem:[%s10858_s23 + $0x114] sm:$0x1] }
  0x5e   : > { %v566_v4 = vrot.slane %v565_v49, 4  ;;  %v596_v5 = vshll.u32 %v8692_v38, 16  ;;  %v618_v6 = vshrl.u32 %v8693_v45, 16  ;;  %v621_v1 = vshll.u32 %v8693_v45, 16 }
  0x5f   : > { %9922 = vmatmul.mubr.msk.bf16.vlgmr.msra.gmra.mxu1 %vm760_vm1, %v11101_v56  ;;  %v580_v7 = vrot.slane %v579_v60, 4  ;;  %v584_v9 = vrot.slane %v582_v44, 5  ;;  %v592_v10 = vrot.slane %v590_v61, 5  ;;  %v632_v11 = vshrl.u32 %v8695_v55, 16  ;;  %v8702_v60 = vld [vmem:[%s10858_s23 + $0x11c] sm:$0x1] }
  0x60   : > { %9940 = vmatpush3.bf16.msra.mxu1 %v10847_v3  ;;  %v571_v13 = vsel %vm10880_vm4, %v566_v4, %v570_v50  ;;  %v620_v14 = vrot.slane %v618_v6, 4  ;;  %v623_v15 = vrot.slane %v621_v1, 5  ;;  %v627_v18 = vshll.u32 %v8694_v62, 16  ;;  %v8699_v3 = vld [vmem:[%s10858_s23 + $0x110] sm:$0xf] }
  0x61   : > { %v11113_v21 = vcombine.low %v557_v57, %v571_v13  ;;  %v593_v25 = vor.u32 %v592_v10, %v589_v54  ;;  %v598_v26 = vrot.slane %v596_v5, 5  ;;  %10558 = vmatprep.subr.msk.bf16.mxu1 %vm773_vm0, %v11010_v22  ;;  %v634_v28 = vrot.slane %v632_v11, 4  ;;  %v8701_v50 = vld [vmem:[%s10858_s23 + $0x118] sm:$0xf]  ;;  %v8703_v6 = vld [vmem:[%s10858_s23 + $0x120] sm:$0xf] }
  0x62   : > { %9936 = vmatmul.mubr.msk.bf16.gmra.mxu0 %vm760_vm1, %v10960_v59  ;;  %v624_v27 = vor.u32 %v623_v15, %v620_v14  ;;  %v635_v29 = vshll.u32 %v8695_v55, 16  ;;  %v641_v30 = vshll.u32 %v8696_v0, 16  ;;  %v585_v31 = vsel %vm10880_vm4, %v580_v7, %v584_v9  ;;  %v11142_v0 = vld [vmem:[%s14573_s1 + $0x6] sm:$0x3]  ;;  %v8704_v15 = vld [vmem:[%s10858_s23 + $0x124] sm:$0x1] }
  0x63   : > { %9951 = vmatprep.mubr.msk.bf16.mxu0 %vm760_vm1, %v10922_v48  ;;  %9925 = vmatprep.mubr.msk.bf16.mxu1 %vm760_vm1, %v11113_v21  ;;  %v594_v32 = vrot.slane %v593_v25, 4  ;;  %v646_v36 = vshrl.u32 %v8697_v19, 16  ;;  %v649_v37 = vshll.u32 %v8697_v19, 16  ;;  %v629_v39 = vrot.slane %v627_v18, 5 }
  0x64   : > { %v625_v38 = vrot.slane %v624_v27, 4  ;;  %v637_v41 = vrot.slane %v635_v29, 5  ;;  %v660_v43 = vshrl.u32 %v8699_v3, 16  ;;  %v655_v49 = vshll.u32 %v8698_v2, 16  ;;  %v8705_v27 = vld [vmem:[%s10858_s23 + $0x128] sm:$0xf] }
  0x65   : > { %v599_v44 = vsel %vm10880_vm4, %v594_v32, %v598_v26  ;;  %v648_v45 = vrot.slane %v646_v36, 4  ;;  %v651_v46 = vrot.slane %v649_v37, 5  ;;  %v643_v57 = vrot.slane %v641_v30, 5  ;;  %v8707_v2 = vld [vmem:[%s10858_s23 + $0x130] sm:$0xf] }
  0x66   : > { %v11131_v54 = vcombine.low %v585_v31, %v599_v44  ;;  %v638_v55 = vor.u32 %v637_v41, %v634_v28  ;;  %v662_v62 = vrot.slane %v660_v43, 4  ;;  %v663_v4 = vshll.u32 %v8699_v3, 16 }
  0x67   : > { %v652_v61 = vor.u32 %v651_v46, %v648_v45  ;;  %v669_v5 = vshll.u32 %v8700_v42, 16  ;;  %v630_v1 = vsel %vm10880_vm4, %v625_v38, %v629_v39  ;;  %v674_v9 = vshrl.u32 %v8701_v50, 16  ;;  %v8706_v38 = vld [vmem:[%s10858_s23 + $0x12c] sm:$0x1] }
  0x68   : > { %9926 = vmatmul.mubr.msk.bf16.gmra.mxu1 %vm760_vm1, %v11131_v54  ;;  %v639_v7 = vrot.slane %v638_v55, 4  ;;  %v677_v10 = vshll.u32 %v8701_v50, 16  ;;  %v657_v13 = vrot.slane %v655_v49, 5  ;;  %v665_v14 = vrot.slane %v663_v4, 5  ;;  %v8708_v49 = vld [vmem:[%s10858_s23 + $0x134] sm:$0x1] }
  0x69   : > { %v653_v11 = vrot.slane %v652_v61, 4  ;;  %v683_v18 = vshll.u32 %v8702_v60, 16  ;;  %v676_v25 = vrot.slane %v674_v9, 4  ;;  %v688_v3 = vshrl.u32 %v8703_v6, 16 }
  0x6a   : > { %9952 = vmatmul.mubr.msk.bf16.vlgmr.msra.gmra.mxu0 %vm760_vm1, %v10945_v33  ;;  %v644_v19 = vsel %vm10880_vm4, %v639_v7, %v643_v57  ;;  %v679_v26 = vrot.slane %v677_v10, 5  ;;  %v666_v29 = vor.u32 %v665_v14, %v662_v62  ;;  %v671_v30 = vrot.slane %v669_v5, 5  ;;  %v8807_v62 = vld [vmem:[%s10858_s23 + $0xf0] sm:$0xf] }
  0x6b   : > { %9955 = vmatprep.mubr.msk.bf16.mxu0 %vm760_vm1, %v10972_v24  ;;  %9970 = vmatpush3.bf16.msra.mxu0 %v11031_v53  ;;  %v11153_v28 = vcombine.low %v630_v1, %v644_v19  ;;  %v690_v32 = vrot.slane %v688_v3, 4  ;;  %v691_v36 = vshll.u32 %v8703_v6, 16  ;;  %v697_v37 = vshll.u32 %v8704_v15, 16  ;;  %v8808_v1 = vld [vmem:[%s10858_s23 + $0xf4] sm:$0x1] }
  0x6c   : > { %10561 = vmatprep.subr.msk.bf16.mxu0 %vm773_vm0, %v11142_v0  ;;  %v680_v31 = vor.u32 %v679_v26, %v676_v25  ;;  %v658_v39 = vsel %vm10880_vm4, %v653_v11, %v657_v13  ;;  %v667_v41 = vrot.slane %v666_v29, 4  ;;  %v702_v42 = vshrl.u32 %v8705_v27, 16  ;;  %v8809_v13 = vld [vmem:[%s10858_s23 + $0xf8] sm:$0xf] }
  0x6d   : > { %9941 = vmatprep.mubr.msk.bf16.mxu1 %vm760_vm1, %v11153_v28  ;;  %v705_v43 = vshll.u32 %v8705_v27, 16  ;;  %v685_v45 = vrot.slane %v683_v18, 5  ;;  %v693_v46 = vrot.slane %v691_v36, 5  ;;  %v716_v50 = vshrl.u32 %v8707_v2, 16  ;;  %v8810_v27 = vld [vmem:[%s10858_s23 + $0xfc] sm:$0x1] }
  0x6e   : > { %v681_v44 = vrot.slane %v680_v31, 4  ;;  %v672_v55 = vsel %vm10880_vm4, %v667_v41, %v671_v30  ;;  %v704_v57 = vrot.slane %v702_v42, 4  ;;  %v711_v61 = vshll.u32 %v8706_v38, 16  ;;  %v8811_v36 = vld [vmem:[%s10858_s23 + $0x100] sm:$0xf] }
  0x6f   : > { %v707_v60 = vrot.slane %v705_v43, 5  ;;  %v11167_v4 = vcombine.low %v658_v39, %v672_v55  ;;  %v694_v5 = vor.u32 %v693_v46, %v690_v32  ;;  %v699_v6 = vrot.slane %v697_v37, 5  ;;  %v8812_v41 = vld [vmem:[%s10858_s23 + $0x104] sm:$0x1]  ;;  %v8813_v42 = vld [vmem:[%s10858_s23 + $0x108] sm:$0xf] }
  0x70   : > { %v718_v9 = vrot.slane %v716_v50, 4  ;;  %v719_v10 = vshll.u32 %v8707_v2, 16  ;;  %v725_v11 = vshll.u32 %v8708_v49, 16  ;;  %v686_v14 = vsel %vm10880_vm4, %v681_v44, %v685_v45  ;;  %v8814_v49 = vld [vmem:[%s10858_s23 + $0x10c] sm:$0x1] }
  0x71   : > { %v708_v7 = vor.u32 %v707_v60, %v704_v57  ;;  %9942 = vmatmul.mubr.msk.bf16.vlgmr.msra.gmra.mxu1 %vm760_vm1, %v11167_v4  ;;  %v695_v15 = vrot.slane %v694_v5, 4  ;;  %v1684_v18 = vshrl.u32 %v8807_v62, 16  ;;  %v1687_v19 = vshll.u32 %v8807_v62, 16  ;;  %v8815_v60 = vld [vmem:[%s10858_s23 + $0x110] sm:$0xf] }
  0x72   : > { %9956 = vmatmul.mubr.msk.bf16.gmra.mxu0 %vm760_vm1, %v10987_v51  ;;  %9960 = vmatpush3.bf16.msra.mxu1 %v11031_v53  ;;  %v713_v26 = vrot.slane %v711_v61, 5  ;;  %v721_v3 = vrot.slane %v719_v10, 5  ;;  %v1693_v29 = vshll.u32 %v8808_v1, 16  ;;  %v1698_v32 = vshrl.u32 %v8809_v13, 16  ;;  %v8816_v1 = vld [vmem:[%s10858_s23 + $0x114] sm:$0x1] }
  0x73   : > { %9971 = vmatprep.mubr.msk.bf16.mxu0 %vm760_vm1, %v10894_v58  ;;  %v709_v25 = vrot.slane %v708_v7, 4  ;;  %v700_v30 = vsel %vm10880_vm4, %v695_v15, %v699_v6  ;;  %v1686_v2 = vrot.slane %v1684_v18, 4  ;;  %v1689_v31 = vrot.slane %v1687_v19, 5  ;;  %10560 = vmatprep.subr.msk.bf16.mxu1 %vm773_vm0, %v11010_v22  ;;  %v8817_v18 = vld [vmem:[%s10858_s23 + $0x118] sm:$0xf] }
  0x74   : > { %v11186_v37 = vcombine.low %v686_v14, %v700_v30  ;;  %v722_v38 = vor.u32 %v721_v3, %v718_v9  ;;  %v727_v39 = vrot.slane %v725_v11, 5  ;;  %v1700_v44 = vrot.slane %v1698_v32, 4 }
  0x75   : > { %v1690_v43 = vor.u32 %v1689_v31, %v1686_v2  ;;  %v1701_v45 = vshll.u32 %v8809_v13, 16  ;;  %v1707_v46 = vshll.u32 %v8810_v27, 16  ;;  %v714_v22 = vsel %vm10880_vm4, %v709_v25, %v713_v26  ;;  %v8818_v27 = vld [vmem:[%s10858_s23 + $0x11c] sm:$0x1] }
  0x76   : > { %9945 = vmatprep.mubr.msk.bf16.mxu1 %vm760_vm1, %v11186_v37  ;;  %v723_v50 = vrot.slane %v722_v38, 4  ;;  %v1712_v55 = vshrl.u32 %v8811_v36, 16  ;;  %v1715_v57 = vshll.u32 %v8811_v36, 16  ;;  %v1695_v62 = vrot.slane %v1693_v29, 5 }
  0x77   : > { %v1691_v61 = vrot.slane %v1690_v43, 4  ;;  %v1703_v5 = vrot.slane %v1701_v45, 5  ;;  %v1726_v6 = vshrl.u32 %v8813_v42, 16  ;;  %v1721_v11 = vshll.u32 %v8812_v41, 16  ;;  %v8819_v41 = vld [vmem:[%s10858_s23 + $0x120] sm:$0xf] }
  0x78   : > { %v728_v7 = vsel %vm10880_vm4, %v723_v50, %v727_v39  ;;  %v1714_v9 = vrot.slane %v1712_v55, 4  ;;  %v1717_v10 = vrot.slane %v1715_v57, 5  ;;  %v1709_v15 = vrot.slane %v1707_v46, 5  ;;  %v8821_v50 = vld [vmem:[%s10858_s23 + $0x128] sm:$0xf] }
  0x79   : > { %v11201_v13 = vcombine.low %v714_v22, %v728_v7  ;;  %v1704_v14 = vor.u32 %v1703_v5, %v1700_v44  ;;  %v1728_v25 = vrot.slane %v1726_v6, 4  ;;  %v1729_v26 = vshll.u32 %v8813_v42, 16 }
  0x7a   : > { %9972 = vmatmul.mubr.msk.bf16.vlgmr.msra.gmra.mxu0 %vm760_vm1, %v10904_v12  ;;  %v1718_v19 = vor.u32 %v1717_v10, %v1714_v9  ;;  %v1735_v3 = vshll.u32 %v8814_v49, 16  ;;  %v1696_v29 = vsel %vm10880_vm4, %v1691_v61, %v1695_v62  ;;  %v1740_v2 = vshrl.u32 %v8815_v60, 16  ;;  %v8820_v62 = vld [vmem:[%s10858_s23 + $0x124] sm:$0x1] }
  0x7b   : > { %9975 = vmatprep.mubr.msk.bf16.mxu0 %vm760_vm1, %v10933_v8  ;;  %9946 = vmatmul.mubr.msk.bf16.gmra.mxu1 %vm760_vm1, %v11201_v13  ;;  %v1705_v30 = vrot.slane %v1704_v14, 4  ;;  %v1743_v31 = vshll.u32 %v8815_v60, 16  ;;  %v1723_v36 = vrot.slane %v1721_v11, 5  ;;  %v1731_v38 = vrot.slane %v1729_v26, 5  ;;  %v8822_v14 = vld [vmem:[%s10858_s23 + $0x12c] sm:$0x1] }
  0x7c   : > { %v1719_v32 = vrot.slane %v1718_v19, 4  ;;  %v1749_v39 = vshll.u32 %v8816_v1, 16  ;;  %v1742_v43 = vrot.slane %v1740_v2, 4  ;;  %v1754_v45 = vshrl.u32 %v8817_v18, 16 }
  0x7d   : > { %v1710_v42 = vsel %vm10880_vm4, %v1705_v30, %v1709_v15  ;;  %v1745_v44 = vrot.slane %v1743_v31, 5  ;;  %v1732_v49 = vor.u32 %v1731_v38, %v1728_v25  ;;  %v1737_v22 = vrot.slane %v1735_v3, 5 }
  0x7e   : > { %v11214_v46 = vcombine.low %v1696_v29, %v1710_v42  ;;  %v1756_v57 = vrot.slane %v1754_v45, 4  ;;  %v1757_v60 = vshll.u32 %v8817_v18, 16  ;;  %v1763_v61 = vshll.u32 %v8818_v27, 16 }
  0x7f   : > { %v1746_v55 = vor.u32 %v1745_v44, %v1742_v43  ;;  %v1724_v5 = vsel %vm10880_vm4, %v1719_v32, %v1723_v36  ;;  %v1733_v6 = vrot.slane %v1732_v49, 4  ;;  %v1768_v1 = vshrl.u32 %v8819_v41, 16 }
  0x80   : > { %14661 = vst [vmem:[#allocation6_spill] sm:$0xff] %v11214_v46  ;;  %9961 = vmatprep.mubr.msk.bf16.mxu1 %vm760_vm1, %v11214_v46  ;;  %v1771_v7 = vshll.u32 %v8819_v41, 16  ;;  %v1751_v10 = vrot.slane %v1749_v39, 5  ;;  %v1759_v11 = vrot.slane %v1757_v60, 5  ;;  %v1782_v15 = vshrl.u32 %v8821_v50, 16 }
  0x81   : > { %v1747_v9 = vrot.slane %v1746_v55, 4  ;;  %v1738_v18 = vsel %vm10880_vm4, %v1733_v6, %v1737_v22  ;;  %v1770_v19 = vrot.slane %v1768_v1, 4  ;;  %v1777_v26 = vshll.u32 %v8820_v62, 16  ;;  %v11254_v22 = vld [vmem:[%s14573_s1 + $0x8] sm:$0x3] }
  0x82   : > { %9976 = vmatmul.mubr.msk.bf16.gmra.mxu0 %vm760_vm1, %v10960_v59  ;;  %v1773_v25 = vrot.slane %v1771_v7, 5  ;;  %v11229_v3 = vcombine.low %v1724_v5, %v1738_v18  ;;  %v1760_v27 = vor.u32 %v1759_v11, %v1756_v57  ;;  %v1765_v29 = vrot.slane %v1763_v61, 5  ;;  %v8874_v60 = vld [vmem:[%s10858_s23 + $0x18] sm:$0xe]  ;;  %v8875_v62 = vld [vmem:[%s10858_s23 + $0x20] sm:$0xe] }
  0x83   : > { %9991 = vmatprep.mubr.msk.bf16.mxu0 %vm760_vm1, %v11214_v46  ;;  %v1784_v2 = vrot.slane %v1782_v15, 4  ;;  %v1785_v31 = vshll.u32 %v8821_v50, 16  ;;  %v1791_v32 = vshll.u32 %v8822_v14, 16  ;;  %v1752_v36 = vsel %vm10880_vm4, %v1747_v9, %v1751_v10  ;;  %v10690_v5 = vld [vmem:[%s10858_s23 + $0x1c] sm:$0x1] }
  0x84   : > { %14662 = vst [vmem:[#allocation7_spill] sm:$0xff] %v11229_v3  ;;  %v1774_v30 = vor.u32 %v1773_v25, %v1770_v19  ;;  %9962 = vmatmul.mubr.msk.bf16.vlgmr.msra.gmra.mxu1 %vm760_vm1, %v11229_v3  ;;  %v1761_v38 = vrot.slane %v1760_v27, 4  ;;  %v11237_v39 = vsel %vm773_vm0, %v11142_v0, 0  ;;  %v1779_v42 = vrot.slane %v1777_v26, 5  ;;  %v10691_v1 = vld [vmem:[%s10858_s23 + $0x24] sm:$0x1] }
  0x85   : > { %9980 = vmatpush3.bf16.msra.mxu1 %v11031_v53  ;;  %v1787_v43 = vrot.slane %v1785_v31, 5  ;;  %9990 = vmatpush3.bf16.msra.mxu0 %v11237_v39  ;;  %v1793_v49 = vrot.slane %v1791_v32, 5  ;;  %v2379_v6 = vrot.slane %v10690_v5, 5  ;;  %v2383_v7 = vrot.slane %v10691_v1, 5  ;;  %v8844_v14 = vld [vmem:[%s10858_s23 + $0xa0] sm:$0xe] }
  0x86   : > { %v1775_v41 = vrot.slane %v1774_v30, 4  ;;  %v1766_v44 = vsel %vm10880_vm4, %v1761_v38, %v1765_v29  ;;  %10562 = vmatprep.subr.msk.bf16.mxu1 %vm773_vm0, %v11142_v0  ;;  %10563 = vmatprep.subr.msk.bf16.mxu0 %vm773_vm0, %v11142_v0  ;;  %v8882_v9 = vrot.slane %v8874_v60, 9  ;;  %v8883_v10 = vrot.slane %v8875_v62, 9  ;;  %v8845_v15 = vld [vmem:[%s10858_s23 + $0xa8] sm:$0xe] }
  0x87   : > { %v11247_v45 = vcombine.low %v1752_v36, %v1766_v44  ;;  %v1788_v53 = vor.u32 %v1787_v43, %v1784_v2  ;;  %v14665_v11 = vmov 0  ;;  %v8852_v26 = vrot.slane %v8844_v14, 9  ;;  %v10692_v27 = vld [vmem:[%s10858_s23 + $0xa4] sm:$0x1]  ;;  %v10693_v2 = vld [vmem:[%s10858_s23 + $0xac] sm:$0x1] }
  0x88   : > { %v1780_v50 = vsel %vm10880_vm4, %v1775_v41, %v1779_v42  ;;  %v14666_v11 = vsel %vm11279_vm7, 4294967295, %v14665_v11  ;;  %v2380_v18 = vsel %vm11279_vm7, %v8882_v9, %v2379_v6  ;;  %v2384_v19 = vsel %vm11279_vm7, %v8883_v10, %v2383_v7  ;;  %v8846_v36 = vld [vmem:[%s10858_s23 + $0xb0] sm:$0xe]  ;;  %v8847_v38 = vld [vmem:[%s10858_s23 + $0xb8] sm:$0xe] }
  0x89   : > { %14663 = vst [vmem:[#allocation8_spill] sm:$0xff] %v11247_v45  ;;  %9965 = vmatprep.mubr.msk.bf16.mxu1 %vm760_vm1, %v11247_v45  ;;  %v1789_v55 = vrot.slane %v1788_v53, 4  ;;  %14667 = vst [vmem:[#allocation10_spill] sm:$0xff] %v14666_v11  ;;  %v11291_v25 = vcombine.low %v2380_v18, %v2384_v19  ;;  %v2145_v29 = vrot.slane %v10692_v27, 5  ;;  %v8853_v30 = vrot.slane %v8845_v15, 9 }
  0x8a   : > { %9992 = vmatmul.mubr.msk.bf16.vlgmr.msra.gmra.mxu0 %vm760_vm1, %v11229_v3  ;;  %v2149_v31 = vrot.slane %v10693_v2, 5  ;;  %v11299_v32 = vsel %vm773_vm0, %v11254_v22, 0  ;;  %v8848_v43 = vld [vmem:[%s10858_s23 + $0xc0] sm:$0xe]  ;;  %v8849_v44 = vld [vmem:[%s10858_s23 + $0xc8] sm:$0xe] }
  0x8b   : > { %9995 = vmatprep.mubr.msk.bf16.mxu0 %vm760_vm1, %v11247_v45  ;;  %10010 = vmatpush3.bf16.msra.mxu0 %v11237_v39  ;;  %v1794_v57 = vsel %vm10880_vm4, %v1789_v55, %v1793_v49  ;;  %14668 = vst [vmem:[#allocation11_spill] sm:$0xff] %v11291_v25  ;;  %v2146_v41 = vsel %vm11279_vm7, %v8852_v26, %v2145_v29  ;;  %v8854_v53 = vrot.slane %v8846_v36, 9  ;;  %v10694_v49 = vld [vmem:[%s10858_s23 + $0xb4] sm:$0x1]  ;;  %v8855_v55 = vrot.slane %v8847_v38, 9 }
  0x8c   : > { %10565 = vmatprep.subr.msk.bf16.mxu0 %vm773_vm0, %v11254_v22  ;;  %v11268_v61 = vcombine.low %v1780_v50, %v1794_v57  ;;  %v2150_v42 = vsel %vm11279_vm7, %v8853_v30, %v2149_v31  ;;  %v2153_v50 = vrot.slane %v10694_v49, 5  ;;  %v10695_v57 = vld [vmem:[%s10858_s23 + $0xbc] sm:$0x1]  ;;  %v8856_v62 = vrot.slane %v8848_v43, 9  ;;  %v10696_v5 = vld [vmem:[%s10858_s23 + $0xc4] sm:$0x1] }
  0x8d   : > { %v2157_v60 = vrot.slane %v10695_v57, 5  ;;  %v2161_v6 = vrot.slane %v10696_v5, 5  ;;  %v8857_v1 = vrot.slane %v8849_v44, 9  ;;  %v10697_v7 = vld [vmem:[%s10858_s23 + $0xcc] sm:$0x1] }
  0x8e   : > { %14664 = vst [vmem:[#allocation9_spill] sm:$0xff] %v11268_v61  ;;  %9966 = vmatmul.mubr.msk.bf16.gmra.mxu1 %vm760_vm1, %v11268_v61  ;;  %v2165_v9 = vrot.slane %v10697_v7, 5  ;;  %v2154_v10 = vsel %vm11279_vm7, %v8854_v53, %v2153_v50  ;;  %v8850_v15 = vld [vmem:[%s10858_s23 + $0xd0] sm:$0xe]  ;;  %v8851_v26 = vld [vmem:[%s10858_s23 + $0xd8] sm:$0xe] }
  0x8f   : > { %9981 = vmatprep.mubr.msk.bf16.mxu1 %vm760_vm1, %v11001_v17  ;;  %v2158_v14 = vsel %vm11279_vm7, %v8855_v55, %v2157_v60  ;;  %v2162_v18 = vsel %vm11279_vm7, %v8856_v62, %v2161_v6  ;;  %v8872_v27 = vld [vmem:[%s10858_s23 + $0x8] sm:$0xe]  ;;  %v8873_v29 = vld [vmem:[%s10858_s23 + $0x10] sm:$0xe]  ;;  %v8858_v2 = vrot.slane %v8850_v15, 9 }
  0x90   : > { %v2166_v19 = vsel %vm11279_vm7, %v8857_v1, %v2165_v9  ;;  %v11347_v30 = vcombine.low %v2154_v10, %v2158_v14  ;;  %v10698_v36 = vld [vmem:[%s10858_s23 + $0xd4] sm:$0x1]  ;;  %v8880_v44 = vrot.slane %v8872_v27, 9  ;;  %v10700_v53 = vld [vmem:[%s10858_s23 + $0xc] sm:$0x1]  ;;  %v8881_v50 = vrot.slane %v8873_v29, 9 }
  0x91   : > { %v11349_v31 = vcombine.low %v2162_v18, %v2166_v19  ;;  %v2169_v38 = vrot.slane %v10698_v36, 5  ;;  %v2371_v49 = vrot.slane %v10700_v53, 5  ;;  %v10701_v55 = vld [vmem:[%s10858_s23 + $0x14] sm:$0x1]  ;;  %v11367_v62 = vld [vmem:[%s14573_s1 + $0xa] sm:$0x3] }
  0x92   : > { %9996 = vmatmul.mubr.msk.bf16.gmra.mxu0 %vm760_vm1, %v11268_v61  ;;  %14670 = vst [vmem:[#allocation13_spill] sm:$0xff] %v11347_v30  ;;  %v2375_v57 = vrot.slane %v10701_v55, 5  ;;  %v8876_v6 = vld [vmem:[%s10858_s23 + $0x28] sm:$0xe]  ;;  %v8877_v1 = vld [vmem:[%s10858_s23 + $0x30] sm:$0xe] }
  0x93   : > { %10011 = vmatprep.mubr.msk.bf16.mxu0 %vm760_vm1, %v11001_v17  ;;  %14671 = vst [vmem:[#allocation14_spill] sm:$0xff] %v11349_v31  ;;  %v2372_v5 = vsel %vm11279_vm7, %v8880_v44, %v2371_v49  ;;  %v8884_v10 = vrot.slane %v8876_v6, 9  ;;  %v10702_v14 = vld [vmem:[%s10858_s23 + $0x2c] sm:$0x1]  ;;  %v8885_v15 = vrot.slane %v8877_v1, 9 }
  0x94   : > { %v10703_v18 = vld [vmem:[%s10858_s23 + $0x34] sm:$0x1]  ;;  %v10705_v44 = vld [vmem:[%s10858_s23 + $0x44] sm:$0x1]  ;;  %v11412_v49 = vld [vmem:[%s10858_s23 + $0x108] ss:$8 sps:$4 sm:$0xff]  }
  0x95   : > { %v2391_v19 = vrot.slane %v10703_v18, 5  ;;  %v2399_v53 = vrot.slane %v10705_v44, 5  ;;  %v11524_v44 = vld [vmem:[%s10858_s23 + $0x44] sm:$0x1]  ;;  %v10654_v61 = vld [vmem:[%s10858_s23 + $0x60] ss:$8 sps:$4 sm:$0xff]  }
  0x96   : > { %9982 = vmatmul.mubr.msk.bf16.vlgmr.msra.gmra.mxu1 %vm760_vm1, %v11024_v47 }
  0x97   : > { %10000 = vmatpush3.bf16.msra.mxu1 %v11237_v39  ;;  %9985 = vmatprep.mubr.msk.bf16.mxu1 %vm760_vm1, %v11053_v16  ;;  %v2392_v29 = vsel %vm11279_vm7, %v8885_v15, %v2391_v19 }
  0x98   : > { %10564 = vmatprep.subr.msk.bf16.mxu1 %vm773_vm0, %v11142_v0  ;;  %v11322_v0 = vcombine.low %v2146_v41, %v2150_v42  ;;  %v8859_v41 = vrot.slane %v8851_v26, 9  ;;  %v10699_v42 = vld [vmem:[%s10858_s23 + $0xdc] sm:$0x1]  ;;  %v11391_v26 = vld [vmem:[%s10858_s23 + $0xf8] ss:$8 sps:$4 sm:$0xff]  }
  0x99   : > { %v2173_v43 = vrot.slane %v10699_v42, 5 }
  0x9a   : > { %10012 = vmatmul.mubr.msk.bf16.vlgmr.msra.gmra.mxu0 %vm760_vm1, %v11024_v47  ;;  %14669 = vst [vmem:[#allocation12_spill] sm:$0xff] %v11322_v0 }
  0x9b   : > { %10015 = vmatprep.mubr.msk.bf16.mxu0 %vm760_vm1, %v11053_v16  ;;  %10030 = vmatpush3.bf16.msra.mxu0 %v11299_v32  ;;  %v2174_v60 = vsel %vm11279_vm7, %v8859_v41, %v2173_v43  ;;  %v10704_v41 = vld [vmem:[%s10858_s23 + $0x3c] sm:$0x1] }
  0x9c   : > { %10567 = vmatprep.subr.msk.bf16.mxu0 %vm773_vm0, %v11254_v22  ;;  %v2395_v42 = vrot.slane %v10704_v41, 5  ;;  %v11513_v41 = vld [vmem:[%s10858_s23 + $0x3c] sm:$0x1] }
  0x9e   : > { %9986 = vmatmul.mubr.msk.bf16.gmra.mxu1 %vm760_vm1, %v11071_v52 }
  0x9f   : > { %10001 = vmatprep.mubr.msk.bf16.mxu1 %vm760_vm1, %v11322_v0 }
  0xa2   : > { %10016 = vmatmul.mubr.msk.bf16.gmra.mxu0 %vm760_vm1, %v11071_v52 }
  0xa3   : > { %10031 = vmatprep.mubr.msk.bf16.mxu0 %vm760_vm1, %v10982_v40  ;;  %v2170_v40 = vsel %vm11279_vm7, %v8858_v2, %v2169_v38  ;;  %v8879_v2 = vld [vmem:[%s10858_s23 + $0x40] sm:$0xe] }
  0xa4   : > { %v11382_v7 = vcombine.low %v2170_v40, %v2174_v60  ;;  %v8887_v43 = vrot.slane %v8879_v2, 9  ;;  %v11442_v60 = vld [vmem:[%s10858_s23 + $0x128] ss:$8 sps:$4 sm:$0xff]  }
  0xa6   : > { %10002 = vmatmul.mubr.msk.bf16.vlgmr.msra.gmra.mxu1 %vm760_vm1, %v11347_v30  ;;  %14672 = vst [vmem:[#allocation15_spill] sm:$0xff] %v11382_v7 }
  0xa7   : > { %10020 = vmatpush3.bf16.msra.mxu1 %v11237_v39  ;;  %10005 = vmatprep.mubr.msk.bf16.mxu1 %vm760_vm1, %v11349_v31  ;;  %v2376_v39 = vsel %vm11279_vm7, %v8881_v50, %v2375_v57  ;;  %v11415_v50 = vld [vmem:[%s10858_s23 + $0x118] ss:$8 sps:$4 sm:$0xff]   ;;  %v2400_v57 = vsel %vm11279_vm7, %v8887_v43, %v2399_v53  ;;  %v11527_v53 = vld [vmem:[%s10858_s23 + $0x4c] sm:$0x1] }
  0xa8   : > { %10566 = vmatprep.subr.msk.bf16.mxu1 %vm773_vm0, %v11254_v22  ;;  %v11386_v9 = vcombine.low %v2372_v5, %v2376_v39  ;;  %v9062_v5 = vld [vmem:[%s10858_s23 + $0x18] sm:$0xe]  ;;  %v10656_v31 = vld [vmem:[%s10858_s23 + $0x80] ss:$8 sps:$4 sm:$0xff]  }
  0xa9   : > { %v9070_v1 = vrot.slane %v9062_v5, 9 }
  0xaa   : > { %10032 = vmatmul.mubr.msk.bf16.vlgmr.msra.gmra.mxu0 %vm760_vm1, %v11004_v20  ;;  %14673 = vst [vmem:[#allocation16_spill] sm:$0xff] %v11386_v9  ;;  %v2387_v20 = vrot.slane %v10702_v14, 5  ;;  %v9063_v14 = vld [vmem:[%s10858_s23 + $0x20] sm:$0xe] }
  0xab   : > { %10035 = vmatprep.mubr.msk.bf16.mxu0 %vm760_vm1, %v11018_v35  ;;  %10050 = vmatpush3.bf16.msra.mxu0 %v11299_v32  ;;  %v8878_v35 = vld [vmem:[%s10858_s23 + $0x38] sm:$0xe]  ;;  %v9071_v15 = vrot.slane %v9063_v14, 9  ;;  %v9068_v14 = vld [vmem:[%s10858_s23 + $0x48] sm:$0xe] }
  0xac   : > { %10569 = vmatprep.subr.msk.bf16.mxu0 %vm773_vm0, %v11367_v62  ;;  %v2388_v27 = vsel %vm11279_vm7, %v8884_v10, %v2387_v20  ;;  %v8886_v36 = vrot.slane %v8878_v35, 9  ;;  %v9064_v20 = vld [vmem:[%s10858_s23 + $0x28] sm:$0xe] }
  0xad   : > { %v11407_v38 = vcombine.low %v2388_v27, %v2392_v29  ;;  %v9072_v19 = vrot.slane %v9064_v20, 9 }
  0xae   : > { %10006 = vmatmul.mubr.msk.bf16.gmra.mxu1 %vm760_vm1, %v11382_v7  ;;  %v2396_v55 = vsel %vm11279_vm7, %v8886_v36, %v2395_v42  ;;  %v11510_v36 = vld [vmem:[%s10858_s23 + $0x34] sm:$0x1] }
  0xaf   : > { %10021 = vmatprep.mubr.msk.bf16.mxu1 %vm760_vm1, %v11386_v9  ;;  %14674 = vst [vmem:[#allocation17_spill] sm:$0xff] %v11407_v38  ;;  %v11437_v40 = vcombine.low %v2396_v55, %v2400_v57  ;;  %v4426_v55 = vrot.slane %v11524_v44, 5  ;;  %v4430_v57 = vrot.slane %v11527_v53, 5 }
  0xb1   : > { %14675 = vst [vmem:[#allocation18_spill] sm:$0xff] %v11437_v40 }
  0xb2   : > { %10036 = vmatmul.mubr.msk.bf16.gmra.mxu0 %vm760_vm1, %v11042_v63  ;;  %v11421_v63 = vsel %vm773_vm0, %v11367_v62, 0 }
  0xb3   : > { %10051 = vmatprep.mubr.msk.bf16.mxu0 %vm760_vm1, %v11391_v26 }
  0xb6   : > { %10022 = vmatmul.mubr.msk.bf16.vlgmr.msra.gmra.mxu1 %vm760_vm1, %v11291_v25 }
  0xb7   : > { %10040 = vmatpush3.bf16.msra.mxu1 %v11299_v32  ;;  %10025 = vmatprep.mubr.msk.bf16.mxu1 %vm760_vm1, %v11407_v38 }
  0xb8   : > { %10568 = vmatprep.subr.msk.bf16.mxu1 %vm773_vm0, %v11254_v22 }
  0xba   : > { %10052 = vmatmul.mubr.msk.bf16.vlgmr.msra.gmra.mxu0 %vm760_vm1, %v11412_v49 }
  0xbb   : > { %10055 = vmatprep.mubr.msk.bf16.mxu0 %vm760_vm1, %v11415_v50  ;;  %10070 = vmatpush3.bf16.msra.mxu0 %v11421_v63 }
  0xbc   : > { %10571 = vmatprep.subr.msk.bf16.mxu0 %vm773_vm0, %v11367_v62 }
  0xbe   : > { %10026 = vmatmul.mubr.msk.bf16.gmra.mxu1 %vm760_vm1, %v11437_v40 }
  0xbf   : > { %10041 = vmatprep.mubr.msk.bf16.mxu1 %vm760_vm1, %v10894_v58  ;;  %v11460_v58 = vld [vmem:[%s14573_s1 + $0xc] sm:$0x3] }
  0xc0   : > { %v11521_v43 = vsel %vm773_vm0, %v11460_v58, 0 }
  0xc2   : > { %10056 = vmatmul.mubr.msk.bf16.gmra.mxu0 %vm760_vm1, %v11442_v60 }
  0xc3   : > { %10071 = vmatprep.mubr.msk.bf16.mxu0 %vm760_vm1, %v11001_v17  ;;  %v11480_v17 = vld [vmem:[%s10858_s23 + $0x24] sm:$0x1] }
  0xc6   : > { %10042 = vmatmul.mubr.msk.bf16.vlgmr.msra.gmra.mxu1 %vm760_vm1, %v10904_v12  ;;  %v11472_v12 = vld [vmem:[%s10858_s23 + $0x14] sm:$0x1] }
  0xc7   : > { %10060 = vmatpush3.bf16.msra.mxu1 %v11299_v32  ;;  %10045 = vmatprep.mubr.msk.bf16.mxu1 %vm760_vm1, %v10933_v8  ;;  %v11477_v8 = vld [vmem:[%s10858_s23 + $0x1c] sm:$0x1]  ;;  %v9061_v32 = vld [vmem:[%s10858_s23 + $0x10] sm:$0xe]  ;;  %v4402_v6 = vrot.slane %v11472_v12, 5  ;;  %v3504_v45 = vshll.u32 %v11472_v12, 16 }
  0xc8   : > { %10570 = vmatprep.subr.msk.bf16.mxu1 %vm773_vm0, %v11367_v62  ;;  %v9069_v39 = vrot.slane %v9061_v32, 9  ;;  %v4406_v10 = vrot.slane %v11477_v8, 5 }
  0xc9   : > { %v3506_v51 = vrot.slane %v3504_v45, 5 }
  0xca   : > { %10072 = vmatmul.mubr.msk.bf16.vlgmr.msra.gmra.mxu0 %vm760_vm1, %v11024_v47  ;;  %v11483_v47 = vld [vmem:[%s10858_s23 + $0x2c] sm:$0x1]  ;;  %v4407_v18 = vsel %vm11279_vm7, %v9070_v1, %v4406_v10  ;;  %v4422_v1 = vrot.slane %v11513_v41, 5  ;;  %v9067_v10 = vld [vmem:[%s10858_s23 + $0x40] sm:$0xe] }
  0xcb   : > { %10075 = vmatprep.mubr.msk.bf16.mxu0 %vm760_vm1, %v11053_v16  ;;  %10090 = vmatpush3.bf16.msra.mxu0 %v11421_v63  ;;  %v4410_v16 = vrot.slane %v11480_v17, 5  ;;  %v4414_v22 = vrot.slane %v11483_v47, 5  ;;  %v9075_v20 = vrot.slane %v9067_v10, 9 }
  0xcc   : > { %10573 = vmatprep.subr.msk.bf16.mxu0 %vm773_vm0, %v11460_v58 }
  0xcd   : > { %v4411_v27 = vsel %vm11279_vm7, %v9071_v15, %v4410_v16  ;;  %v4415_v2 = vsel %vm11279_vm7, %v9072_v19, %v4414_v22  ;;  %v9065_v16 = vld [vmem:[%s10858_s23 + $0x30] sm:$0xe]  ;;  %v9066_v22 = vld [vmem:[%s10858_s23 + $0x38] sm:$0xe]  ;;  %v4427_v19 = vsel %vm11279_vm7, %v9075_v20, %v4426_v55 }
  0xce   : > { %10046 = vmatmul.mubr.msk.bf16.gmra.mxu1 %vm760_vm1, %v10960_v59  ;;  %v11515_v42 = vcombine.low %v4411_v27, %v4415_v2  ;;  %v9073_v5 = vrot.slane %v9065_v16, 9 }
  0xcf   : > { %10061 = vmatprep.mubr.msk.bf16.mxu1 %vm760_vm1, %v11082_v23 }
  0xd0   : > { %14677 = vst [vmem:[#allocation20_spill] sm:$0xff] %v11515_v42  ;;  %v9001_v42 = vld [vmem:[%s10858_s23 + $0x48] sm:$0xf] }
  0xd2   : > { %10076 = vmatmul.mubr.msk.bf16.gmra.mxu0 %vm760_vm1, %v11071_v52  ;;  %v4403_v52 = vsel %vm11279_vm7, %v9069_v39, %v4402_v6  ;;  %v4418_v39 = vrot.slane %v11510_v36, 5  ;;  %v9074_v6 = vrot.slane %v9066_v22, 9 }
  0xd3   : > { %10091 = vmatprep.mubr.msk.bf16.mxu0 %vm760_vm1, %v11153_v28  ;;  %v11503_v35 = vcombine.low %v4403_v52, %v4407_v18  ;;  %v9076_v52 = vrot.slane %v9068_v14, 9  ;;  %v10706_v14 = vld [vmem:[%s10858_s23 + $0xac] sm:$0x1] }
  0xd4   : > { %v9873_v59 = vpop.f32.mrf.mxu0  ;;  %v4423_v15 = vsel %vm11279_vm7, %v9074_v6, %v4422_v1  ;;  %v3085_v20 = vrot.slane %v10706_v14, 5 }
  0xd5   : > { %14676 = vst [vmem:[#allocation19_spill] sm:$0xff] %v11503_v35  ;;  %v4431_v2 = vsel %vm11279_vm7, %v9076_v52, %v4430_v57 }
  0xd6   : > { %v811_v29 = vpop.f32.mrf.mxu0  ;;  %10062 = vmatmul.mubr.msk.bf16.vlgmr.msra.gmra.mxu1 %vm760_vm1, %v11101_v56  ;;  %v11559_v16 = vcombine.low %v4427_v19, %v4431_v2 }
  0xd7   : > { %10080 = vmatpush3.bf16.msra.mxu1 %v11421_v63  ;;  %10065 = vmatprep.mubr.msk.bf16.mxu1 %vm760_vm1, %v11113_v21 }
  0xd8   : > { %10572 = vmatprep.subr.msk.bf16.mxu1 %vm773_vm0, %v11367_v62  ;;  %v9874_v32 = vpop.f32.mrf.mxu0  ;;  %v4419_v62 = vsel %vm11279_vm7, %v9073_v5, %v4418_v39  ;;  %14679 = vst [vmem:[#allocation22_spill] sm:$0xff] %v11559_v16  ;;  %v8938_v5 = vld [vmem:[%s10858_s23 + $0xa8] sm:$0xe]  ;;  %v8939_v39 = vld [vmem:[%s10858_s23 + $0xb0] sm:$0xe] }
  0xd9   : > { %v11553_v18 = vcombine.low %v4419_v62, %v4423_v15  ;;  %v8946_v10 = vrot.slane %v8938_v5, 9  ;;  %v8947_v62 = vrot.slane %v8939_v39, 9  ;;  %v10707_v15 = vld [vmem:[%s10858_s23 + $0xb4] sm:$0x1]  ;;  %v8942_v39 = vld [vmem:[%s10858_s23 + $0xc8] sm:$0xe] }
  0xda   : > { %10092 = vmatmul.mubr.msk.bf16.vlgmr.msra.gmra.mxu0 %vm760_vm1, %v11167_v4  ;;  %v814_v27 = vpop.f32.mrf.mxu0  ;;  %v3089_v52 = vrot.slane %v10707_v15, 5  ;;  %v10709_v15 = vld [vmem:[%s10858_s23 + $0xc4] sm:$0x1]  ;;  %v8999_v16 = vld [vmem:[%s10858_s23 + $0x40] sm:$0xf] }
  0xdb   : > { %10095 = vmatprep.mubr.msk.bf16.mxu0 %vm760_vm1, %v11186_v37  ;;  %10110 = vmatpush3.bf16.msra.mxu0 %v11521_v43  ;;  %14678 = vst [vmem:[#allocation21_spill] sm:$0xff] %v11553_v18 }
  0xdc   : > { %10575 = vmatprep.subr.msk.bf16.mxu0 %vm773_vm0, %v11460_v58  ;;  %v11567_v22 = vpop.f32.mrf.mxu0  ;;  %v3090_v5 = vsel %vm11279_vm7, %v8947_v62, %v3089_v52  ;;  %v3097_v52 = vrot.slane %v10709_v15, 5 }
  0xde   : > { %10066 = vmatmul.mubr.msk.bf16.gmra.mxu1 %vm760_vm1, %v11131_v54  ;;  %v11579_v19 = vpop.f32.mrf.mxu0 }
  0xdf   : > { %10081 = vmatprep.mubr.msk.bf16.mxu1 %vm760_vm1, %v11386_v9 }
  0xe2   : > { %10096 = vmatmul.mubr.msk.bf16.gmra.mxu0 %vm760_vm1, %v11201_v13 }
  0xe3   : > { %10111 = vmatprep.mubr.msk.bf16.mxu0 %vm760_vm1, %v11391_v26 }
  0xe4   : > { %v9883_v55 = vpop.f32.mrf.mxu1 }
  0xe5   : > { %v11573_v57 = vadd.f32 %v9883_v55, %v9873_v59  ;;  %v8940_v59 = vld [vmem:[%s10858_s23 + $0xb8] sm:$0xe]  ;;  %v11594_v55 = vld [vmem:[%s14573_s1 + $0xe] sm:$0x3] }
  0xe6   : > { %v903_v6 = vpop.f32.mrf.mxu1  ;;  %10082 = vmatmul.mubr.msk.bf16.vlgmr.msra.gmra.mxu1 %vm760_vm1, %v11291_v25  ;;  %v10711_v25 = vld [vmem:[%s10858_s23 + $0xd4] sm:$0x1] }
  0xe7   : > { %v11575_v1 = vadd.f32 %v903_v6, %v811_v29  ;;  %10100 = vmatpush3.bf16.msra.mxu1 %v11421_v63  ;;  %10085 = vmatprep.mubr.msk.bf16.mxu1 %vm760_vm1, %v11407_v38  ;;  %v8941_v63 = vld [vmem:[%s10858_s23 + $0xc0] sm:$0xe]  ;;  %v8943_v6 = vld [vmem:[%s10858_s23 + $0xd0] sm:$0xe]  ;;  %v3105_v7 = vrot.slane %v10711_v25, 5 }
  0xe8   : > { %v9884_v2 = vpop.f32.mrf.mxu1  ;;  %10574 = vmatprep.subr.msk.bf16.mxu1 %vm773_vm0, %v11460_v58  ;;  %v8949_v62 = vrot.slane %v8941_v63, 9 }
  0xe9   : > { %v11581_v9 = vadd.f32 %v9884_v2, %v9874_v32  ;;  %v3086_v32 = vsel %vm11279_vm7, %v8946_v10, %v3085_v20  ;;  %v8948_v10 = vrot.slane %v8940_v59, 9  ;;  %v8950_v2 = vrot.slane %v8942_v39, 9 }
  0xea   : > { %v906_v26 = vpop.f32.mrf.mxu1  ;;  %10112 = vmatmul.mubr.msk.bf16.vlgmr.msra.gmra.mxu0 %vm760_vm1, %v11412_v49  ;;  %v11614_v14 = vcombine.low %v3086_v32, %v3090_v5  ;;  %v10708_v49 = vld [vmem:[%s10858_s23 + $0xbc] sm:$0x1]  ;;  %v8944_v32 = vld [vmem:[%s10858_s23 + $0xd8] sm:$0xe]  ;;  %v8945_v5 = vld [vmem:[%s10858_s23 + $0xe0] sm:$0xe]  ;;  %v3098_v39 = vsel %vm11279_vm7, %v8949_v62, %v3097_v52 }
  0xeb   : > { %v11589_v29 = vadd.f32 %v906_v26, %v814_v27  ;;  %v11605_v27 = vpop.f32.mrf.mxu0  ;;  %10115 = vmatprep.mubr.msk.bf16.mxu0 %vm760_vm1, %v11415_v50  ;;  %10130 = vmatpush3.bf16.msra.mxu0 %v11521_v43  ;;  %v3093_v20 = vrot.slane %v10708_v49, 5  ;;  %v10710_v26 = vld [vmem:[%s10858_s23 + $0xcc] sm:$0x1]  ;;  %v8951_v50 = vrot.slane %v8943_v6, 9  ;;  %v8952_v15 = vrot.slane %v8944_v32, 9 }
  0xec   : > { %10577 = vmatprep.subr.msk.bf16.mxu0 %vm773_vm0, %v11594_v55  ;;  %14680 = vst [vmem:[#allocation23_spill] sm:$0xff] %v11614_v14  ;;  %v3101_v38 = vrot.slane %v10710_v26, 5  ;;  %v10712_v26 = vld [vmem:[%s10858_s23 + $0xdc] sm:$0x1] }
  0xed   : > { %v830_v59 = vpop.f32.mrf.mxu0  ;;  %v3094_v63 = vsel %vm11279_vm7, %v8948_v10, %v3093_v20  ;;  %v3106_v6 = vsel %vm11279_vm7, %v8951_v50, %v3105_v7  ;;  %v3109_v10 = vrot.slane %v10712_v26, 5  ;;  %v8953_v20 = vrot.slane %v8945_v5, 9  ;;  %v8989_v50 = vld [vmem:[%s10858_s23 + $0x18] sm:$0xf] }
  0xee   : > { %10086 = vmatmul.mubr.msk.bf16.gmra.mxu1 %vm760_vm1, %v11437_v40  ;;  %v3102_v25 = vsel %vm11279_vm7, %v8950_v2, %v3101_v38  ;;  %v10713_v40 = vld [vmem:[%s10858_s23 + $0xe4] sm:$0x1]  ;;  %v11642_v52 = vcombine.low %v3094_v63, %v3098_v39  ;;  %v8987_v38 = vld [vmem:[%s10858_s23 + $0x10] sm:$0xf]  ;;  %v3509_v63 = vshrl.u32 %v8989_v50, 16  ;;  %v3512_v39 = vshll.u32 %v8989_v50, 16 }
  0xef   : > { %10101 = vmatprep.mubr.msk.bf16.mxu1 %vm760_vm1, %v11614_v14  ;;  %v3113_v62 = vrot.slane %v10713_v40, 5  ;;  %v11645_v2 = vcombine.low %v3102_v25, %v3106_v6  ;;  %v3110_v32 = vsel %vm11279_vm7, %v8952_v15, %v3109_v10  ;;  %v3495_v40 = vshrl.u32 %v8987_v38, 16 }
  0xf0   : > { %14681 = vst [vmem:[#allocation24_spill] sm:$0xff] %v11642_v52  ;;  %v3498_v30 = vshll.u32 %v8987_v38, 16  ;;  %v11663_v25 = vsel %vm773_vm0, %v11594_v55, 0  ;;  %v3511_v50 = vrot.slane %v3509_v63, 4  ;;  %v8997_v63 = vld [vmem:[%s10858_s23 + $0x38] sm:$0xf] }
  0xf1   : > { %14682 = vst [vmem:[#allocation25_spill] sm:$0xff] %v11645_v2  ;;  %v3114_v26 = vsel %vm11279_vm7, %v8953_v20, %v3113_v62  ;;  %v3497_v62 = vrot.slane %v3495_v40, 4  ;;  %v8995_v40 = vld [vmem:[%s10858_s23 + $0x30] sm:$0xf] }
  0xf2   : > { %10116 = vmatmul.mubr.msk.bf16.gmra.mxu0 %vm760_vm1, %v11442_v60  ;;  %v10655_v60 = vld [vmem:[%s10858_s23 + $0x70] ss:$8 sps:$4 sm:$0xff]   ;;  %v11676_v10 = vcombine.low %v3110_v32, %v3114_v26  ;;  %v8993_v26 = vld [vmem:[%s10858_s23 + $0x28] sm:$0xf]  ;;  %v3551_v12 = vshrl.u32 %v8995_v40, 16 }
  0xf3   : > { %v11637_v49 = vpop.f32.mrf.mxu0  ;;  %10131 = vmatprep.mubr.msk.bf16.mxu0 %vm760_vm1, %v10654_v61  ;;  %v3537_v0 = vshrl.u32 %v8993_v26, 16  ;;  %v3540_v46 = vshll.u32 %v8993_v26, 16 }
  0xf4   : > { %14683 = vst [vmem:[#allocation26_spill] sm:$0xff] %v11676_v10 }
  0xf5   : > { %v11647_v7 = vpop.f32.mrf.mxu0  ;;  %v3539_v26 = vrot.slane %v3537_v0, 4  ;;  %v3542_v48 = vrot.slane %v3540_v46, 5  ;;  %v3560_v0 = vshll.u32 %v11510_v36, 16  ;;  %v3574_v36 = vshll.u32 %v11513_v41, 16 }
  0xf6   : > { %10102 = vmatmul.mubr.msk.bf16.vlgmr.msra.gmra.mxu1 %vm760_vm1, %v11642_v52 }
  0xf7   : > { %10120 = vmatpush3.bf16.msra.mxu1 %v11521_v43  ;;  %10105 = vmatprep.mubr.msk.bf16.mxu1 %vm760_vm1, %v11645_v2  ;;  %v11668_v15 = vpop.f32.mrf.mxu0  ;;  %v9035_v2 = vld [vmem:[%s10858_s23 + $0x8c] sm:$0x1] }
  0xf8   : > { %v9887_v5 = vpop.f32.mrf.mxu1  ;;  %10576 = vmatprep.subr.msk.bf16.mxu1 %vm773_vm0, %v11460_v58  ;;  %v3500_v58 = vrot.slane %v3498_v30, 5 }
  0xf9   : > { %v11659_v61 = vadd.f32 %v9887_v5, %v11567_v22  ;;  %v8991_v5 = vld [vmem:[%s10858_s23 + $0x20] sm:$0xf] }
  0xfa   : > { %v919_v6 = vpop.f32.mrf.mxu1  ;;  %10132 = vmatmul.mubr.msk.bf16.vlgmr.msra.gmra.mxu0 %vm760_vm1, %v10655_v60  ;;  %v3514_v60 = vrot.slane %v3512_v39, 5  ;;  %v3526_v30 = vshll.u32 %v8991_v5, 16  ;;  %v3501_v39 = vor.u32 %v3500_v58, %v3497_v62 }
  0xfb   : > { %v11674_v22 = vadd.f32 %v919_v6, %v11579_v19  ;;  %10135 = vmatprep.mubr.msk.bf16.mxu0 %vm760_vm1, %v10656_v31  ;;  %10150 = vmatpush3.bf16.msra.mxu0 %v11663_v25  ;;  %v11686_v19 = vpop.f32.mrf.mxu0  ;;  %v10657_v31 = vld [vmem:[%s10858_s23 + $0x90] ss:$8 sps:$4 sm:$0xff]  }
  0xfc   : > { %v9888_v20 = vpop.f32.mrf.mxu1  ;;  %10579 = vmatprep.subr.msk.bf16.mxu0 %vm773_vm0, %v11594_v55  ;;  %v3515_v3 = vor.u32 %v3514_v60, %v3511_v50  ;;  %v3528_v62 = vrot.slane %v3526_v30, 5  ;;  %v3502_v50 = vrot.slane %v3501_v39, 4  ;;  %v3546_v30 = vshll.u32 %v11483_v47, 16 }
  0xfd   : > { %v11681_v38 = vadd.f32 %v9888_v20, %v11605_v27  ;;  %v3518_v27 = vshll.u32 %v11477_v8, 16  ;;  %v3523_v20 = vshrl.u32 %v8991_v5, 16  ;;  %v3554_v8 = vshll.u32 %v8995_v40, 16 }
  0xfe   : > { %v922_v32 = vpop.f32.mrf.mxu1  ;;  %10106 = vmatmul.mubr.msk.bf16.gmra.mxu1 %vm760_vm1, %v11676_v10  ;;  %v3568_v5 = vshll.u32 %v8997_v63, 16  ;;  %v3516_v60 = vrot.slane %v3515_v3, 4  ;;  %v3553_v40 = vrot.slane %v3551_v12, 4  ;;  %v3543_v3 = vor.u32 %v3542_v48, %v3539_v26  ;;  %v9033_v10 = vld [vmem:[%s10858_s23 + $0x84] sm:$0x1] }
  0xff   : > { %v11689_v6 = vadd.f32 %v922_v32, %v830_v59  ;;  %10121 = vmatprep.mubr.msk.bf16.mxu1 %vm760_vm1, %v11082_v23  ;;  %v3565_v32 = vshrl.u32 %v8997_v63, 16  ;;  %v3520_v24 = vrot.slane %v3518_v27, 5  ;;  %v3525_v33 = vrot.slane %v3523_v20, 4 }
 0x100   : > { %v3556_v18 = vrot.slane %v3554_v8, 5  ;;  %v3570_v45 = vrot.slane %v3568_v5, 5  ;;  %v3532_v20 = vshll.u32 %v11480_v17, 16  ;;  %v3579_v17 = vshrl.u32 %v8999_v16, 16 }
 0x101   : > { %v3567_v63 = vrot.slane %v3565_v32, 4  ;;  %v3529_v27 = vor.u32 %v3528_v62, %v3525_v33  ;;  %v3521_v46 = vsel %vm10880_vm4, %v3516_v60, %v3520_v24  ;;  %v3582_v47 = vshll.u32 %v8999_v16, 16 }
 0x102   : > { %v11700_v59 = vpop.f32.mrf.mxu0  ;;  %10136 = vmatmul.mubr.msk.bf16.gmra.mxu0 %vm760_vm1, %v10657_v31  ;;  %v3593_v39 = vshrl.u32 %v9001_v42, 16  ;;  %v3596_v12 = vshll.u32 %v9001_v42, 16  ;;  %v3557_v48 = vor.u32 %v3556_v18, %v3553_v40  ;;  %v3534_v16 = vrot.slane %v3532_v20, 5 }
 0x103   : > { %10151 = vmatprep.mubr.msk.bf16.mxu0 %vm760_vm1, %v11082_v23  ;;  %v3507_v23 = vsel %vm10880_vm4, %v3502_v50, %v3506_v51  ;;  %v11730_v51 = vld [vmem:[%s14573_s1 + $0x10] sm:$0x3]  ;;  %v3571_v24 = vor.u32 %v3570_v45, %v3567_v63  ;;  %v3530_v8 = vrot.slane %v3529_v27, 4  ;;  %v3548_v32 = vrot.slane %v3546_v30, 5 }
 0x104   : > { %v11703_v58 = vpop.f32.mrf.mxu0  ;;  %v11742_v5 = vcombine.low %v3507_v23, %v3521_v46  ;;  %v3544_v41 = vrot.slane %v3543_v3, 4  ;;  %v3562_v62 = vrot.slane %v3560_v0, 5  ;;  %v3581_v50 = vrot.slane %v3579_v17, 4 }
 0x105   : > { %v3584_v60 = vrot.slane %v3582_v47, 5  ;;  %v3595_v26 = vrot.slane %v3593_v39, 4  ;;  %v3598_v40 = vrot.slane %v3596_v12, 5  ;;  %v3558_v45 = vrot.slane %v3557_v48, 4 }
 0x106   : > { %v11707_v31 = vpop.f32.mrf.mxu0  ;;  %10122 = vmatmul.mubr.msk.bf16.vlgmr.msra.gmra.mxu1 %vm760_vm1, %v11101_v56  ;;  %14684 = vst [vmem:[#allocation27_spill] sm:$0xff] %v11742_v5  ;;  %v3572_v27 = vrot.slane %v3571_v24, 4  ;;  %v3576_v20 = vrot.slane %v3574_v36, 5  ;;  %v3535_v23 = vsel %vm10880_vm4, %v3530_v8, %v3534_v16  ;;  %v3588_v3 = vshll.u32 %v11524_v44, 16 }
 0x107   : > { %10140 = vmatpush3.bf16.msra.mxu1 %v11521_v43  ;;  %10125 = vmatprep.mubr.msk.bf16.mxu1 %vm760_vm1, %v11113_v21  ;;  %v3585_v17 = vor.u32 %v3584_v60, %v3581_v50  ;;  %v3599_v47 = vor.u32 %v3598_v40, %v3595_v26  ;;  %v3602_v39 = vshll.u32 %v11527_v53, 16  ;;  %v3563_v44 = vsel %vm10880_vm4, %v3558_v45, %v3562_v62 }
 0x108   : > { %v11713_v35 = vpop.f32.mrf.mxu0  ;;  %10578 = vmatprep.subr.msk.bf16.mxu1 %vm773_vm0, %v11594_v55  ;;  %v3577_v48 = vsel %vm10880_vm4, %v3572_v27, %v3576_v20  ;;  %v3590_v36 = vrot.slane %v3588_v3, 5 }
 0x109   : > { %v3586_v16 = vrot.slane %v3585_v17, 4 }
 0x10a   : > { %v11725_v33 = vpop.f32.mrf.mxu0  ;;  %10152 = vmatmul.mubr.msk.bf16.vlgmr.msra.gmra.mxu0 %vm760_vm1, %v11101_v56 }
 0x10b   : > { %10155 = vmatprep.mubr.msk.bf16.mxu0 %vm760_vm1, %v11113_v21  ;;  %10170 = vmatpush3.bf16.msra.mxu0 %v11663_v25 }
 0x10c   : > { %v9903_v43 = vpop.f32.mrf.mxu1  ;;  %v11737_v42 = vpop.f32.mrf.mxu0  ;;  %10581 = vmatprep.subr.msk.bf16.mxu0 %vm773_vm0, %v11730_v51 }
 0x10d   : > { %v11745_v18 = vadd.f32 %v9903_v43, %v11637_v49  ;;  %v9024_v43 = vld [vmem:[%s10858_s23 + $0x60] sm:$0xf] }
 0x10e   : > { %v1210_v56 = vpop.f32.mrf.mxu1  ;;  %v11749_v63 = vpop.f32.mrf.mxu0  ;;  %10126 = vmatmul.mubr.msk.bf16.gmra.mxu1 %vm760_vm1, %v11131_v54  ;;  %v3944_v26 = vshrl.u32 %v9024_v43, 16  ;;  %v3947_v40 = vshll.u32 %v9024_v43, 16 }
 0x10f   : > { %v11752_v21 = vadd.f32 %v1210_v56, %v11647_v7  ;;  %10141 = vmatprep.mubr.msk.bf16.mxu1 %vm760_vm1, %v11742_v5  ;;  %v3549_v7 = vsel %vm10880_vm4, %v3544_v41, %v3548_v32  ;;  %v3600_v32 = vrot.slane %v3599_v47, 4  ;;  %v3604_v41 = vrot.slane %v3602_v39, 5  ;;  %v9026_v56 = vld [vmem:[%s10858_s23 + $0x68] sm:$0xf] }
 0x110   : > { %v9904_v49 = vpop.f32.mrf.mxu1  ;;  %v11754_v30 = vpop.f32.mrf.mxu0  ;;  %v11784_v53 = vcombine.low %v3535_v23, %v3549_v7  ;;  %v3958_v27 = vshrl.u32 %v9026_v56, 16  ;;  %v3961_v20 = vshll.u32 %v9026_v56, 16  ;;  %v3946_v39 = vrot.slane %v3944_v26, 4  ;;  %v9029_v56 = vld [vmem:[%s10858_s23 + $0x74] sm:$0x1] }
 0x111   : > { %v11761_v46 = vadd.f32 %v9904_v49, %v11668_v15  ;;  %v11804_v49 = vsel %vm773_vm0, %v11730_v51, 0  ;;  %v3605_v23 = vsel %vm10880_vm4, %v3600_v32, %v3604_v41  ;;  %v9030_v41 = vld [vmem:[%s10858_s23 + $0x78] sm:$0xf] }
 0x112   : > { %v1213_v0 = vpop.f32.mrf.mxu1  ;;  %v11769_v12 = vpop.f32.mrf.mxu0  ;;  %10156 = vmatmul.mubr.msk.bf16.gmra.mxu0 %vm760_vm1, %v11131_v54  ;;  %14687 = vst [vmem:[#allocation30_spill] sm:$0xff] %v11784_v53  ;;  %v3963_v43 = vrot.slane %v3961_v20, 5 }
 0x113   : > { %14685 = vst [vmem:[#allocation28_spill] sm:$0xff] %v11761_v46  ;;  %v11772_v15 = vadd.f32 %v1213_v0, %v11686_v19  ;;  %10171 = vmatprep.mubr.msk.bf16.mxu0 %vm760_vm1, %v11742_v5  ;;  %v11787_v19 = vcombine.low %v3563_v44, %v3577_v48  ;;  %v9025_v0 = vld [vmem:[%s10858_s23 + $0x64] sm:$0x1]  ;;  %v3949_v44 = vrot.slane %v3947_v40, 5  ;;  %v9027_v48 = vld [vmem:[%s10858_s23 + $0x6c] sm:$0x1] }
 0x114   : > { %v11780_v24 = vpop.f32.mrf.mxu0  ;;  %v3953_v32 = vshll.u32 %v9025_v0, 16  ;;  %v3989_v0 = vshll.u32 %v9030_v41, 16 }
 0x115   : > { %14686 = vst [vmem:[#allocation29_spill] sm:$0xff] %v11772_v15  ;;  %14688 = vst [vmem:[#allocation31_spill] sm:$0xff] %v11787_v19  ;;  %v9907_v8 = vpop.f32.mrf.mxu1 }
 0x116   : > { %v11789_v62 = vpop.f32.mrf.mxu0  ;;  %v11793_v54 = vadd.f32 %v9907_v8, %v11700_v59  ;;  %10142 = vmatmul.mubr.msk.bf16.vlgmr.msra.gmra.mxu1 %vm760_vm1, %v11784_v53  ;;  %v3591_v59 = vsel %vm10880_vm4, %v3586_v16, %v3590_v36  ;;  %v3960_v36 = vrot.slane %v3958_v27, 4  ;;  %v9028_v8 = vld [vmem:[%s10858_s23 + $0x70] sm:$0xf] }
 0x117   : > { %v1226_v50 = vpop.f32.mrf.mxu1  ;;  %10160 = vmatpush3.bf16.msra.mxu1 %v11663_v25  ;;  %10145 = vmatprep.mubr.msk.bf16.mxu1 %vm760_vm1, %v11787_v19 }
 0x118   : > { %14689 = vst [vmem:[#allocation32_spill] sm:$0xff] %v11793_v54  ;;  %v11795_v60 = vpop.f32.mrf.mxu0  ;;  %v11800_v45 = vadd.f32 %v1226_v50, %v11703_v58  ;;  %10580 = vmatprep.subr.msk.bf16.mxu1 %vm773_vm0, %v11594_v55  ;;  %v9032_v50 = vld [vmem:[%s10858_s23 + $0x80] sm:$0xf]  ;;  %v3964_v20 = vor.u32 %v3963_v43, %v3960_v36 }
 0x119   : > { %v9908_v58 = vpop.f32.mrf.mxu1 }
 0x11a   : > { %14690 = vst [vmem:[#allocation33_spill] sm:$0xff] %v11800_v45  ;;  %v11813_v3 = vpop.f32.mrf.mxu0  ;;  %v11816_v7 = vadd.f32 %v9908_v58, %v11707_v31  ;;  %10172 = vmatmul.mubr.msk.bf16.vlgmr.msra.gmra.mxu0 %vm760_vm1, %v11784_v53  ;;  %v11828_v31 = vcombine.low %v3591_v59, %v3605_v23  ;;  %v3950_v59 = vor.u32 %v3949_v44, %v3946_v39  ;;  %v3972_v23 = vshrl.u32 %v9028_v8, 16 }
 0x11b   : > { %v1229_v17 = vpop.f32.mrf.mxu1  ;;  %10175 = vmatprep.mubr.msk.bf16.mxu0 %vm760_vm1, %v11787_v19  ;;  %10190 = vmatpush3.bf16.msra.mxu0 %v11804_v49  ;;  %v3975_v58 = vshll.u32 %v9028_v8, 16  ;;  %v3986_v19 = vshrl.u32 %v9030_v41, 16  ;;  %v3955_v39 = vrot.slane %v3953_v32, 5  ;;  %v3981_v44 = vshll.u32 %v9029_v56, 16 }
 0x11c   : > { %14691 = vst [vmem:[#allocation34_spill] sm:$0xff] %v11816_v7  ;;  %v11823_v47 = vpop.f32.mrf.mxu0  ;;  %14692 = vst [vmem:[#allocation35_spill] sm:$0xff] %v11828_v31  ;;  %v11831_v55 = vadd.f32 %v1229_v17, %v11713_v35  ;;  %10583 = vmatprep.subr.msk.bf16.mxu0 %vm773_vm0, %v11730_v51  ;;  %v3967_v35 = vshll.u32 %v9027_v48, 16  ;;  %v9034_v17 = vld [vmem:[%s10858_s23 + $0x88] sm:$0xf]  ;;  %v4000_v48 = vshrl.u32 %v9032_v50, 16 }
 0x11d   : > { %v4014_v36 = vshrl.u32 %v9034_v17, 16  ;;  %v4017_v43 = vshll.u32 %v9034_v17, 16  ;;  %v3974_v7 = vrot.slane %v3972_v23, 4  ;;  %v3977_v32 = vrot.slane %v3975_v58, 5  ;;  %v9038_v23 = vld [vmem:[%s10858_s23 + $0x98] sm:$0xf] }
 0x11e   : > { %14693 = vst [vmem:[#allocation36_spill] sm:$0xff] %v11831_v55  ;;  %v11837_v16 = vpop.f32.mrf.mxu0  ;;  %10146 = vmatmul.mubr.msk.bf16.gmra.mxu1 %vm760_vm1, %v11828_v31  ;;  %v3969_v55 = vrot.slane %v3967_v35, 5  ;;  %v3991_v17 = vrot.slane %v3989_v0, 5  ;;  %v9036_v35 = vld [vmem:[%s10858_s23 + $0x90] sm:$0xf] }
 0x11f   : > { %v9923_v26 = vpop.f32.mrf.mxu1  ;;  %10161 = vmatprep.mubr.msk.bf16.mxu1 %vm760_vm1, %v11153_v28  ;;  %v4019_v46 = vrot.slane %v4017_v43, 5  ;;  %v4042_v43 = vshrl.u32 %v9038_v23, 16 }
 0x120   : > { %v11842_v40 = vpop.f32.mrf.mxu0  ;;  %v11848_v27 = vadd.f32 %v9923_v26, %v11725_v33  ;;  %v4003_v33 = vshll.u32 %v9032_v50, 16  ;;  %v3951_v26 = vrot.slane %v3950_v59, 4  ;;  %v9031_v50 = vld [vmem:[%s10858_s23 + $0x7c] sm:$0x1]  ;;  %v4002_v59 = vrot.slane %v4000_v48, 4 }
 0x121   : > { %v1404_v53 = vpop.f32.mrf.mxu1  ;;  %v3995_v0 = vshll.u32 %v9031_v50, 16 }
 0x122   : > { %v11852_v5 = vpop.f32.mrf.mxu0  ;;  %v11855_v8 = vadd.f32 %v1404_v53, %v11737_v42  ;;  %10176 = vmatmul.mubr.msk.bf16.gmra.mxu0 %vm760_vm1, %v11828_v31  ;;  %v3965_v53 = vrot.slane %v3964_v20, 4  ;;  %v3988_v31 = vrot.slane %v3986_v19, 4  ;;  %v4005_v15 = vrot.slane %v4003_v33, 5 }
 0x123   : > { %v9924_v41 = vpop.f32.mrf.mxu1  ;;  %10191 = vmatprep.mubr.msk.bf16.mxu0 %vm760_vm1, %v11153_v28  ;;  %v4016_v28 = vrot.slane %v4014_v36, 4  ;;  %v3978_v20 = vor.u32 %v3977_v32, %v3974_v7  ;;  %v11877_v19 = vrot.slane %v3981_v44, 5  ;;  %v4028_v33 = vshrl.u32 %v9036_v35, 16  ;;  %v11895_v32 = vld [vmem:[%s14573_s1 + $0x12] sm:$0x3] }
 0x124   : > { %v11859_v56 = vpop.f32.mrf.mxu0  ;;  %v11864_v42 = vadd.f32 %v9924_v41, %v11749_v63  ;;  %v3956_v63 = vsel %vm10880_vm4, %v3951_v26, %v3955_v39  ;;  %v4031_v36 = vshll.u32 %v9036_v35, 16  ;;  %v4009_v44 = vshll.u32 %v9033_v10, 16 }
 0x125   : > { %v1407_v45 = vpop.f32.mrf.mxu1  ;;  %v4045_v26 = vshll.u32 %v9038_v23, 16  ;;  %v3997_v35 = vrot.slane %v3995_v0, 5 }
 0x126   : > { %v11867_v54 = vpop.f32.mrf.mxu0  ;;  %v11872_v58 = vadd.f32 %v1407_v45, %v11754_v30  ;;  %10162 = vmatmul.mubr.msk.bf16.vlgmr.msra.gmra.mxu1 %vm760_vm1, %v11167_v4  ;;  %v3970_v30 = vsel %vm10880_vm4, %v3965_v53, %v3969_v55  ;;  %v3992_v45 = vor.u32 %v3991_v17, %v3988_v31  ;;  %v4006_v55 = vor.u32 %v4005_v15, %v4002_v59 }
 0x127   : > { %10180 = vmatpush3.bf16.msra.mxu1 %v11663_v25  ;;  %10165 = vmatprep.mubr.msk.bf16.mxu1 %vm760_vm1, %v11186_v37  ;;  %v4023_v53 = vshll.u32 %v9035_v2, 16  ;;  %v11907_v50 = vcombine.low %v3956_v63, %v3970_v30  ;;  %v3979_v17 = vrot.slane %v3978_v20, 4  ;;  %v9037_v2 = vld [vmem:[%s10858_s23 + $0x94] sm:$0x1]  ;;  %v4030_v15 = vrot.slane %v4028_v33, 4 }
 0x128   : > { %v11879_v41 = vpop.f32.mrf.mxu0  ;;  %v9927_v48 = vpop.f32.mrf.mxu1  ;;  %10582 = vmatprep.subr.msk.bf16.mxu1 %vm773_vm0, %v11730_v51  ;;  %v4033_v59 = vrot.slane %v4031_v36, 5  ;;  %v9039_v63 = vld [vmem:[%s10858_s23 + $0x9c] sm:$0x1]  ;;  %v4044_v20 = vrot.slane %v4042_v43, 4  ;;  %v4007_v30 = vrot.slane %v4006_v55, 4 }
 0x129   : > { %v11890_v7 = vadd.f32 %v9927_v48, %v11769_v12  ;;  %v4020_v12 = vor.u32 %v4019_v46, %v4016_v28  ;;  %14694 = vst [vmem:[#allocation37_spill] sm:$0xff] %v11907_v50  ;;  %v3993_v46 = vrot.slane %v3992_v45, 4  ;;  %v4011_v28 = vrot.slane %v4009_v44, 5 }
 0x12a   : > { %v9953_v39 = vpop.f32.mrf.mxu0  ;;  %v1420_v31 = vpop.f32.mrf.mxu1  ;;  %10192 = vmatmul.mubr.msk.bf16.vlgmr.msra.gmra.mxu0 %vm760_vm1, %v11167_v4  ;;  %v4025_v33 = vrot.slane %v4023_v53, 5  ;;  %v10715_v53 = vld [vmem:[%s10858_s23 + $0x10c] sm:$0x1] }
 0x12b   : > { %v11900_v25 = vadd.f32 %v9953_v39, %v11573_v57  ;;  %v11905_v10 = vadd.f32 %v1420_v31, %v11780_v24  ;;  %10195 = vmatprep.mubr.msk.bf16.mxu0 %vm760_vm1, %v11186_v37  ;;  %10210 = vmatpush3.bf16.msra.mxu0 %v11804_v49  ;;  %v4047_v37 = vrot.slane %v4045_v26, 5  ;;  %v4021_v45 = vrot.slane %v4020_v12, 4 }
 0x12c   : > { %v1628_v23 = vpop.f32.mrf.mxu0  ;;  %v9928_v57 = vpop.f32.mrf.mxu1  ;;  %10585 = vmatprep.subr.msk.bf16.mxu0 %vm773_vm0, %v11895_v32  ;;  %v4037_v39 = vshll.u32 %v9037_v2, 16  ;;  %v3998_v43 = vsel %vm10880_vm4, %v3993_v46, %v3997_v35  ;;  %v4034_v26 = vor.u32 %v4033_v59, %v4030_v15  ;;  %v4051_v31 = vshll.u32 %v9039_v63, 16  ;;  %v9218_v46 = vld [vmem:[%s10858_s23 + $0x100] sm:$0xe] }
 0x12d   : > { %v11914_v4 = vadd.f32 %v1628_v23, %v11575_v1  ;;  %v11919_v24 = vadd.f32 %v9928_v57, %v11789_v62  ;;  %v3984_v62 = vsel %vm10880_vm4, %v3979_v17, %v11877_v19  ;;  %v4048_v19 = vor.u32 %v4047_v37, %v4044_v20 }
 0x12e   : > { %v9954_v0 = vpop.f32.mrf.mxu0  ;;  %v1423_v48 = vpop.f32.mrf.mxu1  ;;  %10166 = vmatmul.mubr.msk.bf16.gmra.mxu1 %vm760_vm1, %v11201_v13  ;;  %v5970_v17 = vrot.slane %v10715_v53, 5  ;;  %v4012_v35 = vsel %vm10880_vm4, %v4007_v30, %v4011_v28  ;;  %v4026_v57 = vsel %vm10880_vm4, %v4021_v45, %v4025_v33  ;;  %v11955_v15 = vcombine.low %v3984_v62, %v3998_v43  ;;  %v9219_v28 = vld [vmem:[%s10858_s23 + $0x108] sm:$0xe] }
 0x12f   : > { %v11923_v1 = vadd.f32 %v9954_v0, %v11581_v9  ;;  %v11926_v36 = vadd.f32 %v1423_v48, %v11795_v60  ;;  %v10714_v60 = vld [vmem:[%s10858_s23 + $0x104] sm:$0x1]  ;;  %10181 = vmatprep.mubr.msk.bf16.mxu1 %vm760_vm1, %v11907_v50  ;;  %v4039_v59 = vrot.slane %v4037_v39, 5  ;;  %v9226_v20 = vrot.slane %v9218_v46, 9  ;;  %v9223_v46 = vld [vmem:[%s10858_s23 + $0x128] sm:$0xe] }
 0x130   : > { %v1631_v44 = vpop.f32.mrf.mxu0  ;;  %v5966_v55 = vrot.slane %v10714_v60, 5  ;;  %14695 = vst [vmem:[#allocation38_spill] sm:$0xff] %v11955_v15  ;;  %v4035_v0 = vrot.slane %v4034_v26, 4  ;;  %v11966_v30 = vcombine.low %v4012_v35, %v4026_v57  ;;  %v4049_v45 = vrot.slane %v4048_v19, 4 }
 0x131   : > { %v11936_v9 = vadd.f32 %v1631_v44, %v11589_v29  ;;  %v9943_v23 = vpop.f32.mrf.mxu1  ;;  %v11991_v60 = vsel %vm773_vm0, %v11895_v32, 0 }
 0x132   : > { %v9957_v12 = vpop.f32.mrf.mxu0  ;;  %10196 = vmatmul.mubr.msk.bf16.gmra.mxu0 %vm760_vm1, %v11201_v13  ;;  %v11953_v2 = vadd.f32 %v9943_v23, %v11813_v3  ;;  %v9227_v13 = vrot.slane %v9219_v28, 9  ;;  %14696 = vst [vmem:[#allocation39_spill] sm:$0xff] %v11966_v30  ;;  %v11970_v62 = vsel %vm11279_vm7, %v9226_v20, %v5966_v55  ;;  %v10716_v55 = vld [vmem:[%s10858_s23 + $0x124] sm:$0x1] }
 0x133   : > { %v11947_v29 = vadd.f32 %v9957_v12, %v11659_v61  ;;  %10211 = vmatprep.mubr.msk.bf16.mxu0 %vm760_vm1, %v11907_v50  ;;  %v1558_v37 = vpop.f32.mrf.mxu1  ;;  %v4053_v61 = vrot.slane %v4051_v31, 5  ;;  %14697 = vst [vmem:[#allocation40_spill] sm:$0xff] %v11970_v62  ;;  %v5982_v19 = vrot.slane %v10716_v55, 5  ;;  %v4040_v12 = vsel %vm10880_vm4, %v4035_v0, %v4039_v59  ;;  %v4949_v0 = vld [vmem:[%s10858_s23] sm:$0xf]  ;;  %v14709_v50 = vld [vmem:[#allocation28_spill] sm:$0xff] }
 0x134   : > { %v1644_v63 = vpop.f32.mrf.mxu0  ;;  %v11964_v3 = vadd.f32 %v1558_v37, %v11823_v47 }
 0x135   : > { %v11961_v48 = vadd.f32 %v1644_v63, %v11674_v22  ;;  %v9944_v39 = vpop.f32.mrf.mxu1  ;;  %v11977_v22 = vsel %vm11279_vm7, %v9227_v13, %v5970_v17  ;;  %v10717_v17 = vld [vmem:[%s10858_s23 + $0x12c] sm:$0x1] }
 0x136   : > { %v9958_v33 = vpop.f32.mrf.mxu0  ;;  %14698 = vst [vmem:[#allocation41_spill] sm:$0xff] %v11977_v22  ;;  %v11980_v47 = vadd.f32 %v9944_v39, %v11837_v16  ;;  %10182 = vmatmul.mubr.msk.bf16.vlgmr.msra.gmra.mxu1 %vm760_vm1, %v11955_v15  ;;  %v5986_v23 = vrot.slane %v10717_v17, 5  ;;  %v10658_v39 = vld [vmem:[%s10858_s23] ss:$8 sps:$4 sm:$0xff]  }
 0x137   : > { %v11973_v44 = vadd.f32 %v9958_v33, %v11681_v38  ;;  %v1561_v31 = vpop.f32.mrf.mxu1  ;;  %10200 = vmatpush3.bf16.msra.mxu1 %v11804_v49  ;;  %10185 = vmatprep.mubr.msk.bf16.mxu1 %vm760_vm1, %v11966_v30  ;;  %v10664_v22 = vld [vmem:[%s10858_s23 + $0xa0] ss:$8 sps:$4 sm:$0xff]  }
 0x138   : > { %v1647_v43 = vpop.f32.mrf.mxu0  ;;  %v11996_v16 = vadd.f32 %v1561_v31, %v11842_v40  ;;  %10584 = vmatprep.subr.msk.bf16.mxu1 %vm773_vm0, %v11730_v51  ;;  %v9222_v40 = vld [vmem:[%s10858_s23 + $0x120] sm:$0xe] }
 0x139   : > { %v11987_v38 = vadd.f32 %v1647_v43, %v11689_v6  ;;  %v4054_v6 = vsel %vm10880_vm4, %v4049_v45, %v4053_v61  ;;  %v9230_v59 = vrot.slane %v9222_v40, 9 }
 0x13a   : > { %v9973_v53 = vpop.f32.mrf.mxu0  ;;  %10212 = vmatmul.mubr.msk.bf16.vlgmr.msra.gmra.mxu0 %vm760_vm1, %v11955_v15  ;;  %v12017_v28 = vcombine.low %v4040_v12, %v4054_v6  ;;  %v4969_v12 = vshll.u32 %v4949_v0, 16  ;;  %v4953_v6 = vld [vmem:[%s10858_s23 + $0x10] sm:$0xf] }
 0x13b   : > { %v12008_v35 = vadd.f32 %v9973_v53, %v11848_v27  ;;  %10215 = vmatprep.mubr.msk.bf16.mxu0 %vm760_vm1, %v11966_v30  ;;  %10230 = vmatpush3.bf16.msra.mxu0 %v11991_v60  ;;  %v9947_v63 = vpop.f32.mrf.mxu1  ;;  %v9231_v27 = vrot.slane %v9223_v46, 9  ;;  %v12030_v61 = vsel %vm11279_vm7, %v9230_v59, %v5982_v19  ;;  %v4966_v19 = vshrl.u32 %v4949_v0, 16  ;;  %v12074_v0 = vld [vmem:[%s10858_s23 + $0x74] sm:$0x1] }
 0x13c   : > { %v1926_v57 = vpop.f32.mrf.mxu0  ;;  %14699 = vst [vmem:[#allocation42_spill] sm:$0xff] %v12017_v28  ;;  %10587 = vmatprep.subr.msk.bf16.mxu0 %vm773_vm0, %v11895_v32  ;;  %v12025_v20 = vadd.f32 %v9947_v63, %v11852_v5  ;;  %14700 = vst [vmem:[#allocation43_spill] sm:$0xff] %v12030_v61  ;;  %v4994_v46 = vshrl.u32 %v4953_v6, 16  ;;  %v4971_v63 = vrot.slane %v4969_v12, 5  ;;  %v10659_v12 = vld [vmem:[%s10858_s23 + $0x10] ss:$8 sps:$4 sm:$0xff]  }
 0x13d   : > { %v12020_v51 = vadd.f32 %v1926_v57, %v11855_v8  ;;  %v1574_v13 = vpop.f32.mrf.mxu1  ;;  %v12037_v8 = vsel %vm11279_vm7, %v9231_v27, %v5986_v23  ;;  %v4997_v27 = vshll.u32 %v4953_v6, 16  ;;  %v10660_v6 = vld [vmem:[%s10858_s23 + $0x20] ss:$8 sps:$4 sm:$0xff]   ;;  %v10661_v61 = vld [vmem:[%s10858_s23 + $0x30] ss:$8 sps:$4 sm:$0xff]  }
 0x13e   : > { %v9974_v37 = vpop.f32.mrf.mxu0  ;;  %14701 = vst [vmem:[#allocation44_spill] sm:$0xff] %v12037_v8  ;;  %v12040_v33 = vadd.f32 %v1574_v13, %v11859_v56  ;;  %10186 = vmatmul.mubr.msk.bf16.gmra.mxu1 %vm760_vm1, %v12017_v28  ;;  %v4957_v13 = vld [vmem:[%s10858_s23 + $0x20] sm:$0xf] }
 0x13f   : > { %v12033_v45 = vadd.f32 %v9974_v37, %v11864_v42  ;;  %v9948_v31 = vpop.f32.mrf.mxu1  ;;  %v4951_v42 = vld [vmem:[%s10858_s23 + $0x8] sm:$0xf]  ;;  %10201 = vmatprep.mubr.msk.bf16.mxu1 %vm760_vm1, %v11614_v14  ;;  %v12070_v37 = vld [vmem:[%s10858_s23 + $0x6c] sm:$0x1]  ;;  %v5025_v15 = vshll.u32 %v4957_v13, 16 }
 0x140   : > { %v1929_v5 = vpop.f32.mrf.mxu0  ;;  %v12053_v53 = vadd.f32 %v9948_v31, %v11867_v54  ;;  %v4980_v54 = vshrl.u32 %v4951_v42, 16  ;;  %v4983_v57 = vshll.u32 %v4951_v42, 16 }
 0x141   : > { %v12048_v55 = vadd.f32 %v1929_v5, %v11872_v58  ;;  %v1577_v17 = vpop.f32.mrf.mxu1  ;;  %v12078_v5 = vld [vmem:[%s10858_s23 + $0x8c] sm:$0x1] }
 0x142   : > { %v9977_v56 = vpop.f32.mrf.mxu0  ;;  %10216 = vmatmul.mubr.msk.bf16.gmra.mxu0 %vm760_vm1, %v12017_v28  ;;  %v12063_v58 = vadd.f32 %v1577_v17, %v11879_v41  ;;  %14702 = vst [vmem:[#allocation45_spill] sm:$0xff] %v12078_v5  ;;  %v4982_v43 = vrot.slane %v4980_v54, 4  ;;  %v4985_v26 = vrot.slane %v4983_v57, 5  ;;  %v12102_v41 = vld [vmem:[%s10858_s23 + $0xc] sm:$0x1]  ;;  %v5022_v57 = vshrl.u32 %v4957_v13, 16 }
 0x143   : > { %v12058_v23 = vadd.f32 %v9977_v56, %v11890_v7  ;;  %10231 = vmatprep.mubr.msk.bf16.mxu0 %vm760_vm1, %v10658_v39  ;;  %v4968_v7 = vrot.slane %v4966_v19, 4  ;;  %v4955_v56 = vld [vmem:[%s10858_s23 + $0x18] sm:$0xf]  ;;  %v12093_v39 = vrot.slane %v4994_v46, 4  ;;  %14704 = vst [vmem:[#allocation47_spill] sm:$0xff] %v12102_v41 }
 0x144   : > { %v1942_v40 = vpop.f32.mrf.mxu0  ;;  %v9963_v42 = vpop.f32.mrf.mxu1  ;;  %v12106_v54 = vld [vmem:[%s10858_s23 + $0x94] sm:$0x1]  ;;  %v12110_v46 = vld [vmem:[%s10858_s23 + $0x10c] sm:$0x1]  ;;  %v4986_v14 = vor.u32 %v4985_v26, %v4982_v43 }
 0x145   : > { %v12067_v59 = vadd.f32 %v1942_v40, %v11905_v10  ;;  %v12082_v10 = vld [vmem:[%s10858_s23 + $0x4] sm:$0x1]  ;;  %v12091_v17 = vadd.f32 %v9963_v42, %v11745_v18  ;;  %v4972_v28 = vor.u32 %v4971_v63, %v4968_v7  ;;  %v4999_v42 = vrot.slane %v4997_v27, 5  ;;  %14705 = vst [vmem:[#allocation48_spill] sm:$0xff] %v12106_v54  ;;  %14706 = vst [vmem:[#allocation49_spill] sm:$0xff] %v12110_v46 }
 0x146   : > { %v9978_v31 = vpop.f32.mrf.mxu0  ;;  %14703 = vst [vmem:[#allocation46_spill] sm:$0xff] %v12082_v10  ;;  %10202 = vmatmul.mubr.msk.bf16.vlgmr.msra.gmra.mxu1 %vm760_vm1, %v11642_v52  ;;  %v4975_v18 = vshll.u32 %v12082_v10, 16  ;;  %v12122_v7 = vld [vmem:[%s14573_s1 + $0x14] sm:$0x3]  ;;  %v12158_v10 = vld [vmem:[%s10858_s23 + $0x1c] sm:$0x1] }
 0x147   : > { %v12085_v19 = vadd.f32 %v9978_v31, %v11919_v24  ;;  %v1853_v24 = vpop.f32.mrf.mxu1  ;;  %10220 = vmatpush3.bf16.msra.mxu1 %v11804_v49  ;;  %v12125_v63 = vld [vmem:[%s10858_s23 + $0x14] sm:$0x1]  ;;  %v5008_v49 = vshrl.u32 %v4955_v56, 16  ;;  %14714 = vst [vmem:[#allocation52_spill] sm:$0xff] %v12158_v10 }
 0x148   : > { %v1945_v40 = vpop.f32.mrf.mxu0  ;;  %14708 = vst [vmem:[#allocation50_spill] sm:$0xff] %v12125_v63  ;;  %10586 = vmatprep.subr.msk.bf16.mxu1 %vm773_vm0, %v11895_v32  ;;  %v12144_v13 = vrot.slane %v4975_v18, 5 }
 0x149   : > { %v12099_v31 = vadd.f32 %v1945_v40, %v11926_v36  ;;  %v12115_v36 = vadd.f32 %v1853_v24, %v11752_v21  ;;  %v14707_v40 = vld [vmem:[#allocation25_spill] sm:$0xff]  ;;  %v9964_v27 = vpop.f32.mrf.mxu1  ;;  %v5011_v21 = vshll.u32 %v4955_v56, 16  ;;  %v4959_v24 = vld [vmem:[%s10858_s23 + $0x28] sm:$0xf]  ;;  %v5010_v18 = vrot.slane %v5008_v49, 4  ;;  %v14718_v49 = vld [vmem:[#allocation32_spill] sm:$0xff] }
 0x14a   : > { %10205 = vmatprep.mubr.msk.bf16.mxu1 %vm760_vm1, %v14707_v40  ;;  %v9993_v30 = vpop.f32.mrf.mxu0  ;;  %10232 = vmatmul.mubr.msk.bf16.vlgmr.msra.gmra.mxu0 %vm760_vm1, %v10659_v12  ;;  %v12132_v40 = vadd.f32 %v9964_v27, %v14709_v50  ;;  %v4989_v12 = vshll.u32 %v12102_v41, 16  ;;  %v12142_v50 = vrot.slane %v4972_v28, 4  ;;  %v14711_v27 = vld [vmem:[#allocation29_spill] sm:$0xff]  ;;  %v5036_v62 = vshrl.u32 %v4959_v24, 16 }
 0x14b   : > { %v12135_v52 = vadd.f32 %v9993_v30, %v11900_v25  ;;  %10235 = vmatprep.mubr.msk.bf16.mxu0 %vm760_vm1, %v10660_v6  ;;  %10250 = vmatpush3.bf16.msra.mxu0 %v11991_v60  ;;  %v1856_v56 = vpop.f32.mrf.mxu1  ;;  %v5000_v25 = vor.u32 %v4999_v42, %v12093_v39  ;;  %v5003_v30 = vshll.u32 %v12125_v63, 16  ;;  %v4961_v6 = vld [vmem:[%s10858_s23 + $0x30] sm:$0xf]  ;;  %v5039_v41 = vshll.u32 %v4959_v24, 16  ;;  %v14717_v24 = vld [vmem:[#allocation26_spill] sm:$0xff] }
 0x14c   : > { %14710 = vst [vmem:[#allocation28_spill] sm:$0xff] %v12132_v40  ;;  %v2077_v8 = vpop.f32.mrf.mxu0  ;;  %10589 = vmatprep.subr.msk.bf16.mxu0 %vm773_vm0, %v12122_v7  ;;  %v12150_v26 = vadd.f32 %v1856_v56, %v14711_v27  ;;  %v5013_v46 = vrot.slane %v5011_v21, 5  ;;  %v5024_v39 = vrot.slane %v5022_v57, 4  ;;  %v5027_v42 = vrot.slane %v5025_v15, 5  ;;  %v12166_v27 = vld [vmem:[%s10858_s23 + $0x24] sm:$0x1] }
 0x14d   : > { %v12153_v43 = vadd.f32 %v2077_v8, %v11914_v4  ;;  %v12163_v56 = vrot.slane %v4986_v14, 4  ;;  %14716 = vst [vmem:[#allocation54_spill] sm:$0xff] %v12166_v27  ;;  %v5050_v4 = vshrl.u32 %v4961_v6, 16  ;;  %v5053_v8 = vshll.u32 %v4961_v6, 16 }
 0x14e   : > { %14712 = vst [vmem:[#allocation29_spill] sm:$0xff] %v12150_v26  ;;  %v9994_v28 = vpop.f32.mrf.mxu0  ;;  %v9967_v26 = vpop.f32.mrf.mxu1  ;;  %10206 = vmatmul.mubr.msk.bf16.gmra.mxu1 %vm760_vm1, %v14717_v24  ;;  %v12172_v57 = vsel %vm773_vm0, %v12122_v7, 0  ;;  %v12174_v15 = vrot.slane %v4989_v12, 5  ;;  %v12178_v14 = vrot.slane %v5003_v30, 5  ;;  %v12189_v24 = vld [vmem:[%s10858_s23 + $0x2c] sm:$0x1]  ;;  %v5014_v30 = vor.u32 %v5013_v46, %v5010_v18 }
 0x14f   : > { %14713 = vst [vmem:[#allocation51_spill] sm:$0xff] %v12153_v43  ;;  %v12161_v63 = vadd.f32 %v9994_v28, %v11923_v1  ;;  %v12176_v1 = vrot.slane %v5000_v25, 4  ;;  %v12181_v21 = vadd.f32 %v9967_v26, %v14718_v49  ;;  %v14720_v28 = vld [vmem:[#allocation19_spill] sm:$0xff]  ;;  %14721 = vst [vmem:[#allocation55_spill] sm:$0xff] %v12189_v24  ;;  %v5041_v5 = vrot.slane %v5039_v41, 5 }
 0x150   : > { %v2080_v54 = vpop.f32.mrf.mxu0  ;;  %10221 = vmatprep.mubr.msk.bf16.mxu1 %vm760_vm1, %v14720_v28  ;;  %v4963_v43 = vld [vmem:[%s10858_s23 + $0x38] sm:$0xf]  ;;  %v1869_v12 = vpop.f32.mrf.mxu1  ;;  %v5017_v26 = vshll.u32 %v12158_v10, 16  ;;  %v5028_v49 = vor.u32 %v5027_v42, %v5024_v39  ;;  %v5055_v41 = vrot.slane %v5053_v8, 5  ;;  %v5045_v18 = vshll.u32 %v12189_v24, 16 }
 0x151   : > { %14715 = vst [vmem:[#allocation53_spill] sm:$0xff] %v12161_v63  ;;  %14719 = vst [vmem:[#allocation32_spill] sm:$0xff] %v12181_v21  ;;  %v12186_v6 = vadd.f32 %v2080_v54, %v11936_v9  ;;  %v5038_v63 = vrot.slane %v5036_v62, 4  ;;  %v5031_v21 = vshll.u32 %v12166_v27, 16  ;;  %v14722_v28 = vld [vmem:[#allocation33_spill] sm:$0xff]  ;;  %v5052_v62 = vrot.slane %v5050_v4, 4 }
 0x152   : > { %v9997_v25 = vpop.f32.mrf.mxu0  ;;  %10236 = vmatmul.mubr.msk.bf16.gmra.mxu0 %vm760_vm1, %v10661_v61  ;;  %v12196_v40 = vadd.f32 %v1869_v12, %v14722_v28  ;;  %v9968_v54 = vpop.f32.mrf.mxu1  ;;  %v12208_v39 = vld [vmem:[%s10858_s23 + $0x34] sm:$0x1]  ;;  %v5064_v42 = vshrl.u32 %v4963_v43, 16  ;;  %v14726_v28 = vld [vmem:[#allocation34_spill] sm:$0xff]  ;;  %v10666_v27 = vld [vmem:[%s10858_s23 + $0xb0] ss:$8 sps:$4 sm:$0xff]  }
 0x153   : > { %v12199_v9 = vadd.f32 %v9997_v25, %v11947_v29  ;;  %10251 = vmatprep.mubr.msk.bf16.mxu0 %vm760_vm1, %v10664_v22  ;;  %14725 = vst [vmem:[#allocation57_spill] sm:$0xff] %v12208_v39  ;;  %v5067_v29 = vshll.u32 %v4963_v43, 16  ;;  %v12211_v22 = vadd.f32 %v9968_v54, %v14726_v28  ;;  %v5042_v12 = vor.u32 %v5041_v5, %v5038_v63  ;;  %v9139_v25 = vld [vmem:[%s10858_s23 + $0x50] sm:$0xf]  ;;  %v12236_v5 = vld [vmem:[%s10858_s23 + $0x3c] sm:$0x1] }
 0x154   : > { %14723 = vst [vmem:[#allocation33_spill] sm:$0xff] %v12196_v40  ;;  %v2093_v61 = vpop.f32.mrf.mxu0  ;;  %v1872_v46 = vpop.f32.mrf.mxu1  ;;  %v12222_v10 = vrot.slane %v5014_v30, 4  ;;  %v5019_v43 = vrot.slane %v5017_v26, 5  ;;  %v12226_v54 = vrot.slane %v5031_v21, 5  ;;  %v14729_v28 = vld [vmem:[#allocation36_spill] sm:$0xff]  ;;  %v5056_v63 = vor.u32 %v5055_v41, %v5052_v62 }
 0x155   : > { %14724 = vst [vmem:[#allocation56_spill] sm:$0xff] %v12199_v9  ;;  %14727 = vst [vmem:[#allocation34_spill] sm:$0xff] %v12211_v22  ;;  %v12214_v4 = vadd.f32 %v2093_v61, %v11961_v48  ;;  %v12224_v9 = vrot.slane %v5028_v49, 4  ;;  %v12229_v48 = vadd.f32 %v1872_v46, %v14729_v28  ;;  %v5059_v8 = vshll.u32 %v12208_v39, 16  ;;  %v14730_v22 = vld [vmem:[#allocation20_spill] sm:$0xff] }
 0x156   : > { %v9998_v24 = vpop.f32.mrf.mxu0  ;;  %v9983_v30 = vpop.f32.mrf.mxu1  ;;  %10222 = vmatmul.mubr.msk.bf16.vlgmr.msra.gmra.mxu1 %vm760_vm1, %v14730_v22  ;;  %v5047_v21 = vrot.slane %v5045_v18, 5  ;;  %v5066_v49 = vrot.slane %v5064_v42, 4  ;;  %v5069_v40 = vrot.slane %v5067_v29, 5  ;;  %v5194_v46 = vshrl.u32 %v9139_v25, 16  ;;  %v9141_v41 = vld [vmem:[%s10858_s23 + $0x58] sm:$0xf] }
 0x157   : > { %14728 = vst [vmem:[#allocation58_spill] sm:$0xff] %v12214_v4  ;;  %v12232_v61 = vadd.f32 %v9998_v24, %v11973_v44  ;;  %v10668_v4 = vld [vmem:[%s10858_s23 + $0xc0] ss:$8 sps:$4 sm:$0xff]   ;;  %v12242_v28 = vadd.f32 %v9983_v30, %v11953_v2  ;;  %10240 = vmatpush3.bf16.msra.mxu1 %v11991_v60  ;;  %v14731_v44 = vld [vmem:[#allocation21_spill] sm:$0xff]  ;;  %v5043_v62 = vrot.slane %v5042_v12, 4  ;;  %v5197_v22 = vshll.u32 %v9139_v25, 16 }
 0x158   : > { %v2096_v26 = vpop.f32.mrf.mxu0  ;;  %10225 = vmatprep.mubr.msk.bf16.mxu1 %vm760_vm1, %v14731_v44  ;;  %v1999_v39 = vpop.f32.mrf.mxu1  ;;  %10588 = vmatprep.subr.msk.bf16.mxu1 %vm773_vm0, %v11895_v32  ;;  %v5006_v2 = vsel %vm10880_vm4, %v12176_v1, %v12178_v14  ;;  %v5034_v42 = vsel %vm10880_vm4, %v12224_v9, %v12226_v54  ;;  %v5073_v29 = vshll.u32 %v12236_v5, 16  ;;  %v12276_v1 = vrot.slane %v5059_v8, 5  ;;  %v12279_v14 = vld [vmem:[%s10858_s23 + $0x54] sm:$0x1]  ;;  %v14736_v44 = vld [vmem:[#allocation22_spill] sm:$0xff] }
 0x159   : > { %v12248_v24 = vadd.f32 %v2096_v26, %v11987_v38  ;;  %v5020_v38 = vsel %vm10880_vm4, %v12222_v10, %v5019_v43  ;;  %v12267_v32 = vadd.f32 %v1999_v39, %v11964_v3  ;;  %v12274_v10 = vrot.slane %v5056_v63, 4  ;;  %14732 = vst [vmem:[#allocation36_spill] sm:$0xff] %v12279_v14  ;;  %v10662_v43 = vld [vmem:[%s10858_s23 + $0x50] ss:$8 sps:$4 sm:$0xff]   ;;  %v12295_v63 = vld [vmem:[%s10858_s23 + $0x114] sm:$0x1] }
 0x15a   : > { %v10013_v18 = vpop.f32.mrf.mxu0  ;;  %10252 = vmatmul.mubr.msk.bf16.vlgmr.msra.gmra.mxu0 %vm760_vm1, %v10666_v27  ;;  %v9984_v9 = vpop.f32.mrf.mxu1  ;;  %v5070_v25 = vor.u32 %v5069_v40, %v5066_v49  ;;  %v12281_v3 = vrot.slane %v5194_v46, 4  ;;  %v5211_v39 = vshll.u32 %v9141_v41, 16  ;;  %v5048_v54 = vsel %vm10880_vm4, %v5043_v62, %v5047_v21  ;;  %v12299_v26 = vld [vmem:[%s10858_s23 + $0x12c] sm:$0x1] }
 0x15b   : > { %v12270_v27 = vadd.f32 %v10013_v18, %v12008_v35  ;;  %10255 = vmatprep.mubr.msk.bf16.mxu0 %vm760_vm1, %v10668_v4  ;;  %10270 = vmatpush3.bf16.msra.mxu0 %v12172_v57  ;;  %v5208_v35 = vshrl.u32 %v9141_v41, 16  ;;  %v12286_v4 = vadd.f32 %v9984_v9, %v11980_v47  ;;  %v5199_v40 = vrot.slane %v5197_v22, 5  ;;  %v10669_v41 = vld [vmem:[%s10858_s23 + $0xd0] ss:$8 sps:$4 sm:$0xff]  }
 0x15c   : > { %v2306_v12 = vpop.f32.mrf.mxu0  ;;  %10591 = vmatprep.subr.msk.bf16.mxu0 %vm773_vm0, %v12122_v7  ;;  %v2002_v47 = vpop.f32.mrf.mxu1  ;;  %v14734_v22 = vsel %vm10880_vm4, %v12142_v50, %v12144_v13  ;;  %v5203_v62 = vshll.u32 %v12279_v14, 16  ;;  %v5075_v49 = vrot.slane %v5073_v29, 5  ;;  %v12328_v13 = vcombine.low %v5034_v42, %v5048_v54  ;;  %v14756_v14 = vld [vmem:[#allocation53_spill] sm:$0xff] }
 0x15d   : > { %v12290_v8 = vadd.f32 %v2306_v12, %v12020_v51  ;;  %v14733_v51 = vsel %vm10880_vm4, %v12163_v56, %v12174_v15  ;;  %v12315_v18 = vadd.f32 %v2002_v47, %v11996_v16  ;;  %v12320_v12 = vcombine.low %v5006_v2, %v5020_v38  ;;  %v12323_v56 = vld [vmem:[%s10858_s23 + $0x5c] sm:$0x1]  ;;  %v9143_v15 = vld [vmem:[%s10858_s23 + $0x60] sm:$0xf] }
 0x15e   : > { %v10014_v46 = vpop.f32.mrf.mxu0  ;;  %v9131_v21 = vcombine.low %v14734_v22, %v14733_v51  ;;  %14735 = vst [vmem:[#allocation59_spill] sm:$0xff] %v12323_v56  ;;  %v9987_v30 = vpop.f32.mrf.mxu1  ;;  %10226 = vmatmul.mubr.msk.bf16.gmra.mxu1 %vm760_vm1, %v14736_v44  ;;  %v5071_v51 = vrot.slane %v5070_v25, 4  ;;  %v5210_v16 = vrot.slane %v5208_v35, 4  ;;  %v5213_v47 = vrot.slane %v5211_v39, 5  ;;  %v9145_v25 = vld [vmem:[%s10858_s23 + $0x68] sm:$0xf] }
 0x15f   : > { %v12318_v9 = vadd.f32 %v10014_v46, %v12033_v45  ;;  %v12331_v45 = vld [vmem:[%s10858_s23 + $0x64] sm:$0x1]  ;;  %v12334_v2 = vadd.f32 %v9987_v30, %v12025_v20  ;;  %10241 = vmatprep.mubr.msk.bf16.mxu1 %vm760_vm1, %v10662_v43  ;;  %v5062_v42 = vsel %vm10880_vm4, %v12274_v10, %v12276_v1  ;;  %v5200_v29 = vor.u32 %v5199_v40, %v12281_v3  ;;  %v9288_v30 = vld [vmem:[%s10858_s23 + $0x68] sm:$0xe]  ;;  %v9289_v3 = vld [vmem:[%s10858_s23 + $0x70] sm:$0xe] }
 0x160   : > { %v2309_v50 = vpop.f32.mrf.mxu0  ;;  %14737 = vst [vmem:[#allocation60_spill] sm:$0xff] %v12331_v45  ;;  %v2015_v35 = vpop.f32.mrf.mxu1  ;;  %v12347_v20 = vrot.slane %v5203_v62, 5  ;;  %v5217_v43 = vshll.u32 %v12323_v56, 16  ;;  %v5225_v54 = vshll.u32 %v9143_v15, 16  ;;  %v5231_v1 = vshll.u32 %v12331_v45, 16 }
 0x161   : > { %v12338_v38 = vadd.f32 %v2309_v50, %v12048_v55  ;;  %v5222_v55 = vshrl.u32 %v9143_v15, 16  ;;  %v12352_v46 = vadd.f32 %v2015_v35, %v12040_v33  ;;  %v9296_v40 = vrot.slane %v9288_v30, 9  ;;  %v10663_v22 = vld [vmem:[%s10858_s23 + $0x60] ss:$8 sps:$4 sm:$0xff]   ;;  %v9147_v56 = vld [vmem:[%s10858_s23 + $0x70] sm:$0xf] }
 0x162   : > { %v10017_v39 = vpop.f32.mrf.mxu0  ;;  %10256 = vmatmul.mubr.msk.bf16.gmra.mxu0 %vm760_vm1, %v10669_v41  ;;  %v9988_v41 = vpop.f32.mrf.mxu1  ;;  %v5076_v15 = vsel %vm10880_vm4, %v5071_v51, %v5075_v49  ;;  %v5214_v50 = vor.u32 %v5213_v47, %v5210_v16  ;;  %v5236_v44 = vshrl.u32 %v9145_v25, 16  ;;  %v9297_v33 = vrot.slane %v9289_v3, 9  ;;  %v10665_v35 = vld [vmem:[%s10858_s23 + $0x70] ss:$8 sps:$4 sm:$0xff]  }
 0x163   : > { %v12355_v10 = vadd.f32 %v10017_v39, %v12058_v23  ;;  %10271 = vmatprep.mubr.msk.bf16.mxu0 %vm760_vm1, %v9131_v21  ;;  %v12365_v23 = vadd.f32 %v9988_v41, %v12053_v53  ;;  %v12371_v39 = vrot.slane %v5200_v29, 4  ;;  %v14738_v30 = vrot.slane %v12070_v37, 5 }
 0x164   : > { %v2322_v62 = vpop.f32.mrf.mxu0  ;;  %v2018_v49 = vpop.f32.mrf.mxu1  ;;  %v5224_v16 = vrot.slane %v5222_v55, 4  ;;  %v5227_v47 = vrot.slane %v5225_v54, 5  ;;  %v5239_v3 = vshll.u32 %v9145_v25, 16  ;;  %v14740_v53 = vrot.slane %v12074_v0, 5  ;;  %v12394_v55 = vld [vmem:[%s10858_s23 + $0x134] sm:$0x1] }
 0x165   : > { %v12369_v21 = vadd.f32 %v2322_v62, %v12067_v59  ;;  %v12377_v45 = vsel %vm11279_vm7, %v9296_v40, %v14738_v30  ;;  %v12386_v59 = vadd.f32 %v2018_v49, %v12063_v58  ;;  %v5250_v29 = vshrl.u32 %v9147_v56, 16  ;;  %v14749_v25 = vld [vmem:[#allocation45_spill] sm:$0xff] }
 0x166   : > { %14739 = vst [vmem:[#allocation61_spill] sm:$0xff] %v12377_v45  ;;  %v10018_v51 = vpop.f32.mrf.mxu0  ;;  %v12383_v41 = vsel %vm11279_vm7, %v9297_v33, %v14740_v53  ;;  %v10003_v0 = vpop.f32.mrf.mxu1  ;;  %10242 = vmatmul.mubr.msk.bf16.vlgmr.msra.gmra.mxu1 %vm760_vm1, %v10663_v22  ;;  %v12398_v62 = vcombine.low %v5062_v42, %v5076_v15  ;;  %v12400_v58 = vrot.slane %v5217_v43, 5  ;;  %v5215_v49 = vrot.slane %v5214_v50, 4  ;;  %v9149_v42 = vld [vmem:[%s10858_s23 + $0x78] sm:$0xf] }
 0x167   : > { %14741 = vst [vmem:[#allocation62_spill] sm:$0xff] %v12383_v41  ;;  %v12389_v37 = vadd.f32 %v10018_v51, %v12085_v19  ;;  %v5253_v19 = vshll.u32 %v9147_v56, 16  ;;  %v12403_v33 = vadd.f32 %v10003_v0, %v12091_v17  ;;  %10260 = vmatpush3.bf16.msra.mxu1 %v11991_v60  ;;  %10245 = vmatprep.mubr.msk.bf16.mxu1 %vm760_vm1, %v10665_v35  ;;  %v12410_v22 = vrot.slane %v5231_v1, 5  ;;  %v12416_v56 = vld [vmem:[%s14573_s1 + $0x16] sm:$0x3] }
 0x168   : > { %v2325_v54 = vpop.f32.mrf.mxu0  ;;  %v2233_v17 = vpop.f32.mrf.mxu1  ;;  %10590 = vmatprep.subr.msk.bf16.mxu1 %vm773_vm0, %v12122_v7  ;;  %v12427_v43 = vld [vmem:[%s10858_s23 + $0x6c] sm:$0x1]  ;;  %v5228_v1 = vor.u32 %v5227_v47, %v5224_v16  ;;  %v5238_v15 = vrot.slane %v5236_v44, 4  ;;  %v5241_v50 = vrot.slane %v5239_v3, 5  ;;  %v9292_v35 = vld [vmem:[%s10858_s23 + $0x88] sm:$0xe] }
 0x169   : > { %v12408_v30 = vadd.f32 %v2325_v54, %v12099_v31  ;;  %v5206_v31 = vsel %vm10880_vm4, %v12371_v39, %v12347_v20  ;;  %14742 = vst [vmem:[#allocation63_spill] sm:$0xff] %v12427_v43  ;;  %v12431_v51 = vadd.f32 %v2233_v17, %v12115_v36  ;;  %v5252_v20 = vrot.slane %v5250_v29, 4  ;;  %v9293_v39 = vld [vmem:[%s10858_s23 + $0x90] sm:$0xe]  ;;  %v10667_v47 = vld [vmem:[%s10858_s23 + $0x80] ss:$8 sps:$4 sm:$0xff]  }
 0x16a   : > { %v10033_v60 = vpop.f32.mrf.mxu0  ;;  %10272 = vmatmul.mubr.msk.bf16.vlgmr.msra.gmra.mxu0 %vm760_vm1, %v12320_v12  ;;  %v12440_v12 = vld [vmem:[%s10858_s23 + $0x74] sm:$0x1]  ;;  %v9300_v16 = vrot.slane %v9292_v35, 9  ;;  %v10004_v44 = vpop.f32.mrf.mxu1  ;;  %v5255_v36 = vrot.slane %v5253_v19, 5  ;;  %v5264_v0 = vshrl.u32 %v9149_v42, 16  ;;  %v5267_v54 = vshll.u32 %v9149_v42, 16 }
 0x16b   : > { %v12434_v53 = vadd.f32 %v10033_v60, %v12135_v52  ;;  %10275 = vmatprep.mubr.msk.bf16.mxu0 %vm760_vm1, %v12328_v13  ;;  %10290 = vmatpush3.bf16.msra.mxu0 %v12172_v57  ;;  %14743 = vst [vmem:[#allocation64_spill] sm:$0xff] %v12440_v12  ;;  %v9301_v52 = vrot.slane %v9293_v39, 9  ;;  %v14744_v13 = vld [vmem:[#allocation28_spill] sm:$0xff]  ;;  %v14746_v60 = vld [vmem:[#allocation51_spill] sm:$0xff]  ;;  %v5245_v29 = vshll.u32 %v12427_v43, 16  ;;  %v14750_v41 = vrot.slane %v14749_v25, 5 }
 0x16c   : > { %v2537_v3 = vpop.f32.mrf.mxu0  ;;  %10593 = vmatprep.subr.msk.bf16.mxu0 %vm773_vm0, %v12416_v56  ;;  %v12447_v17 = vadd.f32 %v10004_v44, %v14744_v13  ;;  %v12454_v35 = vld [vmem:[%s10858_s23 + $0x7c] sm:$0x1]  ;;  %v2236_v42 = vpop.f32.mrf.mxu1  ;;  %v5220_v39 = vsel %vm10880_vm4, %v5215_v49, %v12400_v58  ;;  %v12465_v44 = vrot.slane %v5228_v1, 4  ;;  %v9151_v13 = vld [vmem:[%s10858_s23 + $0x80] sm:$0xf] }
 0x16d   : > { %v12450_v40 = vadd.f32 %v2537_v3, %v14746_v60  ;;  %14748 = vst [vmem:[#allocation65_spill] sm:$0xff] %v12454_v35  ;;  %v12460_v19 = vsel %vm11279_vm7, %v9300_v16, %v14750_v41  ;;  %v5259_v3 = vshll.u32 %v12440_v12, 16  ;;  %v14752_v60 = vld [vmem:[#allocation48_spill] sm:$0xff]  ;;  %v14755_v41 = vld [vmem:[#allocation29_spill] sm:$0xff]  ;;  %v5256_v12 = vor.u32 %v5255_v36, %v5252_v20  ;;  %v9153_v58 = vld [vmem:[%s10858_s23 + $0x88] sm:$0xf] }
 0x16e   : > { %14745 = vst [vmem:[#allocation28_spill] sm:$0xff] %v12447_v17  ;;  %14751 = vst [vmem:[#allocation45_spill] sm:$0xff] %v12460_v19  ;;  %v10034_v45 = vpop.f32.mrf.mxu0  ;;  %v14753_v43 = vrot.slane %v14752_v60, 5  ;;  %v12476_v16 = vadd.f32 %v2236_v42, %v14755_v41  ;;  %v5242_v17 = vor.u32 %v5241_v50, %v5238_v15  ;;  %v10007_v49 = vpop.f32.mrf.mxu1  ;;  %10246 = vmatmul.mubr.msk.bf16.gmra.mxu1 %vm760_vm1, %v10667_v47  ;;  %v12484_v60 = vrot.slane %v5264_v0, 4  ;;  %v14757_v42 = vld [vmem:[#allocation32_spill] sm:$0xff]  ;;  %v14765_v19 = vld [vmem:[#allocation58_spill] sm:$0xff] }
 0x16f   : > { %14747 = vst [vmem:[#allocation51_spill] sm:$0xff] %v12450_v40  ;;  %v12479_v40 = vadd.f32 %v10034_v45, %v14756_v14  ;;  %v12490_v41 = vadd.f32 %v10007_v49, %v14757_v42  ;;  %v10726_v14 = vld [vmem:[%s10858_s23 + $0xf0] ss:$8 sps:$4 sm:$0xff]   ;;  %v12497_v15 = vcombine.low %v5206_v31, %v5220_v39  ;;  %v5278_v50 = vshrl.u32 %v9151_v13, 16  ;;  %v9316_v49 = vld [vmem:[%s10858_s23 + $0x108] sm:$0xe] }
 0x170   : > { %v12473_v25 = vsel %vm11279_vm7, %v9301_v52, %v14753_v43  ;;  %v2540_v1 = vpop.f32.mrf.mxu0  ;;  %v12486_v43 = vrot.slane %v5267_v54, 5  ;;  %v5273_v52 = vshll.u32 %v12454_v35, 16  ;;  %10261 = vmatprep.mubr.msk.bf16.mxu1 %vm760_vm1, %v10726_v14  ;;  %v2249_v20 = vpop.f32.mrf.mxu1  ;;  %v12505_v0 = vrot.slane %v5245_v29, 5  ;;  %v14760_v39 = vld [vmem:[#allocation56_spill] sm:$0xff]  ;;  %v14762_v14 = vld [vmem:[#allocation2_spill] sm:$0xff] }
 0x171   : > { %14754 = vst [vmem:[#allocation48_spill] sm:$0xff] %v12473_v25  ;;  %v12495_v45 = vadd.f32 %v2540_v1, %v12186_v6  ;;  %v12507_v54 = vrot.slane %v5259_v3, 5  ;;  %v5281_v6 = vshll.u32 %v9151_v13, 16  ;;  %v14758_v1 = vld [vmem:[#allocation33_spill] sm:$0xff]  ;;  %v9317_v29 = vld [vmem:[%s10858_s23 + $0x110] sm:$0xe] }
 0x172   : > { %v10037_v47 = vpop.f32.mrf.mxu0  ;;  %10276 = vmatmul.mubr.msk.bf16.gmra.mxu0 %vm760_vm1, %v12398_v62  ;;  %v12511_v31 = vadd.f32 %v2249_v20, %v14758_v1  ;;  %v12516_v62 = vrot.slane %v5242_v17, 4  ;;  %v9324_v3 = vrot.slane %v9316_v49, 9  ;;  %v10008_v36 = vpop.f32.mrf.mxu1  ;;  %v12522_v25 = vrot.slane %v5256_v12, 4  ;;  %v5550_v49 = vld [vmem:[%s10858_s23] sm:$0xe]  ;;  %v14767_v12 = vld [vmem:[#allocation49_spill] sm:$0xff] }
 0x173   : > { %v12514_v42 = vadd.f32 %v10037_v47, %v14760_v39  ;;  %10291 = vmatprep.mubr.msk.bf16.mxu0 %vm760_vm1, %v14762_v14  ;;  %v5270_v20 = vor.u32 %v12486_v43, %v12484_v60  ;;  %v12526_v1 = vrot.slane %v5273_v52, 5  ;;  %v9325_v47 = vrot.slane %v9317_v29, 9  ;;  %v14763_v39 = vld [vmem:[#allocation34_spill] sm:$0xff] }
 0x174   : > { %14759 = vst [vmem:[#allocation29_spill] sm:$0xff] %v12511_v31  ;;  %v2553_v13 = vpop.f32.mrf.mxu0  ;;  %v12529_v17 = vadd.f32 %v10008_v36, %v14763_v39  ;;  %v12534_v35 = vrot.slane %v5278_v50, 4  ;;  %v14768_v31 = vrot.slane %v14767_v12, 5  ;;  %v2252_v43 = vpop.f32.mrf.mxu1  ;;  %v12545_v29 = vld [vmem:[%s10858_s23 + $0x84] sm:$0x1]  ;;  %v12547_v36 = vrot.slane %v5281_v6, 5 }
 0x175   : > { %14761 = vst [vmem:[#allocation53_spill] sm:$0xff] %v12514_v42  ;;  %v12532_v14 = vadd.f32 %v2553_v13, %v14765_v19  ;;  %v5551_v42 = vld [vmem:[%s10858_s23 + $0x8] sm:$0xe]  ;;  %14770 = vst [vmem:[#allocation2_spill] sm:$0xff] %v12545_v29  ;;  %v5292_v39 = vshrl.u32 %v9153_v58, 16  ;;  %v5295_v19 = vshll.u32 %v9153_v58, 16  ;;  %v12556_v12 = vadd.f32 %v2252_v43, %v12229_v48 }
 0x176   : > { %14764 = vst [vmem:[#allocation32_spill] sm:$0xff] %v12529_v17  ;;  %v12542_v60 = vsel %vm11279_vm7, %v9324_v3, %v14768_v31  ;;  %v10038_v52 = vpop.f32.mrf.mxu0  ;;  %v14771_v50 = vrot.slane %v12295_v63, 5  ;;  %v12562_v3 = vld [vmem:[%s10858_s23 + $0x8c] sm:$0x1]  ;;  %v12566_v6 = vsel %vm773_vm0, %v12416_v56, 0  ;;  %v10023_v58 = vpop.f32.mrf.mxu1  ;;  %v14775_v48 = vld [vmem:[#allocation46_spill] sm:$0xff] }
 0x177   : > { %14766 = vst [vmem:[#allocation33_spill] sm:$0xff] %v12532_v14  ;;  %14769 = vst [vmem:[#allocation56_spill] sm:$0xff] %v12542_v60  ;;  %v12559_v31 = vadd.f32 %v10038_v52, %v12232_v61  ;;  %v10727_v14 = vld [vmem:[%s10858_s23 + $0x100] ss:$8 sps:$4 sm:$0xff]   ;;  %v5576_v43 = vrot.slane %v14775_v48, 5 }
 0x178   : > { %v12553_v13 = vsel %vm11279_vm7, %v9325_v47, %v14771_v50  ;;  %14773 = vst [vmem:[#allocation58_spill] sm:$0xff] %v12556_v12  ;;  %10262 = vmatmul.mubr.msk.bf16.vlgmr.msra.gmra.mxu1 %vm760_vm1, %v10727_v14  ;;  %v2556_v47 = vpop.f32.mrf.mxu0  ;;  %v9172_v50 = vrot.slane %v5550_v49, 9  ;;  %v9173_v12 = vrot.slane %v5551_v42, 9  ;;  %v14776_v61 = vld [vmem:[#allocation47_spill] sm:$0xff]  ;;  %v10728_v17 = vld [vmem:[%s10858_s23 + $0x110] ss:$8 sps:$4 sm:$0xff]   ;;  %v5248_v14 = vsel %vm10880_vm4, %v12516_v62, %v12505_v0  ;;  %v2459_v48 = vpop.f32.mrf.mxu1 }
 0x179   : > { %14772 = vst [vmem:[#allocation34_spill] sm:$0xff] %v12553_v13  ;;  %14774 = vst [vmem:[#allocation49_spill] sm:$0xff] %v12559_v31  ;;  %v5580_v52 = vrot.slane %v14776_v61, 5  ;;  %v12575_v31 = vadd.f32 %v10023_v58, %v12242_v28  ;;  %10280 = vmatpush3.bf16.msra.mxu1 %v12172_v57  ;;  %10265 = vmatprep.mubr.msk.bf16.mxu1 %vm760_vm1, %v10728_v17  ;;  %v12585_v49 = vadd.f32 %v2556_v47, %v12248_v24  ;;  %v14777_v0 = vld [vmem:[#allocation3_spill] sm:$0xff]  ;;  %v5552_v47 = vld [vmem:[%s10858_s23 + $0x10] sm:$0xe] }
 0x17a   : > { %v5287_v42 = vshll.u32 %v12545_v29, 16  ;;  %10592 = vmatprep.subr.msk.bf16.mxu1 %vm773_vm0, %v12122_v7  ;;  %v10053_v28 = vpop.f32.mrf.mxu0  ;;  %v12594_v58 = vrot.slane %v5270_v20, 4  ;;  %10292 = vmatmul.mubr.msk.bf16.vlgmr.msra.gmra.mxu0 %vm760_vm1, %v14777_v0  ;;  %v5284_v24 = vor.u32 %v12547_v36, %v12534_v35  ;;  %v9320_v61 = vld [vmem:[%s10858_s23 + $0x128] sm:$0xe]  ;;  %v12604_v7 = vadd.f32 %v2459_v48, %v12267_v32  ;;  %v14780_v17 = vld [vmem:[#allocation4_spill] sm:$0xff]  ;;  %v10024_v0 = vpop.f32.mrf.mxu1 }
 0x17b   : > { %v12607_v63 = vadd.f32 %v10053_v28, %v12270_v27  ;;  %v5294_v13 = vrot.slane %v5292_v39, 4  ;;  %10295 = vmatprep.mubr.msk.bf16.mxu0 %vm760_vm1, %v14780_v17  ;;  %10310 = vmatpush3.bf16.msra.mxu0 %v12566_v6  ;;  %v5553_v20 = vld [vmem:[%s10858_s23 + $0x18] sm:$0xe]  ;;  %v9321_v35 = vld [vmem:[%s10858_s23 + $0x130] sm:$0xe]  ;;  %v9328_v36 = vrot.slane %v9320_v61, 9  ;;  %v5577_v32 = vsel %vm11279_vm7, %v9172_v50, %v5576_v43 }
 0x17c   : > { %14778 = vst [vmem:[#allocation46_spill] sm:$0xff] %v12604_v7  ;;  %v5297_v62 = vrot.slane %v5295_v19, 5  ;;  %v2723_v60 = vpop.f32.mrf.mxu0  ;;  %v5581_v27 = vsel %vm11279_vm7, %v9173_v12, %v5580_v52  ;;  %10595 = vmatprep.subr.msk.bf16.mxu0 %vm773_vm0, %v12416_v56  ;;  %v9329_v39 = vrot.slane %v9321_v35, 9  ;;  %v12621_v48 = vadd.f32 %v10024_v0, %v12286_v4  ;;  %v5554_v19 = vld [vmem:[%s10858_s23 + $0x20] sm:$0xe]  ;;  %v2462_v12 = vpop.f32.mrf.mxu1  ;;  %v14785_v4 = vld [vmem:[#allocation52_spill] sm:$0xff] }
 0x17d   : > { %14779 = vst [vmem:[#allocation47_spill] sm:$0xff] %v12607_v63  ;;  %v12624_v28 = vadd.f32 %v2723_v60, %v12290_v8  ;;  %v9174_v17 = vrot.slane %v5552_v47, 9  ;;  %v5555_v61 = vld [vmem:[%s10858_s23 + $0x28] sm:$0xe]  ;;  %v14783_v29 = vrot.slane %v12299_v26, 5  ;;  %v14784_v52 = vld [vmem:[#allocation50_spill] sm:$0xff]  ;;  %v12643_v47 = vadd.f32 %v2462_v12, %v12315_v18 }
 0x17e   : > { %14781 = vst [vmem:[#allocation3_spill] sm:$0xff] %v12621_v48  ;;  %v10054_v43 = vpop.f32.mrf.mxu0  ;;  %v5584_v35 = vrot.slane %v14784_v52, 5  ;;  %v9175_v63 = vrot.slane %v5553_v20, 9  ;;  %v5588_v0 = vrot.slane %v14785_v4, 5  ;;  %v14786_v8 = vrot.slane %v12394_v55, 5  ;;  %v10027_v52 = vpop.f32.mrf.mxu1 }
 0x17f   : > { %14782 = vst [vmem:[#allocation4_spill] sm:$0xff] %v12624_v28  ;;  %v12632_v50 = vsel %vm11279_vm7, %v9328_v36, %v14783_v29  ;;  %v12646_v26 = vadd.f32 %v10054_v43, %v12318_v9  ;;  %v9180_v29 = vcombine.low %v5577_v32, %v5581_v27  ;;  %v10729_v20 = vld [vmem:[%s10858_s23 + $0x120] ss:$8 sps:$4 sm:$0xff]   ;;  %v9176_v55 = vrot.slane %v5554_v19, 9  ;;  %v14790_v43 = vld [vmem:[#allocation5_spill] sm:$0xff] }
 0x180   : > { %v12640_v60 = vsel %vm11279_vm7, %v9329_v39, %v14786_v8  ;;  %10266 = vmatmul.mubr.msk.bf16.gmra.mxu1 %vm760_vm1, %v10729_v20  ;;  %v2726_v4 = vpop.f32.mrf.mxu0  ;;  %v14787_v28 = vld [vmem:[#allocation54_spill] sm:$0xff]  ;;  %v9177_v39 = vrot.slane %v5555_v61, 9  ;;  %v14788_v8 = vld [vmem:[#allocation55_spill] sm:$0xff]  ;;  %v12655_v18 = vadd.f32 %v10027_v52, %v12334_v2  ;;  %v5276_v9 = vsel %vm10880_vm4, %v12594_v58, %v12526_v1 }
 0x181   : > { %v5592_v48 = vrot.slane %v14787_v28, 5  ;;  %v5596_v7 = vrot.slane %v14788_v8, 5  ;;  %10281 = vmatprep.mubr.msk.bf16.mxu1 %vm760_vm1, %v12497_v15  ;;  %v5298_v32 = vor.u32 %v5297_v62, %v5294_v13  ;;  %v12664_v27 = vadd.f32 %v2726_v4, %v12338_v38  ;;  %v2475_v28 = vpop.f32.mrf.mxu1  ;;  %v5557_v13 = vld [vmem:[%s10858_s23 + $0x38] sm:$0xe] }
 0x182   : > { %v14789_v2 = vsel %vm10880_vm4, %v12465_v44, %v12410_v22  ;;  %v5289_v61 = vrot.slane %v5287_v42, 5  ;;  %v10057_v12 = vpop.f32.mrf.mxu0  ;;  %10296 = vmatmul.mubr.msk.bf16.gmra.mxu0 %vm760_vm1, %v14790_v43  ;;  %v12674_v15 = vadd.f32 %v2475_v28, %v12352_v46  ;;  %v5585_v38 = vsel %vm11279_vm7, %v9174_v17, %v5584_v35  ;;  %v5556_v44 = vld [vmem:[%s10858_s23 + $0x30] sm:$0xe]  ;;  %v14793_v4 = vld [vmem:[#allocation57_spill] sm:$0xff] }
 0x183   : > { %v9156_v19 = vcombine.low %v14789_v2, %v5248_v14  ;;  %v12677_v1 = vadd.f32 %v10057_v12, %v12355_v10  ;;  %10311 = vmatprep.mubr.msk.bf16.mxu0 %vm760_vm1, %v9180_v29  ;;  %v5589_v22 = vsel %vm11279_vm7, %v9175_v63, %v5588_v0  ;;  %v10028_v14 = vpop.f32.mrf.mxu1  ;;  %v14791_v46 = vsel %vm10880_vm4, %v12522_v25, %v12507_v54 }
 0x184   : > { %v9157_v42 = vcombine.low %v14791_v46, %v5276_v9  ;;  %v5285_v58 = vrot.slane %v5284_v24, 4  ;;  %v2739_v10 = vpop.f32.mrf.mxu0  ;;  %v5593_v62 = vsel %vm11279_vm7, %v9176_v55, %v5592_v48  ;;  %v5597_v17 = vsel %vm11279_vm7, %v9177_v39, %v5596_v7 }
 0x185   : > { %v12696_v35 = vadd.f32 %v10028_v14, %v12365_v23  ;;  %v5299_v63 = vrot.slane %v5298_v32, 4  ;;  %v14792_v0 = vshll.u32 %v12562_v3, 16  ;;  %v12701_v52 = vadd.f32 %v2739_v10, %v12369_v21  ;;  %v2478_v25 = vpop.f32.mrf.mxu1 }
 0x186   : > { %v10058_v54 = vpop.f32.mrf.mxu0  ;;  %v9181_v24 = vcombine.low %v5585_v38, %v5589_v22  ;;  %v9178_v20 = vrot.slane %v5556_v44, 9  ;;  %v5600_v8 = vrot.slane %v14793_v4, 5  ;;  %v9179_v48 = vrot.slane %v5557_v13, 9  ;;  %v14794_v22 = vld [vmem:[#allocation28_spill] sm:$0xff]  ;;  %v9189_v4 = vld [vmem:[%s10858_s23 + $0x58] sm:$0xe] }
 0x187   : > { %v5303_v29 = vrot.slane %v14792_v0, 5  ;;  %v12705_v55 = vadd.f32 %v2478_v25, %v12386_v59  ;;  %v12708_v23 = vadd.f32 %v10058_v54, %v12389_v37  ;;  %v9182_v7 = vcombine.low %v5593_v62, %v5597_v17  ;;  %v10043_v9 = vpop.f32.mrf.mxu1  ;;  %v14798_v54 = vld [vmem:[#allocation53_spill] sm:$0xff] }
 0x188   : > { %v5604_v39 = vrot.slane %v12236_v5, 5  ;;  %10282 = vmatmul.mubr.msk.bf16.vlgmr.msra.gmra.mxu1 %vm760_vm1, %v9156_v19  ;;  %v5290_v21 = vsel %vm10880_vm4, %v5285_v58, %v5289_v61  ;;  %v2742_v32 = vpop.f32.mrf.mxu0  ;;  %v12715_v28 = vadd.f32 %v10043_v9, %v12403_v33  ;;  %v12727_v5 = vld [vmem:[%s14573_s1 + $0x18] sm:$0x3] }
 0x189   : > { %10300 = vmatpush3.bf16.msra.mxu1 %v12172_v57  ;;  %10285 = vmatprep.mubr.msk.bf16.mxu1 %vm760_vm1, %v9157_v42  ;;  %v5304_v59 = vsel %vm10880_vm4, %v5299_v63, %v5303_v29  ;;  %v12722_v37 = vadd.f32 %v2742_v32, %v12408_v30  ;;  %v2610_v2 = vpop.f32.mrf.mxu1  ;;  %v5601_v57 = vsel %vm11279_vm7, %v9178_v20, %v5600_v8  ;;  %v14796_v63 = vld [vmem:[#allocation6_spill] sm:$0xff]  ;;  %v9188_v20 = vld [vmem:[%s10858_s23 + $0x50] sm:$0xe] }
 0x18a   : > { %10594 = vmatprep.subr.msk.bf16.mxu1 %vm773_vm0, %v12416_v56  ;;  %v10073_v33 = vpop.f32.mrf.mxu0  ;;  %10312 = vmatmul.mubr.msk.bf16.vlgmr.msra.gmra.mxu0 %vm760_vm1, %v9181_v24  ;;  %v12735_v19 = vadd.f32 %v2610_v2, %v12431_v51  ;;  %v5605_v61 = vsel %vm11279_vm7, %v9179_v48, %v5604_v39  ;;  %v9158_v43 = vcombine.low %v5290_v21, %v5304_v59  ;;  %v14795_v51 = vld [vmem:[#allocation51_spill] sm:$0xff]  ;;  %v14801_v39 = vld [vmem:[#allocation33_spill] sm:$0xff]  ;;  %v9196_v32 = vrot.slane %v9188_v20, 9  ;;  %v14802_v59 = vld [vmem:[#allocation36_spill] sm:$0xff] }
 0x18b   : > { %v12738_v30 = vadd.f32 %v10073_v33, %v12434_v53  ;;  %10315 = vmatprep.mubr.msk.bf16.mxu0 %vm760_vm1, %v9182_v7  ;;  %10330 = vmatpush3.bf16.msra.mxu0 %v12566_v6  ;;  %v10044_v12 = vpop.f32.mrf.mxu1  ;;  %v9183_v46 = vcombine.low %v5601_v57, %v5605_v61  ;;  %v14800_v7 = vld [vmem:[#allocation32_spill] sm:$0xff]  ;;  %v5732_v2 = vrot.slane %v14802_v59, 5  ;;  %v9197_v33 = vrot.slane %v9189_v4, 9  ;;  %v14803_v57 = vld [vmem:[#allocation59_spill] sm:$0xff]  ;;  %v14811_v59 = vld [vmem:[#allocation14_spill] sm:$0xff] }
 0x18c   : > { %v2874_v38 = vpop.f32.mrf.mxu0  ;;  %10597 = vmatprep.subr.msk.bf16.mxu0 %vm773_vm0, %v12727_v5  ;;  %v12747_v44 = vadd.f32 %v10044_v12, %v14794_v22  ;;  %v5736_v61 = vrot.slane %v14803_v57, 5  ;;  %v14805_v22 = vld [vmem:[#allocation49_spill] sm:$0xff] }
 0x18d   : > { %v12750_v13 = vadd.f32 %v2874_v38, %v14795_v51  ;;  %v2613_v53 = vpop.f32.mrf.mxu1  ;;  %v5733_v20 = vsel %vm11279_vm7, %v9196_v32, %v5732_v2 }
 0x18e   : > { %v10074_v14 = vpop.f32.mrf.mxu0  ;;  %v12753_v42 = vadd.f32 %v2613_v53, %v12476_v16  ;;  %v14797_v16 = vld [vmem:[#allocation29_spill] sm:$0xff]  ;;  %v5737_v4 = vsel %vm11279_vm7, %v9197_v33, %v5736_v61 }
 0x18f   : > { %v12756_v58 = vadd.f32 %v10074_v14, %v12479_v40  ;;  %v10047_v10 = vpop.f32.mrf.mxu1  ;;  %v14806_v14 = vld [vmem:[#allocation7_spill] sm:$0xff] }
 0x190   : > { %10286 = vmatmul.mubr.msk.bf16.gmra.mxu1 %vm760_vm1, %v9158_v43  ;;  %v2877_v62 = vpop.f32.mrf.mxu0  ;;  %v12760_v17 = vadd.f32 %v10047_v10, %v12490_v41  ;;  %v14799_v41 = vld [vmem:[#allocation12_spill] sm:$0xff]  ;;  %v14804_v43 = vld [vmem:[#allocation58_spill] sm:$0xff]  ;;  %v12796_v10 = vsel %vm773_vm0, %v12727_v5, 0 }
 0x191   : > { %10301 = vmatprep.mubr.msk.bf16.mxu1 %vm760_vm1, %v14796_v63  ;;  %v12765_v0 = vadd.f32 %v2877_v62, %v12495_v45  ;;  %v2626_v29 = vpop.f32.mrf.mxu1  ;;  %v14807_v63 = vld [vmem:[#allocation8_spill] sm:$0xff] }
 0x192   : > { %v10077_v25 = vpop.f32.mrf.mxu0  ;;  %10316 = vmatmul.mubr.msk.bf16.gmra.mxu0 %vm760_vm1, %v9183_v46  ;;  %v12769_v40 = vadd.f32 %v2626_v29, %v14797_v16  ;;  %v9190_v29 = vld [vmem:[%s10858_s23 + $0x60] sm:$0xe] }
 0x193   : > { %v12772_v24 = vadd.f32 %v10077_v25, %v14798_v54  ;;  %10331 = vmatprep.mubr.msk.bf16.mxu0 %vm760_vm1, %v14799_v41  ;;  %v10048_v8 = vpop.f32.mrf.mxu1  ;;  %v9191_v25 = vld [vmem:[%s10858_s23 + $0x68] sm:$0xe]  ;;  %v14808_v41 = vld [vmem:[#allocation13_spill] sm:$0xff]  ;;  %v9198_v2 = vrot.slane %v9190_v29, 9 }
 0x194   : > { %v2890_v48 = vpop.f32.mrf.mxu0  ;;  %v12779_v45 = vadd.f32 %v10048_v8, %v14800_v7  ;;  %v14809_v8 = vld [vmem:[#allocation46_spill] sm:$0xff]  ;;  %v14810_v7 = vld [vmem:[#allocation47_spill] sm:$0xff]  ;;  %v9199_v57 = vrot.slane %v9191_v25, 9 }
 0x195   : > { %v12782_v9 = vadd.f32 %v2890_v48, %v14801_v39  ;;  %v2629_v21 = vpop.f32.mrf.mxu1  ;;  %v9192_v39 = vld [vmem:[%s10858_s23 + $0x70] sm:$0xe] }
 0x196   : > { %v10078_v12 = vpop.f32.mrf.mxu0  ;;  %v12787_v38 = vadd.f32 %v2629_v21, %v14804_v43  ;;  %v9193_v21 = vld [vmem:[%s10858_s23 + $0x78] sm:$0xe]  ;;  %v9200_v29 = vrot.slane %v9192_v39, 9 }
 0x197   : > { %v12790_v51 = vadd.f32 %v10078_v12, %v14805_v22  ;;  %v10063_v53 = vpop.f32.mrf.mxu1  ;;  %v14813_v12 = vld [vmem:[#allocation3_spill] sm:$0xff]  ;;  %v9204_v22 = vcombine.low %v5733_v20, %v5737_v4  ;;  %v9201_v25 = vrot.slane %v9193_v21, 9  ;;  %v9194_v21 = vld [vmem:[%s10858_s23 + $0x80] sm:$0xe] }
 0x198   : > { %10302 = vmatmul.mubr.msk.bf16.vlgmr.msra.gmra.mxu1 %vm760_vm1, %v14806_v14  ;;  %v2893_v46 = vpop.f32.mrf.mxu0  ;;  %v12799_v62 = vadd.f32 %v10063_v53, %v12575_v31  ;;  %v14814_v53 = vld [vmem:[#allocation63_spill] sm:$0xff] }
 0x199   : > { %10320 = vmatpush3.bf16.msra.mxu1 %v12566_v6  ;;  %10305 = vmatprep.mubr.msk.bf16.mxu1 %vm760_vm1, %v14807_v63  ;;  %v12807_v16 = vadd.f32 %v2893_v46, %v12585_v49  ;;  %v2796_v54 = vpop.f32.mrf.mxu1  ;;  %v5744_v14 = vrot.slane %v14814_v53, 5  ;;  %v14815_v46 = vld [vmem:[#allocation4_spill] sm:$0xff]  ;;  %v9195_v53 = vld [vmem:[%s10858_s23 + $0x88] sm:$0xe] }
 0x19a   : > { %10596 = vmatprep.subr.msk.bf16.mxu1 %vm773_vm0, %v12416_v56  ;;  %v10093_v31 = vpop.f32.mrf.mxu0  ;;  %10332 = vmatmul.mubr.msk.bf16.vlgmr.msra.gmra.mxu0 %vm760_vm1, %v14808_v41  ;;  %v12818_v48 = vadd.f32 %v2796_v54, %v14809_v8  ;;  %v14812_v56 = vld [vmem:[#allocation60_spill] sm:$0xff]  ;;  %v14817_v8 = vld [vmem:[#allocation65_spill] sm:$0xff] }
 0x19b   : > { %v12821_v49 = vadd.f32 %v10093_v31, %v14810_v7  ;;  %10335 = vmatprep.mubr.msk.bf16.mxu0 %vm760_vm1, %v14811_v59  ;;  %10350 = vmatpush3.bf16.msra.mxu0 %v12796_v10  ;;  %v10064_v32 = vpop.f32.mrf.mxu1  ;;  %v5740_v33 = vrot.slane %v14812_v56, 5  ;;  %v14816_v31 = vld [vmem:[#allocation64_spill] sm:$0xff]  ;;  %v5752_v7 = vrot.slane %v14817_v8, 5 }
 0x19c   : > { %v3020_v61 = vpop.f32.mrf.mxu0  ;;  %10599 = vmatprep.subr.msk.bf16.mxu0 %vm773_vm0, %v12727_v5  ;;  %v12832_v43 = vadd.f32 %v10064_v32, %v14813_v12  ;;  %v5748_v41 = vrot.slane %v14816_v31, 5  ;;  %v10670_v4 = vld [vmem:[%s10858_s23 + $0x8] ss:$8 sps:$4 sm:$0xff]  }
 0x19d   : > { %v12836_v63 = vadd.f32 %v3020_v61, %v14815_v46  ;;  %v2799_v54 = vpop.f32.mrf.mxu1  ;;  %v14818_v61 = vld [vmem:[#allocation9_spill] sm:$0xff] }
 0x19e   : > { %v10094_v59 = vpop.f32.mrf.mxu0  ;;  %v12841_v56 = vadd.f32 %v2799_v54, %v12643_v47  ;;  %v5741_v47 = vsel %vm11279_vm7, %v9198_v2, %v5740_v33  ;;  %v5749_v31 = vsel %vm11279_vm7, %v9200_v29, %v5748_v41  ;;  %v9202_v41 = vrot.slane %v9194_v21, 9  ;;  %v10731_v21 = vld [vmem:[%s10858_s23 + $0xfc] sm:$0x1] }
 0x19f   : > { %v12844_v20 = vadd.f32 %v10094_v59, %v12646_v26  ;;  %v10067_v32 = vpop.f32.mrf.mxu1  ;;  %v5745_v26 = vsel %vm11279_vm7, %v9199_v57, %v5744_v14  ;;  %v9217_v57 = vld [vmem:[%s10858_s23 + $0xf8] sm:$0xe]  ;;  %v9203_v59 = vrot.slane %v9195_v53, 9 }
 0x1a0   : > { %10306 = vmatmul.mubr.msk.bf16.gmra.mxu1 %vm760_vm1, %v14818_v61  ;;  %v3023_v39 = vpop.f32.mrf.mxu0  ;;  %v12850_v12 = vadd.f32 %v10067_v32, %v12655_v18  ;;  %v5753_v18 = vsel %vm11279_vm7, %v9201_v25, %v5752_v7  ;;  %v9205_v29 = vcombine.low %v5741_v47, %v5745_v26  ;;  %v14820_v25 = vld [vmem:[#allocation2_spill] sm:$0xff]  ;;  %v5760_v61 = vrot.slane %v12562_v3, 5 }
 0x1a1   : > { %10321 = vmatprep.mubr.msk.bf16.mxu1 %vm760_vm1, %v9204_v22  ;;  %v12860_v46 = vadd.f32 %v3023_v39, %v12664_v27  ;;  %v2812_v54 = vpop.f32.mrf.mxu1  ;;  %v14819_v22 = vld [vmem:[#allocation15_spill] sm:$0xff]  ;;  %v9216_v27 = vld [vmem:[%s10858_s23 + $0xf0] sm:$0xe]  ;;  %v5756_v7 = vrot.slane %v14820_v25, 5  ;;  %v9225_v26 = vrot.slane %v9217_v57, 9 }
 0x1a2   : > { %v10097_v8 = vpop.f32.mrf.mxu0  ;;  %10336 = vmatmul.mubr.msk.bf16.gmra.mxu0 %vm760_vm1, %v14819_v22  ;;  %v12869_v2 = vadd.f32 %v2812_v54, %v12674_v15  ;;  %v9224_v54 = vrot.slane %v9216_v27, 9  ;;  %v5962_v22 = vrot.slane %v10731_v21, 5  ;;  %v10671_v53 = vld [vmem:[%s10858_s23 + $0x18] ss:$8 sps:$4 sm:$0xff]  }
 0x1a3   : > { %v12872_v33 = vadd.f32 %v10097_v8, %v12677_v1  ;;  %10351 = vmatprep.mubr.msk.bf16.mxu0 %vm760_vm1, %v10670_v4  ;;  %v10068_v14 = vpop.f32.mrf.mxu1  ;;  %v9206_v1 = vcombine.low %v5749_v31, %v5753_v18  ;;  %v10730_v8 = vld [vmem:[%s10858_s23 + $0xf4] sm:$0x1]  ;;  %v10672_v31 = vld [vmem:[%s10858_s23 + $0x28] ss:$8 sps:$4 sm:$0xff]   ;;  %v12911_v57 = vld [vmem:[%s14573_s1 + $0x1a] sm:$0x3] }
 0x1a4   : > { %v3036_v32 = vpop.f32.mrf.mxu0  ;;  %v12879_v15 = vadd.f32 %v10068_v14, %v12696_v35  ;;  %v5958_v47 = vrot.slane %v10730_v8, 5 }
 0x1a5   : > { %v12883_v39 = vadd.f32 %v3036_v32, %v12701_v52  ;;  %v2815_v4 = vpop.f32.mrf.mxu1  ;;  %v5757_v52 = vsel %vm11279_vm7, %v9202_v41, %v5756_v7  ;;  %v9220_v7 = vld [vmem:[%s10858_s23 + $0x110] sm:$0xe] }
 0x1a6   : > { %v10098_v25 = vpop.f32.mrf.mxu0  ;;  %v12889_v36 = vadd.f32 %v2815_v4, %v12705_v55  ;;  %v5761_v55 = vsel %vm11279_vm7, %v9203_v59, %v5760_v61  ;;  %v9221_v59 = vld [vmem:[%s10858_s23 + $0x118] sm:$0xe]  ;;  %v9228_v8 = vrot.slane %v9220_v7, 9 }
 0x1a7   : > { %v12892_v35 = vadd.f32 %v10098_v25, %v12708_v23  ;;  %v10083_v3 = vpop.f32.mrf.mxu1  ;;  %v9229_v21 = vrot.slane %v9221_v59, 9 }
 0x1a8   : > { %10322 = vmatmul.mubr.msk.bf16.vlgmr.msra.gmra.mxu1 %vm760_vm1, %v9205_v29  ;;  %v3039_v18 = vpop.f32.mrf.mxu0  ;;  %v12899_v27 = vadd.f32 %v10083_v3, %v12715_v28  ;;  %v5959_v28 = vsel %vm11279_vm7, %v9224_v54, %v5958_v47  ;;  %v10732_v47 = vld [vmem:[%s10858_s23 + $0x114] sm:$0x1] }
 0x1a9   : > { %10340 = vmatpush3.bf16.msra.mxu1 %v12566_v6  ;;  %10325 = vmatprep.mubr.msk.bf16.mxu1 %vm760_vm1, %v9206_v1  ;;  %v12906_v23 = vadd.f32 %v3039_v18, %v12722_v37  ;;  %v2947_v14 = vpop.f32.mrf.mxu1  ;;  %v5963_v6 = vsel %vm11279_vm7, %v9225_v26, %v5962_v22  ;;  %v9207_v1 = vcombine.low %v5757_v52, %v5761_v55  ;;  %v5974_v26 = vrot.slane %v10732_v47, 5  ;;  %v10733_v22 = vld [vmem:[%s10858_s23 + $0x11c] sm:$0x1] }
 0x1aa   : > { %10598 = vmatprep.subr.msk.bf16.mxu1 %vm773_vm0, %v12727_v5  ;;  %v10113_v29 = vpop.f32.mrf.mxu0  ;;  %10352 = vmatmul.mubr.msk.bf16.vlgmr.msra.gmra.mxu0 %vm760_vm1, %v10671_v53  ;;  %v12921_v37 = vadd.f32 %v2947_v14, %v12735_v19  ;;  %v5978_v25 = vrot.slane %v10733_v22, 5 }
 0x1ab   : > { %v12924_v41 = vadd.f32 %v10113_v29, %v12738_v30  ;;  %10355 = vmatprep.mubr.msk.bf16.mxu0 %vm760_vm1, %v10672_v31  ;;  %10370 = vmatpush3.bf16.msra.mxu0 %v12796_v10  ;;  %v10084_v32 = vpop.f32.mrf.mxu1  ;;  %v9232_v30 = vcombine.low %v5959_v28, %v5963_v6  ;;  %v10673_v31 = vld [vmem:[%s10858_s23 + $0x38] ss:$8 sps:$4 sm:$0xff]  }
 0x1ac   : > { %v3251_v61 = vpop.f32.mrf.mxu0  ;;  %10601 = vmatprep.subr.msk.bf16.mxu0 %vm773_vm0, %v12911_v57  ;;  %v12933_v19 = vadd.f32 %v10084_v32, %v12747_v44  ;;  %v10674_v44 = vld [vmem:[%s10858_s23 + $0xa8] ss:$8 sps:$4 sm:$0xff]  }
 0x1ad   : > { %v12936_v4 = vadd.f32 %v3251_v61, %v12750_v13  ;;  %v2950_v54 = vpop.f32.mrf.mxu1 }
 0x1ae   : > { %v10114_v53 = vpop.f32.mrf.mxu0  ;;  %v12942_v3 = vadd.f32 %v2950_v54, %v12753_v42  ;;  %v5975_v42 = vsel %vm11279_vm7, %v9228_v8, %v5974_v26  ;;  %v10675_v54 = vld [vmem:[%s10858_s23 + $0xb8] ss:$8 sps:$4 sm:$0xff]   ;;  %v10676_v8 = vld [vmem:[%s10858_s23 + $0xc8] ss:$8 sps:$4 sm:$0xff]  }
 0x1af   : > { %v12945_v52 = vadd.f32 %v10114_v53, %v12756_v58  ;;  %v10087_v18 = vpop.f32.mrf.mxu1  ;;  %v5979_v58 = vsel %vm11279_vm7, %v9229_v21, %v5978_v25  ;;  %v14821_v26 = vld [vmem:[#allocation40_spill] sm:$0xff]  ;;  %v14822_v21 = vld [vmem:[#allocation41_spill] sm:$0xff] }
 0x1b0   : > { %10326 = vmatmul.mubr.msk.bf16.gmra.mxu1 %vm760_vm1, %v9207_v1  ;;  %v3254_v13 = vpop.f32.mrf.mxu0  ;;  %v12950_v55 = vadd.f32 %v10087_v18, %v12760_v17  ;;  %v9234_v32 = vcombine.low %v5975_v42, %v5979_v58  ;;  %v14823_v22 = vcombine.low %v14821_v26, %v14822_v21 }
 0x1b1   : > { %10341 = vmatprep.mubr.msk.bf16.mxu1 %vm760_vm1, %v9232_v30  ;;  %v12954_v14 = vadd.f32 %v3254_v13, %v12765_v0  ;;  %v2963_v28 = vpop.f32.mrf.mxu1 }
 0x1b2   : > { %v10117_v6 = vpop.f32.mrf.mxu0  ;;  %10356 = vmatmul.mubr.msk.bf16.gmra.mxu0 %vm760_vm1, %v10673_v31  ;;  %v12962_v17 = vadd.f32 %v2963_v28, %v12769_v40 }
 0x1b3   : > { %v12965_v29 = vadd.f32 %v10117_v6, %v12772_v24  ;;  %10371 = vmatprep.mubr.msk.bf16.mxu0 %vm760_vm1, %v10674_v44  ;;  %v10088_v0 = vpop.f32.mrf.mxu1  ;;  %v14824_v6 = vld [vmem:[#allocation43_spill] sm:$0xff] }
 0x1b4   : > { %v3267_v7 = vpop.f32.mrf.mxu0  ;;  %v12969_v59 = vadd.f32 %v10088_v0, %v12779_v45  ;;  %v14825_v0 = vld [vmem:[#allocation44_spill] sm:$0xff] }
 0x1b5   : > { %v12972_v1 = vadd.f32 %v3267_v7, %v12782_v9  ;;  %v2966_v61 = vpop.f32.mrf.mxu1  ;;  %v12988_v9 = vsel %vm773_vm0, %v12911_v57, 0  ;;  %v14826_v7 = vcombine.low %v14824_v6, %v14825_v0 }
 0x1b6   : > { %v10118_v30 = vpop.f32.mrf.mxu0  ;;  %v12976_v40 = vadd.f32 %v2966_v61, %v12787_v38 }
 0x1b7   : > { %v12979_v24 = vadd.f32 %v10118_v30, %v12790_v51  ;;  %v10103_v47 = vpop.f32.mrf.mxu1 }
 0x1b8   : > { %10342 = vmatmul.mubr.msk.bf16.vlgmr.msra.gmra.mxu1 %vm760_vm1, %v14823_v22  ;;  %v3270_v45 = vpop.f32.mrf.mxu0  ;;  %v12991_v25 = vadd.f32 %v10103_v47, %v12799_v62 }
 0x1b9   : > { %10360 = vmatpush3.bf16.msra.mxu1 %v12796_v10  ;;  %10345 = vmatprep.mubr.msk.bf16.mxu1 %vm760_vm1, %v9234_v32  ;;  %v12996_v38 = vadd.f32 %v3270_v45, %v12807_v16  ;;  %v3173_v51 = vpop.f32.mrf.mxu1 }
 0x1ba   : > { %10600 = vmatprep.subr.msk.bf16.mxu1 %vm773_vm0, %v12727_v5  ;;  %v10133_v53 = vpop.f32.mrf.mxu0  ;;  %10372 = vmatmul.mubr.msk.bf16.vlgmr.msra.gmra.mxu0 %vm760_vm1, %v10675_v54  ;;  %v13002_v31 = vadd.f32 %v3173_v51, %v12818_v48  ;;  %v10735_v51 = vld [vmem:[%s10858_s23 + $0x68] ss:$8 sps:$4 sm:$0xff]  }
 0x1bb   : > { %v13005_v62 = vadd.f32 %v10133_v53, %v12821_v49  ;;  %10375 = vmatprep.mubr.msk.bf16.mxu0 %vm760_vm1, %v10676_v8  ;;  %10390 = vmatpush3.bf16.msra.mxu0 %v12988_v9  ;;  %v10104_v16 = vpop.f32.mrf.mxu1  ;;  %v10677_v49 = vld [vmem:[%s10858_s23 + $0xd8] ss:$8 sps:$4 sm:$0xff]   ;;  %v14827_v8 = vld [vmem:[#allocation16_spill] sm:$0xff] }
 0x1bc   : > { %v3438_v44 = vpop.f32.mrf.mxu0  ;;  %10603 = vmatprep.subr.msk.bf16.mxu0 %vm773_vm0, %v12911_v57  ;;  %v13012_v5 = vadd.f32 %v10104_v16, %v12832_v43 }
 0x1bd   : > { %v13015_v18 = vadd.f32 %v3438_v44, %v12836_v63  ;;  %v3176_v48 = vpop.f32.mrf.mxu1  ;;  %v10734_v63 = vld [vmem:[%s10858_s23 + $0x58] ss:$8 sps:$4 sm:$0xff]  }
 0x1be   : > { %v10134_v13 = vpop.f32.mrf.mxu0  ;;  %v13019_v28 = vadd.f32 %v3176_v48, %v12841_v56  ;;  %v14829_v48 = vld [vmem:[#allocation17_spill] sm:$0xff] }
 0x1bf   : > { %v13022_v42 = vadd.f32 %v10134_v13, %v12844_v20  ;;  %v10107_v58 = vpop.f32.mrf.mxu1 }
 0x1c0   : > { %10346 = vmatmul.mubr.msk.bf16.gmra.mxu1 %vm760_vm1, %v14826_v7  ;;  %v3441_v43 = vpop.f32.mrf.mxu0  ;;  %v13029_v32 = vadd.f32 %v10107_v58, %v12850_v12 }
 0x1c1   : > { %10361 = vmatprep.mubr.msk.bf16.mxu1 %vm760_vm1, %v10734_v63  ;;  %v13034_v61 = vadd.f32 %v3441_v43, %v12860_v46  ;;  %v3189_v56 = vpop.f32.mrf.mxu1  ;;  %v10737_v63 = vld [vmem:[%s10858_s23 + $0x88] ss:$8 sps:$4 sm:$0xff]  }
 0x1c2   : > { %v10137_v20 = vpop.f32.mrf.mxu0  ;;  %10376 = vmatmul.mubr.msk.bf16.gmra.mxu0 %vm760_vm1, %v10677_v49  ;;  %v13038_v30 = vadd.f32 %v3189_v56, %v12869_v2 }
 0x1c3   : > { %v13041_v54 = vadd.f32 %v10137_v20, %v12872_v33  ;;  %10391 = vmatprep.mubr.msk.bf16.mxu0 %vm760_vm1, %v14827_v8  ;;  %v10108_v12 = vpop.f32.mrf.mxu1 }
 0x1c4   : > { %v3454_v47 = vpop.f32.mrf.mxu0  ;;  %v13046_v46 = vadd.f32 %v10108_v12, %v12879_v15  ;;  %v10736_v15 = vld [vmem:[%s10858_s23 + $0x78] ss:$8 sps:$4 sm:$0xff]  }
 0x1c5   : > { %v13049_v26 = vadd.f32 %v3454_v47, %v12883_v39  ;;  %v3192_v21 = vpop.f32.mrf.mxu1  ;;  %v14830_v12 = vld [vmem:[#allocation18_spill] sm:$0xff] }
 0x1c6   : > { %v10138_v22 = vpop.f32.mrf.mxu0  ;;  %v13052_v2 = vadd.f32 %v3192_v21, %v12889_v36  ;;  %v13071_v36 = vld [vmem:[%s14573_s1 + $0x1c] sm:$0x3]  ;;  %v9287_v47 = vld [vmem:[%s10858_s23 + $0x60] sm:$0xe] }
 0x1c7   : > { %v13055_v33 = vadd.f32 %v10138_v22, %v12892_v35  ;;  %v10123_v45 = vpop.f32.mrf.mxu1  ;;  %v14831_v22 = vld [vmem:[#allocation23_spill] sm:$0xff] }
 0x1c8   : > { %10362 = vmatmul.mubr.msk.bf16.vlgmr.msra.gmra.mxu1 %vm760_vm1, %v10735_v51  ;;  %v3457_v53 = vpop.f32.mrf.mxu0  ;;  %v13060_v16 = vadd.f32 %v10123_v45, %v12899_v27  ;;  %v14828_v27 = vld [vmem:[#allocation11_spill] sm:$0xff]  ;;  %v10739_v51 = vld [vmem:[%s10858_s23 + $0x5c] sm:$0x1] }
 0x1c9   : > { %10380 = vmatpush3.bf16.msra.mxu1 %v12796_v10  ;;  %10365 = vmatprep.mubr.msk.bf16.mxu1 %vm760_vm1, %v10736_v15  ;;  %v13066_v39 = vadd.f32 %v3457_v53, %v12906_v23  ;;  %v3324_v35 = vpop.f32.mrf.mxu1  ;;  %v6566_v53 = vrot.slane %v10739_v51, 5  ;;  %v10743_v51 = vld [vmem:[%s10858_s23 + $0x7c] sm:$0x1] }
 0x1ca   : > { %10602 = vmatprep.subr.msk.bf16.mxu1 %vm773_vm0, %v12911_v57  ;;  %v10153_v44 = vpop.f32.mrf.mxu0  ;;  %10392 = vmatmul.mubr.msk.bf16.vlgmr.msra.gmra.mxu0 %vm760_vm1, %v14828_v27  ;;  %v13078_v10 = vadd.f32 %v3324_v35, %v12921_v37  ;;  %v10740_v27 = vld [vmem:[%s10858_s23 + $0x64] sm:$0x1] }
 0x1cb   : > { %v13081_v23 = vadd.f32 %v10153_v44, %v12924_v41  ;;  %10395 = vmatprep.mubr.msk.bf16.mxu0 %vm760_vm1, %v14829_v48  ;;  %10410 = vmatpush3.bf16.msra.mxu0 %v12988_v9  ;;  %v10124_v13 = vpop.f32.mrf.mxu1  ;;  %v9295_v44 = vrot.slane %v9287_v47, 9 }
 0x1cc   : > { %v3742_v49 = vpop.f32.mrf.mxu0  ;;  %10605 = vmatprep.subr.msk.bf16.mxu0 %vm773_vm0, %v13071_v36  ;;  %v13089_v58 = vadd.f32 %v10124_v13, %v12933_v19 }
 0x1cd   : > { %v13092_v37 = vadd.f32 %v3742_v49, %v12936_v4  ;;  %v3327_v41 = vpop.f32.mrf.mxu1  ;;  %v10738_v4 = vld [vmem:[%s10858_s23 + $0xf8] ss:$8 sps:$4 sm:$0xff]  }
 0x1ce   : > { %v10154_v6 = vpop.f32.mrf.mxu0  ;;  %v13095_v0 = vadd.f32 %v3327_v41, %v12942_v3  ;;  %v9286_v3 = vld [vmem:[%s10858_s23 + $0x58] sm:$0xe] }
 0x1cf   : > { %v13098_v7 = vadd.f32 %v10154_v6, %v12945_v52  ;;  %v10127_v43 = vpop.f32.mrf.mxu1  ;;  %v9294_v45 = vrot.slane %v9286_v3, 9  ;;  %v9290_v3 = vld [vmem:[%s10858_s23 + $0x78] sm:$0xe] }
 0x1d0   : > { %10366 = vmatmul.mubr.msk.bf16.gmra.mxu1 %vm760_vm1, %v10737_v63  ;;  %v3745_v56 = vpop.f32.mrf.mxu0  ;;  %v13103_v19 = vadd.f32 %v10127_v43, %v12950_v55 }
 0x1d1   : > { %10381 = vmatprep.mubr.msk.bf16.mxu1 %vm760_vm1, %v10738_v4  ;;  %v13108_v20 = vadd.f32 %v3745_v56, %v12954_v14  ;;  %v3340_v8 = vpop.f32.mrf.mxu1  ;;  %v6567_v43 = vsel %vm11279_vm7, %v9294_v45, %v6566_v53  ;;  %v9298_v45 = vrot.slane %v9290_v3, 9  ;;  %v6582_v53 = vrot.slane %v10743_v51, 5  ;;  %v9314_v3 = vld [vmem:[%s10858_s23 + $0xf8] sm:$0xe] }
 0x1d2   : > { %v10157_v52 = vpop.f32.mrf.mxu0  ;;  %10396 = vmatmul.mubr.msk.bf16.gmra.mxu0 %vm760_vm1, %v14830_v12  ;;  %v13115_v21 = vadd.f32 %v3340_v8, %v12962_v17  ;;  %v6570_v17 = vrot.slane %v10740_v27, 5  ;;  %v14832_v12 = vld [vmem:[#allocation24_spill] sm:$0xff] }
 0x1d3   : > { %v13118_v55 = vadd.f32 %v10157_v52, %v12965_v29  ;;  %10411 = vmatprep.mubr.msk.bf16.mxu0 %vm760_vm1, %v14831_v22  ;;  %v10128_v14 = vpop.f32.mrf.mxu1 }
 0x1d4   : > { %v3758_v15 = vpop.f32.mrf.mxu0  ;;  %v13124_v35 = vadd.f32 %v10128_v14, %v12969_v59  ;;  %v10741_v59 = vld [vmem:[%s10858_s23 + $0x108] ss:$8 sps:$4 sm:$0xff]   ;;  %v14833_v14 = vld [vmem:[#allocation25_spill] sm:$0xff] }
 0x1d5   : > { %v13128_v48 = vadd.f32 %v3758_v15, %v12972_v1  ;;  %v3343_v29 = vpop.f32.mrf.mxu1  ;;  %v13142_v1 = vsel %vm773_vm0, %v13071_v36, 0 }
 0x1d6   : > { %v10158_v13 = vpop.f32.mrf.mxu0  ;;  %v13131_v49 = vadd.f32 %v3343_v29, %v12976_v40  ;;  %v10742_v40 = vld [vmem:[%s10858_s23 + $0x118] ss:$8 sps:$4 sm:$0xff]  }
 0x1d7   : > { %v13134_v41 = vadd.f32 %v10158_v13, %v12979_v24  ;;  %v10143_v6 = vpop.f32.mrf.mxu1  ;;  %v6571_v24 = vsel %vm11279_vm7, %v9295_v44, %v6570_v17  ;;  %v10744_v44 = vld [vmem:[%s10858_s23 + $0x84] sm:$0x1] }
 0x1d8   : > { %10382 = vmatmul.mubr.msk.bf16.vlgmr.msra.gmra.mxu1 %vm760_vm1, %v10741_v59  ;;  %v3761_v63 = vpop.f32.mrf.mxu0  ;;  %v13145_v56 = vadd.f32 %v10143_v6, %v12991_v25  ;;  %v9291_v25 = vld [vmem:[%s10858_s23 + $0x80] sm:$0xe]  ;;  %v6586_v27 = vrot.slane %v10744_v44, 5  ;;  %v10747_v44 = vld [vmem:[%s10858_s23 + $0x104] sm:$0x1] }
 0x1d9   : > { %10400 = vmatpush3.bf16.msra.mxu1 %v12988_v9  ;;  %10385 = vmatprep.mubr.msk.bf16.mxu1 %vm760_vm1, %v10742_v40  ;;  %v13153_v4 = vadd.f32 %v3761_v63, %v12996_v38  ;;  %v3664_v8 = vpop.f32.mrf.mxu1 }
 0x1da   : > { %10604 = vmatprep.subr.msk.bf16.mxu1 %vm773_vm0, %v12911_v57  ;;  %v10173_v52 = vpop.f32.mrf.mxu0  ;;  %10412 = vmatmul.mubr.msk.bf16.vlgmr.msra.gmra.mxu0 %vm760_vm1, %v14832_v12  ;;  %v13162_v47 = vadd.f32 %v3664_v8, %v13002_v31  ;;  %v9302_v57 = vcombine.low %v6567_v43, %v6571_v24  ;;  %v10678_v43 = vld [vmem:[%s10858_s23 + $0x10] ss:$8 sps:$4 sm:$0xff]  }
 0x1db   : > { %v13165_v22 = vadd.f32 %v10173_v52, %v13005_v62  ;;  %10415 = vmatprep.mubr.msk.bf16.mxu0 %vm760_vm1, %v14833_v14  ;;  %10430 = vmatpush3.bf16.msra.mxu0 %v13142_v1  ;;  %v10144_v38 = vpop.f32.mrf.mxu1  ;;  %v9299_v62 = vrot.slane %v9291_v25, 9  ;;  %v14834_v25 = vld [vmem:[#allocation26_spill] sm:$0xff] }
 0x1dc   : > { %v3888_v15 = vpop.f32.mrf.mxu0  ;;  %10607 = vmatprep.subr.msk.bf16.mxu0 %vm773_vm0, %v13071_v36  ;;  %v13174_v31 = vadd.f32 %v10144_v38, %v13012_v5  ;;  %v10745_v5 = vld [vmem:[%s10858_s23 + $0x128] ss:$8 sps:$4 sm:$0xff]  }
 0x1dd   : > { %v13178_v17 = vadd.f32 %v3888_v15, %v13015_v18  ;;  %v3667_v29 = vpop.f32.mrf.mxu1  ;;  %v6583_v18 = vsel %vm11279_vm7, %v9298_v45, %v6582_v53  ;;  %v10746_v45 = vld [vmem:[%s10858_s23 + $0xfc] sm:$0x1] }
 0x1de   : > { %v10174_v13 = vpop.f32.mrf.mxu0  ;;  %v13181_v6 = vadd.f32 %v3667_v29, %v13019_v28  ;;  %v6587_v28 = vsel %vm11279_vm7, %v9299_v62, %v6586_v27  ;;  %v6792_v51 = vrot.slane %v10746_v45, 5 }
 0x1df   : > { %v13184_v59 = vadd.f32 %v10174_v13, %v13022_v42  ;;  %v10147_v63 = vpop.f32.mrf.mxu1  ;;  %v10679_v13 = vld [vmem:[%s10858_s23 + $0x20] ss:$8 sps:$4 sm:$0xff]  }
 0x1e0   : > { %10386 = vmatmul.mubr.msk.bf16.gmra.mxu1 %vm760_vm1, %v10745_v5  ;;  %v3891_v40 = vpop.f32.mrf.mxu0  ;;  %v13190_v24 = vadd.f32 %v10147_v63, %v13029_v32  ;;  %v9315_v32 = vld [vmem:[%s10858_s23 + $0x100] sm:$0xe]  ;;  %v10680_v5 = vld [vmem:[%s10858_s23 + $0x30] ss:$8 sps:$4 sm:$0xff]  }
 0x1e1   : > { %10401 = vmatprep.mubr.msk.bf16.mxu1 %vm760_vm1, %v9302_v57  ;;  %v13198_v42 = vadd.f32 %v3891_v40, %v13034_v61  ;;  %v3680_v8 = vpop.f32.mrf.mxu1  ;;  %v9304_v61 = vcombine.low %v6583_v18, %v6587_v28  ;;  %v9322_v57 = vrot.slane %v9314_v3, 9  ;;  %v9323_v62 = vrot.slane %v9315_v32, 9  ;;  %v14835_v40 = vld [vmem:[#allocation61_spill] sm:$0xff]  ;;  %v14836_v18 = vld [vmem:[#allocation62_spill] sm:$0xff] }
 0x1e2   : > { %v10177_v52 = vpop.f32.mrf.mxu0  ;;  %10416 = vmatmul.mubr.msk.bf16.gmra.mxu0 %vm760_vm1, %v14834_v25  ;;  %v13205_v12 = vadd.f32 %v3680_v8, %v13038_v30  ;;  %v6796_v30 = vrot.slane %v10747_v44, 5  ;;  %v14837_v28 = vcombine.low %v14835_v40, %v14836_v18  ;;  %v13247_v25 = vld [vmem:[%s14573_s1 + $0x1e] sm:$0x3]  ;;  %v10749_v44 = vld [vmem:[%s10858_s23 + $0x124] sm:$0x1] }
 0x1e3   : > { %v13208_v14 = vadd.f32 %v10177_v52, %v13041_v54  ;;  %10431 = vmatprep.mubr.msk.bf16.mxu0 %vm760_vm1, %v10678_v43  ;;  %v10148_v38 = vpop.f32.mrf.mxu1  ;;  %v9318_v52 = vld [vmem:[%s10858_s23 + $0x118] sm:$0xe] }
 0x1e4   : > { %v3904_v53 = vpop.f32.mrf.mxu0  ;;  %v13213_v15 = vadd.f32 %v10148_v38, %v13046_v46  ;;  %v9326_v45 = vrot.slane %v9318_v52, 9  ;;  %v10682_v18 = vld [vmem:[%s10858_s23 + $0xb0] ss:$8 sps:$4 sm:$0xff]  }
 0x1e5   : > { %v13217_v27 = vadd.f32 %v3904_v53, %v13049_v26  ;;  %v3683_v54 = vpop.f32.mrf.mxu1  ;;  %v6793_v26 = vsel %vm11279_vm7, %v9322_v57, %v6792_v51  ;;  %v10748_v51 = vld [vmem:[%s10858_s23 + $0x11c] sm:$0x1] }
 0x1e6   : > { %v10178_v29 = vpop.f32.mrf.mxu0  ;;  %v13221_v43 = vadd.f32 %v3683_v54, %v13052_v2  ;;  %v6797_v2 = vsel %vm11279_vm7, %v9323_v62, %v6796_v30  ;;  %v6808_v53 = vrot.slane %v10748_v51, 5  ;;  %v6812_v30 = vrot.slane %v10749_v44, 5 }
 0x1e7   : > { %v13224_v63 = vadd.f32 %v10178_v29, %v13055_v33  ;;  %v10163_v46 = vpop.f32.mrf.mxu1  ;;  %v9330_v57 = vcombine.low %v6793_v26, %v6797_v2  ;;  %v14839_v26 = vld [vmem:[#allocation48_spill] sm:$0xff] }
 0x1e8   : > { %10402 = vmatmul.mubr.msk.bf16.vlgmr.msra.gmra.mxu1 %vm760_vm1, %v14837_v28  ;;  %v3907_v3 = vpop.f32.mrf.mxu0  ;;  %v13234_v8 = vadd.f32 %v10163_v46, %v13060_v16  ;;  %v9319_v16 = vld [vmem:[%s10858_s23 + $0x120] sm:$0xe]  ;;  %v14838_v28 = vld [vmem:[#allocation45_spill] sm:$0xff] }
 0x1e9   : > { %10420 = vmatpush3.bf16.msra.mxu1 %v12988_v9  ;;  %10405 = vmatprep.mubr.msk.bf16.mxu1 %vm760_vm1, %v9304_v61  ;;  %v13241_v33 = vadd.f32 %v3907_v3, %v13066_v39  ;;  %v3815_v32 = vpop.f32.mrf.mxu1  ;;  %v14840_v3 = vcombine.low %v14838_v28, %v14839_v26 }
 0x1ea   : > { %10606 = vmatprep.subr.msk.bf16.mxu1 %vm773_vm0, %v13071_v36  ;;  %v10193_v9 = vpop.f32.mrf.mxu0  ;;  %10432 = vmatmul.mubr.msk.bf16.vlgmr.msra.gmra.mxu0 %vm760_vm1, %v10679_v13  ;;  %v13254_v38 = vadd.f32 %v3815_v32, %v13078_v10  ;;  %v9400_v32 = vld [vmem:[%s10858_s23 + $0xb0] sm:$0xf] }
 0x1eb   : > { %v13257_v39 = vadd.f32 %v10193_v9, %v13081_v23  ;;  %10435 = vmatprep.mubr.msk.bf16.mxu0 %vm760_vm1, %v10680_v5  ;;  %10450 = vmatpush3.bf16.msra.mxu0 %v13142_v1  ;;  %v10164_v61 = vpop.f32.mrf.mxu1  ;;  %v9327_v23 = vrot.slane %v9319_v16, 9  ;;  %v10681_v5 = vld [vmem:[%s10858_s23 + $0x40] ss:$8 sps:$4 sm:$0xff]  }
 0x1ec   : > { %v4191_v62 = vpop.f32.mrf.mxu0  ;;  %10609 = vmatprep.subr.msk.bf16.mxu0 %vm773_vm0, %v13247_v25  ;;  %v13265_v10 = vadd.f32 %v10164_v61, %v13089_v58  ;;  %v9402_v61 = vld [vmem:[%s10858_s23 + $0xb8] sm:$0xf] }
 0x1ed   : > { %v13269_v54 = vadd.f32 %v4191_v62, %v13092_v37  ;;  %v3818_v29 = vpop.f32.mrf.mxu1  ;;  %v7506_v62 = vshrl.u32 %v9400_v32, 16 }
 0x1ee   : > { %v10194_v13 = vpop.f32.mrf.mxu0  ;;  %v13273_v46 = vadd.f32 %v3818_v29, %v13095_v0  ;;  %v6809_v0 = vsel %vm11279_vm7, %v9326_v45, %v6808_v53  ;;  %v9404_v45 = vld [vmem:[%s10858_s23 + $0xc0] sm:$0xf]  ;;  %v7523_v29 = vshll.u32 %v9402_v61, 16 }
 0x1ef   : > { %v13276_v40 = vadd.f32 %v10194_v13, %v13098_v7  ;;  %v10167_v58 = vpop.f32.mrf.mxu1  ;;  %v6813_v7 = vsel %vm11279_vm7, %v9327_v23, %v6812_v30  ;;  %v7509_v23 = vshll.u32 %v9400_v32, 16  ;;  %v13325_v32 = vsel %vm773_vm0, %v13247_v25, 0 }
 0x1f0   : > { %10406 = vmatmul.mubr.msk.bf16.gmra.mxu1 %vm760_vm1, %v14840_v3  ;;  %v4194_v37 = vpop.f32.mrf.mxu0  ;;  %v13284_v2 = vadd.f32 %v10167_v58, %v13103_v19  ;;  %v7537_v58 = vshll.u32 %v9404_v45, 16  ;;  %v10684_v3 = vld [vmem:[%s10858_s23 + $0xd0] ss:$8 sps:$4 sm:$0xff]  }
 0x1f1   : > { %10421 = vmatprep.mubr.msk.bf16.mxu1 %vm760_vm1, %v9330_v57  ;;  %v13292_v52 = vadd.f32 %v4194_v37, %v13108_v20  ;;  %v3831_v9 = vpop.f32.mrf.mxu1  ;;  %v9332_v20 = vcombine.low %v6809_v0, %v6813_v7  ;;  %v14841_v37 = vld [vmem:[#allocation56_spill] sm:$0xff]  ;;  %v14842_v0 = vld [vmem:[#allocation34_spill] sm:$0xff] }
 0x1f2   : > { %v10197_v16 = vpop.f32.mrf.mxu0  ;;  %10436 = vmatmul.mubr.msk.bf16.gmra.mxu0 %vm760_vm1, %v10681_v5  ;;  %v13298_v19 = vadd.f32 %v3831_v9, %v13115_v21  ;;  %v7520_v21 = vshrl.u32 %v9402_v61, 16  ;;  %v10683_v5 = vld [vmem:[%s10858_s23 + $0xc0] ss:$8 sps:$4 sm:$0xff]   ;;  %v7508_v9 = vrot.slane %v7506_v62, 4  ;;  %v13336_v61 = vld [vmem:[%s10858_s23 + $0xb4] sm:$0x1] }
 0x1f3   : > { %v13301_v57 = vadd.f32 %v10197_v16, %v13118_v55  ;;  %10451 = vmatprep.mubr.msk.bf16.mxu0 %vm760_vm1, %v10682_v18  ;;  %v10168_v51 = vpop.f32.mrf.mxu1  ;;  %v7534_v18 = vshrl.u32 %v9404_v45, 16  ;;  %v7511_v16 = vrot.slane %v7509_v23, 5  ;;  %14844 = vst [vmem:[#allocation50_spill] sm:$0xff] %v13336_v61  ;;  %v7539_v23 = vrot.slane %v7537_v58, 5  ;;  %v10685_v58 = vld [vmem:[%s10858_s23 + $0xe0] ss:$8 sps:$4 sm:$0xff]  }
 0x1f4   : > { %v4207_v53 = vpop.f32.mrf.mxu0  ;;  %v13306_v44 = vadd.f32 %v10168_v51, %v13124_v35  ;;  %v7522_v45 = vrot.slane %v7520_v21, 4  ;;  %v7525_v51 = vrot.slane %v7523_v29, 5  ;;  %v13350_v21 = vld [vmem:[%s10858_s23 + $0xbc] sm:$0x1] }
 0x1f5   : > { %v13309_v30 = vadd.f32 %v4207_v53, %v13128_v48  ;;  %v3834_v13 = vpop.f32.mrf.mxu1  ;;  %v14843_v48 = vcombine.low %v14841_v37, %v14842_v0  ;;  %v7536_v62 = vrot.slane %v7534_v18, 4  ;;  %14845 = vst [vmem:[#allocation52_spill] sm:$0xff] %v13350_v21 }
 0x1f6   : > { %v10198_v55 = vpop.f32.mrf.mxu0  ;;  %v13313_v28 = vadd.f32 %v3834_v13, %v13131_v49 }
 0x1f7   : > { %v13316_v26 = vadd.f32 %v10198_v55, %v13134_v41  ;;  %v10183_v35 = vpop.f32.mrf.mxu1  ;;  %v7512_v55 = vor.u32 %v7511_v16, %v7508_v9  ;;  %v7540_v9 = vor.u32 %v7539_v23, %v7536_v62 }
 0x1f8   : > { %10422 = vmatmul.mubr.msk.bf16.vlgmr.msra.gmra.mxu1 %vm760_vm1, %v14843_v48  ;;  %v4210_v7 = vpop.f32.mrf.mxu0  ;;  %v13328_v49 = vadd.f32 %v10183_v35, %v13145_v56  ;;  %v9410_v35 = vld [vmem:[%s10858_s23 + $0xd8] sm:$0xf]  ;;  %v7529_v48 = vshll.u32 %v13350_v21, 16 }
 0x1f9   : > { %10440 = vmatpush3.bf16.msra.mxu1 %v13142_v1  ;;  %10425 = vmatprep.mubr.msk.bf16.mxu1 %vm760_vm1, %v9332_v20  ;;  %v13333_v41 = vadd.f32 %v4210_v7, %v13153_v4  ;;  %v4113_v53 = vpop.f32.mrf.mxu1  ;;  %v13367_v7 = vld [vmem:[%s10858_s23 + $0xc4] sm:$0x1]  ;;  %v13379_v11 = vrot.slane %v7512_v55, 4  ;;  %v7576_v23 = vshrl.u32 %v9410_v35, 16 }
 0x1fa   : > { %10608 = vmatprep.subr.msk.bf16.mxu1 %vm773_vm0, %v13071_v36  ;;  %v10213_v56 = vpop.f32.mrf.mxu0  ;;  %10452 = vmatmul.mubr.msk.bf16.vlgmr.msra.gmra.mxu0 %vm760_vm1, %v10683_v5  ;;  %v13342_v20 = vadd.f32 %v4113_v53, %v13162_v47  ;;  %v9406_v36 = vld [vmem:[%s10858_s23 + $0xc8] sm:$0xf]  ;;  %v7515_v47 = vshll.u32 %v13336_v61, 16  ;;  %v9408_v5 = vld [vmem:[%s10858_s23 + $0xd0] sm:$0xf]  ;;  %14846 = vst [vmem:[#allocation54_spill] sm:$0xff] %v13367_v7 }
 0x1fb   : > { %v13345_v4 = vadd.f32 %v10213_v56, %v13165_v22  ;;  %10455 = vmatprep.mubr.msk.bf16.mxu0 %vm760_vm1, %v10684_v3  ;;  %10470 = vmatpush3.bf16.msra.mxu0 %v13325_v32  ;;  %v10184_v29 = vpop.f32.mrf.mxu1  ;;  %v7526_v3 = vor.u32 %v7525_v51, %v7522_v45  ;;  %v7548_v16 = vshrl.u32 %v9406_v36, 16  ;;  %v7551_v53 = vshll.u32 %v9406_v36, 16 }
 0x1fc   : > { %v4337_v13 = vpop.f32.mrf.mxu0  ;;  %10611 = vmatprep.subr.msk.bf16.mxu0 %vm773_vm0, %v13247_v25  ;;  %v13358_v22 = vadd.f32 %v10184_v29, %v13174_v31  ;;  %v7565_v29 = vshll.u32 %v9408_v5, 16  ;;  %v14847_v51 = vcombine.low %v12632_v50, %v12640_v60  ;;  %v13381_v62 = vrot.slane %v7515_v47, 5 }
 0x1fd   : > { %v13361_v18 = vadd.f32 %v4337_v13, %v13178_v17  ;;  %v4116_v37 = vpop.f32.mrf.mxu1  ;;  %v7562_v17 = vshrl.u32 %v9408_v5, 16  ;;  %v7543_v60 = vshll.u32 %v13367_v7, 16  ;;  %v7527_v47 = vrot.slane %v7526_v3, 4 }
 0x1fe   : > { %v10214_v0 = vpop.f32.mrf.mxu0  ;;  %v13370_v56 = vadd.f32 %v4116_v37, %v13181_v6  ;;  %v7579_v6 = vshll.u32 %v9410_v35, 16  ;;  %v7531_v35 = vrot.slane %v7529_v48, 5  ;;  %v7550_v37 = vrot.slane %v7548_v16, 4 }
 0x1ff   : > { %v13373_v31 = vadd.f32 %v10214_v0, %v13184_v59  ;;  %v10187_v45 = vpop.f32.mrf.mxu1  ;;  %v10750_v59 = vld [vmem:[%s10858_s23 + $0x60] ss:$8 sps:$4 sm:$0xff]   ;;  %v7567_v3 = vrot.slane %v7565_v29, 5 }
 0x200   : > { %10426 = vmatmul.mubr.msk.bf16.gmra.mxu1 %vm760_vm1, %v14847_v51  ;;  %v4340_v13 = vpop.f32.mrf.mxu0  ;;  %v13384_v36 = vadd.f32 %v10187_v45, %v13190_v24  ;;  %v7553_v24 = vrot.slane %v7551_v53, 5  ;;  %v9412_v0 = vld [vmem:[%s10858_s23 + $0xe0] sm:$0xf]  ;;  %v13412_v53 = vrot.slane %v7540_v9, 4  ;;  %v9414_v29 = vld [vmem:[%s10858_s23 + $0xe8] sm:$0xf] }
 0x201   : > { %10441 = vmatprep.mubr.msk.bf16.mxu1 %vm760_vm1, %v10750_v59  ;;  %v13389_v50 = vadd.f32 %v4340_v13, %v13198_v42  ;;  %v4129_v55 = vpop.f32.mrf.mxu1  ;;  %v14849_v42 = vld [vmem:[#allocation27_spill] sm:$0xff]  ;;  %v13406_v59 = vld [vmem:[%s10858_s23 + $0xd4] sm:$0x1]  ;;  %v7590_v7 = vshrl.u32 %v9412_v0, 16  ;;  %v7593_v21 = vshll.u32 %v9412_v0, 16 }
 0x202   : > { %v10217_v5 = vpop.f32.mrf.mxu0  ;;  %10456 = vmatmul.mubr.msk.bf16.gmra.mxu0 %vm760_vm1, %v10685_v58  ;;  %v13395_v45 = vadd.f32 %v4129_v55, %v13205_v12  ;;  %v13403_v13 = vld [vmem:[%s10858_s23 + $0xcc] sm:$0x1]  ;;  %14851 = vst [vmem:[#allocation57_spill] sm:$0xff] %v13406_v59  ;;  %v7564_v58 = vrot.slane %v7562_v17, 4  ;;  %v7518_v12 = vsel %vm10880_vm4, %v13379_v11, %v13381_v62  ;;  %v7578_v55 = vrot.slane %v7576_v23, 4 }
 0x203   : > { %v13398_v51 = vadd.f32 %v10217_v5, %v13208_v14  ;;  %10471 = vmatprep.mubr.msk.bf16.mxu0 %vm760_vm1, %v14849_v42  ;;  %14850 = vst [vmem:[#allocation5_spill] sm:$0xff] %v13403_v13  ;;  %v10188_v48 = vpop.f32.mrf.mxu1  ;;  %v13415_v14 = vld [vmem:[%s10858_s23 + $0xdc] sm:$0x1]  ;;  %v7581_v5 = vrot.slane %v7579_v6, 5  ;;  %v7532_v11 = vsel %vm10880_vm4, %v7527_v47, %v7531_v35  ;;  %v7554_v9 = vor.u32 %v7553_v24, %v7550_v37 }
 0x204   : > { %v4353_v16 = vpop.f32.mrf.mxu0  ;;  %14852 = vst [vmem:[#allocation28_spill] sm:$0xff] %v13415_v14  ;;  %v13418_v42 = vadd.f32 %v10188_v48, %v13213_v15  ;;  %v7557_v62 = vshll.u32 %v13403_v13, 16  ;;  %v7571_v23 = vshll.u32 %v13406_v59, 16  ;;  %v7568_v6 = vor.u32 %v7567_v3, %v7564_v58  ;;  %v13454_v3 = vld [vmem:[%s14573_s1 + $0x20] sm:$0x3] }
 0x205   : > { %14848 = vst [vmem:[#allocation55_spill] sm:$0xff] %v13398_v51  ;;  %v13421_v17 = vadd.f32 %v4353_v16, %v13217_v27  ;;  %v4132_v61 = vpop.f32.mrf.mxu1  ;;  %v7585_v0 = vshll.u32 %v13415_v14, 16  ;;  %v10751_v16 = vld [vmem:[%s10858_s23 + $0x70] ss:$8 sps:$4 sm:$0xff]   ;;  %v13437_v35 = vrot.slane %v7543_v60, 5  ;;  %v7582_v37 = vor.u32 %v7581_v5, %v7578_v55  ;;  %v14854_v55 = vld [vmem:[#allocation30_spill] sm:$0xff] }
 0x206   : > { %v10218_v51 = vpop.f32.mrf.mxu0  ;;  %v13429_v15 = vadd.f32 %v4132_v61, %v13221_v43  ;;  %v7604_v24 = vshrl.u32 %v9414_v29, 16  ;;  %v7607_v59 = vshll.u32 %v9414_v29, 16  ;;  %v7592_v58 = vrot.slane %v7590_v7, 4 }
 0x207   : > { %v13432_v27 = vadd.f32 %v10218_v51, %v13224_v63  ;;  %v10203_v48 = vpop.f32.mrf.mxu1  ;;  %v10752_v63 = vld [vmem:[%s10858_s23 + $0x80] ss:$8 sps:$4 sm:$0xff]   ;;  %v13449_v51 = vld [vmem:[%s10858_s23 + $0xe4] sm:$0x1]  ;;  %v7595_v60 = vrot.slane %v7593_v21, 5  ;;  %v7555_v5 = vrot.slane %v7554_v9, 4 }
 0x208   : > { %10442 = vmatmul.mubr.msk.bf16.vlgmr.msra.gmra.mxu1 %vm760_vm1, %v10751_v16  ;;  %v4356_v47 = vpop.f32.mrf.mxu0  ;;  %v13440_v43 = vadd.f32 %v10203_v48, %v13234_v8  ;;  %14853 = vst [vmem:[#allocation51_spill] sm:$0xff] %v13449_v51  ;;  %v7559_v29 = vrot.slane %v7557_v62, 5  ;;  %v13460_v48 = vrot.slane %v7571_v23, 5  ;;  %v9424_v21 = vld [vmem:[%s10858_s23 + $0x100] sm:$0xf]  ;;  %v7583_v23 = vrot.slane %v7582_v37, 4 }
 0x209   : > { %10460 = vmatpush3.bf16.msra.mxu1 %v13142_v1  ;;  %10445 = vmatprep.mubr.msk.bf16.mxu1 %vm760_vm1, %v10752_v63  ;;  %v13446_v61 = vadd.f32 %v4356_v47, %v13241_v33  ;;  %v4264_v8 = vpop.f32.mrf.mxu1  ;;  %v9416_v33 = vcombine.low %v7518_v12, %v7532_v11  ;;  %v14855_v47 = vld [vmem:[#allocation31_spill] sm:$0xff]  ;;  %v13472_v63 = vrot.slane %v7568_v6, 4  ;;  %v13474_v12 = vrot.slane %v7585_v0, 5 }
 0x20a   : > { %10610 = vmatprep.subr.msk.bf16.mxu1 %vm773_vm0, %v13247_v25  ;;  %v10233_v1 = vpop.f32.mrf.mxu0  ;;  %10472 = vmatmul.mubr.msk.bf16.vlgmr.msra.gmra.mxu0 %vm760_vm1, %v14854_v55  ;;  %v13464_v7 = vadd.f32 %v4264_v8, %v13254_v38  ;;  %v9426_v11 = vld [vmem:[%s10858_s23 + $0x108] sm:$0xf]  ;;  %v7599_v38 = vshll.u32 %v13449_v51, 16  ;;  %v7606_v8 = vrot.slane %v7604_v24, 4  ;;  %v7609_v55 = vrot.slane %v7607_v59, 5 }
 0x20b   : > { %v13467_v16 = vadd.f32 %v10233_v1, %v13257_v39  ;;  %10475 = vmatprep.mubr.msk.bf16.mxu0 %vm760_vm1, %v14855_v47  ;;  %10490 = vmatpush3.bf16.msra.mxu0 %v13325_v32  ;;  %v10204_v9 = vpop.f32.mrf.mxu1  ;;  %v10686_v1 = vld [vmem:[%s10858_s23 + $0x100] ss:$8 sps:$4 sm:$0xff]   ;;  %v13488_v0 = vld [vmem:[%s10858_s23 + $0xec] sm:$0x1]  ;;  %v7596_v47 = vor.u32 %v7595_v60, %v7592_v58  ;;  %v7731_v37 = vshrl.u32 %v9424_v21, 16  ;;  %v7546_v59 = vsel %vm10880_vm4, %v13412_v53, %v13437_v35 }
 0x20c   : > { %v4608_v62 = vpop.f32.mrf.mxu0  ;;  %10613 = vmatprep.subr.msk.bf16.mxu0 %vm773_vm0, %v13454_v3  ;;  %v13481_v39 = vadd.f32 %v10204_v9, %v13265_v10  ;;  %14856 = vst [vmem:[#allocation6_spill] sm:$0xff] %v13488_v0  ;;  %v7734_v24 = vshll.u32 %v9424_v21, 16  ;;  %v7745_v10 = vshrl.u32 %v9426_v11, 16  ;;  %v7748_v9 = vshll.u32 %v9426_v11, 16  ;;  %v9428_v53 = vld [vmem:[%s10858_s23 + $0x110] sm:$0xf] }
 0x20d   : > { %v13485_v6 = vadd.f32 %v4608_v62, %v13269_v54  ;;  %v4267_v14 = vpop.f32.mrf.mxu1  ;;  %v7560_v58 = vsel %vm10880_vm4, %v7555_v5, %v7559_v29  ;;  %v7574_v60 = vsel %vm10880_vm4, %v13472_v63, %v13460_v48  ;;  %v10753_v21 = vld [vmem:[%s10858_s23 + $0x90] ss:$8 sps:$4 sm:$0xff]   ;;  %v7613_v5 = vshll.u32 %v13488_v0, 16  ;;  %v13525_v11 = vld [vmem:[%s10858_s23 + $0x104] sm:$0x1] }
 0x20e   : > { %v10234_v51 = vpop.f32.mrf.mxu0  ;;  %v13495_v13 = vadd.f32 %v4267_v14, %v13273_v46  ;;  %v13512_v14 = vrot.slane %v7599_v38, 5  ;;  %v13522_v63 = vrot.slane %v7596_v47, 4  ;;  %14859 = vst [vmem:[#allocation12_spill] sm:$0xff] %v13525_v11  ;;  %v13528_v62 = vld [vmem:[%s10858_s23 + $0x10c] sm:$0x1] }
 0x20f   : > { %v13498_v54 = vadd.f32 %v10234_v51, %v13276_v40  ;;  %v10207_v35 = vpop.f32.mrf.mxu1  ;;  %v7588_v40 = vsel %vm10880_vm4, %v7583_v23, %v13474_v12  ;;  %v7610_v51 = vor.u32 %v7609_v55, %v7606_v8  ;;  %14860 = vst [vmem:[#allocation32_spill] sm:$0xff] %v13528_v62  ;;  %v7733_v12 = vrot.slane %v7731_v37, 4  ;;  %v14861_v8 = vld [vmem:[#allocation35_spill] sm:$0xff]  ;;  %v9430_v37 = vld [vmem:[%s10858_s23 + $0x118] sm:$0xf] }
 0x210   : > { %10446 = vmatmul.mubr.msk.bf16.gmra.mxu1 %vm760_vm1, %v10753_v21  ;;  %v4611_v46 = vpop.f32.mrf.mxu0  ;;  %v13516_v29 = vadd.f32 %v10207_v35, %v13284_v2  ;;  %v7736_v2 = vrot.slane %v7734_v24, 5  ;;  %v7747_v55 = vrot.slane %v7745_v10, 4  ;;  %v9417_v21 = vcombine.low %v7546_v59, %v7560_v58 }
 0x211   : > { %10461 = vmatprep.mubr.msk.bf16.mxu1 %vm760_vm1, %v10686_v1  ;;  %v13520_v48 = vadd.f32 %v4611_v46, %v13292_v52  ;;  %v4280_v23 = vpop.f32.mrf.mxu1  ;;  %v7750_v1 = vrot.slane %v7748_v9, 5  ;;  %v7759_v52 = vshrl.u32 %v9428_v53, 16  ;;  %v7762_v46 = vshll.u32 %v9428_v53, 16 }
 0x212   : > { %14857 = vst [vmem:[#allocation29_spill] sm:$0xff] %v13516_v29  ;;  %v10237_v38 = vpop.f32.mrf.mxu0  ;;  %10476 = vmatmul.mubr.msk.bf16.gmra.mxu0 %vm760_vm1, %v14861_v8  ;;  %v13533_v35 = vadd.f32 %v4280_v23, %v13298_v19  ;;  %v7611_v24 = vrot.slane %v7610_v51, 4  ;;  %v7615_v10 = vrot.slane %v7613_v5, 5  ;;  %v7740_v9 = vshll.u32 %v13525_v11, 16 }
 0x213   : > { %14858 = vst [vmem:[#allocation53_spill] sm:$0xff] %v13520_v48  ;;  %v13536_v47 = vadd.f32 %v10237_v38, %v13301_v57  ;;  %10491 = vmatprep.mubr.msk.bf16.mxu0 %vm760_vm1, %v9416_v33  ;;  %v10208_v0 = vpop.f32.mrf.mxu1  ;;  %v10687_v48 = vld [vmem:[%s10858_s23 + $0x110] ss:$8 sps:$4 sm:$0xff]   ;;  %v7754_v19 = vshll.u32 %v13528_v62, 16  ;;  %v10688_v57 = vld [vmem:[%s10858_s23 + $0x120] ss:$8 sps:$4 sm:$0xff]   ;;  %v9418_v59 = vcombine.low %v7574_v60, %v7588_v40  ;;  %v7602_v58 = vsel %vm10880_vm4, %v13522_v63, %v13512_v14 }
 0x214   : > { %v4624_v29 = vpop.f32.mrf.mxu0  ;;  %v13544_v23 = vadd.f32 %v10208_v0, %v13306_v44  ;;  %v7737_v5 = vor.u32 %v7736_v2, %v7733_v12  ;;  %v7751_v38 = vor.u32 %v7750_v1, %v7747_v55  ;;  %v7761_v8 = vrot.slane %v7759_v52, 4  ;;  %v9432_v62 = vld [vmem:[%s10858_s23 + $0x120] sm:$0xf]  ;;  %v13562_v0 = vld [vmem:[%s10858_s23 + $0x114] sm:$0x1] }
 0x215   : > { %v13548_v33 = vadd.f32 %v4624_v29, %v13309_v30  ;;  %v4283_v53 = vpop.f32.mrf.mxu1  ;;  %v7773_v11 = vshrl.u32 %v9430_v37, 16  ;;  %14862 = vst [vmem:[#allocation33_spill] sm:$0xff] %v13562_v0  ;;  %v7764_v60 = vrot.slane %v7762_v46, 5  ;;  %v7776_v40 = vshll.u32 %v9430_v37, 16  ;;  %v9434_v55 = vld [vmem:[%s10858_s23 + $0x128] sm:$0xf] }
 0x216   : > { %v10238_v51 = vpop.f32.mrf.mxu0  ;;  %v13556_v44 = vadd.f32 %v4283_v53, %v13313_v28  ;;  %v7616_v63 = vsel %vm10880_vm4, %v7611_v24, %v7615_v10  ;;  %v13567_v12 = vrot.slane %v7740_v9, 5  ;;  %v7756_v2 = vrot.slane %v7754_v19, 5  ;;  %v10689_v53 = vld [vmem:[%s10858_s23 + $0x130] ss:$8 sps:$4 sm:$0xff]  }
 0x217   : > { %v13559_v30 = vadd.f32 %v10238_v51, %v13316_v26  ;;  %v10223_v29 = vpop.f32.mrf.mxu1  ;;  %v13571_v28 = vsel %vm773_vm0, %v13454_v3, 0  ;;  %v7787_v1 = vshrl.u32 %v9432_v62, 16  ;;  %v7790_v52 = vshll.u32 %v9432_v62, 16  ;;  %v13594_v62 = vld [vmem:[%s10858_s23 + $0x11c] sm:$0x1] }
 0x218   : > { %10462 = vmatmul.mubr.msk.bf16.vlgmr.msra.gmra.mxu1 %vm760_vm1, %v10687_v48  ;;  %v4627_v14 = vpop.f32.mrf.mxu0  ;;  %v13574_v26 = vadd.f32 %v10223_v29, %v13328_v49  ;;  %v7738_v49 = vrot.slane %v7737_v5, 4  ;;  %v7752_v24 = vrot.slane %v7751_v38, 4  ;;  %v7768_v10 = vshll.u32 %v13562_v0, 16  ;;  %14863 = vst [vmem:[#allocation36_spill] sm:$0xff] %v13594_v62 }
 0x219   : > { %10480 = vmatpush3.bf16.msra.mxu1 %v13325_v32  ;;  %10465 = vmatprep.mubr.msk.bf16.mxu1 %vm760_vm1, %v10688_v57  ;;  %v13579_v48 = vadd.f32 %v4627_v14, %v13333_v41  ;;  %v4490_v37 = vpop.f32.mrf.mxu1  ;;  %v7775_v9 = vrot.slane %v7773_v11, 4  ;;  %v7765_v57 = vor.u32 %v7764_v60, %v7761_v8  ;;  %v9419_v5 = vcombine.low %v7602_v58, %v7616_v63  ;;  %v13615_v63 = vld [vmem:[%s10858_s23 + $0x124] sm:$0x1] }
 0x21a   : > { %10612 = vmatprep.subr.msk.bf16.mxu1 %vm773_vm0, %v13247_v25  ;;  %v10253_v46 = vpop.f32.mrf.mxu0  ;;  %10492 = vmatmul.mubr.msk.bf16.vlgmr.msra.gmra.mxu0 %vm760_vm1, %v9417_v21  ;;  %v13587_v19 = vadd.f32 %v4490_v37, %v13342_v20  ;;  %v7778_v25 = vrot.slane %v7776_v40, 5  ;;  %v7801_v11 = vshrl.u32 %v9434_v55, 16  ;;  %v7804_v38 = vshll.u32 %v9434_v55, 16  ;;  %14864 = vst [vmem:[#allocation59_spill] sm:$0xff] %v13615_v63 }
 0x21b   : > { %v13590_v41 = vadd.f32 %v10253_v46, %v13345_v4  ;;  %10495 = vmatprep.mubr.msk.bf16.mxu0 %vm760_vm1, %v9418_v59  ;;  %10510 = vmatpush3.bf16.msra.mxu0 %v13571_v28  ;;  %v10224_v21 = vpop.f32.mrf.mxu1  ;;  %v7789_v59 = vrot.slane %v7787_v1, 4  ;;  %v7792_v8 = vrot.slane %v7790_v52, 5  ;;  %v7743_v29 = vsel %vm10880_vm4, %v7738_v49, %v13567_v12 }
 0x21c   : > { %v4835_v51 = vpop.f32.mrf.mxu0  ;;  %10615 = vmatprep.subr.msk.bf16.mxu0 %vm773_vm0, %v13454_v3  ;;  %v13601_v20 = vadd.f32 %v10224_v21, %v13358_v22  ;;  %v7757_v58 = vsel %vm10880_vm4, %v7752_v24, %v7756_v2  ;;  %v13611_v14 = vrot.slane %v7768_v10, 5  ;;  %v7782_v22 = vshll.u32 %v13594_v62, 16  ;;  %v14865_v24 = vld [vmem:[#allocation37_spill] sm:$0xff] }
 0x21d   : > { %v13604_v4 = vadd.f32 %v4835_v51, %v13361_v18  ;;  %v4493_v60 = vpop.f32.mrf.mxu1  ;;  %v13623_v1 = vrot.slane %v7765_v57, 4  ;;  %v7779_v12 = vor.u32 %v7778_v25, %v7775_v9  ;;  %v7803_v37 = vrot.slane %v7801_v11, 4  ;;  %v9436_v57 = vld [vmem:[%s10858_s23 + $0x130] sm:$0xf] }
 0x21e   : > { %v10254_v40 = vpop.f32.mrf.mxu0  ;;  %v13618_v18 = vadd.f32 %v4493_v60, %v13370_v56  ;;  %v7806_v46 = vrot.slane %v7804_v38, 5  ;;  %v7793_v10 = vor.u32 %v7792_v8, %v7789_v59  ;;  %v7796_v9 = vshll.u32 %v13615_v63, 16  ;;  %v14868_v8 = vld [vmem:[#allocation19_spill] sm:$0xff]  ;;  %v9477_v60 = vld [vmem:[%s10858_s23 + $0xb0] sm:$0xe] }
 0x21f   : > { %v13621_v55 = vadd.f32 %v10254_v40, %v13373_v31  ;;  %v10227_v52 = vpop.f32.mrf.mxu1  ;;  %v13635_v31 = vld [vmem:[%s10858_s23 + $0x12c] sm:$0x1]  ;;  %v13654_v59 = vrot.slane %v7779_v12, 4 }
 0x220   : > { %10466 = vmatmul.mubr.msk.bf16.gmra.mxu1 %vm760_vm1, %v10689_v53  ;;  %v4838_v2 = vpop.f32.mrf.mxu0  ;;  %v13627_v49 = vadd.f32 %v10227_v52, %v13384_v36  ;;  %14866 = vst [vmem:[#allocation58_spill] sm:$0xff] %v13635_v31  ;;  %v13640_v36 = vcombine.low %v7743_v29, %v7757_v58  ;;  %v13642_v53 = vrot.slane %v7782_v22, 5  ;;  %v7807_v58 = vor.u32 %v7806_v46, %v7803_v37  ;;  %v14869_v46 = vld [vmem:[#allocation50_spill] sm:$0xff] }
 0x221   : > { %10481 = vmatprep.mubr.msk.bf16.mxu1 %vm760_vm1, %v14865_v24  ;;  %v13632_v56 = vadd.f32 %v4838_v2, %v13389_v50  ;;  %v4506_v25 = vpop.f32.mrf.mxu1  ;;  %v14867_v50 = vld [vmem:[#allocation55_spill] sm:$0xff]  ;;  %v7815_v22 = vshrl.u32 %v9436_v57, 16  ;;  %v7818_v52 = vshll.u32 %v9436_v57, 16  ;;  %v9478_v2 = vld [vmem:[%s10858_s23 + $0xb8] sm:$0xe]  ;;  %v13668_v12 = vrot.slane %v7793_v10, 4 }
 0x222   : > { %v10257_v21 = vpop.f32.mrf.mxu0  ;;  %10496 = vmatmul.mubr.msk.bf16.gmra.mxu0 %vm760_vm1, %v9419_v5  ;;  %v13645_v51 = vadd.f32 %v4506_v25, %v13395_v45  ;;  %v9438_v5 = vld [vmem:[%s10858_s23 + $0x138] sm:$0xf]  ;;  %v7810_v45 = vshll.u32 %v13635_v31, 16  ;;  %v9485_v37 = vrot.slane %v9477_v60, 9  ;;  %v8196_v31 = vrot.slane %v14869_v46, 5  ;;  %v14870_v10 = vld [vmem:[#allocation52_spill] sm:$0xff] }
 0x223   : > { %v13648_v11 = vadd.f32 %v10257_v21, %v14867_v50  ;;  %10511 = vmatprep.mubr.msk.bf16.mxu0 %vm760_vm1, %v14868_v8  ;;  %v10228_v40 = vpop.f32.mrf.mxu1  ;;  %v13670_v21 = vrot.slane %v7796_v9, 5  ;;  %v7829_v38 = vshrl.u32 %v9438_v5, 16  ;;  %v7832_v63 = vshll.u32 %v9438_v5, 16 }
 0x224   : > { %v4851_v29 = vpop.f32.mrf.mxu0  ;;  %v13663_v24 = vadd.f32 %v10228_v40, %v13418_v42  ;;  %v8200_v40 = vrot.slane %v14870_v10, 5  ;;  %v13682_v5 = vrot.slane %v7807_v58, 4  ;;  %v13684_v60 = vrot.slane %v7810_v45, 5 }
 0x225   : > { %v13666_v25 = vadd.f32 %v4851_v29, %v13421_v17  ;;  %v4509_v50 = vpop.f32.mrf.mxu1  ;;  %v9486_v17 = vrot.slane %v9478_v2, 9  ;;  %v14871_v29 = vld [vmem:[#allocation38_spill] sm:$0xff]  ;;  %v13686_v46 = vrot.slane %v7815_v22, 4  ;;  %v14873_v2 = vld [vmem:[#allocation39_spill] sm:$0xff]  ;;  %v7785_v58 = vsel %vm10880_vm4, %v13654_v59, %v13642_v53  ;;  %v13704_v22 = vld [vmem:[%s10858_s23 + $0x134] sm:$0x1] }
 0x226   : > { %v10258_v8 = vpop.f32.mrf.mxu0  ;;  %v13674_v57 = vadd.f32 %v4509_v50, %v13429_v15  ;;  %v13688_v15 = vrot.slane %v7818_v52, 5  ;;  %14875 = vst [vmem:[#allocation8_spill] sm:$0xff] %v13704_v22  ;;  %v13707_v52 = vld [vmem:[%s10858_s23 + $0x13c] sm:$0x1]  ;;  %v7799_v50 = vsel %vm10880_vm4, %v13668_v12, %v13670_v21  ;;  %v13722_v53 = vld [vmem:[%s10858_s23 + $0x60] sm:$0xe]  ;;  %v8197_v10 = vsel %vm11279_vm7, %v9485_v37, %v8196_v31 }
 0x227   : > { %v13677_v42 = vadd.f32 %v10258_v8, %v13432_v27  ;;  %v10243_v9 = vpop.f32.mrf.mxu1  ;;  %14876 = vst [vmem:[#allocation13_spill] sm:$0xff] %v13707_v52  ;;  %v14877_v8 = vld [vmem:[#allocation20_spill] sm:$0xff]  ;;  %v14881_v12 = vld [vmem:[#allocation21_spill] sm:$0xff]  ;;  %v7824_v31 = vshll.u32 %v13704_v22, 16  ;;  %v7838_v37 = vshll.u32 %v13707_v52, 16 }
 0x228   : > { %10482 = vmatmul.mubr.msk.bf16.vlgmr.msra.gmra.mxu1 %vm760_vm1, %v14871_v29  ;;  %v4854_v62 = vpop.f32.mrf.mxu0  ;;  %v13691_v27 = vadd.f32 %v10243_v9, %v13440_v43  ;;  %v9454_v52 = vld [vmem:[%s10858_s23 + $0x68] sm:$0xe] }
 0x229   : > { %10500 = vmatpush3.bf16.msra.mxu1 %v13325_v32  ;;  %10485 = vmatprep.mubr.msk.bf16.mxu1 %vm760_vm1, %v14873_v2  ;;  %v13701_v45 = vadd.f32 %v4854_v62, %v13446_v61  ;;  %v4722_v43 = vpop.f32.mrf.mxu1  ;;  %v13717_v61 = vrot.slane %v7829_v38, 4  ;;  %v13719_v62 = vrot.slane %v7832_v63, 5  ;;  %v8201_v63 = vsel %vm11279_vm7, %v9486_v17, %v8200_v40  ;;  %v9479_v38 = vld [vmem:[%s10858_s23 + $0xc0] sm:$0xe] }
 0x22a   : > { %14872 = vst [vmem:[#allocation49_spill] sm:$0xff] %v13691_v27  ;;  %10614 = vmatprep.subr.msk.bf16.mxu1 %vm773_vm0, %v13454_v3  ;;  %v10273_v32 = vpop.f32.mrf.mxu0  ;;  %10512 = vmatmul.mubr.msk.bf16.vlgmr.msra.gmra.mxu0 %vm760_vm1, %v14877_v8  ;;  %v13727_v9 = vadd.f32 %v4722_v43, %v13464_v7  ;;  %v7813_v7 = vsel %vm10880_vm4, %v13682_v5, %v13684_v60  ;;  %v9480_v43 = vld [vmem:[%s10858_s23 + $0xc8] sm:$0xe]  ;;  %v9461_v40 = vrot.slane %v13722_v53, 9  ;;  %v10754_v8 = vld [vmem:[%s10858_s23 + $0x64] sm:$0x1] }
 0x22b   : > { %14874 = vst [vmem:[#allocation7_spill] sm:$0xff] %v13701_v45  ;;  %v13730_v29 = vadd.f32 %v10273_v32, %v13467_v16  ;;  %10515 = vmatprep.mubr.msk.bf16.mxu0 %vm760_vm1, %v14881_v12  ;;  %10530 = vmatpush3.bf16.msra.mxu0 %v13571_v28  ;;  %v10244_v21 = vpop.f32.mrf.mxu1  ;;  %v7821_v16 = vor.u32 %v13688_v15, %v13686_v46  ;;  %v8043_v5 = vrot.slane %v10754_v8, 5  ;;  %v9481_v60 = vld [vmem:[%s10858_s23 + $0xd0] sm:$0xe]  ;;  %v9482_v12 = vld [vmem:[%s10858_s23 + $0xd8] sm:$0xe] }
 0x22c   : > { %14879 = vst [vmem:[#allocation46_spill] sm:$0xff] %v13727_v9  ;;  %v5138_v2 = vpop.f32.mrf.mxu0  ;;  %v13748_v32 = vadd.f32 %v10244_v21, %v13481_v39  ;;  %v7835_v46 = vor.u32 %v13719_v62, %v13717_v61  ;;  %v9493_v22 = vcombine.low %v8197_v10, %v8201_v63  ;;  %v14884_v9 = vld [vmem:[#allocation54_spill] sm:$0xff]  ;;  %v9488_v21 = vrot.slane %v9480_v43, 9  ;;  %v14887_v10 = vld [vmem:[#allocation57_spill] sm:$0xff] }
 0x22d   : > { %14880 = vst [vmem:[#allocation47_spill] sm:$0xff] %v13730_v29  ;;  %v13751_v17 = vadd.f32 %v5138_v2, %v13485_v6  ;;  %v4725_v0 = vpop.f32.mrf.mxu1  ;;  %v9487_v29 = vrot.slane %v9479_v38, 9  ;;  %v8204_v39 = vrot.slane %v14884_v9, 5  ;;  %v14885_v2 = vld [vmem:[#allocation5_spill] sm:$0xff]  ;;  %v9489_v62 = vrot.slane %v9481_v60, 9  ;;  %v14888_v9 = vld [vmem:[#allocation28_spill] sm:$0xff] }
 0x22e   : > { %14882 = vst [vmem:[#allocation14_spill] sm:$0xff] %v13748_v32  ;;  %v10274_v15 = vpop.f32.mrf.mxu0  ;;  %v13762_v6 = vadd.f32 %v4725_v0, %v13495_v13  ;;  %v8208_v8 = vrot.slane %v14885_v2, 5  ;;  %v14886_v32 = vld [vmem:[#allocation42_spill] sm:$0xff]  ;;  %v8212_v63 = vrot.slane %v14887_v10, 5  ;;  %v9490_v38 = vrot.slane %v9482_v12, 9  ;;  %v14889_v27 = vld [vmem:[#allocation29_spill] sm:$0xff] }
 0x22f   : > { %14883 = vst [vmem:[#allocation60_spill] sm:$0xff] %v13751_v17  ;;  %v13765_v53 = vadd.f32 %v10274_v15, %v13498_v54  ;;  %v10247_v17 = vpop.f32.mrf.mxu1  ;;  %v8216_v45 = vrot.slane %v14888_v9, 5  ;;  %v14890_v54 = vld [vmem:[#allocation53_spill] sm:$0xff]  ;;  %v9462_v43 = vrot.slane %v9454_v52, 9  ;;  %v14891_v12 = vsel %vm10880_vm4, %v13623_v1, %v13611_v14  ;;  %v9483_v1 = vld [vmem:[%s10858_s23 + $0xe0] sm:$0xe] }
 0x230   : > { %10486 = vmatmul.mubr.msk.bf16.gmra.mxu1 %vm760_vm1, %v14886_v32  ;;  %v5141_v61 = vpop.f32.mrf.mxu0  ;;  %v13773_v13 = vadd.f32 %v10247_v17, %v14889_v27  ;;  %v10755_v32 = vld [vmem:[%s10858_s23 + $0x6c] sm:$0x1]  ;;  %v9441_v2 = vcombine.low %v14891_v12, %v7785_v58  ;;  %v9442_v27 = vcombine.low %v7799_v50, %v7813_v7  ;;  %v7826_v17 = vrot.slane %v7824_v31, 5  ;;  %v9484_v58 = vld [vmem:[%s10858_s23 + $0xe8] sm:$0xe] }
 0x231   : > { %10501 = vmatprep.mubr.msk.bf16.mxu1 %vm760_vm1, %v13640_v36  ;;  %v13778_v0 = vadd.f32 %v5141_v61, %v14890_v54  ;;  %v8047_v15 = vrot.slane %v10755_v32, 5  ;;  %v4738_v60 = vpop.f32.mrf.mxu1  ;;  %v7840_v10 = vrot.slane %v7838_v37, 5  ;;  %v14892_v36 = vld [vmem:[#allocation22_spill] sm:$0xff]  ;;  %v8205_v54 = vsel %vm11279_vm7, %v9487_v29, %v8204_v39  ;;  %v14893_v32 = vld [vmem:[#allocation51_spill] sm:$0xff] }
 0x232   : > { %v10277_v9 = vpop.f32.mrf.mxu0  ;;  %10516 = vmatmul.mubr.msk.bf16.gmra.mxu0 %vm760_vm1, %v14892_v36  ;;  %v13789_v61 = vadd.f32 %v4738_v60, %v13533_v35  ;;  %v8209_v14 = vsel %vm11279_vm7, %v9488_v21, %v8208_v8  ;;  %v7822_v7 = vrot.slane %v7821_v16, 4  ;;  %v13803_v35 = vsel %vm11279_vm7, %v9461_v40, %v8043_v5 }
 0x233   : > { %v13792_v52 = vadd.f32 %v10277_v9, %v13536_v47  ;;  %10531 = vmatprep.mubr.msk.bf16.mxu0 %vm760_vm1, %v9493_v22  ;;  %v10248_v50 = vpop.f32.mrf.mxu1  ;;  %v8213_v22 = vsel %vm11279_vm7, %v9489_v62, %v8212_v63  ;;  %v8217_v29 = vsel %vm11279_vm7, %v9490_v38, %v8216_v45  ;;  %v7836_v37 = vrot.slane %v7835_v46, 4  ;;  %v9456_v46 = vld [vmem:[%s10858_s23 + $0x78] sm:$0xe] }
 0x234   : > { %v5154_v47 = vpop.f32.mrf.mxu0  ;;  %v13810_v31 = vadd.f32 %v10248_v50, %v13544_v23  ;;  %v13814_v16 = vsel %vm11279_vm7, %v9462_v43, %v8047_v15  ;;  %v9494_v21 = vcombine.low %v8205_v54, %v8209_v14  ;;  %v9491_v8 = vrot.slane %v9483_v1, 9  ;;  %v9455_v23 = vld [vmem:[%s10858_s23 + $0x70] sm:$0xe]  ;;  %v14894_v15 = vld [vmem:[#allocation6_spill] sm:$0xff]  ;;  %v10756_v14 = vld [vmem:[%s10858_s23 + $0x74] sm:$0x1] }
 0x235   : > { %v13817_v39 = vadd.f32 %v5154_v47, %v13548_v33  ;;  %v4741_v40 = vpop.f32.mrf.mxu1  ;;  %v8220_v62 = vrot.slane %v14893_v32, 5  ;;  %v9492_v63 = vrot.slane %v9484_v58, 9  ;;  %v9495_v43 = vcombine.low %v8213_v22, %v8217_v29  ;;  %v9457_v54 = vld [vmem:[%s10858_s23 + $0x80] sm:$0xe]  ;;  %v10757_v47 = vld [vmem:[%s10858_s23 + $0x7c] sm:$0x1] }
 0x236   : > { %v10278_v5 = vpop.f32.mrf.mxu0  ;;  %v13821_v45 = vadd.f32 %v4741_v40, %v13556_v44  ;;  %v8224_v33 = vrot.slane %v14894_v15, 5  ;;  %v7827_v12 = vsel %vm10880_vm4, %v7822_v7, %v7826_v17  ;;  %v9469_v17 = vcombine.low %v13803_v35, %v13814_v16 }
 0x237   : > { %v13826_v38 = vadd.f32 %v10278_v5, %v13559_v30  ;;  %v7841_v30 = vsel %vm10880_vm4, %v7836_v37, %v7840_v10  ;;  %v8051_v1 = vrot.slane %v10756_v14, 5  ;;  %v8055_v22 = vrot.slane %v10757_v47, 5  ;;  %v10758_v37 = vld [vmem:[%s10858_s23 + $0x84] sm:$0x1]  ;;  %v10759_v5 = vld [vmem:[%s10858_s23 + $0x8c] sm:$0x1] }
 0x238   : > { %v10263_v60 = vpop.f32.mrf.mxu1  ;;  %10502 = vmatmul.mubr.msk.bf16.vlgmr.msra.gmra.mxu1 %vm760_vm1, %v9441_v2  ;;  %v5157_v9 = vpop.f32.mrf.mxu0  ;;  %v8225_v50 = vsel %vm11279_vm7, %v9492_v63, %v8224_v33  ;;  %v9443_v35 = vcombine.low %v7827_v12, %v7841_v30  ;;  %v9465_v29 = vrot.slane %v9457_v54, 9  ;;  %v8059_v16 = vrot.slane %v10758_v37, 5  ;;  %v9460_v30 = vld [vmem:[%s10858_s23 + $0x98] sm:$0xe] }
 0x239   : > { %v13833_v44 = vadd.f32 %v10263_v60, %v13574_v26  ;;  %10520 = vmatpush3.bf16.msra.mxu1 %v13571_v28  ;;  %10505 = vmatprep.mubr.msk.bf16.mxu1 %vm760_vm1, %v9442_v27  ;;  %v13840_v36 = vadd.f32 %v5157_v9, %v13579_v48  ;;  %v9463_v26 = vrot.slane %v9455_v23, 9  ;;  %v9464_v27 = vrot.slane %v9456_v46, 9  ;;  %v9459_v60 = vld [vmem:[%s10858_s23 + $0x90] sm:$0xe] }
 0x23a   : > { %v4908_v2 = vpop.f32.mrf.mxu1  ;;  %10616 = vmatprep.subr.msk.bf16.mxu1 %vm773_vm0, %v13454_v3  ;;  %v10293_v58 = vpop.f32.mrf.mxu0  ;;  %10532 = vmatmul.mubr.msk.bf16.vlgmr.msra.gmra.mxu0 %vm760_vm1, %v9494_v21  ;;  %v8221_v3 = vsel %vm11279_vm7, %v9491_v8, %v8220_v62  ;;  %v8063_v21 = vrot.slane %v10759_v5, 5 }
 0x23b   : > { %v13851_v48 = vadd.f32 %v4908_v2, %v13587_v19  ;;  %v13854_v10 = vadd.f32 %v10293_v58, %v13590_v41  ;;  %10535 = vmatprep.mubr.msk.bf16.mxu0 %vm760_vm1, %v9495_v43  ;;  %v9466_v41 = vrot.slane %v9458_v34, 9  ;;  %v9496_v63 = vcombine.low %v8221_v3, %v8225_v50 }
 0x23c   : > { %v10264_v7 = vpop.f32.mrf.mxu1  ;;  %v5436_v19 = vpop.f32.mrf.mxu0  ;;  %v9467_v58 = vrot.slane %v9459_v60, 9 }
 0x23d   : > { %v13864_v40 = vadd.f32 %v10264_v7, %v13601_v20  ;;  %v13868_v8 = vadd.f32 %v5436_v19, %v13604_v4  ;;  %v8052_v20 = vsel %vm11279_vm7, %v9463_v26, %v8051_v1  ;;  %v8056_v4 = vsel %vm11279_vm7, %v9464_v27, %v8055_v22  ;;  %v9502_v26 = vld [vmem:[%s10858_s23 + $0x108] sm:$0xe]  ;;  %v14896_v19 = vld [vmem:[#allocation32_spill] sm:$0xff] }
 0x23e   : > { %v4911_v32 = vpop.f32.mrf.mxu1  ;;  %v10294_v62 = vpop.f32.mrf.mxu0  ;;  %v9470_v1 = vcombine.low %v8052_v20, %v8056_v4  ;;  %v9468_v7 = vrot.slane %v9460_v30, 9  ;;  %v9504_v20 = vld [vmem:[%s10858_s23 + $0x118] sm:$0xe]  ;;  %v14898_v4 = vld [vmem:[#allocation7_spill] sm:$0xff]  ;;  %v14899_v30 = vld [vmem:[#allocation46_spill] sm:$0xff] }
 0x23f   : > { %v13871_v23 = vadd.f32 %v4911_v32, %v13618_v18  ;;  %v13874_v46 = vadd.f32 %v10294_v62, %v13621_v55  ;;  %v8060_v18 = vsel %vm11279_vm7, %v9465_v29, %v8059_v16  ;;  %v8064_v55 = vsel %vm11279_vm7, %v9466_v41, %v8063_v21  ;;  %v14895_v29 = vld [vmem:[#allocation12_spill] sm:$0xff] }
 0x240   : > { %v10267_v43 = vpop.f32.mrf.mxu1  ;;  %10506 = vmatmul.mubr.msk.bf16.gmra.mxu1 %vm760_vm1, %v9443_v35  ;;  %v5439_v15 = vpop.f32.mrf.mxu0  ;;  %v9471_v27 = vcombine.low %v8060_v18, %v8064_v55  ;;  %v10761_v35 = vld [vmem:[%s10858_s23 + $0x9c] sm:$0x1]  ;;  %v8349_v37 = vrot.slane %v14895_v29, 5  ;;  %v9510_v16 = vrot.slane %v9502_v26, 9  ;;  %v8353_v41 = vrot.slane %v14896_v19, 5 }
 0x241   : > { %v13882_v33 = vadd.f32 %v10267_v43, %v13627_v49  ;;  %10521 = vmatprep.mubr.msk.bf16.mxu1 %vm760_vm1, %v9469_v17  ;;  %v13891_v12 = vadd.f32 %v5439_v15, %v13632_v56  ;;  %v9501_v17 = vld [vmem:[%s10858_s23 + $0x100] sm:$0xe]  ;;  %v10760_v56 = vld [vmem:[%s10858_s23 + $0x94] sm:$0x1]  ;;  %v8071_v47 = vrot.slane %v10761_v35, 5 }
 0x242   : > { %v4924_v9 = vpop.f32.mrf.mxu1  ;;  %v10297_v54 = vpop.f32.mrf.mxu0  ;;  %10536 = vmatmul.mubr.msk.bf16.gmra.mxu0 %vm760_vm1, %v9496_v63  ;;  %v8067_v34 = vrot.slane %v10760_v56, 5  ;;  %v9509_v22 = vrot.slane %v9501_v17, 9  ;;  %v14897_v63 = vld [vmem:[#allocation49_spill] sm:$0xff]  ;;  %v8354_v60 = vsel %vm11279_vm7, %v9510_v16, %v8353_v41  ;;  %v9505_v26 = vld [vmem:[%s10858_s23 + $0x120] sm:$0xe] }
 0x243   : > { %v13896_v49 = vadd.f32 %v4924_v9, %v13645_v51  ;;  %v13899_v2 = vadd.f32 %v10297_v54, %v13648_v11  ;;  %v14900_v54 = vld [vmem:[#allocation47_spill] sm:$0xff]  ;;  %v14901_v56 = vld [vmem:[#allocation33_spill] sm:$0xff]  ;;  %v14902_v35 = vld [vmem:[#allocation14_spill] sm:$0xff]  ;;  %v9513_v41 = vrot.slane %v9505_v26, 9 }
 0x244   : > { %v10268_v14 = vpop.f32.mrf.mxu1  ;;  %v5452_v3 = vpop.f32.mrf.mxu0  ;;  %v8350_v55 = vsel %vm11279_vm7, %v9509_v22, %v8349_v37  ;;  %v14903_v22 = vld [vmem:[#allocation36_spill] sm:$0xff] }
 0x245   : > { %v13905_v50 = vadd.f32 %v10268_v14, %v13663_v24  ;;  %v13909_v51 = vadd.f32 %v5452_v3, %v13666_v25  ;;  %v8068_v25 = vsel %vm11279_vm7, %v9467_v58, %v8067_v34  ;;  %v9506_v14 = vld [vmem:[%s10858_s23 + $0x128] sm:$0xe]  ;;  %v8357_v34 = vrot.slane %v14901_v56, 5  ;;  %v14904_v37 = vld [vmem:[#allocation60_spill] sm:$0xff] }
 0x246   : > { %v4927_v11 = vpop.f32.mrf.mxu1  ;;  %v10298_v5 = vpop.f32.mrf.mxu0  ;;  %v9512_v3 = vrot.slane %v9504_v20, 9  ;;  %v8361_v29 = vrot.slane %v14903_v22, 5 }
 0x247   : > { %v13914_v21 = vadd.f32 %v4927_v11, %v13674_v57  ;;  %v13917_v24 = vadd.f32 %v10298_v5, %v13677_v42  ;;  %v8072_v57 = vsel %vm11279_vm7, %v9468_v7, %v8071_v47  ;;  %v9503_v42 = vld [vmem:[%s10858_s23 + $0x110] sm:$0xe]  ;;  %v9517_v11 = vcombine.low %v8350_v55, %v8354_v60  ;;  %v14905_v5 = vld [vmem:[#allocation59_spill] sm:$0xff] }
 0x248   : > { %v10283_v32 = vpop.f32.mrf.mxu1  ;;  %10522 = vmatmul.mubr.msk.bf16.vlgmr.msra.gmra.mxu1 %vm760_vm1, %v9470_v1  ;;  %v5455_v62 = vpop.f32.mrf.mxu0  ;;  %v9511_v58 = vrot.slane %v9503_v42, 9 }
 0x249   : > { %v13923_v43 = vadd.f32 %v10283_v32, %v14897_v63  ;;  %10540 = vmatpush3.bf16.msra.mxu1 %v13571_v28  ;;  %10525 = vmatprep.mubr.msk.bf16.mxu1 %vm760_vm1, %v9471_v27  ;;  %v13932_v15 = vadd.f32 %v5455_v62, %v14898_v4  ;;  %v9472_v27 = vcombine.low %v8068_v25, %v8072_v57  ;;  %v8365_v32 = vrot.slane %v14905_v5, 5  ;;  %v14906_v62 = vld [vmem:[#allocation58_spill] sm:$0xff] }
 0x24a   : > { %v5363_v18 = vpop.f32.mrf.mxu1  ;;  %v10313_v9 = vpop.f32.mrf.mxu0  ;;  %v9514_v25 = vrot.slane %v9506_v14, 9  ;;  %v8369_v63 = vrot.slane %v14906_v62, 5  ;;  %v8358_v60 = vsel %vm11279_vm7, %v9511_v58, %v8357_v34 }
 0x24b   : > { %v13939_v28 = vadd.f32 %v5363_v18, %v14899_v30  ;;  %v13942_v17 = vadd.f32 %v10313_v9, %v14900_v54  ;;  %v8362_v9 = vsel %vm11279_vm7, %v9512_v3, %v8361_v29  ;;  %v9508_v30 = vld [vmem:[%s10858_s23 + $0x138] sm:$0xe]  ;;  %v8366_v26 = vsel %vm11279_vm7, %v9513_v41, %v8365_v32  ;;  %v14907_v3 = vld [vmem:[#allocation8_spill] sm:$0xff] }
 0x24c   : > { %v10284_v1 = vpop.f32.mrf.mxu1  ;;  %v5667_v7 = vpop.f32.mrf.mxu0  ;;  %v9518_v56 = vcombine.low %v8358_v60, %v8362_v9  ;;  %v14908_v29 = vld [vmem:[#allocation13_spill] sm:$0xff] }
 0x24d   : > { %v13948_v47 = vadd.f32 %v10284_v1, %v14902_v35  ;;  %v13952_v16 = vadd.f32 %v5667_v7, %v14904_v37  ;;  %v9516_v7 = vrot.slane %v9508_v30, 9  ;;  %v8377_v37 = vrot.slane %v14908_v29, 5 }
 0x24e   : > { %v5366_v19 = vpop.f32.mrf.mxu1  ;;  %v10314_v57 = vpop.f32.mrf.mxu0 }
 0x24f   : > { %v13957_v42 = vadd.f32 %v5366_v19, %v13762_v6  ;;  %v13960_v20 = vadd.f32 %v10314_v57, %v13765_v53  ;;  %v9507_v6 = vld [vmem:[%s10858_s23 + $0x130] sm:$0xe]  ;;  %v8378_v62 = vsel %vm11279_vm7, %v9516_v7, %v8377_v37 }
 0x250   : > { %v10287_v4 = vpop.f32.mrf.mxu1  ;;  %10526 = vmatmul.mubr.msk.bf16.gmra.mxu1 %vm760_vm1, %v9472_v27  ;;  %v5670_v18 = vpop.f32.mrf.mxu0  ;;  %v9515_v34 = vrot.slane %v9507_v6, 9 }
 0x251   : > { %v13964_v55 = vadd.f32 %v10287_v4, %v13773_v13  ;;  %10541 = vmatprep.mubr.msk.bf16.mxu1 %vm760_vm1, %v9517_v11  ;;  %v13974_v53 = vadd.f32 %v5670_v18, %v13778_v0  ;;  %v8370_v13 = vsel %vm11279_vm7, %v9514_v25, %v8369_v63  ;;  %v8373_v0 = vrot.slane %v14907_v3, 5 }
 0x252   : > { %v5379_v54 = vpop.f32.mrf.mxu1  ;;  %v10317_v14 = vpop.f32.mrf.mxu0  ;;  %v9519_v22 = vcombine.low %v8366_v26, %v8370_v13 }
 0x253   : > { %v13981_v1 = vadd.f32 %v5379_v54, %v13789_v61  ;;  %v13984_v27 = vadd.f32 %v10317_v14, %v13792_v52 }
 0x254   : > { %v10288_v58 = vpop.f32.mrf.mxu1  ;;  %v5683_v35 = vpop.f32.mrf.mxu0 }
 0x255   : > { %v13988_v11 = vadd.f32 %v10288_v58, %v13810_v31  ;;  %v13992_v19 = vadd.f32 %v5683_v35, %v13817_v39  ;;  %v8374_v39 = vsel %vm11279_vm7, %v9515_v34, %v8373_v0 }
 0x256   : > { %v5382_v61 = vpop.f32.mrf.mxu1  ;;  %v10318_v41 = vpop.f32.mrf.mxu0  ;;  %v9520_v18 = vcombine.low %v8374_v39, %v8378_v62 }
 0x257   : > { %v13995_v52 = vadd.f32 %v5382_v61, %v13821_v45  ;;  %v13998_v5 = vadd.f32 %v10318_v41, %v13826_v38 }
 0x258   : > { %v10303_v32 = vpop.f32.mrf.mxu1  ;;  %10542 = vmatmul.mubr.msk.bf16.vlgmr.msra.gmra.mxu1 %vm760_vm1, %v9518_v56  ;;  %v5686_v25 = vpop.f32.mrf.mxu0 }
 0x259   : > { %v14002_v31 = vadd.f32 %v10303_v32, %v13833_v44  ;;  %10545 = vmatprep.mubr.msk.bf16.mxu1 %vm760_vm1, %v9519_v22  ;;  %v14010_v45 = vadd.f32 %v5686_v25, %v13840_v36 }
 0x25a   : > { %v5509_v38 = vpop.f32.mrf.mxu1  ;;  %v10333_v63 = vpop.f32.mrf.mxu0 }
 0x25b   : > { %v14013_v57 = vadd.f32 %v5509_v38, %v13851_v48  ;;  %v14016_v4 = vadd.f32 %v10333_v63, %v13854_v10 }
 0x25c   : > { %v10304_v44 = vpop.f32.mrf.mxu1  ;;  %v5893_v60 = vpop.f32.mrf.mxu0 }
 0x25d   : > { %v14019_v9 = vadd.f32 %v10304_v44, %v13864_v40  ;;  %v14022_v59 = vadd.f32 %v5893_v60, %v13868_v8 }
 0x25e   : > { %v5512_v6 = vpop.f32.mrf.mxu1  ;;  %v10334_v36 = vpop.f32.mrf.mxu0 }
 0x25f   : > { %v14025_v30 = vadd.f32 %v5512_v6, %v13871_v23  ;;  %v14028_v48 = vadd.f32 %v10334_v36, %v13874_v46 }
 0x260   : > { %v10307_v54 = vpop.f32.mrf.mxu1  ;;  %10546 = vmatmul.mubr.msk.bf16.gmra.mxu1 %vm760_vm1, %v9520_v18  ;;  %v5896_v10 = vpop.f32.mrf.mxu0 }
 0x261   : > { %v14032_v26 = vadd.f32 %v10307_v54, %v13882_v33  ;;  %v14035_v40 = vadd.f32 %v5896_v10, %v13891_v12 }
 0x262   : > { %v5525_v8 = vpop.f32.mrf.mxu1  ;;  %v10337_v13 = vpop.f32.mrf.mxu0 }
 0x263   : > { %v14038_v14 = vadd.f32 %v5525_v8, %v13896_v49  ;;  %v14041_v23 = vadd.f32 %v10337_v13, %v13899_v2 }
 0x264   : > { %v10308_v46 = vpop.f32.mrf.mxu1  ;;  %v5909_v58 = vpop.f32.mrf.mxu0 }
 0x265   : > { %v14044_v56 = vadd.f32 %v10308_v46, %v13905_v50  ;;  %v14047_v34 = vadd.f32 %v5909_v58, %v13909_v51 }
 0x266   : > { %v5528_v33 = vpop.f32.mrf.mxu1  ;;  %v10338_v3 = vpop.f32.mrf.mxu0 }
 0x267   : > { %v14050_v12 = vadd.f32 %v5528_v33, %v13914_v21  ;;  %v14053_v0 = vadd.f32 %v10338_v3, %v13917_v24 }
 0x268   : > { %v10323_v49 = vpop.f32.mrf.mxu1  ;;  %v5912_v7 = vpop.f32.mrf.mxu0 }
 0x269   : > { %v14056_v2 = vadd.f32 %v10323_v49, %v13923_v43  ;;  %v14059_v35 = vadd.f32 %v5912_v7, %v13932_v15 }
 0x26a   : > { %v5820_v50 = vpop.f32.mrf.mxu1  ;;  %v10353_v22 = vpop.f32.mrf.mxu0 }
 0x26b   : > { %v14062_v51 = vadd.f32 %v5820_v50, %v13939_v28  ;;  %v14065_v29 = vadd.f32 %v10353_v22, %v13942_v17 }
 0x26c   : > { %v10324_v21 = vpop.f32.mrf.mxu1  ;;  %v6164_v37 = vpop.f32.mrf.mxu0 }
 0x26d   : > { %v14068_v24 = vadd.f32 %v10324_v21, %v13948_v47  ;;  %v14071_v61 = vadd.f32 %v6164_v37, %v13952_v16 }
 0x26e   : > { %v5823_v43 = vpop.f32.mrf.mxu1  ;;  %v10354_v41 = vpop.f32.mrf.mxu0 }
 0x26f   : > { %v14074_v15 = vadd.f32 %v5823_v43, %v13957_v42  ;;  %v14077_v32 = vadd.f32 %v10354_v41, %v13960_v20 }
 0x270   : > { %v10327_v28 = vpop.f32.mrf.mxu1  ;;  %v6167_v25 = vpop.f32.mrf.mxu0 }
 0x271   : > { %v14080_v17 = vadd.f32 %v10327_v28, %v13964_v55  ;;  %v14083_v39 = vadd.f32 %v6167_v25, %v13974_v53 }
 0x272   : > { %v5836_v47 = vpop.f32.mrf.mxu1  ;;  %v10357_v62 = vpop.f32.mrf.mxu0 }
 0x273   : > { %v14086_v16 = vadd.f32 %v5836_v47, %v13981_v1  ;;  %v14089_v38 = vadd.f32 %v10357_v62, %v13984_v27 }
 0x274   : > { %v10328_v42 = vpop.f32.mrf.mxu1  ;;  %v6180_v63 = vpop.f32.mrf.mxu0 }
 0x275   : > { %v14092_v20 = vadd.f32 %v10328_v42, %v13988_v11  ;;  %v14095_v44 = vadd.f32 %v6180_v63, %v13992_v19 }
 0x276   : > { %v5839_v55 = vpop.f32.mrf.mxu1  ;;  %v10358_v18 = vpop.f32.mrf.mxu0 }
 0x277   : > { %v14098_v53 = vadd.f32 %v5839_v55, %v13995_v52  ;;  %v14101_v60 = vadd.f32 %v10358_v18, %v13998_v5 }
 0x278   : > { %v10343_v1 = vpop.f32.mrf.mxu1  ;;  %v6183_v6 = vpop.f32.mrf.mxu0 }
 0x279   : > { %v14104_v27 = vadd.f32 %v10343_v1, %v14002_v31  ;;  %v14107_v36 = vadd.f32 %v6183_v6, %v14010_v45 }
 0x27a   : > { %v6046_v11 = vpop.f32.mrf.mxu1  ;;  %v10373_v54 = vpop.f32.mrf.mxu0 }
 0x27b   : > { %v14110_v19 = vadd.f32 %v6046_v11, %v14013_v57  ;;  %v14113_v10 = vadd.f32 %v10373_v54, %v14016_v4 }
 0x27c   : > { %v10344_v52 = vpop.f32.mrf.mxu1  ;;  %v6350_v8 = vpop.f32.mrf.mxu0 }
 0x27d   : > { %v14116_v5 = vadd.f32 %v10344_v52, %v14019_v9  ;;  %v14119_v13 = vadd.f32 %v6350_v8, %v14022_v59 }
 0x27e   : > { %v6049_v31 = vpop.f32.mrf.mxu1  ;;  %v10374_v46 = vpop.f32.mrf.mxu0 }
 0x27f   : > { %v14122_v45 = vadd.f32 %v6049_v31, %v14025_v30  ;;  %v14125_v58 = vadd.f32 %v10374_v46, %v14028_v48 }
 0x280   : > { %v10347_v57 = vpop.f32.mrf.mxu1  ;;  %v6353_v33 = vpop.f32.mrf.mxu0 }
 0x281   : > { %v14128_v4 = vadd.f32 %v10347_v57, %v14032_v26  ;;  %v14131_v3 = vadd.f32 %v6353_v33, %v14035_v40 }
 0x282   : > { %v6062_v9 = vpop.f32.mrf.mxu1  ;;  %v10377_v49 = vpop.f32.mrf.mxu0 }
 0x283   : > { %v14134_v59 = vadd.f32 %v6062_v9, %v14038_v14  ;;  %v14137_v7 = vadd.f32 %v10377_v49, %v14041_v23 }
 0x284   : > { %v10348_v30 = vpop.f32.mrf.mxu1  ;;  %v6366_v50 = vpop.f32.mrf.mxu0 }
 0x285   : > { %v14140_v48 = vadd.f32 %v10348_v30, %v14044_v56  ;;  %v14143_v22 = vadd.f32 %v6366_v50, %v14047_v34 }
 0x286   : > { %v6065_v26 = vpop.f32.mrf.mxu1  ;;  %v10378_v21 = vpop.f32.mrf.mxu0 }
 0x287   : > { %v14146_v40 = vadd.f32 %v6065_v26, %v14050_v12  ;;  %v14149_v37 = vadd.f32 %v10378_v21, %v14053_v0 }
 0x288   : > { %v10363_v14 = vpop.f32.mrf.mxu1  ;;  %v6369_v43 = vpop.f32.mrf.mxu0 }
 0x289   : > { %v14152_v23 = vadd.f32 %v10363_v14, %v14056_v2  ;;  %v14155_v41 = vadd.f32 %v6369_v43, %v14059_v35 }
 0x28a   : > { %v6237_v56 = vpop.f32.mrf.mxu1  ;;  %v10393_v28 = vpop.f32.mrf.mxu0 }
 0x28b   : > { %v14158_v34 = vadd.f32 %v6237_v56, %v14062_v51  ;;  %v14161_v25 = vadd.f32 %v10393_v28, %v14065_v29 }
 0x28c   : > { %v10364_v12 = vpop.f32.mrf.mxu1  ;;  %v6501_v47 = vpop.f32.mrf.mxu0 }
 0x28d   : > { %v14164_v0 = vadd.f32 %v10364_v12, %v14068_v24  ;;  %v14167_v62 = vadd.f32 %v6501_v47, %v14071_v61 }
 0x28e   : > { %v6240_v2 = vpop.f32.mrf.mxu1  ;;  %v10394_v42 = vpop.f32.mrf.mxu0 }
 0x28f   : > { %v14170_v35 = vadd.f32 %v6240_v2, %v14074_v15  ;;  %v14173_v63 = vadd.f32 %v10394_v42, %v14077_v32 }
 0x290   : > { %v10367_v51 = vpop.f32.mrf.mxu1  ;;  %v6504_v55 = vpop.f32.mrf.mxu0 }
 0x291   : > { %v14176_v29 = vadd.f32 %v10367_v51, %v14080_v17  ;;  %v14179_v18 = vadd.f32 %v6504_v55, %v14083_v39 }
 0x292   : > { %v6253_v24 = vpop.f32.mrf.mxu1  ;;  %v10397_v1 = vpop.f32.mrf.mxu0 }
 0x293   : > { %v14182_v61 = vadd.f32 %v6253_v24, %v14086_v16  ;;  %v14185_v6 = vadd.f32 %v10397_v1, %v14089_v38 }
 0x294   : > { %v10368_v15 = vpop.f32.mrf.mxu1  ;;  %v6517_v11 = vpop.f32.mrf.mxu0 }
 0x295   : > { %v14188_v32 = vadd.f32 %v10368_v15, %v14092_v20  ;;  %v14191_v54 = vadd.f32 %v6517_v11, %v14095_v44 }
 0x296   : > { %v6256_v17 = vpop.f32.mrf.mxu1  ;;  %v10398_v52 = vpop.f32.mrf.mxu0 }
 0x297   : > { %v14194_v39 = vadd.f32 %v6256_v17, %v14098_v53  ;;  %v14197_v8 = vadd.f32 %v10398_v52, %v14101_v60 }
 0x298   : > { %v10383_v16 = vpop.f32.mrf.mxu1  ;;  %v6520_v31 = vpop.f32.mrf.mxu0 }
 0x299   : > { %v14200_v38 = vadd.f32 %v10383_v16, %v14104_v27  ;;  %v14203_v46 = vadd.f32 %v6520_v31, %v14107_v36 }
 0x29a   : > { %v6423_v20 = vpop.f32.mrf.mxu1  ;;  %v10413_v57 = vpop.f32.mrf.mxu0 }
 0x29b   : > { %v14206_v44 = vadd.f32 %v6423_v20, %v14110_v19  ;;  %v14209_v33 = vadd.f32 %v10413_v57, %v14113_v10 }
 0x29c   : > { %v10384_v53 = vpop.f32.mrf.mxu1  ;;  %v6727_v9 = vpop.f32.mrf.mxu0 }
 0x29d   : > { %v14212_v60 = vadd.f32 %v10384_v53, %v14116_v5  ;;  %v14215_v49 = vadd.f32 %v6727_v9, %v14119_v13 }
 0x29e   : > { %v6426_v27 = vpop.f32.mrf.mxu1  ;;  %v10414_v30 = vpop.f32.mrf.mxu0 }
 0x29f   : > { %v6455_v36 = vadd.f32 %v6426_v27, %v14122_v45  ;;  %v14219_v50 = vadd.f32 %v10414_v30, %v14125_v58 }
 0x2a0   : > { %v10387_v19 = vpop.f32.mrf.mxu1  ;;  %v6730_v26 = vpop.f32.mrf.mxu0 }
 0x2a1   : > { %v6460_v10 = vadd.f32 %v10387_v19, %v14128_v4  ;;  %v14223_v21 = vadd.f32 %v6730_v26, %v14131_v3 }
 0x2a2   : > { %v6439_v14 = vpop.f32.mrf.mxu1  ;;  %v10417_v5 = vpop.f32.mrf.mxu0 }
 0x2a3   : > { %v6458_v43 = vadd.f32 %v6439_v14, %v14134_v59  ;;  %v14227_v13 = vadd.f32 %v10417_v5, %v14137_v7 }
 0x2a4   : > { %v10388_v56 = vpop.f32.mrf.mxu1  ;;  %v6743_v28 = vpop.f32.mrf.mxu0 }
 0x2a5   : > { %v6461_v45 = vadd.f32 %v10388_v56, %v14140_v48  ;;  %v14231_v58 = vadd.f32 %v6743_v28, %v14143_v22 }
 0x2a6   : > { %v6442_v12 = vpop.f32.mrf.mxu1  ;;  %v10418_v47 = vpop.f32.mrf.mxu0 }
 0x2a7   : > { %v6459_v4 = vadd.f32 %v6442_v12, %v14146_v40  ;;  %v14235_v3 = vadd.f32 %v10418_v47, %v14149_v37 }
 0x2a8   : > { %v10403_v2 = vpop.f32.mrf.mxu1  ;;  %v6746_v42 = vpop.f32.mrf.mxu0 }
 0x2a9   : > { %14909 = vst [vmem:[#allocation3_spill] sm:$0xff] %v14235_v3  ;;  %v6687_v59 = vadd.f32 %v10403_v2, %v14152_v23  ;;  %v14239_v7 = vadd.f32 %v6746_v42, %v14155_v41 }
 0x2aa   : > { %v6654_v51 = vpop.f32.mrf.mxu1  ;;  %v10433_v55 = vpop.f32.mrf.mxu0 }
 0x2ab   : > { %14910 = vst [vmem:[#allocation63_spill] sm:$0xff] %v14239_v7  ;;  %v6685_v48 = vadd.f32 %v6654_v51, %v14158_v34  ;;  %v14243_v22 = vadd.f32 %v10433_v55, %v14161_v25 }
 0x2ac   : > { %v10404_v24 = vpop.f32.mrf.mxu1  ;;  %v6998_v1 = vpop.f32.mrf.mxu0 }
 0x2ad   : > { %v6688_v40 = vadd.f32 %v10404_v24, %v14164_v0  ;;  %v14247_v37 = vadd.f32 %v6998_v1, %v14167_v62 }
 0x2ae   : > { %v6657_v15 = vpop.f32.mrf.mxu1  ;;  %v10434_v11 = vpop.f32.mrf.mxu0 }
 0x2af   : > { %v6686_v23 = vadd.f32 %v6657_v15, %v14170_v35  ;;  %v14251_v41 = vadd.f32 %v10434_v11, %v14173_v63 }
 0x2b0   : > { %v10407_v17 = vpop.f32.mrf.mxu1  ;;  %v7001_v52 = vpop.f32.mrf.mxu0 }
 0x2b1   : > { %v6691_v34 = vadd.f32 %v10407_v17, %v14176_v29  ;;  %v14255_v25 = vadd.f32 %v7001_v52, %v14179_v18 }
 0x2b2   : > { %v6670_v16 = vpop.f32.mrf.mxu1  ;;  %v10437_v31 = vpop.f32.mrf.mxu0 }
 0x2b3   : > { %v6689_v0 = vadd.f32 %v6670_v16, %v14182_v61  ;;  %v14259_v62 = vadd.f32 %v10437_v31, %v14185_v6 }
 0x2b4   : > { %v10408_v20 = vpop.f32.mrf.mxu1  ;;  %v7014_v57 = vpop.f32.mrf.mxu0 }
 0x2b5   : > { %v6692_v35 = vadd.f32 %v10408_v20, %v14188_v32  ;;  %v14263_v63 = vadd.f32 %v7014_v57, %v14191_v54 }
 0x2b6   : > { %v6673_v53 = vpop.f32.mrf.mxu1  ;;  %v10438_v9 = vpop.f32.mrf.mxu0 }
 0x2b7   : > { %v6690_v29 = vadd.f32 %v6673_v53, %v14194_v39  ;;  %v14267_v18 = vadd.f32 %v10438_v9, %v14197_v8 }
 0x2b8   : > { %v10423_v27 = vpop.f32.mrf.mxu1  ;;  %v7017_v30 = vpop.f32.mrf.mxu0 }
 0x2b9   : > { %v14270_v61 = vadd.f32 %v10423_v27, %v14200_v38  ;;  %v14273_v6 = vadd.f32 %v7017_v30, %v14203_v46 }
 0x2ba   : > { %v6880_v19 = vpop.f32.mrf.mxu1  ;;  %v14275_v32 = vpop.f32.mrf.mxu0 }
 0x2bb   : > { %v14278_v54 = vadd.f32 %v6880_v19, %v14206_v44 }
 0x2bc   : > { %v10424_v26 = vpop.f32.mrf.mxu1  ;;  %v14280_v14 = vpop.f32.mrf.mxu0 }
 0x2bd   : > { %14911 = vst [vmem:[#allocation4_spill] sm:$0xff] %v14278_v54  ;;  %v14283_v39 = vadd.f32 %v10424_v26, %v14212_v60 }
 0x2be   : > { %v6883_v8 = vpop.f32.mrf.mxu1  ;;  %v14285_v5 = vpop.f32.mrf.mxu0 }
 0x2bf   : > { %14912 = vst [vmem:[#allocation64_spill] sm:$0xff] %v14283_v39  ;;  %v14287_v38 = vadd.f32 %v6883_v8, %v6455_v36 }
 0x2c0   : > { %v10427_v56 = vpop.f32.mrf.mxu1  ;;  %v14289_v46 = vpop.f32.mrf.mxu0 }
 0x2c1   : > { %14913 = vst [vmem:[#allocation65_spill] sm:$0xff] %v14287_v38  ;;  %v14291_v28 = vadd.f32 %v10427_v56, %v6460_v10 }
 0x2c2   : > { %v6896_v12 = vpop.f32.mrf.mxu1  ;;  %v14293_v47 = vpop.f32.mrf.mxu0 }
 0x2c3   : > { %14914 = vst [vmem:[#allocation9_spill] sm:$0xff] %v14291_v28  ;;  %v14295_v44 = vadd.f32 %v6896_v12, %v6458_v43 }
 0x2c4   : > { %v10428_v2 = vpop.f32.mrf.mxu1  ;;  %v14297_v42 = vpop.f32.mrf.mxu0 }
 0x2c5   : > { %14915 = vst [vmem:[#allocation15_spill] sm:$0xff] %v14295_v44  ;;  %14916 = vst [vmem:[#allocation2_spill] sm:$0xff] %v14297_v42  ;;  %v14299_v60 = vadd.f32 %v10428_v2, %v6461_v45 }
 0x2c6   : > { %v6899_v51 = vpop.f32.mrf.mxu1  ;;  %v14301_v55 = vpop.f32.mrf.mxu0 }
 0x2c7   : > { %14917 = vst [vmem:[#allocation40_spill] sm:$0xff] %v14299_v60  ;;  %14918 = vst [vmem:[#allocation41_spill] sm:$0xff] %v14301_v55  ;;  %v14303_v36 = vadd.f32 %v6899_v51, %v6459_v4 }
 0x2c8   : > { %v10443_v24 = vpop.f32.mrf.mxu1  ;;  %v14305_v1 = vpop.f32.mrf.mxu0 }
 0x2c9   : > { %14919 = vst [vmem:[#allocation43_spill] sm:$0xff] %v14303_v36  ;;  %14920 = vst [vmem:[#allocation44_spill] sm:$0xff] %v14305_v1  ;;  %v14307_v10 = vadd.f32 %v10443_v24, %v6687_v59 }
 0x2ca   : > { %v7071_v15 = vpop.f32.mrf.mxu1  ;;  %v10473_v11 = vpop.f32.mrf.mxu0 }
 0x2cb   : > { %v14309_v17 = vadd.f32 %v7071_v15, %v6685_v48 }
 0x2cc   : > { %v10444_v43 = vpop.f32.mrf.mxu1  ;;  %v7377_v52 = vpop.f32.mrf.mxu0 }
 0x2cd   : > { %v14311_v16 = vadd.f32 %v10444_v43, %v6688_v40 }
 0x2ce   : > { %v7074_v45 = vpop.f32.mrf.mxu1  ;;  %v14313_v31 = vpop.f32.mrf.mxu0 }
 0x2cf   : > { %v14315_v20 = vadd.f32 %v7074_v45, %v6686_v23 }
 0x2d0   : > { %v10447_v4 = vpop.f32.mrf.mxu1  ;;  %v14317_v57 = vpop.f32.mrf.mxu0 }
 0x2d1   : > { %v14319_v53 = vadd.f32 %v10447_v4, %v6691_v34 }
 0x2d2   : > { %v7087_v59 = vpop.f32.mrf.mxu1  ;;  %v14321_v9 = vpop.f32.mrf.mxu0 }
 0x2d3   : > { %v14323_v27 = vadd.f32 %v7087_v59, %v6689_v0 }
 0x2d4   : > { %v10448_v48 = vpop.f32.mrf.mxu1  ;;  %v14325_v30 = vpop.f32.mrf.mxu0 }
 0x2d5   : > { %v14327_v40 = vadd.f32 %v10448_v48, %v6692_v35 }
 0x2d6   : > { %v7090_v19 = vpop.f32.mrf.mxu1  ;;  %v14329_v26 = vpop.f32.mrf.mxu0 }
 0x2d7   : > { %v14331_v23 = vadd.f32 %v7090_v19, %v6690_v29 }
 0x2d8   : > { %v14333_v8 = vpop.f32.mrf.mxu1  ;;  %v14335_v56 = vpop.f32.mrf.mxu0 }
 0x2da   : > { %v14337_v34 = vpop.f32.mrf.mxu1  ;;  %v14339_v12 = vpop.f32.mrf.mxu0 }
 0x2db   : > { %14921 = vst [vmem:[#allocation16_spill] sm:$0xff] %v14337_v34  ;;  %14922 = vst [vmem:[#allocation11_spill] sm:$0xff] %v14339_v12 }
 0x2dc   : > { %v14341_v0 = vpop.f32.mrf.mxu1  ;;  %v14343_v2 = vpop.f32.mrf.mxu0 }
 0x2dd   : > { %14923 = vst [vmem:[#allocation17_spill] sm:$0xff] %v14341_v0  ;;  %14924 = vst [vmem:[#allocation18_spill] sm:$0xff] %v14343_v2 }
 0x2de   : > { %v14345_v51 = vpop.f32.mrf.mxu1  ;;  %v14347_v35 = vpop.f32.mrf.mxu0 }
 0x2df   : > { %14925 = vst [vmem:[#allocation23_spill] sm:$0xff] %v14345_v51  ;;  %14926 = vst [vmem:[#allocation24_spill] sm:$0xff] %v14347_v35 }
 0x2e0   : > { %v14349_v24 = vpop.f32.mrf.mxu1  ;;  %v14351_v29 = vpop.f32.mrf.mxu0 }
 0x2e1   : > { %14927 = vst [vmem:[#allocation25_spill] sm:$0xff] %v14349_v24  ;;  %14928 = vst [vmem:[#allocation26_spill] sm:$0xff] %v14351_v29 }
 0x2e2   : > { %v14353_v15 = vpop.f32.mrf.mxu1  ;;  %v14355_v43 = vpop.f32.mrf.mxu0 }
 0x2e3   : > { %14929 = vst [vmem:[#allocation61_spill] sm:$0xff] %v14353_v15  ;;  %14930 = vst [vmem:[#allocation62_spill] sm:$0xff] %v14355_v43 }
 0x2e4   : > { %v14357_v45 = vpop.f32.mrf.mxu1  ;;  %v14359_v4 = vpop.f32.mrf.mxu0 }
 0x2e5   : > { %14931 = vst [vmem:[#allocation45_spill] sm:$0xff] %v14357_v45  ;;  %14932 = vst [vmem:[#allocation48_spill] sm:$0xff] %v14359_v4 }
 0x2e6   : > { %v14361_v59 = vpop.f32.mrf.mxu1  ;;  %v14363_v48 = vpop.f32.mrf.mxu0 }
 0x2e7   : > { %14933 = vst [vmem:[#allocation56_spill] sm:$0xff] %v14361_v59  ;;  %14934 = vst [vmem:[#allocation34_spill] sm:$0xff] %v14363_v48 }
 0x2e8   : > { %v10483_v19 = vpop.f32.mrf.mxu1  ;;  %v14365_v36 = vpop.f32.mrf.mxu0 }
 0x2e9   : > { %14935 = vst [vmem:[#allocation27_spill] sm:$0xff] %v14365_v36  ;;  %v7483_v34 = vadd.f32 %v10483_v19, %v14307_v10  ;;  %v14951_v19 = vld [vmem:[#allocation64_spill] sm:$0xff] }
 0x2ea   : > { %v7450_v60 = vpop.f32.mrf.mxu1  ;;  %v10513_v35 = vpop.f32.mrf.mxu0 }
 0x2ec   : > { %v10484_v44 = vpop.f32.mrf.mxu1  ;;  %v7978_v24 = vpop.f32.mrf.mxu0 }
 0x2ee   : > { %v7453_v29 = vpop.f32.mrf.mxu1  ;;  %v10514_v15 = vpop.f32.mrf.mxu0 }
 0x2f0   : > { %v10487_v28 = vpop.f32.mrf.mxu1  ;;  %v7981_v51 = vpop.f32.mrf.mxu0 }
 0x2f2   : > { %v7466_v2 = vpop.f32.mrf.mxu1  ;;  %v10517_v4 = vpop.f32.mrf.mxu0 }
 0x2f4   : > { %v10488_v43 = vpop.f32.mrf.mxu1  ;;  %v7994_v1 = vpop.f32.mrf.mxu0 }
 0x2f6   : > { %v7469_v45 = vpop.f32.mrf.mxu1  ;;  %v10518_v0 = vpop.f32.mrf.mxu0 }
 0x2f8   : > { %v14367_v38 = vpop.f32.mrf.mxu1  ;;  %v7997_v55 = vpop.f32.mrf.mxu0 }
 0x2f9   : > { %14936 = vst [vmem:[#allocation30_spill] sm:$0xff] %v14367_v38  ;;  %v7410_v38 = vadd.f32 %v10473_v11, %v14243_v22 }
 0x2fa   : > { %v14369_v59 = vpop.f32.mrf.mxu1  ;;  %v14385_v54 = vpop.f32.mrf.mxu0 }
 0x2fb   : > { %14937 = vst [vmem:[#allocation31_spill] sm:$0xff] %v14369_v59 }
 0x2fc   : > { %v14371_v48 = vpop.f32.mrf.mxu1 }
 0x2fd   : > { %14938 = vst [vmem:[#allocation35_spill] sm:$0xff] %v14371_v48  ;;  %v7408_v48 = vadd.f32 %v7377_v52, %v14247_v37  ;;  %v7409_v37 = vadd.f32 %v14317_v57, %v14255_v25 }
 0x2fe   : > { %v14373_v36 = vpop.f32.mrf.mxu1 }
 0x2ff   : > { %14939 = vst [vmem:[#allocation37_spill] sm:$0xff] %v14373_v36  ;;  %v7481_v36 = vadd.f32 %v7450_v60, %v14309_v17  ;;  %v14396_v22 = vadd.f32 %v7978_v24, %v7408_v48  ;;  %v8284_v60 = vpop.f32.mrf.mxu0  ;;  %v7482_v17 = vadd.f32 %v7453_v29, %v14315_v20  ;;  %v7412_v20 = vadd.f32 %v14325_v30, %v14263_v63 }
 0x300   : > { %v14375_v7 = vpop.f32.mrf.mxu1  ;;  %v7219_v63 = vadd.f32 %v14285_v5, %v14219_v50  ;;  %v7415_v30 = vadd.f32 %v14329_v26, %v14267_v18  ;;  %v7332_v50 = vadd.f32 %v14333_v8, %v14270_v61  ;;  %v7413_v18 = vadd.f32 %v14335_v56, %v14273_v6  ;;  %v14947_v8 = vld [vmem:[#allocation3_spill] sm:$0xff] }
 0x301   : > { %14940 = vst [vmem:[#allocation55_spill] sm:$0xff] %v14375_v7  ;;  %v14389_v7 = vadd.f32 %v10513_v35, %v7410_v38  ;;  %v7486_v5 = vadd.f32 %v7469_v45, %v14331_v23  ;;  %v14949_v56 = vld [vmem:[#allocation11_spill] sm:$0xff]  ;;  %v14950_v23 = vld [vmem:[#allocation30_spill] sm:$0xff] }
 0x302   : > { %v14377_v39 = vpop.f32.mrf.mxu1  ;;  %v14467_v45 = vadd.f32 %v7997_v55, %v7413_v18  ;;  %v14958_v55 = vld [vmem:[#allocation31_spill] sm:$0xff] }
 0x303   : > { %14941 = vst [vmem:[#allocation19_spill] sm:$0xff] %v14377_v39 }
 0x304   : > { %v14379_v12 = vpop.f32.mrf.mxu1 }
 0x305   : > { %14942 = vst [vmem:[#allocation50_spill] sm:$0xff] %v14379_v12  ;;  %v7411_v12 = vadd.f32 %v14313_v31, %v14251_v41 }
 0x306   : > { %v14381_v3 = vpop.f32.mrf.mxu1 }
 0x307   : > { %14943 = vst [vmem:[#allocation52_spill] sm:$0xff] %v14381_v3  ;;  %v7484_v3 = vadd.f32 %v10484_v44, %v14311_v16  ;;  %v14405_v52 = vadd.f32 %v10514_v15, %v7411_v12  ;;  %v7414_v16 = vadd.f32 %v14321_v9, %v14259_v62  ;;  %v10534_v12 = vpop.f32.mrf.mxu0  ;;  %v7216_v9 = vadd.f32 %v14280_v14, %v14215_v49  ;;  %v14948_v15 = vld [vmem:[#allocation41_spill] sm:$0xff] }
 0x308   : > { %v10523_v59 = vpop.f32.mrf.mxu1  ;;  %v7222_v49 = vadd.f32 %v14293_v47, %v14227_v13  ;;  %v14946_v47 = vld [vmem:[#allocation16_spill] sm:$0xff]  ;;  %v7223_v6 = vadd.f32 %v14948_v15, %v14947_v8 }
 0x309   : > { %v14391_v42 = vadd.f32 %v10523_v59, %v7483_v34  ;;  %v14423_v35 = vadd.f32 %v10517_v4, %v7414_v16  ;;  %v8287_v14 = vpop.f32.mrf.mxu0  ;;  %v14963_v15 = vld [vmem:[#allocation24_spill] sm:$0xff] }
 0x30a   : > { %v8131_v39 = vpop.f32.mrf.mxu1 }
 0x30b   : > { %v8478_v10 = vmax.f32 %v14389_v7, %v14391_v42  ;;  %v14400_v11 = vadd.f32 %v8131_v39, %v7481_v36  ;;  %v7487_v39 = vadd.f32 %v10487_v28, %v14319_v53  ;;  %v14414_v36 = vadd.f32 %v7981_v51, %v7409_v37 }
 0x30c   : > { %v10524_v38 = vpop.f32.mrf.mxu1  ;;  %v7218_v53 = vadd.f32 %v14275_v32, %v14209_v33  ;;  %v14438_v51 = vadd.f32 %v7994_v1, %v7412_v20  ;;  %v7217_v33 = vadd.f32 %v14289_v46, %v14223_v21  ;;  %v14453_v1 = vadd.f32 %v10518_v0, %v7415_v30  ;;  %v14944_v21 = vld [vmem:[#allocation2_spill] sm:$0xff]  ;;  %v14945_v46 = vld [vmem:[#allocation4_spill] sm:$0xff] }
 0x30d   : > { %v8476_v41 = vmax.f32 %v14396_v22, %v14400_v11  ;;  %v14409_v44 = vadd.f32 %v10524_v38, %v7484_v3  ;;  %v7485_v3 = vadd.f32 %v7466_v2, %v14323_v27  ;;  %v7488_v2 = vadd.f32 %v10488_v43, %v14327_v40  ;;  %v14953_v38 = vld [vmem:[#allocation63_spill] sm:$0xff] }
 0x30e   : > { %v8134_v31 = vpop.f32.mrf.mxu1  ;;  %v7220_v13 = vadd.f32 %v14944_v21, %v14231_v58  ;;  %v7330_v61 = vadd.f32 %v14946_v47, %v14945_v46  ;;  %v7708_v43 = vadd.f32 %v14949_v56, %v7218_v53  ;;  %v7933_v0 = vadd.f32 %v14950_v23, %v7332_v50  ;;  %v14952_v58 = vld [vmem:[#allocation17_spill] sm:$0xff]  ;;  %v10537_v53 = vpop.f32.mrf.mxu0  ;;  %v14961_v46 = vld [vmem:[#allocation15_spill] sm:$0xff] }
 0x30f   : > { %v8479_v25 = vmax.f32 %v14405_v52, %v14409_v44  ;;  %v14418_v57 = vadd.f32 %v8134_v31, %v7482_v17  ;;  %v7333_v37 = vadd.f32 %v14952_v58, %v14951_v19  ;;  %v14954_v17 = vld [vmem:[#allocation44_spill] sm:$0xff]  ;;  %v14955_v31 = vld [vmem:[#allocation65_spill] sm:$0xff]  ;;  %v7709_v56 = vadd.f32 %v14963_v15, %v7219_v63  ;;  %v14965_v19 = vld [vmem:[#allocation35_spill] sm:$0xff] }
 0x310   : > { %v10527_v34 = vpop.f32.mrf.mxu1  ;;  %v7221_v16 = vadd.f32 %v14954_v17, %v14953_v38  ;;  %v14962_v47 = vld [vmem:[#allocation61_spill] sm:$0xff]  ;;  %v14499_v63 = vld [vmem:[%s14574_s2] ss:$0 sm:$0xff]  ;;  %v14975_v15 = vld [vmem:[#allocation55_spill] sm:$0xff] }
 0x311   : > { %v8477_v62 = vmax.f32 %v14414_v36, %v14418_v57  ;;  %v14427_v28 = vadd.f32 %v10527_v34, %v7487_v39  ;;  %v14956_v39 = vld [vmem:[#allocation23_spill] sm:$0xff]  ;;  %v14957_v34 = vld [vmem:[#allocation18_spill] sm:$0xff]  ;;  %v7334_v8 = vadd.f32 %v14962_v47, %v14961_v46  ;;  %v7934_v58 = vadd.f32 %v14965_v19, %v7333_v37  ;;  %v14967_v17 = vld [vmem:[#allocation45_spill] sm:$0xff] }
 0x312   : > { %v8147_v27 = vpop.f32.mrf.mxu1  ;;  %v7331_v20 = vadd.f32 %v14956_v39, %v14955_v31  ;;  %v14968_v31 = vld [vmem:[#allocation62_spill] sm:$0xff] }
 0x313   : > { %v8482_v24 = vmax.f32 %v14423_v35, %v14427_v28  ;;  %v14442_v29 = vadd.f32 %v8147_v27, %v7485_v3  ;;  %v7706_v3 = vadd.f32 %v14957_v34, %v7216_v9  ;;  %v7931_v27 = vadd.f32 %v14958_v55, %v7330_v61  ;;  %v14969_v34 = vld [vmem:[#allocation48_spill] sm:$0xff]  ;;  %v14970_v55 = vld [vmem:[#allocation37_spill] sm:$0xff] }
 0x314   : > { %v10528_v32 = vpop.f32.mrf.mxu1  ;;  %v7712_v39 = vadd.f32 %v14968_v31, %v7222_v49  ;;  %v14972_v49 = vld [vmem:[#allocation56_spill] sm:$0xff] }
 0x315   : > { %v8480_v40 = vmax.f32 %v14438_v51, %v14442_v29  ;;  %v14457_v26 = vadd.f32 %v10528_v32, %v7488_v2  ;;  %v8317_v2 = vadd.f32 %v14385_v54, %v7708_v43  ;;  %v14959_v32 = vld [vmem:[#allocation9_spill] sm:$0xff]  ;;  %v8315_v61 = vadd.f32 %v8284_v60, %v7706_v3  ;;  %v14966_v43 = vld [vmem:[#allocation40_spill] sm:$0xff] }
 0x316   : > { %v8150_v4 = vpop.f32.mrf.mxu1  ;;  %v8318_v60 = vadd.f32 %v10534_v12, %v7709_v56  ;;  %v14976_v12 = vld [vmem:[#allocation19_spill] sm:$0xff] }
 0x317   : > { %v8483_v59 = vmax.f32 %v14453_v1, %v14457_v26  ;;  %v14471_v48 = vadd.f32 %v8150_v4, %v7486_v5  ;;  %v14960_v5 = vld [vmem:[#allocation25_spill] sm:$0xff]  ;;  %v14964_v4 = vld [vmem:[#allocation26_spill] sm:$0xff]  ;;  %v7935_v56 = vadd.f32 %v14976_v12, %v7334_v8 }
 0x318   : > { %v10543_v30 = vpop.f32.mrf.mxu1  ;;  %v7336_v21 = vadd.f32 %v14960_v5, %v14959_v32  ;;  %v7707_v9 = vadd.f32 %v14964_v4, %v7217_v33  ;;  %v7932_v32 = vadd.f32 %v14970_v55, %v7331_v20  ;;  %v8300_v33 = vpop.f32.mrf.mxu0  ;;  %v14974_v20 = vld [vmem:[#allocation27_spill] sm:$0xff] }
 0x319   : > { %v8481_v50 = vmax.f32 %v14467_v45, %v14471_v48  ;;  %v8470_v18 = vadd.f32 %v10543_v30, %v7933_v0  ;;  %v7337_v0 = vadd.f32 %v14967_v17, %v14966_v43  ;;  %v7710_v30 = vadd.f32 %v14969_v34, %v7220_v13  ;;  %v14973_v13 = vld [vmem:[#allocation34_spill] sm:$0xff] }
 0x31a   : > { %v8437_v23 = vpop.f32.mrf.mxu1  ;;  %v7713_v46 = vadd.f32 %v14973_v13, %v7223_v6  ;;  %v7711_v47 = vadd.f32 %v14974_v20, %v7221_v16  ;;  %v7937_v4 = vadd.f32 %v14975_v15, %v7336_v21  ;;  %v8321_v6 = vadd.f32 %v10537_v53, %v7712_v39 }
 0x31b   : > { %v8486_v38 = vmax.f32 %v8317_v2, %v8470_v18  ;;  %v8468_v54 = vadd.f32 %v8437_v23, %v7931_v27  ;;  %v14971_v18 = vld [vmem:[#allocation43_spill] sm:$0xff] }
 0x31c   : > { %v10544_v37 = vpop.f32.mrf.mxu1  ;;  %v7335_v5 = vadd.f32 %v14972_v49, %v14971_v18 }
 0x31d   : > { %v8494_v3 = vmax.f32 %v8478_v10, %v8486_v38  ;;  %v8484_v27 = vmax.f32 %v8315_v61, %v8468_v54  ;;  %v8471_v2 = vadd.f32 %v10544_v37, %v7934_v58  ;;  %v14977_v58 = vld [vmem:[#allocation50_spill] sm:$0xff]  ;;  %v8316_v38 = vadd.f32 %v8287_v14, %v7707_v9  ;;  %v10538_v54 = vpop.f32.mrf.mxu0 }
 0x31e   : > { %v8440_v23 = vpop.f32.mrf.mxu1  ;;  %v7938_v61 = vadd.f32 %v14977_v58, %v7337_v0  ;;  %v8319_v14 = vadd.f32 %v8300_v33, %v7710_v30  ;;  %v8322_v39 = vadd.f32 %v10538_v54, %v7713_v46 }
 0x31f   : > { %v8509_v19 = vadd.f32 %v14499_v63, %v8494_v3  ;;  %v8492_v7 = vmax.f32 %v8476_v41, %v8484_v27  ;;  %v8487_v42 = vmax.f32 %v8318_v60, %v8471_v2  ;;  %v8469_v10 = vadd.f32 %v8440_v23, %v7932_v32  ;;  %v14978_v41 = vld [vmem:[#allocation52_spill] sm:$0xff]  ;;  %v8303_v34 = vpop.f32.mrf.mxu0 }
 0x320   : > { %v10547_v16 = vpop.f32.mrf.mxu1  ;;  %v7936_v8 = vadd.f32 %v14978_v41, %v7335_v5  ;;  %v8320_v57 = vadd.f32 %v8303_v34, %v7711_v47 }
 0x321   : > { %vm8517_vm8 = vcmp.gt.f32.partialorder %v8509_v19, 0.0  ;;  %v8525_v21 = vmul.f32 0.01, %v8509_v19  ;;  %v8507_v22 = vadd.f32 %v14499_v63, %v8492_v7  ;;  %v8495_v11 = vmax.f32 %v8479_v25, %v8487_v42 }
 0x322   : > { %v8485_v53 = vmax.f32 %v8316_v38, %v8469_v10  ;;  %v8474_v9 = vadd.f32 %v10547_v16, %v7937_v4  ;;  %v8453_v43 = vpop.f32.mrf.mxu1 }
 0x323   : > { %v8533_v17 = vsel %vm8517_vm8, %v8509_v19, %v8525_v21  ;;  %vm8515_vm9 = vcmp.gt.f32.partialorder %v8507_v22, 0.0  ;;  %v8523_v0 = vmul.f32 0.01, %v8507_v22  ;;  %v8510_v31 = vadd.f32 %v14499_v63, %v8495_v11 }
 0x324   : > { %8541 = vst.msk [vmem:[%s14519_s12 + $0x10] sm:$0xff] %vm760_vm1, %v8533_v17  ;;  %v8493_v52 = vmax.f32 %v8477_v62, %v8485_v53  ;;  %v8490_v44 = vmax.f32 %v8321_v6, %v8474_v9  ;;  %v8472_v25 = vadd.f32 %v8453_v43, %v7935_v56  ;;  %v10548_v30 = vpop.f32.mrf.mxu1 }
 0x325   : > { %v8531_v55 = vsel %vm8515_vm9, %v8507_v22, %v8523_v0  ;;  %vm8518_vm10 = vcmp.gt.f32.partialorder %v8510_v31, 0.0  ;;  %v8526_v32 = vmul.f32 0.01, %v8510_v31  ;;  %v8475_v33 = vadd.f32 %v10548_v30, %v7938_v61 }
 0x326   : > { %8539 = vst.msk [vmem:[%s14519_s12] sm:$0xff] %vm760_vm1, %v8531_v55  ;;  %v8508_v37 = vadd.f32 %v14499_v63, %v8493_v52  ;;  %v8498_v60 = vmax.f32 %v8482_v24, %v8490_v44  ;;  %v8488_v3 = vmax.f32 %v8319_v14, %v8472_v25  ;;  %v8456_v27 = vpop.f32.mrf.mxu1 }
 0x327   : > { %v8534_v36 = vsel %vm8518_vm10, %v8510_v31, %v8526_v32  ;;  %v8491_v62 = vmax.f32 %v8322_v39, %v8475_v33  ;;  %v8473_v2 = vadd.f32 %v8456_v27, %v7936_v8 }
 0x328   : > { %8542 = vst.msk [vmem:[%s14519_s12 + $0x18] sm:$0xff] %vm760_vm1, %v8534_v36  ;;  %vm8516_vm11 = vcmp.gt.f32.partialorder %v8508_v37, 0.0  ;;  %v8524_v18 = vmul.f32 0.01, %v8508_v37  ;;  %v8513_v49 = vadd.f32 %v14499_v63, %v8498_v60  ;;  %v8496_v5 = vmax.f32 %v8480_v40, %v8488_v3 }
 0x329   : > { %v8499_v35 = vmax.f32 %v8483_v59, %v8491_v62  ;;  %v8489_v28 = vmax.f32 %v8320_v57, %v8473_v2 }
 0x32a   : > { %v8532_v24 = vsel %vm8516_vm11, %v8508_v37, %v8524_v18  ;;  %vm8521_vm12 = vcmp.gt.f32.partialorder %v8513_v49, 0.0  ;;  %v8529_v13 = vmul.f32 0.01, %v8513_v49  ;;  %v8511_v46 = vadd.f32 %v14499_v63, %v8496_v5 }
 0x32b   : > { %8540 = vst.msk [vmem:[%s14519_s12 + $0x8] sm:$0xff] %vm760_vm1, %v8532_v24  ;;  %v8514_v20 = vadd.f32 %v14499_v63, %v8499_v35  ;;  %v8497_v51 = vmax.f32 %v8481_v50, %v8489_v28 }
 0x32c   : > { %v8537_v29 = vsel %vm8521_vm12, %v8513_v49, %v8529_v13  ;;  %vm8519_vm13 = vcmp.gt.f32.partialorder %v8511_v46, 0.0  ;;  %v8527_v1 = vmul.f32 0.01, %v8511_v46 }
 0x32d   : > { %8545 = vst.msk [vmem:[%s14519_s12 + $0x30] sm:$0xff] %vm760_vm1, %v8537_v29  ;;  %vm8522_vm14 = vcmp.gt.f32.partialorder %v8514_v20, 0.0  ;;  %v8530_v40 = vmul.f32 0.01, %v8514_v20  ;;  %v8512_v26 = vadd.f32 %v14499_v63, %v8497_v51 }
 0x32e   : > { %v8535_v59 = vsel %vm8519_vm13, %v8511_v46, %v8527_v1 }
 0x32f   : > { %8543 = vst.msk [vmem:[%s14519_s12 + $0x20] sm:$0xff] %vm760_vm1, %v8535_v59  ;;  %v8538_v47 = vsel %vm8522_vm14, %v8514_v20, %v8530_v40  ;;  %vm8520_vm15 = vcmp.gt.f32.partialorder %v8512_v26, 0.0  ;;  %v8528_v15 = vmul.f32 0.01, %v8512_v26 }
 0x330   : > { %8546 = vst.msk [vmem:[%s14519_s12 + $0x38] sm:$0xff] %vm760_vm1, %v8538_v47 }
 0x331   : > { %v8536_v45 = vsel %vm8520_vm15, %v8512_v26, %v8528_v15 }
 0x332   : > { %8544 = vst.msk [vmem:[%s14519_s12 + $0x28] sm:$0xff] %vm760_vm1, %v8536_v45 }
 0x333 PF: > { %s13_s14 = sadd.s32 1, %s10784_s14   ;;  %s14979_s12 = smov %s10780_s13 }
 0x334   : > { %p10_p5 = scmp.ge.s32.totalorder %s13_s14, 4   ;;  %s14980_s13 = smov %s14982_s15 }
 0x336   :  { %12 = sbr.rel (!%p10_p5) target bundleno = 2 (0x2), region = 89 }

</bundles_post_ra>
